<compile_context>
chip_gen: v6e
topology: v6e:2x2x1
jax: 0.10.0
libtpu: 0.0.40
codegen_flags: <defaults>
</compile_context>

<pallas_src>
import math
from functools import partial

import jax
import jax.numpy as jnp
from jax.experimental import pallas as pl
from jax.experimental.pallas import tpu as pltpu


# ----------------------------- in-kernel helpers ----------------------------

def _rms(x, w):
    # T5LayerNorm: no mean subtraction, fp32 stats, eps=1e-6.
    var = jnp.mean(x * x, axis=-1, keepdims=True)
    return x * jax.lax.rsqrt(var + 1e-6) * w


def _attend(q, k, v, bias):
    # T5 attention: NO 1/sqrt(d_k) scaling; additive bias (pos bias + mask); fp32 softmax.
    s = jax.lax.dot_general(q.astype(jnp.bfloat16), k.astype(jnp.bfloat16),
                            (((1,), (1,)), ((), ())),
                            preferred_element_type=jnp.float32)
    s = s + bias
    s = s - jnp.max(s, axis=-1, keepdims=True)
    p = jnp.exp(s)
    p = p * pl.reciprocal(jnp.sum(p, axis=-1, keepdims=True), approx=True)
    return jnp.dot(p.astype(jnp.bfloat16), v.astype(jnp.bfloat16),
                   preferred_element_type=jnp.float32)


# ------------------------------- fused kernel --------------------------------

def _sign2thai_kernel(
        x_ref, pw_ref,
        e_ln1_ref, e_wqkv_ref, e_wo_ref, e_ln2_ref, e_wi_ref, e_wf_ref, e_fln_ref, e_bias_ref,
        ids_ref, emb_ref,
        d_ln1_ref, d_wqkv_ref, d_wo1_ref, d_lnc_ref, d_wqc_ref, d_wkvc_ref, d_woc_ref,
        d_ln2_ref, d_wi_ref, d_wf_ref, d_fln_ref,
        self_bias_ref, cross_mask_ref, lm_ref, labels_ref,
        enc_out_ref, logits_ref, loss_ref,
        *, vocab):
    L = e_ln1_ref.shape[0]
    B, H, S, _ = e_bias_ref.shape
    Tp = self_bias_ref.shape[1]
    inner = e_wo_ref.shape[1]
    Dk = inner // H
    D = pw_ref.shape[1]
    Vp = lm_ref.shape[1]
    Md = ids_ref.shape[0]                      # B * Tp

    def mm(a, w):
        # bf16 MXU matmul, f32 accumulate (weights are pre-packed bf16).
        return jnp.dot(a.astype(jnp.bfloat16), w, preferred_element_type=jnp.float32)

    def self_attn(h, ln_w, wqkv, wo, bias_get, rows):
        normed = _rms(h, ln_w)
        qkv = mm(normed, wqkv)                                             # [M, 3*inner]
        # per-head lane slices hoisted out of the batch loop
        qh = [qkv[:, hh * Dk:(hh + 1) * Dk] for hh in range(H)]
        kh = [qkv[:, inner + hh * Dk:inner + (hh + 1) * Dk] for hh in range(H)]
        vh = [qkv[:, 2 * inner + hh * Dk:2 * inner + (hh + 1) * Dk] for hh in range(H)]
        outs = []
        for b in range(B):
            r0 = b * rows
            ctx = jnp.concatenate(
                [_attend(qh[hh][r0:r0 + rows], kh[hh][r0:r0 + rows],
                         vh[hh][r0:r0 + rows], bias_get(b, hh)) for hh in range(H)],
                axis=1)                                                    # [rows, inner]
            outs.append(mm(ctx, wo))                                       # one matmul per batch
        return jnp.concatenate(outs, axis=0)                               # [B*rows, D]

    def cross_attn(h, enc, ln_w, wq, wkv, wo, bias_get, rows_q, rows_k):
        normed = _rms(h, ln_w)
        q_all = mm(normed, wq)                                             # [Mq, inner]
        kv = mm(enc, wkv)                                                  # [Mk, 2*inner]
        qh = [q_all[:, hh * Dk:(hh + 1) * Dk] for hh in range(H)]
        kh = [kv[:, hh * Dk:(hh + 1) * Dk] for hh in range(H)]
        vh = [kv[:, inner + hh * Dk:inner + (hh + 1) * Dk] for hh in range(H)]
        outs = []
        for b in range(B):
            r0, e0 = b * rows_q, b * rows_k
            ctx = jnp.concatenate(
                [_attend(qh[hh][r0:r0 + rows_q], kh[hh][e0:e0 + rows_k],
                         vh[hh][e0:e0 + rows_k], bias_get(b)) for hh in range(H)],
                axis=1)
            outs.append(mm(ctx, wo))
        return jnp.concatenate(outs, axis=0)

    def ffn(h, ln_w, wi, wf):
        ff = jnp.maximum(mm(_rms(h, ln_w), wi), 0.0)
        return mm(ff, wf)

    # ------------------------------ encoder ------------------------------
    # projection: Linear(input_dim -> d_model, bias=False); K zero-padded to 512.
    h = mm(x_ref[...], pw_ref[...])
    for l in range(L):
        h = h + self_attn(h, e_ln1_ref[l], e_wqkv_ref[l], e_wo_ref[l],
                          lambda b, hh: e_bias_ref[b, hh], S)
        h = h + ffn(h, e_ln2_ref[l], e_wi_ref[l], e_wf_ref[l])
    enc = _rms(h, e_fln_ref[...])
    enc_out_ref[...] = enc                                                  # encoder_last_hidden_state

    # ------------------------------ decoder ------------------------------
    # embedding gather in-kernel: one-hot(ids) @ shared_pad  (pad rows are zero, ids < vocab)
    col = jax.lax.broadcasted_iota(jnp.int32, (Md, Vp), 1)
    onehot = (col == ids_ref[...]).astype(jnp.bfloat16)
    h = jnp.dot(onehot, emb_ref[...], preferred_element_type=jnp.float32)   # [Md, D]

    for l in range(L):
        # NOTE: decoder position bias is built over the padded length Tp; correct for real
        # positions (bias depends only on j-i and the causal mask blocks pad keys).
        h = h + self_attn(h, d_ln1_ref[l], d_wqkv_ref[l], d_wo1_ref[l],
                          lambda b, hh: self_bias_ref[hh], Tp)
        h = h + cross_attn(h, enc, d_lnc_ref[l], d_wqc_ref[l], d_wkvc_ref[l], d_woc_ref[l],
                           lambda b: cross_mask_ref[b], Tp, S)
        h = h + ffn(h, d_ln2_ref[l], d_wi_ref[l], d_wf_ref[l])

    # final RMSNorm + tied-embedding rescale + LM head (vocab padded to 128 lanes)
    dec = _rms(h, d_fln_ref[...]) * (D ** -0.5)
    logits = mm(dec, lm_ref[...])                                           # [Md, Vp]
    lg = jnp.where(col < vocab, logits, jnp.float32(-1e30))                 # mask pad vocab cols
    logits_ref[...] = lg                                                    # wrapper slices [:, :vocab]

    # fused masked cross-entropy (ignore_index = -100)
    m = jnp.max(lg, axis=-1, keepdims=True)
    lse = m + jnp.log(jnp.sum(jnp.exp(lg - m), axis=-1, keepdims=True))
    lbl = labels_ref[...]                                                   # [Md, 1] int32
    valid = lbl != -100
    safe = jnp.where(valid, lbl, 0)
    tgt = jnp.sum(jnp.where(col == safe, lg, 0.0), axis=-1, keepdims=True)
    nll = (lse - tgt) * valid.astype(jnp.float32)
    total = jnp.sum(nll, axis=0, keepdims=True)                             # [1, 1]
    count = jnp.sum(valid.astype(jnp.float32), axis=0, keepdims=True)
    # NOTE: if every label is -100 this returns 0 (torch would return NaN).
    loss_ref[...] = total * pl.reciprocal(jnp.maximum(count, 1.0), approx=True)


# ------------------------------ model config --------------------------------

class Cfg:
    vocab_size = 119          # after resize_token_embeddings(119)
    input_dim = 483           # landmark feature dim
    d_model = 32              # scaled-down t5-small style config
    d_kv = 8
    num_heads = 4
    d_ff = 64
    num_layers = 2
    num_buckets = 32
    max_distance = 128


def init_params(key, cfg):
    keys = iter(jax.random.split(key, 256))

    def w(shape, scale=0.02):
        return jax.random.normal(next(keys), shape, jnp.float32) * scale

    inner = cfg.num_heads * cfg.d_kv

    def attn_params():
        return dict(q=w((cfg.d_model, inner)), k=w((cfg.d_model, inner)),
                    v=w((cfg.d_model, inner)), o=w((inner, cfg.d_model)))

    def layer_params(is_decoder):
        p = dict(
            ln_self=jnp.ones((cfg.d_model,), jnp.float32),
            self_attn=attn_params(),
            ln_ff=jnp.ones((cfg.d_model,), jnp.float32),
            wi=w((cfg.d_model, cfg.d_ff)),
            wo=w((cfg.d_ff, cfg.d_model)),
        )
        if is_decoder:
            p["ln_cross"] = jnp.ones((cfg.d_model,), jnp.float32)
            p["cross_attn"] = attn_params()
        return p

    return dict(
        projection=w((cfg.input_dim, cfg.d_model)),      # Linear(483 -> d_model), no bias
        shared=w((cfg.vocab_size, cfg.d_model)),         # tied token embedding / lm_head
        enc_rel_bias=w((cfg.num_buckets, cfg.num_heads)),
        dec_rel_bias=w((cfg.num_buckets, cfg.num_heads)),
        enc_layers=[layer_params(False) for _ in range(cfg.num_layers)],
        dec_layers=[layer_params(True) for _ in range(cfg.num_layers)],
        enc_final_ln=jnp.ones((cfg.d_model,), jnp.float32),
        dec_final_ln=jnp.ones((cfg.d_model,), jnp.float32),
    )


def pack_params(params, cfg):
    """One-time repack: fused QKV/KV weights, stacked layers, lane-dense zero padding,
    matmul weights in bf16 (MXU-native), norm weights in f32."""
    D = cfg.d_model
    Fp = ((cfg.input_dim + 127) // 128) * 128    # 483 -> 512
    Vp = ((cfg.vocab_size + 127) // 128) * 128   # 119 -> 128
    bf = jnp.bfloat16

    def ln(v):
        return v.reshape(1, D)

    def stack(fn, layers, dtype=bf):
        return jnp.stack([fn(lp) for lp in layers]).astype(dtype)

    enc, dec = params["enc_layers"], params["dec_layers"]

    proj_w = jnp.zeros((Fp, D), jnp.float32).at[:cfg.input_dim, :].set(params["projection"])
    shared_pad = jnp.zeros((Vp, D), jnp.float32).at[:cfg.vocab_size, :].set(params["shared"])
    lm_w = jnp.zeros((D, Vp), jnp.float32).at[:, :cfg.vocab_size].set(params["shared"].T)

    return dict(
        proj_w=proj_w.astype(bf),
        shared_pad=shared_pad.astype(bf),
        lm_w=lm_w.astype(bf),
        enc_rel_bias=params["enc_rel_bias"],
        dec_rel_bias=params["dec_rel_bias"],
        enc_ln1=stack(lambda p: ln(p["ln_self"]), enc, jnp.float32),
        enc_wqkv=stack(lambda p: jnp.concatenate(
            [p["self_attn"]["q"], p["self_attn"]["k"], p["self_attn"]["v"]], axis=1), enc),
        enc_wo=stack(lambda p: p["self_attn"]["o"], enc),
        enc_ln2=stack(lambda p: ln(p["ln_ff"]), enc, jnp.float32),
        enc_wi=stack(lambda p: p["wi"], enc),
        enc_wf=stack(lambda p: p["wo"], enc),
        enc_fln=ln(params["enc_final_ln"]),
        dec_ln1=stack(lambda p: ln(p["ln_self"]), dec, jnp.float32),
        dec_wqkv=stack(lambda p: jnp.concatenate(
            [p["self_attn"]["q"], p["self_attn"]["k"], p["self_attn"]["v"]], axis=1), dec),
        dec_wo1=stack(lambda p: p["self_attn"]["o"], dec),
        dec_lnc=stack(lambda p: ln(p["ln_cross"]), dec, jnp.float32),
        dec_wqc=stack(lambda p: p["cross_attn"]["q"], dec),
        dec_wkvc=stack(lambda p: jnp.concatenate(
            [p["cross_attn"]["k"], p["cross_attn"]["v"]], axis=1), dec),
        dec_woc=stack(lambda p: p["cross_attn"]["o"], dec),
        dec_ln2=stack(lambda p: ln(p["ln_ff"]), dec, jnp.float32),
        dec_wi=stack(lambda p: p["wi"], dec),
        dec_wf=stack(lambda p: p["wo"], dec),
        dec_fln=ln(params["dec_final_ln"]),
    )


# ------------------------------ T5 glue (JAX) --------------------------------

def _relative_position_bucket(relative_position, bidirectional, num_buckets, max_distance):
    relative_buckets = jnp.zeros_like(relative_position)
    if bidirectional:
        num_buckets = num_buckets // 2
        relative_buckets = relative_buckets + (relative_position > 0).astype(jnp.int32) * num_buckets
        relative_position = jnp.abs(relative_position)
    else:
        relative_position = -jnp.minimum(relative_position, 0)
    max_exact = num_buckets // 2
    is_small = relative_position < max_exact
    rp = relative_position.astype(jnp.float32)
    rel_if_large = max_exact + (
        jnp.log(jnp.maximum(rp, 1.0) / max_exact) / math.log(max_distance / max_exact)
        * (num_buckets - max_exact)
    ).astype(jnp.int32)
    rel_if_large = jnp.minimum(rel_if_large, num_buckets - 1)
    return relative_buckets + jnp.where(is_small, relative_position, rel_if_large)


def compute_position_bias(rel_embed, q_len, k_len, bidirectional, cfg):
    context_position = jnp.arange(q_len)[:, None]
    memory_position = jnp.arange(k_len)[None, :]
    relative_position = memory_position - context_position
    buckets = _relative_position_bucket(relative_position, bidirectional,
                                        cfg.num_buckets, cfg.max_distance)
    values = rel_embed[buckets]                    # [q, k, H]
    return jnp.transpose(values, (2, 0, 1))[None]  # [1, H, q, k]


def shift_right(labels, decoder_start_token_id=0, pad_token_id=0):
    shifted = jnp.concatenate(
        [jnp.full((labels.shape[0], 1), decoder_start_token_id, labels.dtype),
         labels[:, :-1]], axis=1)
    return jnp.where(shifted == -100, pad_token_id, shifted)


# ------------------------------- forward pass --------------------------------

def sign2thai_t5_forward(pp, cfg, landmarks, attention_mask=None,
                         decoder_input_ids=None, labels=None):
    B, S, F = landmarks.shape
    D = cfg.d_model
    Fp = pp["proj_w"].shape[0]
    Vp = pp["lm_w"].shape[1]
    if attention_mask is None:
        attention_mask = jnp.ones((B, S), jnp.int32)
    NEG = -1e9

    # TODO(synk): T5 dropout layers are omitted (eval-mode semantics; dropout is stochastic).

    # ---------------- encoder-side glue ----------------
    x2d = jnp.pad(landmarks.reshape(B * S, F), ((0, 0), (0, Fp - F)))        # K padded w/ zeros
    enc_ext = (1.0 - attention_mask.astype(jnp.float32)) * NEG               # [B, S]
    enc_pos = compute_position_bias(pp["enc_rel_bias"], S, S, True, cfg)     # [1, H, S, S]
    enc_bias = enc_pos + enc_ext[:, None, None, :]                           # [B, H, S, S]

    # ---------------- decoder-side glue ----------------
    if decoder_input_ids is None and labels is not None:
        decoder_input_ids = shift_right(labels)
    T = decoder_input_ids.shape[1]
    Tp = ((T + 7) // 8) * 8                                                  # sublane-align seq
    dec_ids = jnp.pad(decoder_input_ids, ((0, 0), (0, Tp - T))).astype(jnp.int32)
    if labels is not None:
        labels_p = jnp.pad(labels, ((0, 0), (0, Tp - T)), constant_values=-100).astype(jnp.int32)
    else:
        labels_p = jnp.full((B, Tp), -100, jnp.int32)

    causal = jnp.where(jnp.arange(Tp)[:, None] >= jnp.arange(Tp)[None, :], 0.0, NEG)
    dec_pos = compute_position_bias(pp["dec_rel_bias"], Tp, Tp, False, cfg)  # [1, H, Tp, Tp]
    self_bias = (dec_pos + causal[None, None])[0]                            # [H, Tp, Tp]
    cross_mask = enc_ext[:, None, :]                                         # [B, 1, S]

    # ---------------- ONE fused Pallas kernel (grid-less, fully VMEM-resident) ------------
    enc_out2d, logits_p, loss2d = pl.pallas_call(
        partial(_sign2thai_kernel, vocab=cfg.vocab_size),
        out_shape=(jax.ShapeDtypeStruct((B * S, D), jnp.float32),
                   jax.ShapeDtypeStruct((B * Tp, Vp), jnp.float32),
                   jax.ShapeDtypeStruct((1, 1), jnp.float32)),
    )(x2d, pp["proj_w"],
      pp["enc_ln1"], pp["enc_wqkv"], pp["enc_wo"], pp["enc_ln2"], pp["enc_wi"], pp["enc_wf"],
      pp["enc_fln"], enc_bias,
      dec_ids.reshape(B * Tp, 1), pp["shared_pad"],
      pp["dec_ln1"], pp["dec_wqkv"], pp["dec_wo1"], pp["dec_lnc"], pp["dec_wqc"],
      pp["dec_wkvc"], pp["dec_woc"], pp["dec_ln2"], pp["dec_wi"], pp["dec_wf"], pp["dec_fln"],
      self_bias, cross_mask, pp["lm_w"],
      labels_p.reshape(B * Tp, 1))

    logits = logits_p.reshape(B, Tp, Vp)[:, :T, :cfg.vocab_size]
    loss = loss2d[0, 0] if labels is not None else None

    # TODO(synk): generate() (autoregressive decoding loop / beam search) is not implemented here.
    return dict(loss=loss,
                logits=logits,
                encoder_last_hidden_state=enc_out2d.reshape(B, S, D))


# ---------------------------------- main -------------------------------------

if __name__ == "__main__":
    cfg = Cfg()
    key = jax.random.PRNGKey(0)
    pkey, lkey, dkey, ykey = jax.random.split(key, 4)
    params = init_params(pkey, cfg)
    packed = pack_params(params, cfg)

    B, S, T = 2, 8, 6
    landmarks = jax.random.normal(lkey, (B, S, cfg.input_dim), jnp.float32)
    attention_mask = jnp.ones((B, S), jnp.int32).at[1, 6:].set(0)
    decoder_input_ids = jax.random.randint(dkey, (B, T), 0, cfg.vocab_size)
    labels = jax.random.randint(ykey, (B, T), 0, cfg.vocab_size)

    fwd = jax.jit(partial(sign2thai_t5_forward, packed, cfg))
    out = fwd(landmarks, attention_mask, decoder_input_ids, labels)
    jax.block_until_ready(out)

    assert out["logits"].shape == (B, T, cfg.vocab_size)
    assert out["encoder_last_hidden_state"].shape == (B, S, cfg.d_model)
    assert bool(jnp.isfinite(out["loss"]))
    print("KERNEL_OK")
</pallas_src>

<mosaic_0001>
module attributes {stable_mosaic.version = 11 : i64} {
  func.func @_sign2thai_kernel(%arg0: memref<16x512xf32, #tpu.memory_space<vmem>>, %arg1: memref<512x32xbf16, #tpu.memory_space<vmem>>, %arg2: memref<2x1x32xf32, #tpu.memory_space<vmem>>, %arg3: memref<2x32x96xbf16, #tpu.memory_space<vmem>>, %arg4: memref<2x32x32xbf16, #tpu.memory_space<vmem>>, %arg5: memref<2x1x32xf32, #tpu.memory_space<vmem>>, %arg6: memref<2x32x64xbf16, #tpu.memory_space<vmem>>, %arg7: memref<2x64x32xbf16, #tpu.memory_space<vmem>>, %arg8: memref<1x32xf32, #tpu.memory_space<vmem>>, %arg9: memref<2x4x8x8xf32, #tpu.memory_space<vmem>>, %arg10: memref<16x1xi32, #tpu.memory_space<vmem>>, %arg11: memref<128x32xbf16, #tpu.memory_space<vmem>>, %arg12: memref<2x1x32xf32, #tpu.memory_space<vmem>>, %arg13: memref<2x32x96xbf16, #tpu.memory_space<vmem>>, %arg14: memref<2x32x32xbf16, #tpu.memory_space<vmem>>, %arg15: memref<2x1x32xf32, #tpu.memory_space<vmem>>, %arg16: memref<2x32x32xbf16, #tpu.memory_space<vmem>>, %arg17: memref<2x32x64xbf16, #tpu.memory_space<vmem>>, %arg18: memref<2x32x32xbf16, #tpu.memory_space<vmem>>, %arg19: memref<2x1x32xf32, #tpu.memory_space<vmem>>, %arg20: memref<2x32x64xbf16, #tpu.memory_space<vmem>>, %arg21: memref<2x64x32xbf16, #tpu.memory_space<vmem>>, %arg22: memref<1x32xf32, #tpu.memory_space<vmem>>, %arg23: memref<4x8x8xf32, #tpu.memory_space<vmem>>, %arg24: memref<2x1x8xf32, #tpu.memory_space<vmem>>, %arg25: memref<32x128xbf16, #tpu.memory_space<vmem>>, %arg26: memref<16x1xi32, #tpu.memory_space<vmem>>, %arg27: memref<16x32xf32, #tpu.memory_space<vmem>>, %arg28: memref<16x128xf32, #tpu.memory_space<vmem>>, %arg29: memref<1x1xf32, #tpu.memory_space<vmem>>) attributes {dimension_semantics = [], scalar_prefetch = 0 : i64, scratch_operands = 0 : i64, tpu.core_type = #tpu.core_type<tc>} {
    %c0 = arith.constant 0 : index
    %c0_0 = arith.constant 0 : index
    %0 = vector.load %arg0[%c0, %c0_0] : memref<16x512xf32, #tpu.memory_space<vmem>>, vector<16x512xf32>
    %c0_1 = arith.constant 0 : index
    %c0_2 = arith.constant 0 : index
    %1 = vector.load %arg1[%c0_1, %c0_2] : memref<512x32xbf16, #tpu.memory_space<vmem>>, vector<512x32xbf16>
    %2 = arith.truncf %0 : vector<16x512xf32> to vector<16x512xbf16>
    %cst = arith.constant dense<0.000000e+00> : vector<16x32xf32>
    %3 = tpu.matmul %2, %1, %cst {dimension_numbers = #tpu.dot_dimension_numbers<[1], [0], [0], [1], [0, 0, 1, 1], [], []>} : vector<16x512xbf16>, vector<512x32xbf16>, vector<16x32xf32> -> vector<16x32xf32>
    %c0_3 = arith.constant 0 : index
    %c0_4 = arith.constant 0 : index
    %c0_5 = arith.constant 0 : index
    %4 = vector.load %arg2[%c0_3, %c0_4, %c0_5] : memref<2x1x32xf32, #tpu.memory_space<vmem>>, vector<1x1x32xf32>
    %5 = vector.shape_cast %4 : vector<1x1x32xf32> to vector<1x32xf32>
    %c0_6 = arith.constant 0 : index
    %c0_7 = arith.constant 0 : index
    %c0_8 = arith.constant 0 : index
    %6 = vector.load %arg3[%c0_6, %c0_7, %c0_8] : memref<2x32x96xbf16, #tpu.memory_space<vmem>>, vector<1x32x96xbf16>
    %7 = vector.shape_cast %6 : vector<1x32x96xbf16> to vector<32x96xbf16>
    %c0_9 = arith.constant 0 : index
    %c0_10 = arith.constant 0 : index
    %c0_11 = arith.constant 0 : index
    %8 = vector.load %arg4[%c0_9, %c0_10, %c0_11] : memref<2x32x32xbf16, #tpu.memory_space<vmem>>, vector<1x32x32xbf16>
    %9 = vector.shape_cast %8 : vector<1x32x32xbf16> to vector<32x32xbf16>
    %10 = arith.mulf %3, %3 : vector<16x32xf32>
    %cst_12 = arith.constant dense<0.000000e+00> : vector<16xf32>
    %11 = vector.multi_reduction <add>, %10, %cst_12 [1] : vector<16x32xf32> to vector<16xf32>
    %12 = vector.shape_cast %11 : vector<16xf32> to vector<16x1xf32>
    %cst_13 = arith.constant 3.200000e+01 : f32
    %13 = vector.broadcast %cst_13 : f32 to vector<16x1xf32>
    %14 = arith.divf %12, %13 : vector<16x1xf32>
    %cst_14 = arith.constant 9.99999997E-7 : f32
    %15 = vector.broadcast %cst_14 : f32 to vector<16x1xf32>
    %16 = arith.addf %14, %15 : vector<16x1xf32>
    %17 = math.rsqrt %16 : vector<16x1xf32>
    %18 = vector.broadcast %17 : vector<16x1xf32> to vector<16x32xf32>
    %19 = arith.mulf %3, %18 : vector<16x32xf32>
    %20 = vector.broadcast %5 : vector<1x32xf32> to vector<16x32xf32>
    %21 = arith.mulf %19, %20 : vector<16x32xf32>
    %22 = arith.truncf %21 : vector<16x32xf32> to vector<16x32xbf16>
    %cst_15 = arith.constant dense<0.000000e+00> : vector<16x96xf32>
    %23 = tpu.matmul %22, %7, %cst_15 {dimension_numbers = #tpu.dot_dimension_numbers<[1], [0], [0], [1], [0, 0, 1, 1], [], []>} : vector<16x32xbf16>, vector<32x96xbf16>, vector<16x96xf32> -> vector<16x96xf32>
    %24 = vector.extract_strided_slice %23 {offsets = [0, 0], sizes = [16, 8], strides = [1, 1]} : vector<16x96xf32> to vector<16x8xf32>
    %25 = vector.extract_strided_slice %23 {offsets = [0, 8], sizes = [16, 8], strides = [1, 1]} : vector<16x96xf32> to vector<16x8xf32>
    %26 = vector.extract_strided_slice %23 {offsets = [0, 16], sizes = [16, 8], strides = [1, 1]} : vector<16x96xf32> to vector<16x8xf32>
    %27 = vector.extract_strided_slice %23 {offsets = [0, 24], sizes = [16, 8], strides = [1, 1]} : vector<16x96xf32> to vector<16x8xf32>
    %28 = vector.extract_strided_slice %23 {offsets = [0, 32], sizes = [16, 8], strides = [1, 1]} : vector<16x96xf32> to vector<16x8xf32>
    %29 = vector.extract_strided_slice %23 {offsets = [0, 40], sizes = [16, 8], strides = [1, 1]} : vector<16x96xf32> to vector<16x8xf32>
    %30 = vector.extract_strided_slice %23 {offsets = [0, 48], sizes = [16, 8], strides = [1, 1]} : vector<16x96xf32> to vector<16x8xf32>
    %31 = vector.extract_strided_slice %23 {offsets = [0, 56], sizes = [16, 8], strides = [1, 1]} : vector<16x96xf32> to vector<16x8xf32>
    %32 = vector.extract_strided_slice %23 {offsets = [0, 64], sizes = [16, 8], strides = [1, 1]} : vector<16x96xf32> to vector<16x8xf32>
    %33 = vector.extract_strided_slice %23 {offsets = [0, 72], sizes = [16, 8], strides = [1, 1]} : vector<16x96xf32> to vector<16x8xf32>
    %34 = vector.extract_strided_slice %23 {offsets = [0, 80], sizes = [16, 8], strides = [1, 1]} : vector<16x96xf32> to vector<16x8xf32>
    %35 = vector.extract_strided_slice %23 {offsets = [0, 88], sizes = [16, 8], strides = [1, 1]} : vector<16x96xf32> to vector<16x8xf32>
    %36 = vector.extract_strided_slice %24 {offsets = [0, 0], sizes = [8, 8], strides = [1, 1]} : vector<16x8xf32> to vector<8x8xf32>
    %37 = vector.extract_strided_slice %28 {offsets = [0, 0], sizes = [8, 8], strides = [1, 1]} : vector<16x8xf32> to vector<8x8xf32>
    %38 = vector.extract_strided_slice %32 {offsets = [0, 0], sizes = [8, 8], strides = [1, 1]} : vector<16x8xf32> to vector<8x8xf32>
    %c0_16 = arith.constant 0 : index
    %c0_17 = arith.constant 0 : index
    %c0_18 = arith.constant 0 : index
    %c0_19 = arith.constant 0 : index
    %39 = vector.load %arg9[%c0_16, %c0_17, %c0_18, %c0_19] : memref<2x4x8x8xf32, #tpu.memory_space<vmem>>, vector<1x1x8x8xf32>
    %40 = vector.shape_cast %39 : vector<1x1x8x8xf32> to vector<8x8xf32>
    %41 = arith.truncf %36 : vector<8x8xf32> to vector<8x8xbf16>
    %42 = arith.truncf %37 : vector<8x8xf32> to vector<8x8xbf16>
    %cst_20 = arith.constant dense<0.000000e+00> : vector<8x8xf32>
    %43 = tpu.matmul %41, %42, %cst_20 {dimension_numbers = #tpu.dot_dimension_numbers<[1], [1], [0], [0], [0, 0, 1, 0], [], []>} : vector<8x8xbf16>, vector<8x8xbf16>, vector<8x8xf32> -> vector<8x8xf32>
    %44 = arith.addf %43, %40 : vector<8x8xf32>
    %cst_21 = arith.constant dense<0xFF800000> : vector<8xf32>
    %45 = vector.multi_reduction <maximumf>, %44, %cst_21 [1] : vector<8x8xf32> to vector<8xf32>
    %46 = vector.shape_cast %45 : vector<8xf32> to vector<8x1xf32>
    %47 = vector.broadcast %46 : vector<8x1xf32> to vector<8x8xf32>
    %48 = arith.subf %44, %47 : vector<8x8xf32>
    %49 = math.exp %48 : vector<8x8xf32>
    %cst_22 = arith.constant dense<0.000000e+00> : vector<8xf32>
    %50 = vector.multi_reduction <add>, %49, %cst_22 [1] : vector<8x8xf32> to vector<8xf32>
    %51 = vector.shape_cast %50 : vector<8xf32> to vector<8x1xf32>
    %52 = tpu.reciprocal %51 {approx = true} : vector<8x1xf32> -> vector<8x1xf32>
    %53 = vector.broadcast %52 : vector<8x1xf32> to vector<8x8xf32>
    %54 = arith.mulf %49, %53 : vector<8x8xf32>
    %55 = arith.truncf %54 : vector<8x8xf32> to vector<8x8xbf16>
    %56 = arith.truncf %38 : vector<8x8xf32> to vector<8x8xbf16>
    %cst_23 = arith.constant dense<0.000000e+00> : vector<8x8xf32>
    %57 = tpu.matmul %55, %56, %cst_23 {dimension_numbers = #tpu.dot_dimension_numbers<[1], [0], [0], [1], [0, 0, 1, 1], [], []>} : vector<8x8xbf16>, vector<8x8xbf16>, vector<8x8xf32> -> vector<8x8xf32>
    %58 = vector.extract_strided_slice %25 {offsets = [0, 0], sizes = [8, 8], strides = [1, 1]} : vector<16x8xf32> to vector<8x8xf32>
    %59 = vector.extract_strided_slice %29 {offsets = [0, 0], sizes = [8, 8], strides = [1, 1]} : vector<16x8xf32> to vector<8x8xf32>
    %60 = vector.extract_strided_slice %33 {offsets = [0, 0], sizes = [8, 8], strides = [1, 1]} : vector<16x8xf32> to vector<8x8xf32>
    %c0_24 = arith.constant 0 : index
    %c1 = arith.constant 1 : index
    %c0_25 = arith.constant 0 : index
    %c0_26 = arith.constant 0 : index
    %61 = vector.load %arg9[%c0_24, %c1, %c0_25, %c0_26] : memref<2x4x8x8xf32, #tpu.memory_space<vmem>>, vector<1x1x8x8xf32>
    %62 = vector.shape_cast %61 : vector<1x1x8x8xf32> to vector<8x8xf32>
    %63 = arith.truncf %58 : vector<8x8xf32> to vector<8x8xbf16>
    %64 = arith.truncf %59 : vector<8x8xf32> to vector<8x8xbf16>
    %cst_27 = arith.constant dense<0.000000e+00> : vector<8x8xf32>
    %65 = tpu.matmul %63, %64, %cst_27 {dimension_numbers = #tpu.dot_dimension_numbers<[1], [1], [0], [0], [0, 0, 1, 0], [], []>} : vector<8x8xbf16>, vector<8x8xbf16>, vector<8x8xf32> -> vector<8x8xf32>
    %66 = arith.addf %65, %62 : vector<8x8xf32>
    %cst_28 = arith.constant dense<0xFF800000> : vector<8xf32>
    %67 = vector.multi_reduction <maximumf>, %66, %cst_28 [1] : vector<8x8xf32> to vector<8xf32>
    %68 = vector.shape_cast %67 : vector<8xf32> to vector<8x1xf32>
    %69 = vector.broadcast %68 : vector<8x1xf32> to vector<8x8xf32>
    %70 = arith.subf %66, %69 : vector<8x8xf32>
    %71 = math.exp %70 : vector<8x8xf32>
    %cst_29 = arith.constant dense<0.000000e+00> : vector<8xf32>
    %72 = vector.multi_reduction <add>, %71, %cst_29 [1] : vector<8x8xf32> to vector<8xf32>
    %73 = vector.shape_cast %72 : vector<8xf32> to vector<8x1xf32>
    %74 = tpu.reciprocal %73 {approx = true} : vector<8x1xf32> -> vector<8x1xf32>
    %75 = vector.broadcast %74 : vector<8x1xf32> to vector<8x8xf32>
    %76 = arith.mulf %71, %75 : vector<8x8xf32>
    %77 = arith.truncf %76 : vector<8x8xf32> to vector<8x8xbf16>
    %78 = arith.truncf %60 : vector<8x8xf32> to vector<8x8xbf16>
    %cst_30 = arith.constant dense<0.000000e+00> : vector<8x8xf32>
    %79 = tpu.matmul %77, %78, %cst_30 {dimension_numbers = #tpu.dot_dimension_numbers<[1], [0], [0], [1], [0, 0, 1, 1], [], []>} : vector<8x8xbf16>, vector<8x8xbf16>, vector<8x8xf32> -> vector<8x8xf32>
    %80 = vector.extract_strided_slice %26 {offsets = [0, 0], sizes = [8, 8], strides = [1, 1]} : vector<16x8xf32> to vector<8x8xf32>
    %81 = vector.extract_strided_slice %30 {offsets = [0, 0], sizes = [8, 8], strides = [1, 1]} : vector<16x8xf32> to vector<8x8xf32>
    %82 = vector.extract_strided_slice %34 {offsets = [0, 0], sizes = [8, 8], strides = [1, 1]} : vector<16x8xf32> to vector<8x8xf32>
    %c0_31 = arith.constant 0 : index
    %c2 = arith.constant 2 : index
    %c0_32 = arith.constant 0 : index
    %c0_33 = arith.constant 0 : index
    %83 = vector.load %arg9[%c0_31, %c2, %c0_32, %c0_33] : memref<2x4x8x8xf32, #tpu.memory_space<vmem>>, vector<1x1x8x8xf32>
    %84 = vector.shape_cast %83 : vector<1x1x8x8xf32> to vector<8x8xf32>
    %85 = arith.truncf %80 : vector<8x8xf32> to vector<8x8xbf16>
    %86 = arith.truncf %81 : vector<8x8xf32> to vector<8x8xbf16>
    %cst_34 = arith.constant dense<0.000000e+00> : vector<8x8xf32>
    %87 = tpu.matmul %85, %86, %cst_34 {dimension_numbers = #tpu.dot_dimension_numbers<[1], [1], [0], [0], [0, 0, 1, 0], [], []>} : vector<8x8xbf16>, vector<8x8xbf16>, vector<8x8xf32> -> vector<8x8xf32>
    %88 = arith.addf %87, %84 : vector<8x8xf32>
    %cst_35 = arith.constant dense<0xFF800000> : vector<8xf32>
    %89 = vector.multi_reduction <maximumf>, %88, %cst_35 [1] : vector<8x8xf32> to vector<8xf32>
    %90 = vector.shape_cast %89 : vector<8xf32> to vector<8x1xf32>
    %91 = vector.broadcast %90 : vector<8x1xf32> to vector<8x8xf32>
    %92 = arith.subf %88, %91 : vector<8x8xf32>
    %93 = math.exp %92 : vector<8x8xf32>
    %cst_36 = arith.constant dense<0.000000e+00> : vector<8xf32>
    %94 = vector.multi_reduction <add>, %93, %cst_36 [1] : vector<8x8xf32> to vector<8xf32>
    %95 = vector.shape_cast %94 : vector<8xf32> to vector<8x1xf32>
    %96 = tpu.reciprocal %95 {approx = true} : vector<8x1xf32> -> vector<8x1xf32>
    %97 = vector.broadcast %96 : vector<8x1xf32> to vector<8x8xf32>
    %98 = arith.mulf %93, %97 : vector<8x8xf32>
    %99 = arith.truncf %98 : vector<8x8xf32> to vector<8x8xbf16>
    %100 = arith.truncf %82 : vector<8x8xf32> to vector<8x8xbf16>
    %cst_37 = arith.constant dense<0.000000e+00> : vector<8x8xf32>
    %101 = tpu.matmul %99, %100, %cst_37 {dimension_numbers = #tpu.dot_dimension_numbers<[1], [0], [0], [1], [0, 0, 1, 1], [], []>} : vector<8x8xbf16>, vector<8x8xbf16>, vector<8x8xf32> -> vector<8x8xf32>
    %102 = vector.extract_strided_slice %27 {offsets = [0, 0], sizes = [8, 8], strides = [1, 1]} : vector<16x8xf32> to vector<8x8xf32>
    %103 = vector.extract_strided_slice %31 {offsets = [0, 0], sizes = [8, 8], strides = [1, 1]} : vector<16x8xf32> to vector<8x8xf32>
    %104 = vector.extract_strided_slice %35 {offsets = [0, 0], sizes = [8, 8], strides = [1, 1]} : vector<16x8xf32> to vector<8x8xf32>
    %c0_38 = arith.constant 0 : index
    %c3 = arith.constant 3 : index
    %c0_39 = arith.constant 0 : index
    %c0_40 = arith.constant 0 : index
    %105 = vector.load %arg9[%c0_38, %c3, %c0_39, %c0_40] : memref<2x4x8x8xf32, #tpu.memory_space<vmem>>, vector<1x1x8x8xf32>
    %106 = vector.shape_cast %105 : vector<1x1x8x8xf32> to vector<8x8xf32>
    %107 = arith.truncf %102 : vector<8x8xf32> to vector<8x8xbf16>
    %108 = arith.truncf %103 : vector<8x8xf32> to vector<8x8xbf16>
    %cst_41 = arith.constant dense<0.000000e+00> : vector<8x8xf32>
    %109 = tpu.matmul %107, %108, %cst_41 {dimension_numbers = #tpu.dot_dimension_numbers<[1], [1], [0], [0], [0, 0, 1, 0], [], []>} : vector<8x8xbf16>, vector<8x8xbf16>, vector<8x8xf32> -> vector<8x8xf32>
    %110 = arith.addf %109, %106 : vector<8x8xf32>
    %cst_42 = arith.constant dense<0xFF800000> : vector<8xf32>
    %111 = vector.multi_reduction <maximumf>, %110, %cst_42 [1] : vector<8x8xf32> to vector<8xf32>
    %112 = vector.shape_cast %111 : vector<8xf32> to vector<8x1xf32>
    %113 = vector.broadcast %112 : vector<8x1xf32> to vector<8x8xf32>
    %114 = arith.subf %110, %113 : vector<8x8xf32>
    %115 = math.exp %114 : vector<8x8xf32>
    %cst_43 = arith.constant dense<0.000000e+00> : vector<8xf32>
    %116 = vector.multi_reduction <add>, %115, %cst_43 [1] : vector<8x8xf32> to vector<8xf32>
    %117 = vector.shape_cast %116 : vector<8xf32> to vector<8x1xf32>
    %118 = tpu.reciprocal %117 {approx = true} : vector<8x1xf32> -> vector<8x1xf32>
    %119 = vector.broadcast %118 : vector<8x1xf32> to vector<8x8xf32>
    %120 = arith.mulf %115, %119 : vector<8x8xf32>
    %121 = arith.truncf %120 : vector<8x8xf32> to vector<8x8xbf16>
    %122 = arith.truncf %104 : vector<8x8xf32> to vector<8x8xbf16>
    %cst_44 = arith.constant dense<0.000000e+00> : vector<8x8xf32>
    %123 = tpu.matmul %121, %122, %cst_44 {dimension_numbers = #tpu.dot_dimension_numbers<[1], [0], [0], [1], [0, 0, 1, 1], [], []>} : vector<8x8xbf16>, vector<8x8xbf16>, vector<8x8xf32> -> vector<8x8xf32>
    %124 = tpu.concatenate %57, %79, %101, %123 in 1 : vector<8x8xf32>, vector<8x8xf32>, vector<8x8xf32>, vector<8x8xf32> -> vector<8x32xf32>
    %125 = arith.truncf %124 : vector<8x32xf32> to vector<8x32xbf16>
    %cst_45 = arith.constant dense<0.000000e+00> : vector<8x32xf32>
    %126 = tpu.matmul %125, %9, %cst_45 {dimension_numbers = #tpu.dot_dimension_numbers<[1], [0], [0], [1], [0, 0, 1, 1], [], []>} : vector<8x32xbf16>, vector<32x32xbf16>, vector<8x32xf32> -> vector<8x32xf32>
    %127 = vector.extract_strided_slice %24 {offsets = [8, 0], sizes = [8, 8], strides = [1, 1]} : vector<16x8xf32> to vector<8x8xf32>
    %128 = vector.extract_strided_slice %28 {offsets = [8, 0], sizes = [8, 8], strides = [1, 1]} : vector<16x8xf32> to vector<8x8xf32>
    %129 = vector.extract_strided_slice %32 {offsets = [8, 0], sizes = [8, 8], strides = [1, 1]} : vector<16x8xf32> to vector<8x8xf32>
    %c1_46 = arith.constant 1 : index
    %c0_47 = arith.constant 0 : index
    %c0_48 = arith.constant 0 : index
    %c0_49 = arith.constant 0 : index
    %130 = vector.load %arg9[%c1_46, %c0_47, %c0_48, %c0_49] : memref<2x4x8x8xf32, #tpu.memory_space<vmem>>, vector<1x1x8x8xf32>
    %131 = vector.shape_cast %130 : vector<1x1x8x8xf32> to vector<8x8xf32>
    %132 = arith.truncf %127 : vector<8x8xf32> to vector<8x8xbf16>
    %133 = arith.truncf %128 : vector<8x8xf32> to vector<8x8xbf16>
    %cst_50 = arith.constant dense<0.000000e+00> : vector<8x8xf32>
    %134 = tpu.matmul %132, %133, %cst_50 {dimension_numbers = #tpu.dot_dimension_numbers<[1], [1], [0], [0], [0, 0, 1, 0], [], []>} : vector<8x8xbf16>, vector<8x8xbf16>, vector<8x8xf32> -> vector<8x8xf32>
    %135 = arith.addf %134, %131 : vector<8x8xf32>
    %cst_51 = arith.constant dense<0xFF800000> : vector<8xf32>
    %136 = vector.multi_reduction <maximumf>, %135, %cst_51 [1] : vector<8x8xf32> to vector<8xf32>
    %137 = vector.shape_cast %136 : vector<8xf32> to vector<8x1xf32>
    %138 = vector.broadcast %137 : vector<8x1xf32> to vector<8x8xf32>
    %139 = arith.subf %135, %138 : vector<8x8xf32>
    %140 = math.exp %139 : vector<8x8xf32>
    %cst_52 = arith.constant dense<0.000000e+00> : vector<8xf32>
    %141 = vector.multi_reduction <add>, %140, %cst_52 [1] : vector<8x8xf32> to vector<8xf32>
    %142 = vector.shape_cast %141 : vector<8xf32> to vector<8x1xf32>
    %143 = tpu.reciprocal %142 {approx = true} : vector<8x1xf32> -> vector<8x1xf32>
    %144 = vector.broadcast %143 : vector<8x1xf32> to vector<8x8xf32>
    %145 = arith.mulf %140, %144 : vector<8x8xf32>
    %146 = arith.truncf %145 : vector<8x8xf32> to vector<8x8xbf16>
    %147 = arith.truncf %129 : vector<8x8xf32> to vector<8x8xbf16>
    %cst_53 = arith.constant dense<0.000000e+00> : vector<8x8xf32>
    %148 = tpu.matmul %146, %147, %cst_53 {dimension_numbers = #tpu.dot_dimension_numbers<[1], [0], [0], [1], [0, 0, 1, 1], [], []>} : vector<8x8xbf16>, vector<8x8xbf16>, vector<8x8xf32> -> vector<8x8xf32>
    %149 = vector.extract_strided_slice %25 {offsets = [8, 0], sizes = [8, 8], strides = [1, 1]} : vector<16x8xf32> to vector<8x8xf32>
    %150 = vector.extract_strided_slice %29 {offsets = [8, 0], sizes = [8, 8], strides = [1, 1]} : vector<16x8xf32> to vector<8x8xf32>
    %151 = vector.extract_strided_slice %33 {offsets = [8, 0], sizes = [8, 8], strides = [1, 1]} : vector<16x8xf32> to vector<8x8xf32>
    %c1_54 = arith.constant 1 : index
    %c1_55 = arith.constant 1 : index
    %c0_56 = arith.constant 0 : index
    %c0_57 = arith.constant 0 : index
    %152 = vector.load %arg9[%c1_54, %c1_55, %c0_56, %c0_57] : memref<2x4x8x8xf32, #tpu.memory_space<vmem>>, vector<1x1x8x8xf32>
    %153 = vector.shape_cast %152 : vector<1x1x8x8xf32> to vector<8x8xf32>
    %154 = arith.truncf %149 : vector<8x8xf32> to vector<8x8xbf16>
    %155 = arith.truncf %150 : vector<8x8xf32> to vector<8x8xbf16>
    %cst_58 = arith.constant dense<0.000000e+00> : vector<8x8xf32>
    %156 = tpu.matmul %154, %155, %cst_58 {dimension_numbers = #tpu.dot_dimension_numbers<[1], [1], [0], [0], [0, 0, 1, 0], [], []>} : vector<8x8xbf16>, vector<8x8xbf16>, vector<8x8xf32> -> vector<8x8xf32>
    %157 = arith.addf %156, %153 : vector<8x8xf32>
    %cst_59 = arith.constant dense<0xFF800000> : vector<8xf32>
    %158 = vector.multi_reduction <maximumf>, %157, %cst_59 [1] : vector<8x8xf32> to vector<8xf32>
    %159 = vector.shape_cast %158 : vector<8xf32> to vector<8x1xf32>
    %160 = vector.broadcast %159 : vector<8x1xf32> to vector<8x8xf32>
    %161 = arith.subf %157, %160 : vector<8x8xf32>
    %162 = math.exp %161 : vector<8x8xf32>
    %cst_60 = arith.constant dense<0.000000e+00> : vector<8xf32>
    %163 = vector.multi_reduction <add>, %162, %cst_60 [1] : vector<8x8xf32> to vector<8xf32>
    %164 = vector.shape_cast %163 : vector<8xf32> to vector<8x1xf32>
    %165 = tpu.reciprocal %164 {approx = true} : vector<8x1xf32> -> vector<8x1xf32>
    %166 = vector.broadcast %165 : vector<8x1xf32> to vector<8x8xf32>
    %167 = arith.mulf %162, %166 : vector<8x8xf32>
    %168 = arith.truncf %167 : vector<8x8xf32> to vector<8x8xbf16>
    %169 = arith.truncf %151 : vector<8x8xf32> to vector<8x8xbf16>
    %cst_61 = arith.constant dense<0.000000e+00> : vector<8x8xf32>
    %170 = tpu.matmul %168, %169, %cst_61 {dimension_numbers = #tpu.dot_dimension_numbers<[1], [0], [0], [1], [0, 0, 1, 1], [], []>} : vector<8x8xbf16>, vector<8x8xbf16>, vector<8x8xf32> -> vector<8x8xf32>
    %171 = vector.extract_strided_slice %26 {offsets = [8, 0], sizes = [8, 8], strides = [1, 1]} : vector<16x8xf32> to vector<8x8xf32>
    %172 = vector.extract_strided_slice %30 {offsets = [8, 0], sizes = [8, 8], strides = [1, 1]} : vector<16x8xf32> to vector<8x8xf32>
    %173 = vector.extract_strided_slice %34 {offsets = [8, 0], sizes = [8, 8], strides = [1, 1]} : vector<16x8xf32> to vector<8x8xf32>
    %c1_62 = arith.constant 1 : index
    %c2_63 = arith.constant 2 : index
    %c0_64 = arith.constant 0 : index
    %c0_65 = arith.constant 0 : index
    %174 = vector.load %arg9[%c1_62, %c2_63, %c0_64, %c0_65] : memref<2x4x8x8xf32, #tpu.memory_space<vmem>>, vector<1x1x8x8xf32>
    %175 = vector.shape_cast %174 : vector<1x1x8x8xf32> to vector<8x8xf32>
    %176 = arith.truncf %171 : vector<8x8xf32> to vector<8x8xbf16>
    %177 = arith.truncf %172 : vector<8x8xf32> to vector<8x8xbf16>
    %cst_66 = arith.constant dense<0.000000e+00> : vector<8x8xf32>
    %178 = tpu.matmul %176, %177, %cst_66 {dimension_numbers = #tpu.dot_dimension_numbers<[1], [1], [0], [0], [0, 0, 1, 0], [], []>} : vector<8x8xbf16>, vector<8x8xbf16>, vector<8x8xf32> -> vector<8x8xf32>
    %179 = arith.addf %178, %175 : vector<8x8xf32>
    %cst_67 = arith.constant dense<0xFF800000> : vector<8xf32>
    %180 = vector.multi_reduction <maximumf>, %179, %cst_67 [1] : vector<8x8xf32> to vector<8xf32>
    %181 = vector.shape_cast %180 : vector<8xf32> to vector<8x1xf32>
    %182 = vector.broadcast %181 : vector<8x1xf32> to vector<8x8xf32>
    %183 = arith.subf %179, %182 : vector<8x8xf32>
    %184 = math.exp %183 : vector<8x8xf32>
    %cst_68 = arith.constant dense<0.000000e+00> : vector<8xf32>
    %185 = vector.multi_reduction <add>, %184, %cst_68 [1] : vector<8x8xf32> to vector<8xf32>
    %186 = vector.shape_cast %185 : vector<8xf32> to vector<8x1xf32>
    %187 = tpu.reciprocal %186 {approx = true} : vector<8x1xf32> -> vector<8x1xf32>
    %188 = vector.broadcast %187 : vector<8x1xf32> to vector<8x8xf32>
    %189 = arith.mulf %184, %188 : vector<8x8xf32>
    %190 = arith.truncf %189 : vector<8x8xf32> to vector<8x8xbf16>
    %191 = arith.truncf %173 : vector<8x8xf32> to vector<8x8xbf16>
    %cst_69 = arith.constant dense<0.000000e+00> : vector<8x8xf32>
    %192 = tpu.matmul %190, %191, %cst_69 {dimension_numbers = #tpu.dot_dimension_numbers<[1], [0], [0], [1], [0, 0, 1, 1], [], []>} : vector<8x8xbf16>, vector<8x8xbf16>, vector<8x8xf32> -> vector<8x8xf32>
    %193 = vector.extract_strided_slice %27 {offsets = [8, 0], sizes = [8, 8], strides = [1, 1]} : vector<16x8xf32> to vector<8x8xf32>
    %194 = vector.extract_strided_slice %31 {offsets = [8, 0], sizes = [8, 8], strides = [1, 1]} : vector<16x8xf32> to vector<8x8xf32>
    %195 = vector.extract_strided_slice %35 {offsets = [8, 0], sizes = [8, 8], strides = [1, 1]} : vector<16x8xf32> to vector<8x8xf32>
    %c1_70 = arith.constant 1 : index
    %c3_71 = arith.constant 3 : index
    %c0_72 = arith.constant 0 : index
    %c0_73 = arith.constant 0 : index
    %196 = vector.load %arg9[%c1_70, %c3_71, %c0_72, %c0_73] : memref<2x4x8x8xf32, #tpu.memory_space<vmem>>, vector<1x1x8x8xf32>
    %197 = vector.shape_cast %196 : vector<1x1x8x8xf32> to vector<8x8xf32>
    %198 = arith.truncf %193 : vector<8x8xf32> to vector<8x8xbf16>
    %199 = arith.truncf %194 : vector<8x8xf32> to vector<8x8xbf16>
    %cst_74 = arith.constant dense<0.000000e+00> : vector<8x8xf32>
    %200 = tpu.matmul %198, %199, %cst_74 {dimension_numbers = #tpu.dot_dimension_numbers<[1], [1], [0], [0], [0, 0, 1, 0], [], []>} : vector<8x8xbf16>, vector<8x8xbf16>, vector<8x8xf32> -> vector<8x8xf32>
    %201 = arith.addf %200, %197 : vector<8x8xf32>
    %cst_75 = arith.constant dense<0xFF800000> : vector<8xf32>
    %202 = vector.multi_reduction <maximumf>, %201, %cst_75 [1] : vector<8x8xf32> to vector<8xf32>
    %203 = vector.shape_cast %202 : vector<8xf32> to vector<8x1xf32>
    %204 = vector.broadcast %203 : vector<8x1xf32> to vector<8x8xf32>
    %205 = arith.subf %201, %204 : vector<8x8xf32>
    %206 = math.exp %205 : vector<8x8xf32>
    %cst_76 = arith.constant dense<0.000000e+00> : vector<8xf32>
    %207 = vector.multi_reduction <add>, %206, %cst_76 [1] : vector<8x8xf32> to vector<8xf32>
    %208 = vector.shape_cast %207 : vector<8xf32> to vector<8x1xf32>
    %209 = tpu.reciprocal %208 {approx = true} : vector<8x1xf32> -> vector<8x1xf32>
    %210 = vector.broadcast %209 : vector<8x1xf32> to vector<8x8xf32>
    %211 = arith.mulf %206, %210 : vector<8x8xf32>
    %212 = arith.truncf %211 : vector<8x8xf32> to vector<8x8xbf16>
    %213 = arith.truncf %195 : vector<8x8xf32> to vector<8x8xbf16>
    %cst_77 = arith.constant dense<0.000000e+00> : vector<8x8xf32>
    %214 = tpu.matmul %212, %213, %cst_77 {dimension_numbers = #tpu.dot_dimension_numbers<[1], [0], [0], [1], [0, 0, 1, 1], [], []>} : vector<8x8xbf16>, vector<8x8xbf16>, vector<8x8xf32> -> vector<8x8xf32>
    %215 = tpu.concatenate %148, %170, %192, %214 in 1 : vector<8x8xf32>, vector<8x8xf32>, vector<8x8xf32>, vector<8x8xf32> -> vector<8x32xf32>
    %216 = arith.truncf %215 : vector<8x32xf32> to vector<8x32xbf16>
    %cst_78 = arith.constant dense<0.000000e+00> : vector<8x32xf32>
    %217 = tpu.matmul %216, %9, %cst_78 {dimension_numbers = #tpu.dot_dimension_numbers<[1], [0], [0], [1], [0, 0, 1, 1], [], []>} : vector<8x32xbf16>, vector<32x32xbf16>, vector<8x32xf32> -> vector<8x32xf32>
    %218 = tpu.concatenate %126, %217 in 0 : vector<8x32xf32>, vector<8x32xf32> -> vector<16x32xf32>
    %219 = arith.addf %3, %218 : vector<16x32xf32>
    %c0_79 = arith.constant 0 : index
    %c0_80 = arith.constant 0 : index
    %c0_81 = arith.constant 0 : index
    %220 = vector.load %arg5[%c0_79, %c0_80, %c0_81] : memref<2x1x32xf32, #tpu.memory_space<vmem>>, vector<1x1x32xf32>
    %221 = vector.shape_cast %220 : vector<1x1x32xf32> to vector<1x32xf32>
    %c0_82 = arith.constant 0 : index
    %c0_83 = arith.constant 0 : index
    %c0_84 = arith.constant 0 : index
    %222 = vector.load %arg6[%c0_82, %c0_83, %c0_84] : memref<2x32x64xbf16, #tpu.memory_space<vmem>>, vector<1x32x64xbf16>
    %223 = vector.shape_cast %222 : vector<1x32x64xbf16> to vector<32x64xbf16>
    %c0_85 = arith.constant 0 : index
    %c0_86 = arith.constant 0 : index
    %c0_87 = arith.constant 0 : index
    %224 = vector.load %arg7[%c0_85, %c0_86, %c0_87] : memref<2x64x32xbf16, #tpu.memory_space<vmem>>, vector<1x64x32xbf16>
    %225 = vector.shape_cast %224 : vector<1x64x32xbf16> to vector<64x32xbf16>
    %226 = arith.mulf %219, %219 : vector<16x32xf32>
    %cst_88 = arith.constant dense<0.000000e+00> : vector<16xf32>
    %227 = vector.multi_reduction <add>, %226, %cst_88 [1] : vector<16x32xf32> to vector<16xf32>
    %228 = vector.shape_cast %227 : vector<16xf32> to vector<16x1xf32>
    %cst_89 = arith.constant 3.200000e+01 : f32
    %229 = vector.broadcast %cst_89 : f32 to vector<16x1xf32>
    %230 = arith.divf %228, %229 : vector<16x1xf32>
    %cst_90 = arith.constant 9.99999997E-7 : f32
    %231 = vector.broadcast %cst_90 : f32 to vector<16x1xf32>
    %232 = arith.addf %230, %231 : vector<16x1xf32>
    %233 = math.rsqrt %232 : vector<16x1xf32>
    %234 = vector.broadcast %233 : vector<16x1xf32> to vector<16x32xf32>
    %235 = arith.mulf %219, %234 : vector<16x32xf32>
    %236 = vector.broadcast %221 : vector<1x32xf32> to vector<16x32xf32>
    %237 = arith.mulf %235, %236 : vector<16x32xf32>
    %238 = arith.truncf %237 : vector<16x32xf32> to vector<16x32xbf16>
    %cst_91 = arith.constant dense<0.000000e+00> : vector<16x64xf32>
    %239 = tpu.matmul %238, %223, %cst_91 {dimension_numbers = #tpu.dot_dimension_numbers<[1], [0], [0], [1], [0, 0, 1, 1], [], []>} : vector<16x32xbf16>, vector<32x64xbf16>, vector<16x64xf32> -> vector<16x64xf32>
    %cst_92 = arith.constant 0.000000e+00 : f32
    %240 = vector.broadcast %cst_92 : f32 to vector<16x64xf32>
    %241 = arith.maximumf %239, %240 : vector<16x64xf32>
    %242 = arith.truncf %241 : vector<16x64xf32> to vector<16x64xbf16>
    %cst_93 = arith.constant dense<0.000000e+00> : vector<16x32xf32>
    %243 = tpu.matmul %242, %225, %cst_93 {dimension_numbers = #tpu.dot_dimension_numbers<[1], [0], [0], [1], [0, 0, 1, 1], [], []>} : vector<16x64xbf16>, vector<64x32xbf16>, vector<16x32xf32> -> vector<16x32xf32>
    %244 = arith.addf %219, %243 : vector<16x32xf32>
    %c1_94 = arith.constant 1 : index
    %c0_95 = arith.constant 0 : index
    %c0_96 = arith.constant 0 : index
    %245 = vector.load %arg2[%c1_94, %c0_95, %c0_96] : memref<2x1x32xf32, #tpu.memory_space<vmem>>, vector<1x1x32xf32>
    %246 = vector.shape_cast %245 : vector<1x1x32xf32> to vector<1x32xf32>
    %c1_97 = arith.constant 1 : index
    %c0_98 = arith.constant 0 : index
    %c0_99 = arith.constant 0 : index
    %247 = vector.load %arg3[%c1_97, %c0_98, %c0_99] : memref<2x32x96xbf16, #tpu.memory_space<vmem>>, vector<1x32x96xbf16>
    %248 = vector.shape_cast %247 : vector<1x32x96xbf16> to vector<32x96xbf16>
    %c1_100 = arith.constant 1 : index
    %c0_101 = arith.constant 0 : index
    %c0_102 = arith.constant 0 : index
    %249 = vector.load %arg4[%c1_100, %c0_101, %c0_102] : memref<2x32x32xbf16, #tpu.memory_space<vmem>>, vector<1x32x32xbf16>
    %250 = vector.shape_cast %249 : vector<1x32x32xbf16> to vector<32x32xbf16>
    %251 = arith.mulf %244, %244 : vector<16x32xf32>
    %cst_103 = arith.constant dense<0.000000e+00> : vector<16xf32>
    %252 = vector.multi_reduction <add>, %251, %cst_103 [1] : vector<16x32xf32> to vector<16xf32>
    %253 = vector.shape_cast %252 : vector<16xf32> to vector<16x1xf32>
    %cst_104 = arith.constant 3.200000e+01 : f32
    %254 = vector.broadcast %cst_104 : f32 to vector<16x1xf32>
    %255 = arith.divf %253, %254 : vector<16x1xf32>
    %cst_105 = arith.constant 9.99999997E-7 : f32
    %256 = vector.broadcast %cst_105 : f32 to vector<16x1xf32>
    %257 = arith.addf %255, %256 : vector<16x1xf32>
    %258 = math.rsqrt %257 : vector<16x1xf32>
    %259 = vector.broadcast %258 : vector<16x1xf32> to vector<16x32xf32>
    %260 = arith.mulf %244, %259 : vector<16x32xf32>
    %261 = vector.broadcast %246 : vector<1x32xf32> to vector<16x32xf32>
    %262 = arith.mulf %260, %261 : vector<16x32xf32>
    %263 = arith.truncf %262 : vector<16x32xf32> to vector<16x32xbf16>
    %cst_106 = arith.constant dense<0.000000e+00> : vector<16x96xf32>
    %264 = tpu.matmul %263, %248, %cst_106 {dimension_numbers = #tpu.dot_dimension_numbers<[1], [0], [0], [1], [0, 0, 1, 1], [], []>} : vector<16x32xbf16>, vector<32x96xbf16>, vector<16x96xf32> -> vector<16x96xf32>
    %265 = vector.extract_strided_slice %264 {offsets = [0, 0], sizes = [16, 8], strides = [1, 1]} : vector<16x96xf32> to vector<16x8xf32>
    %266 = vector.extract_strided_slice %264 {offsets = [0, 8], sizes = [16, 8], strides = [1, 1]} : vector<16x96xf32> to vector<16x8xf32>
    %267 = vector.extract_strided_slice %264 {offsets = [0, 16], sizes = [16, 8], strides = [1, 1]} : vector<16x96xf32> to vector<16x8xf32>
    %268 = vector.extract_strided_slice %264 {offsets = [0, 24], sizes = [16, 8], strides = [1, 1]} : vector<16x96xf32> to vector<16x8xf32>
    %269 = vector.extract_strided_slice %264 {offsets = [0, 32], sizes = [16, 8], strides = [1, 1]} : vector<16x96xf32> to vector<16x8xf32>
    %270 = vector.extract_strided_slice %264 {offsets = [0, 40], sizes = [16, 8], strides = [1, 1]} : vector<16x96xf32> to vector<16x8xf32>
    %271 = vector.extract_strided_slice %264 {offsets = [0, 48], sizes = [16, 8], strides = [1, 1]} : vector<16x96xf32> to vector<16x8xf32>
    %272 = vector.extract_strided_slice %264 {offsets = [0, 56], sizes = [16, 8], strides = [1, 1]} : vector<16x96xf32> to vector<16x8xf32>
    %273 = vector.extract_strided_slice %264 {offsets = [0, 64], sizes = [16, 8], strides = [1, 1]} : vector<16x96xf32> to vector<16x8xf32>
    %274 = vector.extract_strided_slice %264 {offsets = [0, 72], sizes = [16, 8], strides = [1, 1]} : vector<16x96xf32> to vector<16x8xf32>
    %275 = vector.extract_strided_slice %264 {offsets = [0, 80], sizes = [16, 8], strides = [1, 1]} : vector<16x96xf32> to vector<16x8xf32>
    %276 = vector.extract_strided_slice %264 {offsets = [0, 88], sizes = [16, 8], strides = [1, 1]} : vector<16x96xf32> to vector<16x8xf32>
    %277 = vector.extract_strided_slice %265 {offsets = [0, 0], sizes = [8, 8], strides = [1, 1]} : vector<16x8xf32> to vector<8x8xf32>
    %278 = vector.extract_strided_slice %269 {offsets = [0, 0], sizes = [8, 8], strides = [1, 1]} : vector<16x8xf32> to vector<8x8xf32>
    %279 = vector.extract_strided_slice %273 {offsets = [0, 0], sizes = [8, 8], strides = [1, 1]} : vector<16x8xf32> to vector<8x8xf32>
    %c0_107 = arith.constant 0 : index
    %c0_108 = arith.constant 0 : index
    %c0_109 = arith.constant 0 : index
    %c0_110 = arith.constant 0 : index
    %280 = vector.load %arg9[%c0_107, %c0_108, %c0_109, %c0_110] : memref<2x4x8x8xf32, #tpu.memory_space<vmem>>, vector<1x1x8x8xf32>
    %281 = vector.shape_cast %280 : vector<1x1x8x8xf32> to vector<8x8xf32>
    %282 = arith.truncf %277 : vector<8x8xf32> to vector<8x8xbf16>
    %283 = arith.truncf %278 : vector<8x8xf32> to vector<8x8xbf16>
    %cst_111 = arith.constant dense<0.000000e+00> : vector<8x8xf32>
    %284 = tpu.matmul %282, %283, %cst_111 {dimension_numbers = #tpu.dot_dimension_numbers<[1], [1], [0], [0], [0, 0, 1, 0], [], []>} : vector<8x8xbf16>, vector<8x8xbf16>, vector<8x8xf32> -> vector<8x8xf32>
    %285 = arith.addf %284, %281 : vector<8x8xf32>
    %cst_112 = arith.constant dense<0xFF800000> : vector<8xf32>
    %286 = vector.multi_reduction <maximumf>, %285, %cst_112 [1] : vector<8x8xf32> to vector<8xf32>
    %287 = vector.shape_cast %286 : vector<8xf32> to vector<8x1xf32>
    %288 = vector.broadcast %287 : vector<8x1xf32> to vector<8x8xf32>
    %289 = arith.subf %285, %288 : vector<8x8xf32>
    %290 = math.exp %289 : vector<8x8xf32>
    %cst_113 = arith.constant dense<0.000000e+00> : vector<8xf32>
    %291 = vector.multi_reduction <add>, %290, %cst_113 [1] : vector<8x8xf32> to vector<8xf32>
    %292 = vector.shape_cast %291 : vector<8xf32> to vector<8x1xf32>
    %293 = tpu.reciprocal %292 {approx = true} : vector<8x1xf32> -> vector<8x1xf32>
    %294 = vector.broadcast %293 : vector<8x1xf32> to vector<8x8xf32>
    %295 = arith.mulf %290, %294 : vector<8x8xf32>
    %296 = arith.truncf %295 : vector<8x8xf32> to vector<8x8xbf16>
    %297 = arith.truncf %279 : vector<8x8xf32> to vector<8x8xbf16>
    %cst_114 = arith.constant dense<0.000000e+00> : vector<8x8xf32>
    %298 = tpu.matmul %296, %297, %cst_114 {dimension_numbers = #tpu.dot_dimension_numbers<[1], [0], [0], [1], [0, 0, 1, 1], [], []>} : vector<8x8xbf16>, vector<8x8xbf16>, vector<8x8xf32> -> vector<8x8xf32>
    %299 = vector.extract_strided_slice %266 {offsets = [0, 0], sizes = [8, 8], strides = [1, 1]} : vector<16x8xf32> to vector<8x8xf32>
    %300 = vector.extract_strided_slice %270 {offsets = [0, 0], sizes = [8, 8], strides = [1, 1]} : vector<16x8xf32> to vector<8x8xf32>
    %301 = vector.extract_strided_slice %274 {offsets = [0, 0], sizes = [8, 8], strides = [1, 1]} : vector<16x8xf32> to vector<8x8xf32>
    %c0_115 = arith.constant 0 : index
    %c1_116 = arith.constant 1 : index
    %c0_117 = arith.constant 0 : index
    %c0_118 = arith.constant 0 : index
    %302 = vector.load %arg9[%c0_115, %c1_116, %c0_117, %c0_118] : memref<2x4x8x8xf32, #tpu.memory_space<vmem>>, vector<1x1x8x8xf32>
    %303 = vector.shape_cast %302 : vector<1x1x8x8xf32> to vector<8x8xf32>
    %304 = arith.truncf %299 : vector<8x8xf32> to vector<8x8xbf16>
    %305 = arith.truncf %300 : vector<8x8xf32> to vector<8x8xbf16>
    %cst_119 = arith.constant dense<0.000000e+00> : vector<8x8xf32>
    %306 = tpu.matmul %304, %305, %cst_119 {dimension_numbers = #tpu.dot_dimension_numbers<[1], [1], [0], [0], [0, 0, 1, 0], [], []>} : vector<8x8xbf16>, vector<8x8xbf16>, vector<8x8xf32> -> vector<8x8xf32>
    %307 = arith.addf %306, %303 : vector<8x8xf32>
    %cst_120 = arith.constant dense<0xFF800000> : vector<8xf32>
    %308 = vector.multi_reduction <maximumf>, %307, %cst_120 [1] : vector<8x8xf32> to vector<8xf32>
    %309 = vector.shape_cast %308 : vector<8xf32> to vector<8x1xf32>
    %310 = vector.broadcast %309 : vector<8x1xf32> to vector<8x8xf32>
    %311 = arith.subf %307, %310 : vector<8x8xf32>
    %312 = math.exp %311 : vector<8x8xf32>
    %cst_121 = arith.constant dense<0.000000e+00> : vector<8xf32>
    %313 = vector.multi_reduction <add>, %312, %cst_121 [1] : vector<8x8xf32> to vector<8xf32>
    %314 = vector.shape_cast %313 : vector<8xf32> to vector<8x1xf32>
    %315 = tpu.reciprocal %314 {approx = true} : vector<8x1xf32> -> vector<8x1xf32>
    %316 = vector.broadcast %315 : vector<8x1xf32> to vector<8x8xf32>
    %317 = arith.mulf %312, %316 : vector<8x8xf32>
    %318 = arith.truncf %317 : vector<8x8xf32> to vector<8x8xbf16>
    %319 = arith.truncf %301 : vector<8x8xf32> to vector<8x8xbf16>
    %cst_122 = arith.constant dense<0.000000e+00> : vector<8x8xf32>
    %320 = tpu.matmul %318, %319, %cst_122 {dimension_numbers = #tpu.dot_dimension_numbers<[1], [0], [0], [1], [0, 0, 1, 1], [], []>} : vector<8x8xbf16>, vector<8x8xbf16>, vector<8x8xf32> -> vector<8x8xf32>
    %321 = vector.extract_strided_slice %267 {offsets = [0, 0], sizes = [8, 8], strides = [1, 1]} : vector<16x8xf32> to vector<8x8xf32>
    %322 = vector.extract_strided_slice %271 {offsets = [0, 0], sizes = [8, 8], strides = [1, 1]} : vector<16x8xf32> to vector<8x8xf32>
    %323 = vector.extract_strided_slice %275 {offsets = [0, 0], sizes = [8, 8], strides = [1, 1]} : vector<16x8xf32> to vector<8x8xf32>
    %c0_123 = arith.constant 0 : index
    %c2_124 = arith.constant 2 : index
    %c0_125 = arith.constant 0 : index
    %c0_126 = arith.constant 0 : index
    %324 = vector.load %arg9[%c0_123, %c2_124, %c0_125, %c0_126] : memref<2x4x8x8xf32, #tpu.memory_space<vmem>>, vector<1x1x8x8xf32>
    %325 = vector.shape_cast %324 : vector<1x1x8x8xf32> to vector<8x8xf32>
    %326 = arith.truncf %321 : vector<8x8xf32> to vector<8x8xbf16>
    %327 = arith.truncf %322 : vector<8x8xf32> to vector<8x8xbf16>
    %cst_127 = arith.constant dense<0.000000e+00> : vector<8x8xf32>
    %328 = tpu.matmul %326, %327, %cst_127 {dimension_numbers = #tpu.dot_dimension_numbers<[1], [1], [0], [0], [0, 0, 1, 0], [], []>} : vector<8x8xbf16>, vector<8x8xbf16>, vector<8x8xf32> -> vector<8x8xf32>
    %329 = arith.addf %328, %325 : vector<8x8xf32>
    %cst_128 = arith.constant dense<0xFF800000> : vector<8xf32>
    %330 = vector.multi_reduction <maximumf>, %329, %cst_128 [1] : vector<8x8xf32> to vector<8xf32>
    %331 = vector.shape_cast %330 : vector<8xf32> to vector<8x1xf32>
    %332 = vector.broadcast %331 : vector<8x1xf32> to vector<8x8xf32>
    %333 = arith.subf %329, %332 : vector<8x8xf32>
    %334 = math.exp %333 : vector<8x8xf32>
    %cst_129 = arith.constant dense<0.000000e+00> : vector<8xf32>
    %335 = vector.multi_reduction <add>, %334, %cst_129 [1] : vector<8x8xf32> to vector<8xf32>
    %336 = vector.shape_cast %335 : vector<8xf32> to vector<8x1xf32>
    %337 = tpu.reciprocal %336 {approx = true} : vector<8x1xf32> -> vector<8x1xf32>
    %338 = vector.broadcast %337 : vector<8x1xf32> to vector<8x8xf32>
    %339 = arith.mulf %334, %338 : vector<8x8xf32>
    %340 = arith.truncf %339 : vector<8x8xf32> to vector<8x8xbf16>
    %341 = arith.truncf %323 : vector<8x8xf32> to vector<8x8xbf16>
    %cst_130 = arith.constant dense<0.000000e+00> : vector<8x8xf32>
    %342 = tpu.matmul %340, %341, %cst_130 {dimension_numbers = #tpu.dot_dimension_numbers<[1], [0], [0], [1], [0, 0, 1, 1], [], []>} : vector<8x8xbf16>, vector<8x8xbf16>, vector<8x8xf32> -> vector<8x8xf32>
    %343 = vector.extract_strided_slice %268 {offsets = [0, 0], sizes = [8, 8], strides = [1, 1]} : vector<16x8xf32> to vector<8x8xf32>
    %344 = vector.extract_strided_slice %272 {offsets = [0, 0], sizes = [8, 8], strides = [1, 1]} : vector<16x8xf32> to vector<8x8xf32>
    %345 = vector.extract_strided_slice %276 {offsets = [0, 0], sizes = [8, 8], strides = [1, 1]} : vector<16x8xf32> to vector<8x8xf32>
    %c0_131 = arith.constant 0 : index
    %c3_132 = arith.constant 3 : index
    %c0_133 = arith.constant 0 : index
    %c0_134 = arith.constant 0 : index
    %346 = vector.load %arg9[%c0_131, %c3_132, %c0_133, %c0_134] : memref<2x4x8x8xf32, #tpu.memory_space<vmem>>, vector<1x1x8x8xf32>
    %347 = vector.shape_cast %346 : vector<1x1x8x8xf32> to vector<8x8xf32>
    %348 = arith.truncf %343 : vector<8x8xf32> to vector<8x8xbf16>
    %349 = arith.truncf %344 : vector<8x8xf32> to vector<8x8xbf16>
    %cst_135 = arith.constant dense<0.000000e+00> : vector<8x8xf32>
    %350 = tpu.matmul %348, %349, %cst_135 {dimension_numbers = #tpu.dot_dimension_numbers<[1], [1], [0], [0], [0, 0, 1, 0], [], []>} : vector<8x8xbf16>, vector<8x8xbf16>, vector<8x8xf32> -> vector<8x8xf32>
    %351 = arith.addf %350, %347 : vector<8x8xf32>
    %cst_136 = arith.constant dense<0xFF800000> : vector<8xf32>
    %352 = vector.multi_reduction <maximumf>, %351, %cst_136 [1] : vector<8x8xf32> to vector<8xf32>
    %353 = vector.shape_cast %352 : vector<8xf32> to vector<8x1xf32>
    %354 = vector.broadcast %353 : vector<8x1xf32> to vector<8x8xf32>
    %355 = arith.subf %351, %354 : vector<8x8xf32>
    %356 = math.exp %355 : vector<8x8xf32>
    %cst_137 = arith.constant dense<0.000000e+00> : vector<8xf32>
    %357 = vector.multi_reduction <add>, %356, %cst_137 [1] : vector<8x8xf32> to vector<8xf32>
    %358 = vector.shape_cast %357 : vector<8xf32> to vector<8x1xf32>
    %359 = tpu.reciprocal %358 {approx = true} : vector<8x1xf32> -> vector<8x1xf32>
    %360 = vector.broadcast %359 : vector<8x1xf32> to vector<8x8xf32>
    %361 = arith.mulf %356, %360 : vector<8x8xf32>
    %362 = arith.truncf %361 : vector<8x8xf32> to vector<8x8xbf16>
    %363 = arith.truncf %345 : vector<8x8xf32> to vector<8x8xbf16>
    %cst_138 = arith.constant dense<0.000000e+00> : vector<8x8xf32>
    %364 = tpu.matmul %362, %363, %cst_138 {dimension_numbers = #tpu.dot_dimension_numbers<[1], [0], [0], [1], [0, 0, 1, 1], [], []>} : vector<8x8xbf16>, vector<8x8xbf16>, vector<8x8xf32> -> vector<8x8xf32>
    %365 = tpu.concatenate %298, %320, %342, %364 in 1 : vector<8x8xf32>, vector<8x8xf32>, vector<8x8xf32>, vector<8x8xf32> -> vector<8x32xf32>
    %366 = arith.truncf %365 : vector<8x32xf32> to vector<8x32xbf16>
    %cst_139 = arith.constant dense<0.000000e+00> : vector<8x32xf32>
    %367 = tpu.matmul %366, %250, %cst_139 {dimension_numbers = #tpu.dot_dimension_numbers<[1], [0], [0], [1], [0, 0, 1, 1], [], []>} : vector<8x32xbf16>, vector<32x32xbf16>, vector<8x32xf32> -> vector<8x32xf32>
    %368 = vector.extract_strided_slice %265 {offsets = [8, 0], sizes = [8, 8], strides = [1, 1]} : vector<16x8xf32> to vector<8x8xf32>
    %369 = vector.extract_strided_slice %269 {offsets = [8, 0], sizes = [8, 8], strides = [1, 1]} : vector<16x8xf32> to vector<8x8xf32>
    %370 = vector.extract_strided_slice %273 {offsets = [8, 0], sizes = [8, 8], strides = [1, 1]} : vector<16x8xf32> to vector<8x8xf32>
    %c1_140 = arith.constant 1 : index
    %c0_141 = arith.constant 0 : index
    %c0_142 = arith.constant 0 : index
    %c0_143 = arith.constant 0 : index
    %371 = vector.load %arg9[%c1_140, %c0_141, %c0_142, %c0_143] : memref<2x4x8x8xf32, #tpu.memory_space<vmem>>, vector<1x1x8x8xf32>
    %372 = vector.shape_cast %371 : vector<1x1x8x8xf32> to vector<8x8xf32>
    %373 = arith.truncf %368 : vector<8x8xf32> to vector<8x8xbf16>
    %374 = arith.truncf %369 : vector<8x8xf32> to vector<8x8xbf16>
    %cst_144 = arith.constant dense<0.000000e+00> : vector<8x8xf32>
    %375 = tpu.matmul %373, %374, %cst_144 {dimension_numbers = #tpu.dot_dimension_numbers<[1], [1], [0], [0], [0, 0, 1, 0], [], []>} : vector<8x8xbf16>, vector<8x8xbf16>, vector<8x8xf32> -> vector<8x8xf32>
    %376 = arith.addf %375, %372 : vector<8x8xf32>
    %cst_145 = arith.constant dense<0xFF800000> : vector<8xf32>
    %377 = vector.multi_reduction <maximumf>, %376, %cst_145 [1] : vector<8x8xf32> to vector<8xf32>
    %378 = vector.shape_cast %377 : vector<8xf32> to vector<8x1xf32>
    %379 = vector.broadcast %378 : vector<8x1xf32> to vector<8x8xf32>
    %380 = arith.subf %376, %379 : vector<8x8xf32>
    %381 = math.exp %380 : vector<8x8xf32>
    %cst_146 = arith.constant dense<0.000000e+00> : vector<8xf32>
    %382 = vector.multi_reduction <add>, %381, %cst_146 [1] : vector<8x8xf32> to vector<8xf32>
    %383 = vector.shape_cast %382 : vector<8xf32> to vector<8x1xf32>
    %384 = tpu.reciprocal %383 {approx = true} : vector<8x1xf32> -> vector<8x1xf32>
    %385 = vector.broadcast %384 : vector<8x1xf32> to vector<8x8xf32>
    %386 = arith.mulf %381, %385 : vector<8x8xf32>
    %387 = arith.truncf %386 : vector<8x8xf32> to vector<8x8xbf16>
    %388 = arith.truncf %370 : vector<8x8xf32> to vector<8x8xbf16>
    %cst_147 = arith.constant dense<0.000000e+00> : vector<8x8xf32>
    %389 = tpu.matmul %387, %388, %cst_147 {dimension_numbers = #tpu.dot_dimension_numbers<[1], [0], [0], [1], [0, 0, 1, 1], [], []>} : vector<8x8xbf16>, vector<8x8xbf16>, vector<8x8xf32> -> vector<8x8xf32>
    %390 = vector.extract_strided_slice %266 {offsets = [8, 0], sizes = [8, 8], strides = [1, 1]} : vector<16x8xf32> to vector<8x8xf32>
    %391 = vector.extract_strided_slice %270 {offsets = [8, 0], sizes = [8, 8], strides = [1, 1]} : vector<16x8xf32> to vector<8x8xf32>
    %392 = vector.extract_strided_slice %274 {offsets = [8, 0], sizes = [8, 8], strides = [1, 1]} : vector<16x8xf32> to vector<8x8xf32>
    %c1_148 = arith.constant 1 : index
    %c1_149 = arith.constant 1 : index
    %c0_150 = arith.constant 0 : index
    %c0_151 = arith.constant 0 : index
    %393 = vector.load %arg9[%c1_148, %c1_149, %c0_150, %c0_151] : memref<2x4x8x8xf32, #tpu.memory_space<vmem>>, vector<1x1x8x8xf32>
    %394 = vector.shape_cast %393 : vector<1x1x8x8xf32> to vector<8x8xf32>
    %395 = arith.truncf %390 : vector<8x8xf32> to vector<8x8xbf16>
    %396 = arith.truncf %391 : vector<8x8xf32> to vector<8x8xbf16>
    %cst_152 = arith.constant dense<0.000000e+00> : vector<8x8xf32>
    %397 = tpu.matmul %395, %396, %cst_152 {dimension_numbers = #tpu.dot_dimension_numbers<[1], [1], [0], [0], [0, 0, 1, 0], [], []>} : vector<8x8xbf16>, vector<8x8xbf16>, vector<8x8xf32> -> vector<8x8xf32>
    %398 = arith.addf %397, %394 : vector<8x8xf32>
    %cst_153 = arith.constant dense<0xFF800000> : vector<8xf32>
    %399 = vector.multi_reduction <maximumf>, %398, %cst_153 [1] : vector<8x8xf32> to vector<8xf32>
    %400 = vector.shape_cast %399 : vector<8xf32> to vector<8x1xf32>
    %401 = vector.broadcast %400 : vector<8x1xf32> to vector<8x8xf32>
    %402 = arith.subf %398, %401 : vector<8x8xf32>
    %403 = math.exp %402 : vector<8x8xf32>
    %cst_154 = arith.constant dense<0.000000e+00> : vector<8xf32>
    %404 = vector.multi_reduction <add>, %403, %cst_154 [1] : vector<8x8xf32> to vector<8xf32>
    %405 = vector.shape_cast %404 : vector<8xf32> to vector<8x1xf32>
    %406 = tpu.reciprocal %405 {approx = true} : vector<8x1xf32> -> vector<8x1xf32>
    %407 = vector.broadcast %406 : vector<8x1xf32> to vector<8x8xf32>
    %408 = arith.mulf %403, %407 : vector<8x8xf32>
    %409 = arith.truncf %408 : vector<8x8xf32> to vector<8x8xbf16>
    %410 = arith.truncf %392 : vector<8x8xf32> to vector<8x8xbf16>
    %cst_155 = arith.constant dense<0.000000e+00> : vector<8x8xf32>
    %411 = tpu.matmul %409, %410, %cst_155 {dimension_numbers = #tpu.dot_dimension_numbers<[1], [0], [0], [1], [0, 0, 1, 1], [], []>} : vector<8x8xbf16>, vector<8x8xbf16>, vector<8x8xf32> -> vector<8x8xf32>
    %412 = vector.extract_strided_slice %267 {offsets = [8, 0], sizes = [8, 8], strides = [1, 1]} : vector<16x8xf32> to vector<8x8xf32>
    %413 = vector.extract_strided_slice %271 {offsets = [8, 0], sizes = [8, 8], strides = [1, 1]} : vector<16x8xf32> to vector<8x8xf32>
    %414 = vector.extract_strided_slice %275 {offsets = [8, 0], sizes = [8, 8], strides = [1, 1]} : vector<16x8xf32> to vector<8x8xf32>
    %c1_156 = arith.constant 1 : index
    %c2_157 = arith.constant 2 : index
    %c0_158 = arith.constant 0 : index
    %c0_159 = arith.constant 0 : index
    %415 = vector.load %arg9[%c1_156, %c2_157, %c0_158, %c0_159] : memref<2x4x8x8xf32, #tpu.memory_space<vmem>>, vector<1x1x8x8xf32>
    %416 = vector.shape_cast %415 : vector<1x1x8x8xf32> to vector<8x8xf32>
    %417 = arith.truncf %412 : vector<8x8xf32> to vector<8x8xbf16>
    %418 = arith.truncf %413 : vector<8x8xf32> to vector<8x8xbf16>
    %cst_160 = arith.constant dense<0.000000e+00> : vector<8x8xf32>
    %419 = tpu.matmul %417, %418, %cst_160 {dimension_numbers = #tpu.dot_dimension_numbers<[1], [1], [0], [0], [0, 0, 1, 0], [], []>} : vector<8x8xbf16>, vector<8x8xbf16>, vector<8x8xf32> -> vector<8x8xf32>
    %420 = arith.addf %419, %416 : vector<8x8xf32>
    %cst_161 = arith.constant dense<0xFF800000> : vector<8xf32>
    %421 = vector.multi_reduction <maximumf>, %420, %cst_161 [1] : vector<8x8xf32> to vector<8xf32>
    %422 = vector.shape_cast %421 : vector<8xf32> to vector<8x1xf32>
    %423 = vector.broadcast %422 : vector<8x1xf32> to vector<8x8xf32>
    %424 = arith.subf %420, %423 : vector<8x8xf32>
    %425 = math.exp %424 : vector<8x8xf32>
    %cst_162 = arith.constant dense<0.000000e+00> : vector<8xf32>
    %426 = vector.multi_reduction <add>, %425, %cst_162 [1] : vector<8x8xf32> to vector<8xf32>
    %427 = vector.shape_cast %426 : vector<8xf32> to vector<8x1xf32>
    %428 = tpu.reciprocal %427 {approx = true} : vector<8x1xf32> -> vector<8x1xf32>
    %429 = vector.broadcast %428 : vector<8x1xf32> to vector<8x8xf32>
    %430 = arith.mulf %425, %429 : vector<8x8xf32>
    %431 = arith.truncf %430 : vector<8x8xf32> to vector<8x8xbf16>
    %432 = arith.truncf %414 : vector<8x8xf32> to vector<8x8xbf16>
    %cst_163 = arith.constant dense<0.000000e+00> : vector<8x8xf32>
    %433 = tpu.matmul %431, %432, %cst_163 {dimension_numbers = #tpu.dot_dimension_numbers<[1], [0], [0], [1], [0, 0, 1, 1], [], []>} : vector<8x8xbf16>, vector<8x8xbf16>, vector<8x8xf32> -> vector<8x8xf32>
    %434 = vector.extract_strided_slice %268 {offsets = [8, 0], sizes = [8, 8], strides = [1, 1]} : vector<16x8xf32> to vector<8x8xf32>
    %435 = vector.extract_strided_slice %272 {offsets = [8, 0], sizes = [8, 8], strides = [1, 1]} : vector<16x8xf32> to vector<8x8xf32>
    %436 = vector.extract_strided_slice %276 {offsets = [8, 0], sizes = [8, 8], strides = [1, 1]} : vector<16x8xf32> to vector<8x8xf32>
    %c1_164 = arith.constant 1 : index
    %c3_165 = arith.constant 3 : index
    %c0_166 = arith.constant 0 : index
    %c0_167 = arith.constant 0 : index
    %437 = vector.load %arg9[%c1_164, %c3_165, %c0_166, %c0_167] : memref<2x4x8x8xf32, #tpu.memory_space<vmem>>, vector<1x1x8x8xf32>
    %438 = vector.shape_cast %437 : vector<1x1x8x8xf32> to vector<8x8xf32>
    %439 = arith.truncf %434 : vector<8x8xf32> to vector<8x8xbf16>
    %440 = arith.truncf %435 : vector<8x8xf32> to vector<8x8xbf16>
    %cst_168 = arith.constant dense<0.000000e+00> : vector<8x8xf32>
    %441 = tpu.matmul %439, %440, %cst_168 {dimension_numbers = #tpu.dot_dimension_numbers<[1], [1], [0], [0], [0, 0, 1, 0], [], []>} : vector<8x8xbf16>, vector<8x8xbf16>, vector<8x8xf32> -> vector<8x8xf32>
    %442 = arith.addf %441, %438 : vector<8x8xf32>
    %cst_169 = arith.constant dense<0xFF800000> : vector<8xf32>
    %443 = vector.multi_reduction <maximumf>, %442, %cst_169 [1] : vector<8x8xf32> to vector<8xf32>
    %444 = vector.shape_cast %443 : vector<8xf32> to vector<8x1xf32>
    %445 = vector.broadcast %444 : vector<8x1xf32> to vector<8x8xf32>
    %446 = arith.subf %442, %445 : vector<8x8xf32>
    %447 = math.exp %446 : vector<8x8xf32>
    %cst_170 = arith.constant dense<0.000000e+00> : vector<8xf32>
    %448 = vector.multi_reduction <add>, %447, %cst_170 [1] : vector<8x8xf32> to vector<8xf32>
    %449 = vector.shape_cast %448 : vector<8xf32> to vector<8x1xf32>
    %450 = tpu.reciprocal %449 {approx = true} : vector<8x1xf32> -> vector<8x1xf32>
    %451 = vector.broadcast %450 : vector<8x1xf32> to vector<8x8xf32>
    %452 = arith.mulf %447, %451 : vector<8x8xf32>
    %453 = arith.truncf %452 : vector<8x8xf32> to vector<8x8xbf16>
    %454 = arith.truncf %436 : vector<8x8xf32> to vector<8x8xbf16>
    %cst_171 = arith.constant dense<0.000000e+00> : vector<8x8xf32>
    %455 = tpu.matmul %453, %454, %cst_171 {dimension_numbers = #tpu.dot_dimension_numbers<[1], [0], [0], [1], [0, 0, 1, 1], [], []>} : vector<8x8xbf16>, vector<8x8xbf16>, vector<8x8xf32> -> vector<8x8xf32>
    %456 = tpu.concatenate %389, %411, %433, %455 in 1 : vector<8x8xf32>, vector<8x8xf32>, vector<8x8xf32>, vector<8x8xf32> -> vector<8x32xf32>
    %457 = arith.truncf %456 : vector<8x32xf32> to vector<8x32xbf16>
    %cst_172 = arith.constant dense<0.000000e+00> : vector<8x32xf32>
    %458 = tpu.matmul %457, %250, %cst_172 {dimension_numbers = #tpu.dot_dimension_numbers<[1], [0], [0], [1], [0, 0, 1, 1], [], []>} : vector<8x32xbf16>, vector<32x32xbf16>, vector<8x32xf32> -> vector<8x32xf32>
    %459 = tpu.concatenate %367, %458 in 0 : vector<8x32xf32>, vector<8x32xf32> -> vector<16x32xf32>
    %460 = arith.addf %244, %459 : vector<16x32xf32>
    %c1_173 = arith.constant 1 : index
    %c0_174 = arith.constant 0 : index
    %c0_175 = arith.constant 0 : index
    %461 = vector.load %arg5[%c1_173, %c0_174, %c0_175] : memref<2x1x32xf32, #tpu.memory_space<vmem>>, vector<1x1x32xf32>
    %462 = vector.shape_cast %461 : vector<1x1x32xf32> to vector<1x32xf32>
    %c1_176 = arith.constant 1 : index
    %c0_177 = arith.constant 0 : index
    %c0_178 = arith.constant 0 : index
    %463 = vector.load %arg6[%c1_176, %c0_177, %c0_178] : memref<2x32x64xbf16, #tpu.memory_space<vmem>>, vector<1x32x64xbf16>
    %464 = vector.shape_cast %463 : vector<1x32x64xbf16> to vector<32x64xbf16>
    %c1_179 = arith.constant 1 : index
    %c0_180 = arith.constant 0 : index
    %c0_181 = arith.constant 0 : index
    %465 = vector.load %arg7[%c1_179, %c0_180, %c0_181] : memref<2x64x32xbf16, #tpu.memory_space<vmem>>, vector<1x64x32xbf16>
    %466 = vector.shape_cast %465 : vector<1x64x32xbf16> to vector<64x32xbf16>
    %467 = arith.mulf %460, %460 : vector<16x32xf32>
    %cst_182 = arith.constant dense<0.000000e+00> : vector<16xf32>
    %468 = vector.multi_reduction <add>, %467, %cst_182 [1] : vector<16x32xf32> to vector<16xf32>
    %469 = vector.shape_cast %468 : vector<16xf32> to vector<16x1xf32>
    %cst_183 = arith.constant 3.200000e+01 : f32
    %470 = vector.broadcast %cst_183 : f32 to vector<16x1xf32>
    %471 = arith.divf %469, %470 : vector<16x1xf32>
    %cst_184 = arith.constant 9.99999997E-7 : f32
    %472 = vector.broadcast %cst_184 : f32 to vector<16x1xf32>
    %473 = arith.addf %471, %472 : vector<16x1xf32>
    %474 = math.rsqrt %473 : vector<16x1xf32>
    %475 = vector.broadcast %474 : vector<16x1xf32> to vector<16x32xf32>
    %476 = arith.mulf %460, %475 : vector<16x32xf32>
    %477 = vector.broadcast %462 : vector<1x32xf32> to vector<16x32xf32>
    %478 = arith.mulf %476, %477 : vector<16x32xf32>
    %479 = arith.truncf %478 : vector<16x32xf32> to vector<16x32xbf16>
    %cst_185 = arith.constant dense<0.000000e+00> : vector<16x64xf32>
    %480 = tpu.matmul %479, %464, %cst_185 {dimension_numbers = #tpu.dot_dimension_numbers<[1], [0], [0], [1], [0, 0, 1, 1], [], []>} : vector<16x32xbf16>, vector<32x64xbf16>, vector<16x64xf32> -> vector<16x64xf32>
    %cst_186 = arith.constant 0.000000e+00 : f32
    %481 = vector.broadcast %cst_186 : f32 to vector<16x64xf32>
    %482 = arith.maximumf %480, %481 : vector<16x64xf32>
    %483 = arith.truncf %482 : vector<16x64xf32> to vector<16x64xbf16>
    %cst_187 = arith.constant dense<0.000000e+00> : vector<16x32xf32>
    %484 = tpu.matmul %483, %466, %cst_187 {dimension_numbers = #tpu.dot_dimension_numbers<[1], [0], [0], [1], [0, 0, 1, 1], [], []>} : vector<16x64xbf16>, vector<64x32xbf16>, vector<16x32xf32> -> vector<16x32xf32>
    %485 = arith.addf %460, %484 : vector<16x32xf32>
    %c0_188 = arith.constant 0 : index
    %c0_189 = arith.constant 0 : index
    %486 = vector.load %arg8[%c0_188, %c0_189] : memref<1x32xf32, #tpu.memory_space<vmem>>, vector<1x32xf32>
    %487 = arith.mulf %485, %485 : vector<16x32xf32>
    %cst_190 = arith.constant dense<0.000000e+00> : vector<16xf32>
    %488 = vector.multi_reduction <add>, %487, %cst_190 [1] : vector<16x32xf32> to vector<16xf32>
    %489 = vector.shape_cast %488 : vector<16xf32> to vector<16x1xf32>
    %cst_191 = arith.constant 3.200000e+01 : f32
    %490 = vector.broadcast %cst_191 : f32 to vector<16x1xf32>
    %491 = arith.divf %489, %490 : vector<16x1xf32>
    %cst_192 = arith.constant 9.99999997E-7 : f32
    %492 = vector.broadcast %cst_192 : f32 to vector<16x1xf32>
    %493 = arith.addf %491, %492 : vector<16x1xf32>
    %494 = math.rsqrt %493 : vector<16x1xf32>
    %495 = vector.broadcast %494 : vector<16x1xf32> to vector<16x32xf32>
    %496 = arith.mulf %485, %495 : vector<16x32xf32>
    %497 = vector.broadcast %486 : vector<1x32xf32> to vector<16x32xf32>
    %498 = arith.mulf %496, %497 : vector<16x32xf32>
    %c0_193 = arith.constant 0 : index
    %c0_194 = arith.constant 0 : index
    %499 = vector.load %arg27[%c0_193, %c0_194] : memref<16x32xf32, #tpu.memory_space<vmem>>, vector<16x32xf32>
    tpu.vector_store %arg27[%c0_193, %c0_194], %498 {strides = array<i32>} : memref<16x32xf32, #tpu.memory_space<vmem>>, vector<16x32xf32>,
    %500 = tpu.iota {dimensions = array<i32: 1>} : vector<16x128xi32>
    %c0_195 = arith.constant 0 : index
    %c0_196 = arith.constant 0 : index
    %501 = vector.load %arg10[%c0_195, %c0_196] : memref<16x1xi32, #tpu.memory_space<vmem>>, vector<16x1xi32>
    %502 = vector.broadcast %501 : vector<16x1xi32> to vector<16x128xi32>
    %503 = arith.cmpi eq, %500, %502 : vector<16x128xi32>
    %504 = arith.extui %503 : vector<16x128xi1> to vector<16x128xi32>
    %505 = arith.sitofp %504 : vector<16x128xi32> to vector<16x128xf32>
    %506 = arith.truncf %505 : vector<16x128xf32> to vector<16x128xbf16>
    %c0_197 = arith.constant 0 : index
    %c0_198 = arith.constant 0 : index
    %507 = vector.load %arg11[%c0_197, %c0_198] : memref<128x32xbf16, #tpu.memory_space<vmem>>, vector<128x32xbf16>
    %cst_199 = arith.constant dense<0.000000e+00> : vector<16x32xf32>
    %508 = tpu.matmul %506, %507, %cst_199 {dimension_numbers = #tpu.dot_dimension_numbers<[1], [0], [0], [1], [0, 0, 1, 1], [], []>} : vector<16x128xbf16>, vector<128x32xbf16>, vector<16x32xf32> -> vector<16x32xf32>
    %c0_200 = arith.constant 0 : index
    %c0_201 = arith.constant 0 : index
    %c0_202 = arith.constant 0 : index
    %509 = vector.load %arg12[%c0_200, %c0_201, %c0_202] : memref<2x1x32xf32, #tpu.memory_space<vmem>>, vector<1x1x32xf32>
    %510 = vector.shape_cast %509 : vector<1x1x32xf32> to vector<1x32xf32>
    %c0_203 = arith.constant 0 : index
    %c0_204 = arith.constant 0 : index
    %c0_205 = arith.constant 0 : index
    %511 = vector.load %arg13[%c0_203, %c0_204, %c0_205] : memref<2x32x96xbf16, #tpu.memory_space<vmem>>, vector<1x32x96xbf16>
    %512 = vector.shape_cast %511 : vector<1x32x96xbf16> to vector<32x96xbf16>
    %c0_206 = arith.constant 0 : index
    %c0_207 = arith.constant 0 : index
    %c0_208 = arith.constant 0 : index
    %513 = vector.load %arg14[%c0_206, %c0_207, %c0_208] : memref<2x32x32xbf16, #tpu.memory_space<vmem>>, vector<1x32x32xbf16>
    %514 = vector.shape_cast %513 : vector<1x32x32xbf16> to vector<32x32xbf16>
    %515 = arith.mulf %508, %508 : vector<16x32xf32>
    %cst_209 = arith.constant dense<0.000000e+00> : vector<16xf32>
    %516 = vector.multi_reduction <add>, %515, %cst_209 [1] : vector<16x32xf32> to vector<16xf32>
    %517 = vector.shape_cast %516 : vector<16xf32> to vector<16x1xf32>
    %cst_210 = arith.constant 3.200000e+01 : f32
    %518 = vector.broadcast %cst_210 : f32 to vector<16x1xf32>
    %519 = arith.divf %517, %518 : vector<16x1xf32>
    %cst_211 = arith.constant 9.99999997E-7 : f32
    %520 = vector.broadcast %cst_211 : f32 to vector<16x1xf32>
    %521 = arith.addf %519, %520 : vector<16x1xf32>
    %522 = math.rsqrt %521 : vector<16x1xf32>
    %523 = vector.broadcast %522 : vector<16x1xf32> to vector<16x32xf32>
    %524 = arith.mulf %508, %523 : vector<16x32xf32>
    %525 = vector.broadcast %510 : vector<1x32xf32> to vector<16x32xf32>
    %526 = arith.mulf %524, %525 : vector<16x32xf32>
    %527 = arith.truncf %526 : vector<16x32xf32> to vector<16x32xbf16>
    %cst_212 = arith.constant dense<0.000000e+00> : vector<16x96xf32>
    %528 = tpu.matmul %527, %512, %cst_212 {dimension_numbers = #tpu.dot_dimension_numbers<[1], [0], [0], [1], [0, 0, 1, 1], [], []>} : vector<16x32xbf16>, vector<32x96xbf16>, vector<16x96xf32> -> vector<16x96xf32>
    %529 = vector.extract_strided_slice %528 {offsets = [0, 0], sizes = [16, 8], strides = [1, 1]} : vector<16x96xf32> to vector<16x8xf32>
    %530 = vector.extract_strided_slice %528 {offsets = [0, 8], sizes = [16, 8], strides = [1, 1]} : vector<16x96xf32> to vector<16x8xf32>
    %531 = vector.extract_strided_slice %528 {offsets = [0, 16], sizes = [16, 8], strides = [1, 1]} : vector<16x96xf32> to vector<16x8xf32>
    %532 = vector.extract_strided_slice %528 {offsets = [0, 24], sizes = [16, 8], strides = [1, 1]} : vector<16x96xf32> to vector<16x8xf32>
    %533 = vector.extract_strided_slice %528 {offsets = [0, 32], sizes = [16, 8], strides = [1, 1]} : vector<16x96xf32> to vector<16x8xf32>
    %534 = vector.extract_strided_slice %528 {offsets = [0, 40], sizes = [16, 8], strides = [1, 1]} : vector<16x96xf32> to vector<16x8xf32>
    %535 = vector.extract_strided_slice %528 {offsets = [0, 48], sizes = [16, 8], strides = [1, 1]} : vector<16x96xf32> to vector<16x8xf32>
    %536 = vector.extract_strided_slice %528 {offsets = [0, 56], sizes = [16, 8], strides = [1, 1]} : vector<16x96xf32> to vector<16x8xf32>
    %537 = vector.extract_strided_slice %528 {offsets = [0, 64], sizes = [16, 8], strides = [1, 1]} : vector<16x96xf32> to vector<16x8xf32>
    %538 = vector.extract_strided_slice %528 {offsets = [0, 72], sizes = [16, 8], strides = [1, 1]} : vector<16x96xf32> to vector<16x8xf32>
    %539 = vector.extract_strided_slice %528 {offsets = [0, 80], sizes = [16, 8], strides = [1, 1]} : vector<16x96xf32> to vector<16x8xf32>
    %540 = vector.extract_strided_slice %528 {offsets = [0, 88], sizes = [16, 8], strides = [1, 1]} : vector<16x96xf32> to vector<16x8xf32>
    %541 = vector.extract_strided_slice %529 {offsets = [0, 0], sizes = [8, 8], strides = [1, 1]} : vector<16x8xf32> to vector<8x8xf32>
    %542 = vector.extract_strided_slice %533 {offsets = [0, 0], sizes = [8, 8], strides = [1, 1]} : vector<16x8xf32> to vector<8x8xf32>
    %543 = vector.extract_strided_slice %537 {offsets = [0, 0], sizes = [8, 8], strides = [1, 1]} : vector<16x8xf32> to vector<8x8xf32>
    %c0_213 = arith.constant 0 : index
    %c0_214 = arith.constant 0 : index
    %c0_215 = arith.constant 0 : index
    %544 = vector.load %arg23[%c0_213, %c0_214, %c0_215] : memref<4x8x8xf32, #tpu.memory_space<vmem>>, vector<1x8x8xf32>
    %545 = vector.shape_cast %544 : vector<1x8x8xf32> to vector<8x8xf32>
    %546 = arith.truncf %541 : vector<8x8xf32> to vector<8x8xbf16>
    %547 = arith.truncf %542 : vector<8x8xf32> to vector<8x8xbf16>
    %cst_216 = arith.constant dense<0.000000e+00> : vector<8x8xf32>
    %548 = tpu.matmul %546, %547, %cst_216 {dimension_numbers = #tpu.dot_dimension_numbers<[1], [1], [0], [0], [0, 0, 1, 0], [], []>} : vector<8x8xbf16>, vector<8x8xbf16>, vector<8x8xf32> -> vector<8x8xf32>
    %549 = arith.addf %548, %545 : vector<8x8xf32>
    %cst_217 = arith.constant dense<0xFF800000> : vector<8xf32>
    %550 = vector.multi_reduction <maximumf>, %549, %cst_217 [1] : vector<8x8xf32> to vector<8xf32>
    %551 = vector.shape_cast %550 : vector<8xf32> to vector<8x1xf32>
    %552 = vector.broadcast %551 : vector<8x1xf32> to vector<8x8xf32>
    %553 = arith.subf %549, %552 : vector<8x8xf32>
    %554 = math.exp %553 : vector<8x8xf32>
    %cst_218 = arith.constant dense<0.000000e+00> : vector<8xf32>
    %555 = vector.multi_reduction <add>, %554, %cst_218 [1] : vector<8x8xf32> to vector<8xf32>
    %556 = vector.shape_cast %555 : vector<8xf32> to vector<8x1xf32>
    %557 = tpu.reciprocal %556 {approx = true} : vector<8x1xf32> -> vector<8x1xf32>
    %558 = vector.broadcast %557 : vector<8x1xf32> to vector<8x8xf32>
    %559 = arith.mulf %554, %558 : vector<8x8xf32>
    %560 = arith.truncf %559 : vector<8x8xf32> to vector<8x8xbf16>
    %561 = arith.truncf %543 : vector<8x8xf32> to vector<8x8xbf16>
    %cst_219 = arith.constant dense<0.000000e+00> : vector<8x8xf32>
    %562 = tpu.matmul %560, %561, %cst_219 {dimension_numbers = #tpu.dot_dimension_numbers<[1], [0], [0], [1], [0, 0, 1, 1], [], []>} : vector<8x8xbf16>, vector<8x8xbf16>, vector<8x8xf32> -> vector<8x8xf32>
    %563 = vector.extract_strided_slice %530 {offsets = [0, 0], sizes = [8, 8], strides = [1, 1]} : vector<16x8xf32> to vector<8x8xf32>
    %564 = vector.extract_strided_slice %534 {offsets = [0, 0], sizes = [8, 8], strides = [1, 1]} : vector<16x8xf32> to vector<8x8xf32>
    %565 = vector.extract_strided_slice %538 {offsets = [0, 0], sizes = [8, 8], strides = [1, 1]} : vector<16x8xf32> to vector<8x8xf32>
    %c1_220 = arith.constant 1 : index
    %c0_221 = arith.constant 0 : index
    %c0_222 = arith.constant 0 : index
    %566 = vector.load %arg23[%c1_220, %c0_221, %c0_222] : memref<4x8x8xf32, #tpu.memory_space<vmem>>, vector<1x8x8xf32>
    %567 = vector.shape_cast %566 : vector<1x8x8xf32> to vector<8x8xf32>
    %568 = arith.truncf %563 : vector<8x8xf32> to vector<8x8xbf16>
    %569 = arith.truncf %564 : vector<8x8xf32> to vector<8x8xbf16>
    %cst_223 = arith.constant dense<0.000000e+00> : vector<8x8xf32>
    %570 = tpu.matmul %568, %569, %cst_223 {dimension_numbers = #tpu.dot_dimension_numbers<[1], [1], [0], [0], [0, 0, 1, 0], [], []>} : vector<8x8xbf16>, vector<8x8xbf16>, vector<8x8xf32> -> vector<8x8xf32>
    %571 = arith.addf %570, %567 : vector<8x8xf32>
    %cst_224 = arith.constant dense<0xFF800000> : vector<8xf32>
    %572 = vector.multi_reduction <maximumf>, %571, %cst_224 [1] : vector<8x8xf32> to vector<8xf32>
    %573 = vector.shape_cast %572 : vector<8xf32> to vector<8x1xf32>
    %574 = vector.broadcast %573 : vector<8x1xf32> to vector<8x8xf32>
    %575 = arith.subf %571, %574 : vector<8x8xf32>
    %576 = math.exp %575 : vector<8x8xf32>
    %cst_225 = arith.constant dense<0.000000e+00> : vector<8xf32>
    %577 = vector.multi_reduction <add>, %576, %cst_225 [1] : vector<8x8xf32> to vector<8xf32>
    %578 = vector.shape_cast %577 : vector<8xf32> to vector<8x1xf32>
    %579 = tpu.reciprocal %578 {approx = true} : vector<8x1xf32> -> vector<8x1xf32>
    %580 = vector.broadcast %579 : vector<8x1xf32> to vector<8x8xf32>
    %581 = arith.mulf %576, %580 : vector<8x8xf32>
    %582 = arith.truncf %581 : vector<8x8xf32> to vector<8x8xbf16>
    %583 = arith.truncf %565 : vector<8x8xf32> to vector<8x8xbf16>
    %cst_226 = arith.constant dense<0.000000e+00> : vector<8x8xf32>
    %584 = tpu.matmul %582, %583, %cst_226 {dimension_numbers = #tpu.dot_dimension_numbers<[1], [0], [0], [1], [0, 0, 1, 1], [], []>} : vector<8x8xbf16>, vector<8x8xbf16>, vector<8x8xf32> -> vector<8x8xf32>
    %585 = vector.extract_strided_slice %531 {offsets = [0, 0], sizes = [8, 8], strides = [1, 1]} : vector<16x8xf32> to vector<8x8xf32>
    %586 = vector.extract_strided_slice %535 {offsets = [0, 0], sizes = [8, 8], strides = [1, 1]} : vector<16x8xf32> to vector<8x8xf32>
    %587 = vector.extract_strided_slice %539 {offsets = [0, 0], sizes = [8, 8], strides = [1, 1]} : vector<16x8xf32> to vector<8x8xf32>
    %c2_227 = arith.constant 2 : index
    %c0_228 = arith.constant 0 : index
    %c0_229 = arith.constant 0 : index
    %588 = vector.load %arg23[%c2_227, %c0_228, %c0_229] : memref<4x8x8xf32, #tpu.memory_space<vmem>>, vector<1x8x8xf32>
    %589 = vector.shape_cast %588 : vector<1x8x8xf32> to vector<8x8xf32>
    %590 = arith.truncf %585 : vector<8x8xf32> to vector<8x8xbf16>
    %591 = arith.truncf %586 : vector<8x8xf32> to vector<8x8xbf16>
    %cst_230 = arith.constant dense<0.000000e+00> : vector<8x8xf32>
    %592 = tpu.matmul %590, %591, %cst_230 {dimension_numbers = #tpu.dot_dimension_numbers<[1], [1], [0], [0], [0, 0, 1, 0], [], []>} : vector<8x8xbf16>, vector<8x8xbf16>, vector<8x8xf32> -> vector<8x8xf32>
    %593 = arith.addf %592, %589 : vector<8x8xf32>
    %cst_231 = arith.constant dense<0xFF800000> : vector<8xf32>
    %594 = vector.multi_reduction <maximumf>, %593, %cst_231 [1] : vector<8x8xf32> to vector<8xf32>
    %595 = vector.shape_cast %594 : vector<8xf32> to vector<8x1xf32>
    %596 = vector.broadcast %595 : vector<8x1xf32> to vector<8x8xf32>
    %597 = arith.subf %593, %596 : vector<8x8xf32>
    %598 = math.exp %597 : vector<8x8xf32>
    %cst_232 = arith.constant dense<0.000000e+00> : vector<8xf32>
    %599 = vector.multi_reduction <add>, %598, %cst_232 [1] : vector<8x8xf32> to vector<8xf32>
    %600 = vector.shape_cast %599 : vector<8xf32> to vector<8x1xf32>
    %601 = tpu.reciprocal %600 {approx = true} : vector<8x1xf32> -> vector<8x1xf32>
    %602 = vector.broadcast %601 : vector<8x1xf32> to vector<8x8xf32>
    %603 = arith.mulf %598, %602 : vector<8x8xf32>
    %604 = arith.truncf %603 : vector<8x8xf32> to vector<8x8xbf16>
    %605 = arith.truncf %587 : vector<8x8xf32> to vector<8x8xbf16>
    %cst_233 = arith.constant dense<0.000000e+00> : vector<8x8xf32>
    %606 = tpu.matmul %604, %605, %cst_233 {dimension_numbers = #tpu.dot_dimension_numbers<[1], [0], [0], [1], [0, 0, 1, 1], [], []>} : vector<8x8xbf16>, vector<8x8xbf16>, vector<8x8xf32> -> vector<8x8xf32>
    %607 = vector.extract_strided_slice %532 {offsets = [0, 0], sizes = [8, 8], strides = [1, 1]} : vector<16x8xf32> to vector<8x8xf32>
    %608 = vector.extract_strided_slice %536 {offsets = [0, 0], sizes = [8, 8], strides = [1, 1]} : vector<16x8xf32> to vector<8x8xf32>
    %609 = vector.extract_strided_slice %540 {offsets = [0, 0], sizes = [8, 8], strides = [1, 1]} : vector<16x8xf32> to vector<8x8xf32>
    %c3_234 = arith.constant 3 : index
    %c0_235 = arith.constant 0 : index
    %c0_236 = arith.constant 0 : index
    %610 = vector.load %arg23[%c3_234, %c0_235, %c0_236] : memref<4x8x8xf32, #tpu.memory_space<vmem>>, vector<1x8x8xf32>
    %611 = vector.shape_cast %610 : vector<1x8x8xf32> to vector<8x8xf32>
    %612 = arith.truncf %607 : vector<8x8xf32> to vector<8x8xbf16>
    %613 = arith.truncf %608 : vector<8x8xf32> to vector<8x8xbf16>
    %cst_237 = arith.constant dense<0.000000e+00> : vector<8x8xf32>
    %614 = tpu.matmul %612, %613, %cst_237 {dimension_numbers = #tpu.dot_dimension_numbers<[1], [1], [0], [0], [0, 0, 1, 0], [], []>} : vector<8x8xbf16>, vector<8x8xbf16>, vector<8x8xf32> -> vector<8x8xf32>
    %615 = arith.addf %614, %611 : vector<8x8xf32>
    %cst_238 = arith.constant dense<0xFF800000> : vector<8xf32>
    %616 = vector.multi_reduction <maximumf>, %615, %cst_238 [1] : vector<8x8xf32> to vector<8xf32>
    %617 = vector.shape_cast %616 : vector<8xf32> to vector<8x1xf32>
    %618 = vector.broadcast %617 : vector<8x1xf32> to vector<8x8xf32>
    %619 = arith.subf %615, %618 : vector<8x8xf32>
    %620 = math.exp %619 : vector<8x8xf32>
    %cst_239 = arith.constant dense<0.000000e+00> : vector<8xf32>
    %621 = vector.multi_reduction <add>, %620, %cst_239 [1] : vector<8x8xf32> to vector<8xf32>
    %622 = vector.shape_cast %621 : vector<8xf32> to vector<8x1xf32>
    %623 = tpu.reciprocal %622 {approx = true} : vector<8x1xf32> -> vector<8x1xf32>
    %624 = vector.broadcast %623 : vector<8x1xf32> to vector<8x8xf32>
    %625 = arith.mulf %620, %624 : vector<8x8xf32>
    %626 = arith.truncf %625 : vector<8x8xf32> to vector<8x8xbf16>
    %627 = arith.truncf %609 : vector<8x8xf32> to vector<8x8xbf16>
    %cst_240 = arith.constant dense<0.000000e+00> : vector<8x8xf32>
    %628 = tpu.matmul %626, %627, %cst_240 {dimension_numbers = #tpu.dot_dimension_numbers<[1], [0], [0], [1], [0, 0, 1, 1], [], []>} : vector<8x8xbf16>, vector<8x8xbf16>, vector<8x8xf32> -> vector<8x8xf32>
    %629 = tpu.concatenate %562, %584, %606, %628 in 1 : vector<8x8xf32>, vector<8x8xf32>, vector<8x8xf32>, vector<8x8xf32> -> vector<8x32xf32>
    %630 = arith.truncf %629 : vector<8x32xf32> to vector<8x32xbf16>
    %cst_241 = arith.constant dense<0.000000e+00> : vector<8x32xf32>
    %631 = tpu.matmul %630, %514, %cst_241 {dimension_numbers = #tpu.dot_dimension_numbers<[1], [0], [0], [1], [0, 0, 1, 1], [], []>} : vector<8x32xbf16>, vector<32x32xbf16>, vector<8x32xf32> -> vector<8x32xf32>
    %632 = vector.extract_strided_slice %529 {offsets = [8, 0], sizes = [8, 8], strides = [1, 1]} : vector<16x8xf32> to vector<8x8xf32>
    %633 = vector.extract_strided_slice %533 {offsets = [8, 0], sizes = [8, 8], strides = [1, 1]} : vector<16x8xf32> to vector<8x8xf32>
    %634 = vector.extract_strided_slice %537 {offsets = [8, 0], sizes = [8, 8], strides = [1, 1]} : vector<16x8xf32> to vector<8x8xf32>
    %c0_242 = arith.constant 0 : index
    %c0_243 = arith.constant 0 : index
    %c0_244 = arith.constant 0 : index
    %635 = vector.load %arg23[%c0_242, %c0_243, %c0_244] : memref<4x8x8xf32, #tpu.memory_space<vmem>>, vector<1x8x8xf32>
    %636 = vector.shape_cast %635 : vector<1x8x8xf32> to vector<8x8xf32>
    %637 = arith.truncf %632 : vector<8x8xf32> to vector<8x8xbf16>
    %638 = arith.truncf %633 : vector<8x8xf32> to vector<8x8xbf16>
    %cst_245 = arith.constant dense<0.000000e+00> : vector<8x8xf32>
    %639 = tpu.matmul %637, %638, %cst_245 {dimension_numbers = #tpu.dot_dimension_numbers<[1], [1], [0], [0], [0, 0, 1, 0], [], []>} : vector<8x8xbf16>, vector<8x8xbf16>, vector<8x8xf32> -> vector<8x8xf32>
    %640 = arith.addf %639, %636 : vector<8x8xf32>
    %cst_246 = arith.constant dense<0xFF800000> : vector<8xf32>
    %641 = vector.multi_reduction <maximumf>, %640, %cst_246 [1] : vector<8x8xf32> to vector<8xf32>
    %642 = vector.shape_cast %641 : vector<8xf32> to vector<8x1xf32>
    %643 = vector.broadcast %642 : vector<8x1xf32> to vector<8x8xf32>
    %644 = arith.subf %640, %643 : vector<8x8xf32>
    %645 = math.exp %644 : vector<8x8xf32>
    %cst_247 = arith.constant dense<0.000000e+00> : vector<8xf32>
    %646 = vector.multi_reduction <add>, %645, %cst_247 [1] : vector<8x8xf32> to vector<8xf32>
    %647 = vector.shape_cast %646 : vector<8xf32> to vector<8x1xf32>
    %648 = tpu.reciprocal %647 {approx = true} : vector<8x1xf32> -> vector<8x1xf32>
    %649 = vector.broadcast %648 : vector<8x1xf32> to vector<8x8xf32>
    %650 = arith.mulf %645, %649 : vector<8x8xf32>
    %651 = arith.truncf %650 : vector<8x8xf32> to vector<8x8xbf16>
    %652 = arith.truncf %634 : vector<8x8xf32> to vector<8x8xbf16>
    %cst_248 = arith.constant dense<0.000000e+00> : vector<8x8xf32>
    %653 = tpu.matmul %651, %652, %cst_248 {dimension_numbers = #tpu.dot_dimension_numbers<[1], [0], [0], [1], [0, 0, 1, 1], [], []>} : vector<8x8xbf16>, vector<8x8xbf16>, vector<8x8xf32> -> vector<8x8xf32>
    %654 = vector.extract_strided_slice %530 {offsets = [8, 0], sizes = [8, 8], strides = [1, 1]} : vector<16x8xf32> to vector<8x8xf32>
    %655 = vector.extract_strided_slice %534 {offsets = [8, 0], sizes = [8, 8], strides = [1, 1]} : vector<16x8xf32> to vector<8x8xf32>
    %656 = vector.extract_strided_slice %538 {offsets = [8, 0], sizes = [8, 8], strides = [1, 1]} : vector<16x8xf32> to vector<8x8xf32>
    %c1_249 = arith.constant 1 : index
    %c0_250 = arith.constant 0 : index
    %c0_251 = arith.constant 0 : index
    %657 = vector.load %arg23[%c1_249, %c0_250, %c0_251] : memref<4x8x8xf32, #tpu.memory_space<vmem>>, vector<1x8x8xf32>
    %658 = vector.shape_cast %657 : vector<1x8x8xf32> to vector<8x8xf32>
    %659 = arith.truncf %654 : vector<8x8xf32> to vector<8x8xbf16>
    %660 = arith.truncf %655 : vector<8x8xf32> to vector<8x8xbf16>
    %cst_252 = arith.constant dense<0.000000e+00> : vector<8x8xf32>
    %661 = tpu.matmul %659, %660, %cst_252 {dimension_numbers = #tpu.dot_dimension_numbers<[1], [1], [0], [0], [0, 0, 1, 0], [], []>} : vector<8x8xbf16>, vector<8x8xbf16>, vector<8x8xf32> -> vector<8x8xf32>
    %662 = arith.addf %661, %658 : vector<8x8xf32>
    %cst_253 = arith.constant dense<0xFF800000> : vector<8xf32>
    %663 = vector.multi_reduction <maximumf>, %662, %cst_253 [1] : vector<8x8xf32> to vector<8xf32>
    %664 = vector.shape_cast %663 : vector<8xf32> to vector<8x1xf32>
    %665 = vector.broadcast %664 : vector<8x1xf32> to vector<8x8xf32>
    %666 = arith.subf %662, %665 : vector<8x8xf32>
    %667 = math.exp %666 : vector<8x8xf32>
    %cst_254 = arith.constant dense<0.000000e+00> : vector<8xf32>
    %668 = vector.multi_reduction <add>, %667, %cst_254 [1] : vector<8x8xf32> to vector<8xf32>
    %669 = vector.shape_cast %668 : vector<8xf32> to vector<8x1xf32>
    %670 = tpu.reciprocal %669 {approx = true} : vector<8x1xf32> -> vector<8x1xf32>
    %671 = vector.broadcast %670 : vector<8x1xf32> to vector<8x8xf32>
    %672 = arith.mulf %667, %671 : vector<8x8xf32>
    %673 = arith.truncf %672 : vector<8x8xf32> to vector<8x8xbf16>
    %674 = arith.truncf %656 : vector<8x8xf32> to vector<8x8xbf16>
    %cst_255 = arith.constant dense<0.000000e+00> : vector<8x8xf32>
    %675 = tpu.matmul %673, %674, %cst_255 {dimension_numbers = #tpu.dot_dimension_numbers<[1], [0], [0], [1], [0, 0, 1, 1], [], []>} : vector<8x8xbf16>, vector<8x8xbf16>, vector<8x8xf32> -> vector<8x8xf32>
    %676 = vector.extract_strided_slice %531 {offsets = [8, 0], sizes = [8, 8], strides = [1, 1]} : vector<16x8xf32> to vector<8x8xf32>
    %677 = vector.extract_strided_slice %535 {offsets = [8, 0], sizes = [8, 8], strides = [1, 1]} : vector<16x8xf32> to vector<8x8xf32>
    %678 = vector.extract_strided_slice %539 {offsets = [8, 0], sizes = [8, 8], strides = [1, 1]} : vector<16x8xf32> to vector<8x8xf32>
    %c2_256 = arith.constant 2 : index
    %c0_257 = arith.constant 0 : index
    %c0_258 = arith.constant 0 : index
    %679 = vector.load %arg23[%c2_256, %c0_257, %c0_258] : memref<4x8x8xf32, #tpu.memory_space<vmem>>, vector<1x8x8xf32>
    %680 = vector.shape_cast %679 : vector<1x8x8xf32> to vector<8x8xf32>
    %681 = arith.truncf %676 : vector<8x8xf32> to vector<8x8xbf16>
    %682 = arith.truncf %677 : vector<8x8xf32> to vector<8x8xbf16>
    %cst_259 = arith.constant dense<0.000000e+00> : vector<8x8xf32>
    %683 = tpu.matmul %681, %682, %cst_259 {dimension_numbers = #tpu.dot_dimension_numbers<[1], [1], [0], [0], [0, 0, 1, 0], [], []>} : vector<8x8xbf16>, vector<8x8xbf16>, vector<8x8xf32> -> vector<8x8xf32>
    %684 = arith.addf %683, %680 : vector<8x8xf32>
    %cst_260 = arith.constant dense<0xFF800000> : vector<8xf32>
    %685 = vector.multi_reduction <maximumf>, %684, %cst_260 [1] : vector<8x8xf32> to vector<8xf32>
    %686 = vector.shape_cast %685 : vector<8xf32> to vector<8x1xf32>
    %687 = vector.broadcast %686 : vector<8x1xf32> to vector<8x8xf32>
    %688 = arith.subf %684, %687 : vector<8x8xf32>
    %689 = math.exp %688 : vector<8x8xf32>
    %cst_261 = arith.constant dense<0.000000e+00> : vector<8xf32>
    %690 = vector.multi_reduction <add>, %689, %cst_261 [1] : vector<8x8xf32> to vector<8xf32>
    %691 = vector.shape_cast %690 : vector<8xf32> to vector<8x1xf32>
    %692 = tpu.reciprocal %691 {approx = true} : vector<8x1xf32> -> vector<8x1xf32>
    %693 = vector.broadcast %692 : vector<8x1xf32> to vector<8x8xf32>
    %694 = arith.mulf %689, %693 : vector<8x8xf32>
    %695 = arith.truncf %694 : vector<8x8xf32> to vector<8x8xbf16>
    %696 = arith.truncf %678 : vector<8x8xf32> to vector<8x8xbf16>
    %cst_262 = arith.constant dense<0.000000e+00> : vector<8x8xf32>
    %697 = tpu.matmul %695, %696, %cst_262 {dimension_numbers = #tpu.dot_dimension_numbers<[1], [0], [0], [1], [0, 0, 1, 1], [], []>} : vector<8x8xbf16>, vector<8x8xbf16>, vector<8x8xf32> -> vector<8x8xf32>
    %698 = vector.extract_strided_slice %532 {offsets = [8, 0], sizes = [8, 8], strides = [1, 1]} : vector<16x8xf32> to vector<8x8xf32>
    %699 = vector.extract_strided_slice %536 {offsets = [8, 0], sizes = [8, 8], strides = [1, 1]} : vector<16x8xf32> to vector<8x8xf32>
    %700 = vector.extract_strided_slice %540 {offsets = [8, 0], sizes = [8, 8], strides = [1, 1]} : vector<16x8xf32> to vector<8x8xf32>
    %c3_263 = arith.constant 3 : index
    %c0_264 = arith.constant 0 : index
    %c0_265 = arith.constant 0 : index
    %701 = vector.load %arg23[%c3_263, %c0_264, %c0_265] : memref<4x8x8xf32, #tpu.memory_space<vmem>>, vector<1x8x8xf32>
    %702 = vector.shape_cast %701 : vector<1x8x8xf32> to vector<8x8xf32>
    %703 = arith.truncf %698 : vector<8x8xf32> to vector<8x8xbf16>
    %704 = arith.truncf %699 : vector<8x8xf32> to vector<8x8xbf16>
    %cst_266 = arith.constant dense<0.000000e+00> : vector<8x8xf32>
    %705 = tpu.matmul %703, %704, %cst_266 {dimension_numbers = #tpu.dot_dimension_numbers<[1], [1], [0], [0], [0, 0, 1, 0], [], []>} : vector<8x8xbf16>, vector<8x8xbf16>, vector<8x8xf32> -> vector<8x8xf32>
    %706 = arith.addf %705, %702 : vector<8x8xf32>
    %cst_267 = arith.constant dense<0xFF800000> : vector<8xf32>
    %707 = vector.multi_reduction <maximumf>, %706, %cst_267 [1] : vector<8x8xf32> to vector<8xf32>
    %708 = vector.shape_cast %707 : vector<8xf32> to vector<8x1xf32>
    %709 = vector.broadcast %708 : vector<8x1xf32> to vector<8x8xf32>
    %710 = arith.subf %706, %709 : vector<8x8xf32>
    %711 = math.exp %710 : vector<8x8xf32>
    %cst_268 = arith.constant dense<0.000000e+00> : vector<8xf32>
    %712 = vector.multi_reduction <add>, %711, %cst_268 [1] : vector<8x8xf32> to vector<8xf32>
    %713 = vector.shape_cast %712 : vector<8xf32> to vector<8x1xf32>
    %714 = tpu.reciprocal %713 {approx = true} : vector<8x1xf32> -> vector<8x1xf32>
    %715 = vector.broadcast %714 : vector<8x1xf32> to vector<8x8xf32>
    %716 = arith.mulf %711, %715 : vector<8x8xf32>
    %717 = arith.truncf %716 : vector<8x8xf32> to vector<8x8xbf16>
    %718 = arith.truncf %700 : vector<8x8xf32> to vector<8x8xbf16>
    %cst_269 = arith.constant dense<0.000000e+00> : vector<8x8xf32>
    %719 = tpu.matmul %717, %718, %cst_269 {dimension_numbers = #tpu.dot_dimension_numbers<[1], [0], [0], [1], [0, 0, 1, 1], [], []>} : vector<8x8xbf16>, vector<8x8xbf16>, vector<8x8xf32> -> vector<8x8xf32>
    %720 = tpu.concatenate %653, %675, %697, %719 in 1 : vector<8x8xf32>, vector<8x8xf32>, vector<8x8xf32>, vector<8x8xf32> -> vector<8x32xf32>
    %721 = arith.truncf %720 : vector<8x32xf32> to vector<8x32xbf16>
    %cst_270 = arith.constant dense<0.000000e+00> : vector<8x32xf32>
    %722 = tpu.matmul %721, %514, %cst_270 {dimension_numbers = #tpu.dot_dimension_numbers<[1], [0], [0], [1], [0, 0, 1, 1], [], []>} : vector<8x32xbf16>, vector<32x32xbf16>, vector<8x32xf32> -> vector<8x32xf32>
    %723 = tpu.concatenate %631, %722 in 0 : vector<8x32xf32>, vector<8x32xf32> -> vector<16x32xf32>
    %724 = arith.addf %508, %723 : vector<16x32xf32>
    %c0_271 = arith.constant 0 : index
    %c0_272 = arith.constant 0 : index
    %c0_273 = arith.constant 0 : index
    %725 = vector.load %arg15[%c0_271, %c0_272, %c0_273] : memref<2x1x32xf32, #tpu.memory_space<vmem>>, vector<1x1x32xf32>
    %726 = vector.shape_cast %725 : vector<1x1x32xf32> to vector<1x32xf32>
    %c0_274 = arith.constant 0 : index
    %c0_275 = arith.constant 0 : index
    %c0_276 = arith.constant 0 : index
    %727 = vector.load %arg16[%c0_274, %c0_275, %c0_276] : memref<2x32x32xbf16, #tpu.memory_space<vmem>>, vector<1x32x32xbf16>
    %728 = vector.shape_cast %727 : vector<1x32x32xbf16> to vector<32x32xbf16>
    %c0_277 = arith.constant 0 : index
    %c0_278 = arith.constant 0 : index
    %c0_279 = arith.constant 0 : index
    %729 = vector.load %arg17[%c0_277, %c0_278, %c0_279] : memref<2x32x64xbf16, #tpu.memory_space<vmem>>, vector<1x32x64xbf16>
    %730 = vector.shape_cast %729 : vector<1x32x64xbf16> to vector<32x64xbf16>
    %c0_280 = arith.constant 0 : index
    %c0_281 = arith.constant 0 : index
    %c0_282 = arith.constant 0 : index
    %731 = vector.load %arg18[%c0_280, %c0_281, %c0_282] : memref<2x32x32xbf16, #tpu.memory_space<vmem>>, vector<1x32x32xbf16>
    %732 = vector.shape_cast %731 : vector<1x32x32xbf16> to vector<32x32xbf16>
    %733 = arith.mulf %724, %724 : vector<16x32xf32>
    %cst_283 = arith.constant dense<0.000000e+00> : vector<16xf32>
    %734 = vector.multi_reduction <add>, %733, %cst_283 [1] : vector<16x32xf32> to vector<16xf32>
    %735 = vector.shape_cast %734 : vector<16xf32> to vector<16x1xf32>
    %cst_284 = arith.constant 3.200000e+01 : f32
    %736 = vector.broadcast %cst_284 : f32 to vector<16x1xf32>
    %737 = arith.divf %735, %736 : vector<16x1xf32>
    %cst_285 = arith.constant 9.99999997E-7 : f32
    %738 = vector.broadcast %cst_285 : f32 to vector<16x1xf32>
    %739 = arith.addf %737, %738 : vector<16x1xf32>
    %740 = math.rsqrt %739 : vector<16x1xf32>
    %741 = vector.broadcast %740 : vector<16x1xf32> to vector<16x32xf32>
    %742 = arith.mulf %724, %741 : vector<16x32xf32>
    %743 = vector.broadcast %726 : vector<1x32xf32> to vector<16x32xf32>
    %744 = arith.mulf %742, %743 : vector<16x32xf32>
    %745 = arith.truncf %744 : vector<16x32xf32> to vector<16x32xbf16>
    %cst_286 = arith.constant dense<0.000000e+00> : vector<16x32xf32>
    %746 = tpu.matmul %745, %728, %cst_286 {dimension_numbers = #tpu.dot_dimension_numbers<[1], [0], [0], [1], [0, 0, 1, 1], [], []>} : vector<16x32xbf16>, vector<32x32xbf16>, vector<16x32xf32> -> vector<16x32xf32>
    %747 = arith.truncf %498 : vector<16x32xf32> to vector<16x32xbf16>
    %cst_287 = arith.constant dense<0.000000e+00> : vector<16x64xf32>
    %748 = tpu.matmul %747, %730, %cst_287 {dimension_numbers = #tpu.dot_dimension_numbers<[1], [0], [0], [1], [0, 0, 1, 1], [], []>} : vector<16x32xbf16>, vector<32x64xbf16>, vector<16x64xf32> -> vector<16x64xf32>
    %749 = vector.extract_strided_slice %746 {offsets = [0, 0], sizes = [16, 8], strides = [1, 1]} : vector<16x32xf32> to vector<16x8xf32>
    %750 = vector.extract_strided_slice %746 {offsets = [0, 8], sizes = [16, 8], strides = [1, 1]} : vector<16x32xf32> to vector<16x8xf32>
    %751 = vector.extract_strided_slice %746 {offsets = [0, 16], sizes = [16, 8], strides = [1, 1]} : vector<16x32xf32> to vector<16x8xf32>
    %752 = vector.extract_strided_slice %746 {offsets = [0, 24], sizes = [16, 8], strides = [1, 1]} : vector<16x32xf32> to vector<16x8xf32>
    %753 = vector.extract_strided_slice %748 {offsets = [0, 0], sizes = [16, 8], strides = [1, 1]} : vector<16x64xf32> to vector<16x8xf32>
    %754 = vector.extract_strided_slice %748 {offsets = [0, 8], sizes = [16, 8], strides = [1, 1]} : vector<16x64xf32> to vector<16x8xf32>
    %755 = vector.extract_strided_slice %748 {offsets = [0, 16], sizes = [16, 8], strides = [1, 1]} : vector<16x64xf32> to vector<16x8xf32>
    %756 = vector.extract_strided_slice %748 {offsets = [0, 24], sizes = [16, 8], strides = [1, 1]} : vector<16x64xf32> to vector<16x8xf32>
    %757 = vector.extract_strided_slice %748 {offsets = [0, 32], sizes = [16, 8], strides = [1, 1]} : vector<16x64xf32> to vector<16x8xf32>
    %758 = vector.extract_strided_slice %748 {offsets = [0, 40], sizes = [16, 8], strides = [1, 1]} : vector<16x64xf32> to vector<16x8xf32>
    %759 = vector.extract_strided_slice %748 {offsets = [0, 48], sizes = [16, 8], strides = [1, 1]} : vector<16x64xf32> to vector<16x8xf32>
    %760 = vector.extract_strided_slice %748 {offsets = [0, 56], sizes = [16, 8], strides = [1, 1]} : vector<16x64xf32> to vector<16x8xf32>
    %761 = vector.extract_strided_slice %749 {offsets = [0, 0], sizes = [8, 8], strides = [1, 1]} : vector<16x8xf32> to vector<8x8xf32>
    %762 = vector.extract_strided_slice %753 {offsets = [0, 0], sizes = [8, 8], strides = [1, 1]} : vector<16x8xf32> to vector<8x8xf32>
    %763 = vector.extract_strided_slice %757 {offsets = [0, 0], sizes = [8, 8], strides = [1, 1]} : vector<16x8xf32> to vector<8x8xf32>
    %c0_288 = arith.constant 0 : index
    %c0_289 = arith.constant 0 : index
    %c0_290 = arith.constant 0 : index
    %764 = vector.load %arg24[%c0_288, %c0_289, %c0_290] : memref<2x1x8xf32, #tpu.memory_space<vmem>>, vector<1x1x8xf32>
    %765 = vector.shape_cast %764 : vector<1x1x8xf32> to vector<1x8xf32>
    %766 = arith.truncf %761 : vector<8x8xf32> to vector<8x8xbf16>
    %767 = arith.truncf %762 : vector<8x8xf32> to vector<8x8xbf16>
    %cst_291 = arith.constant dense<0.000000e+00> : vector<8x8xf32>
    %768 = tpu.matmul %766, %767, %cst_291 {dimension_numbers = #tpu.dot_dimension_numbers<[1], [1], [0], [0], [0, 0, 1, 0], [], []>} : vector<8x8xbf16>, vector<8x8xbf16>, vector<8x8xf32> -> vector<8x8xf32>
    %769 = vector.broadcast %765 : vector<1x8xf32> to vector<8x8xf32>
    %770 = arith.addf %768, %769 : vector<8x8xf32>
    %cst_292 = arith.constant dense<0xFF800000> : vector<8xf32>
    %771 = vector.multi_reduction <maximumf>, %770, %cst_292 [1] : vector<8x8xf32> to vector<8xf32>
    %772 = vector.shape_cast %771 : vector<8xf32> to vector<8x1xf32>
    %773 = vector.broadcast %772 : vector<8x1xf32> to vector<8x8xf32>
    %774 = arith.subf %770, %773 : vector<8x8xf32>
    %775 = math.exp %774 : vector<8x8xf32>
    %cst_293 = arith.constant dense<0.000000e+00> : vector<8xf32>
    %776 = vector.multi_reduction <add>, %775, %cst_293 [1] : vector<8x8xf32> to vector<8xf32>
    %777 = vector.shape_cast %776 : vector<8xf32> to vector<8x1xf32>
    %778 = tpu.reciprocal %777 {approx = true} : vector<8x1xf32> -> vector<8x1xf32>
    %779 = vector.broadcast %778 : vector<8x1xf32> to vector<8x8xf32>
    %780 = arith.mulf %775, %779 : vector<8x8xf32>
    %781 = arith.truncf %780 : vector<8x8xf32> to vector<8x8xbf16>
    %782 = arith.truncf %763 : vector<8x8xf32> to vector<8x8xbf16>
    %cst_294 = arith.constant dense<0.000000e+00> : vector<8x8xf32>
    %783 = tpu.matmul %781, %782, %cst_294 {dimension_numbers = #tpu.dot_dimension_numbers<[1], [0], [0], [1], [0, 0, 1, 1], [], []>} : vector<8x8xbf16>, vector<8x8xbf16>, vector<8x8xf32> -> vector<8x8xf32>
    %784 = vector.extract_strided_slice %750 {offsets = [0, 0], sizes = [8, 8], strides = [1, 1]} : vector<16x8xf32> to vector<8x8xf32>
    %785 = vector.extract_strided_slice %754 {offsets = [0, 0], sizes = [8, 8], strides = [1, 1]} : vector<16x8xf32> to vector<8x8xf32>
    %786 = vector.extract_strided_slice %758 {offsets = [0, 0], sizes = [8, 8], strides = [1, 1]} : vector<16x8xf32> to vector<8x8xf32>
    %c0_295 = arith.constant 0 : index
    %c0_296 = arith.constant 0 : index
    %c0_297 = arith.constant 0 : index
    %787 = vector.load %arg24[%c0_295, %c0_296, %c0_297] : memref<2x1x8xf32, #tpu.memory_space<vmem>>, vector<1x1x8xf32>
    %788 = vector.shape_cast %787 : vector<1x1x8xf32> to vector<1x8xf32>
    %789 = arith.truncf %784 : vector<8x8xf32> to vector<8x8xbf16>
    %790 = arith.truncf %785 : vector<8x8xf32> to vector<8x8xbf16>
    %cst_298 = arith.constant dense<0.000000e+00> : vector<8x8xf32>
    %791 = tpu.matmul %789, %790, %cst_298 {dimension_numbers = #tpu.dot_dimension_numbers<[1], [1], [0], [0], [0, 0, 1, 0], [], []>} : vector<8x8xbf16>, vector<8x8xbf16>, vector<8x8xf32> -> vector<8x8xf32>
    %792 = vector.broadcast %788 : vector<1x8xf32> to vector<8x8xf32>
    %793 = arith.addf %791, %792 : vector<8x8xf32>
    %cst_299 = arith.constant dense<0xFF800000> : vector<8xf32>
    %794 = vector.multi_reduction <maximumf>, %793, %cst_299 [1] : vector<8x8xf32> to vector<8xf32>
    %795 = vector.shape_cast %794 : vector<8xf32> to vector<8x1xf32>
    %796 = vector.broadcast %795 : vector<8x1xf32> to vector<8x8xf32>
    %797 = arith.subf %793, %796 : vector<8x8xf32>
    %798 = math.exp %797 : vector<8x8xf32>
    %cst_300 = arith.constant dense<0.000000e+00> : vector<8xf32>
    %799 = vector.multi_reduction <add>, %798, %cst_300 [1] : vector<8x8xf32> to vector<8xf32>
    %800 = vector.shape_cast %799 : vector<8xf32> to vector<8x1xf32>
    %801 = tpu.reciprocal %800 {approx = true} : vector<8x1xf32> -> vector<8x1xf32>
    %802 = vector.broadcast %801 : vector<8x1xf32> to vector<8x8xf32>
    %803 = arith.mulf %798, %802 : vector<8x8xf32>
    %804 = arith.truncf %803 : vector<8x8xf32> to vector<8x8xbf16>
    %805 = arith.truncf %786 : vector<8x8xf32> to vector<8x8xbf16>
    %cst_301 = arith.constant dense<0.000000e+00> : vector<8x8xf32>
    %806 = tpu.matmul %804, %805, %cst_301 {dimension_numbers = #tpu.dot_dimension_numbers<[1], [0], [0], [1], [0, 0, 1, 1], [], []>} : vector<8x8xbf16>, vector<8x8xbf16>, vector<8x8xf32> -> vector<8x8xf32>
    %807 = vector.extract_strided_slice %751 {offsets = [0, 0], sizes = [8, 8], strides = [1, 1]} : vector<16x8xf32> to vector<8x8xf32>
    %808 = vector.extract_strided_slice %755 {offsets = [0, 0], sizes = [8, 8], strides = [1, 1]} : vector<16x8xf32> to vector<8x8xf32>
    %809 = vector.extract_strided_slice %759 {offsets = [0, 0], sizes = [8, 8], strides = [1, 1]} : vector<16x8xf32> to vector<8x8xf32>
    %c0_302 = arith.constant 0 : index
    %c0_303 = arith.constant 0 : index
    %c0_304 = arith.constant 0 : index
    %810 = vector.load %arg24[%c0_302, %c0_303, %c0_304] : memref<2x1x8xf32, #tpu.memory_space<vmem>>, vector<1x1x8xf32>
    %811 = vector.shape_cast %810 : vector<1x1x8xf32> to vector<1x8xf32>
    %812 = arith.truncf %807 : vector<8x8xf32> to vector<8x8xbf16>
    %813 = arith.truncf %808 : vector<8x8xf32> to vector<8x8xbf16>
    %cst_305 = arith.constant dense<0.000000e+00> : vector<8x8xf32>
    %814 = tpu.matmul %812, %813, %cst_305 {dimension_numbers = #tpu.dot_dimension_numbers<[1], [1], [0], [0], [0, 0, 1, 0], [], []>} : vector<8x8xbf16>, vector<8x8xbf16>, vector<8x8xf32> -> vector<8x8xf32>
    %815 = vector.broadcast %811 : vector<1x8xf32> to vector<8x8xf32>
    %816 = arith.addf %814, %815 : vector<8x8xf32>
    %cst_306 = arith.constant dense<0xFF800000> : vector<8xf32>
    %817 = vector.multi_reduction <maximumf>, %816, %cst_306 [1] : vector<8x8xf32> to vector<8xf32>
    %818 = vector.shape_cast %817 : vector<8xf32> to vector<8x1xf32>
    %819 = vector.broadcast %818 : vector<8x1xf32> to vector<8x8xf32>
    %820 = arith.subf %816, %819 : vector<8x8xf32>
    %821 = math.exp %820 : vector<8x8xf32>
    %cst_307 = arith.constant dense<0.000000e+00> : vector<8xf32>
    %822 = vector.multi_reduction <add>, %821, %cst_307 [1] : vector<8x8xf32> to vector<8xf32>
    %823 = vector.shape_cast %822 : vector<8xf32> to vector<8x1xf32>
    %824 = tpu.reciprocal %823 {approx = true} : vector<8x1xf32> -> vector<8x1xf32>
    %825 = vector.broadcast %824 : vector<8x1xf32> to vector<8x8xf32>
    %826 = arith.mulf %821, %825 : vector<8x8xf32>
    %827 = arith.truncf %826 : vector<8x8xf32> to vector<8x8xbf16>
    %828 = arith.truncf %809 : vector<8x8xf32> to vector<8x8xbf16>
    %cst_308 = arith.constant dense<0.000000e+00> : vector<8x8xf32>
    %829 = tpu.matmul %827, %828, %cst_308 {dimension_numbers = #tpu.dot_dimension_numbers<[1], [0], [0], [1], [0, 0, 1, 1], [], []>} : vector<8x8xbf16>, vector<8x8xbf16>, vector<8x8xf32> -> vector<8x8xf32>
    %830 = vector.extract_strided_slice %752 {offsets = [0, 0], sizes = [8, 8], strides = [1, 1]} : vector<16x8xf32> to vector<8x8xf32>
    %831 = vector.extract_strided_slice %756 {offsets = [0, 0], sizes = [8, 8], strides = [1, 1]} : vector<16x8xf32> to vector<8x8xf32>
    %832 = vector.extract_strided_slice %760 {offsets = [0, 0], sizes = [8, 8], strides = [1, 1]} : vector<16x8xf32> to vector<8x8xf32>
    %c0_309 = arith.constant 0 : index
    %c0_310 = arith.constant 0 : index
    %c0_311 = arith.constant 0 : index
    %833 = vector.load %arg24[%c0_309, %c0_310, %c0_311] : memref<2x1x8xf32, #tpu.memory_space<vmem>>, vector<1x1x8xf32>
    %834 = vector.shape_cast %833 : vector<1x1x8xf32> to vector<1x8xf32>
    %835 = arith.truncf %830 : vector<8x8xf32> to vector<8x8xbf16>
    %836 = arith.truncf %831 : vector<8x8xf32> to vector<8x8xbf16>
    %cst_312 = arith.constant dense<0.000000e+00> : vector<8x8xf32>
    %837 = tpu.matmul %835, %836, %cst_312 {dimension_numbers = #tpu.dot_dimension_numbers<[1], [1], [0], [0], [0, 0, 1, 0], [], []>} : vector<8x8xbf16>, vector<8x8xbf16>, vector<8x8xf32> -> vector<8x8xf32>
    %838 = vector.broadcast %834 : vector<1x8xf32> to vector<8x8xf32>
    %839 = arith.addf %837, %838 : vector<8x8xf32>
    %cst_313 = arith.constant dense<0xFF800000> : vector<8xf32>
    %840 = vector.multi_reduction <maximumf>, %839, %cst_313 [1] : vector<8x8xf32> to vector<8xf32>
    %841 = vector.shape_cast %840 : vector<8xf32> to vector<8x1xf32>
    %842 = vector.broadcast %841 : vector<8x1xf32> to vector<8x8xf32>
    %843 = arith.subf %839, %842 : vector<8x8xf32>
    %844 = math.exp %843 : vector<8x8xf32>
    %cst_314 = arith.constant dense<0.000000e+00> : vector<8xf32>
    %845 = vector.multi_reduction <add>, %844, %cst_314 [1] : vector<8x8xf32> to vector<8xf32>
    %846 = vector.shape_cast %845 : vector<8xf32> to vector<8x1xf32>
    %847 = tpu.reciprocal %846 {approx = true} : vector<8x1xf32> -> vector<8x1xf32>
    %848 = vector.broadcast %847 : vector<8x1xf32> to vector<8x8xf32>
    %849 = arith.mulf %844, %848 : vector<8x8xf32>
    %850 = arith.truncf %849 : vector<8x8xf32> to vector<8x8xbf16>
    %851 = arith.truncf %832 : vector<8x8xf32> to vector<8x8xbf16>
    %cst_315 = arith.constant dense<0.000000e+00> : vector<8x8xf32>
    %852 = tpu.matmul %850, %851, %cst_315 {dimension_numbers = #tpu.dot_dimension_numbers<[1], [0], [0], [1], [0, 0, 1, 1], [], []>} : vector<8x8xbf16>, vector<8x8xbf16>, vector<8x8xf32> -> vector<8x8xf32>
    %853 = tpu.concatenate %783, %806, %829, %852 in 1 : vector<8x8xf32>, vector<8x8xf32>, vector<8x8xf32>, vector<8x8xf32> -> vector<8x32xf32>
    %854 = arith.truncf %853 : vector<8x32xf32> to vector<8x32xbf16>
    %cst_316 = arith.constant dense<0.000000e+00> : vector<8x32xf32>
    %855 = tpu.matmul %854, %732, %cst_316 {dimension_numbers = #tpu.dot_dimension_numbers<[1], [0], [0], [1], [0, 0, 1, 1], [], []>} : vector<8x32xbf16>, vector<32x32xbf16>, vector<8x32xf32> -> vector<8x32xf32>
    %856 = vector.extract_strided_slice %749 {offsets = [8, 0], sizes = [8, 8], strides = [1, 1]} : vector<16x8xf32> to vector<8x8xf32>
    %857 = vector.extract_strided_slice %753 {offsets = [8, 0], sizes = [8, 8], strides = [1, 1]} : vector<16x8xf32> to vector<8x8xf32>
    %858 = vector.extract_strided_slice %757 {offsets = [8, 0], sizes = [8, 8], strides = [1, 1]} : vector<16x8xf32> to vector<8x8xf32>
    %c1_317 = arith.constant 1 : index
    %c0_318 = arith.constant 0 : index
    %c0_319 = arith.constant 0 : index
    %859 = vector.load %arg24[%c1_317, %c0_318, %c0_319] : memref<2x1x8xf32, #tpu.memory_space<vmem>>, vector<1x1x8xf32>
    %860 = vector.shape_cast %859 : vector<1x1x8xf32> to vector<1x8xf32>
    %861 = arith.truncf %856 : vector<8x8xf32> to vector<8x8xbf16>
    %862 = arith.truncf %857 : vector<8x8xf32> to vector<8x8xbf16>
    %cst_320 = arith.constant dense<0.000000e+00> : vector<8x8xf32>
    %863 = tpu.matmul %861, %862, %cst_320 {dimension_numbers = #tpu.dot_dimension_numbers<[1], [1], [0], [0], [0, 0, 1, 0], [], []>} : vector<8x8xbf16>, vector<8x8xbf16>, vector<8x8xf32> -> vector<8x8xf32>
    %864 = vector.broadcast %860 : vector<1x8xf32> to vector<8x8xf32>
    %865 = arith.addf %863, %864 : vector<8x8xf32>
    %cst_321 = arith.constant dense<0xFF800000> : vector<8xf32>
    %866 = vector.multi_reduction <maximumf>, %865, %cst_321 [1] : vector<8x8xf32> to vector<8xf32>
    %867 = vector.shape_cast %866 : vector<8xf32> to vector<8x1xf32>
    %868 = vector.broadcast %867 : vector<8x1xf32> to vector<8x8xf32>
    %869 = arith.subf %865, %868 : vector<8x8xf32>
    %870 = math.exp %869 : vector<8x8xf32>
    %cst_322 = arith.constant dense<0.000000e+00> : vector<8xf32>
    %871 = vector.multi_reduction <add>, %870, %cst_322 [1] : vector<8x8xf32> to vector<8xf32>
    %872 = vector.shape_cast %871 : vector<8xf32> to vector<8x1xf32>
    %873 = tpu.reciprocal %872 {approx = true} : vector<8x1xf32> -> vector<8x1xf32>
    %874 = vector.broadcast %873 : vector<8x1xf32> to vector<8x8xf32>
    %875 = arith.mulf %870, %874 : vector<8x8xf32>
    %876 = arith.truncf %875 : vector<8x8xf32> to vector<8x8xbf16>
    %877 = arith.truncf %858 : vector<8x8xf32> to vector<8x8xbf16>
    %cst_323 = arith.constant dense<0.000000e+00> : vector<8x8xf32>
    %878 = tpu.matmul %876, %877, %cst_323 {dimension_numbers = #tpu.dot_dimension_numbers<[1], [0], [0], [1], [0, 0, 1, 1], [], []>} : vector<8x8xbf16>, vector<8x8xbf16>, vector<8x8xf32> -> vector<8x8xf32>
    %879 = vector.extract_strided_slice %750 {offsets = [8, 0], sizes = [8, 8], strides = [1, 1]} : vector<16x8xf32> to vector<8x8xf32>
    %880 = vector.extract_strided_slice %754 {offsets = [8, 0], sizes = [8, 8], strides = [1, 1]} : vector<16x8xf32> to vector<8x8xf32>
    %881 = vector.extract_strided_slice %758 {offsets = [8, 0], sizes = [8, 8], strides = [1, 1]} : vector<16x8xf32> to vector<8x8xf32>
    %c1_324 = arith.constant 1 : index
    %c0_325 = arith.constant 0 : index
    %c0_326 = arith.constant 0 : index
    %882 = vector.load %arg24[%c1_324, %c0_325, %c0_326] : memref<2x1x8xf32, #tpu.memory_space<vmem>>, vector<1x1x8xf32>
    %883 = vector.shape_cast %882 : vector<1x1x8xf32> to vector<1x8xf32>
    %884 = arith.truncf %879 : vector<8x8xf32> to vector<8x8xbf16>
    %885 = arith.truncf %880 : vector<8x8xf32> to vector<8x8xbf16>
    %cst_327 = arith.constant dense<0.000000e+00> : vector<8x8xf32>
    %886 = tpu.matmul %884, %885, %cst_327 {dimension_numbers = #tpu.dot_dimension_numbers<[1], [1], [0], [0], [0, 0, 1, 0], [], []>} : vector<8x8xbf16>, vector<8x8xbf16>, vector<8x8xf32> -> vector<8x8xf32>
    %887 = vector.broadcast %883 : vector<1x8xf32> to vector<8x8xf32>
    %888 = arith.addf %886, %887 : vector<8x8xf32>
    %cst_328 = arith.constant dense<0xFF800000> : vector<8xf32>
    %889 = vector.multi_reduction <maximumf>, %888, %cst_328 [1] : vector<8x8xf32> to vector<8xf32>
    %890 = vector.shape_cast %889 : vector<8xf32> to vector<8x1xf32>
    %891 = vector.broadcast %890 : vector<8x1xf32> to vector<8x8xf32>
    %892 = arith.subf %888, %891 : vector<8x8xf32>
    %893 = math.exp %892 : vector<8x8xf32>
    %cst_329 = arith.constant dense<0.000000e+00> : vector<8xf32>
    %894 = vector.multi_reduction <add>, %893, %cst_329 [1] : vector<8x8xf32> to vector<8xf32>
    %895 = vector.shape_cast %894 : vector<8xf32> to vector<8x1xf32>
    %896 = tpu.reciprocal %895 {approx = true} : vector<8x1xf32> -> vector<8x1xf32>
    %897 = vector.broadcast %896 : vector<8x1xf32> to vector<8x8xf32>
    %898 = arith.mulf %893, %897 : vector<8x8xf32>
    %899 = arith.truncf %898 : vector<8x8xf32> to vector<8x8xbf16>
    %900 = arith.truncf %881 : vector<8x8xf32> to vector<8x8xbf16>
    %cst_330 = arith.constant dense<0.000000e+00> : vector<8x8xf32>
    %901 = tpu.matmul %899, %900, %cst_330 {dimension_numbers = #tpu.dot_dimension_numbers<[1], [0], [0], [1], [0, 0, 1, 1], [], []>} : vector<8x8xbf16>, vector<8x8xbf16>, vector<8x8xf32> -> vector<8x8xf32>
    %902 = vector.extract_strided_slice %751 {offsets = [8, 0], sizes = [8, 8], strides = [1, 1]} : vector<16x8xf32> to vector<8x8xf32>
    %903 = vector.extract_strided_slice %755 {offsets = [8, 0], sizes = [8, 8], strides = [1, 1]} : vector<16x8xf32> to vector<8x8xf32>
    %904 = vector.extract_strided_slice %759 {offsets = [8, 0], sizes = [8, 8], strides = [1, 1]} : vector<16x8xf32> to vector<8x8xf32>
    %c1_331 = arith.constant 1 : index
    %c0_332 = arith.constant 0 : index
    %c0_333 = arith.constant 0 : index
    %905 = vector.load %arg24[%c1_331, %c0_332, %c0_333] : memref<2x1x8xf32, #tpu.memory_space<vmem>>, vector<1x1x8xf32>
    %906 = vector.shape_cast %905 : vector<1x1x8xf32> to vector<1x8xf32>
    %907 = arith.truncf %902 : vector<8x8xf32> to vector<8x8xbf16>
    %908 = arith.truncf %903 : vector<8x8xf32> to vector<8x8xbf16>
    %cst_334 = arith.constant dense<0.000000e+00> : vector<8x8xf32>
    %909 = tpu.matmul %907, %908, %cst_334 {dimension_numbers = #tpu.dot_dimension_numbers<[1], [1], [0], [0], [0, 0, 1, 0], [], []>} : vector<8x8xbf16>, vector<8x8xbf16>, vector<8x8xf32> -> vector<8x8xf32>
    %910 = vector.broadcast %906 : vector<1x8xf32> to vector<8x8xf32>
    %911 = arith.addf %909, %910 : vector<8x8xf32>
    %cst_335 = arith.constant dense<0xFF800000> : vector<8xf32>
    %912 = vector.multi_reduction <maximumf>, %911, %cst_335 [1] : vector<8x8xf32> to vector<8xf32>
    %913 = vector.shape_cast %912 : vector<8xf32> to vector<8x1xf32>
    %914 = vector.broadcast %913 : vector<8x1xf32> to vector<8x8xf32>
    %915 = arith.subf %911, %914 : vector<8x8xf32>
    %916 = math.exp %915 : vector<8x8xf32>
    %cst_336 = arith.constant dense<0.000000e+00> : vector<8xf32>
    %917 = vector.multi_reduction <add>, %916, %cst_336 [1] : vector<8x8xf32> to vector<8xf32>
    %918 = vector.shape_cast %917 : vector<8xf32> to vector<8x1xf32>
    %919 = tpu.reciprocal %918 {approx = true} : vector<8x1xf32> -> vector<8x1xf32>
    %920 = vector.broadcast %919 : vector<8x1xf32> to vector<8x8xf32>
    %921 = arith.mulf %916, %920 : vector<8x8xf32>
    %922 = arith.truncf %921 : vector<8x8xf32> to vector<8x8xbf16>
    %923 = arith.truncf %904 : vector<8x8xf32> to vector<8x8xbf16>
    %cst_337 = arith.constant dense<0.000000e+00> : vector<8x8xf32>
    %924 = tpu.matmul %922, %923, %cst_337 {dimension_numbers = #tpu.dot_dimension_numbers<[1], [0], [0], [1], [0, 0, 1, 1], [], []>} : vector<8x8xbf16>, vector<8x8xbf16>, vector<8x8xf32> -> vector<8x8xf32>
    %925 = vector.extract_strided_slice %752 {offsets = [8, 0], sizes = [8, 8], strides = [1, 1]} : vector<16x8xf32> to vector<8x8xf32>
    %926 = vector.extract_strided_slice %756 {offsets = [8, 0], sizes = [8, 8], strides = [1, 1]} : vector<16x8xf32> to vector<8x8xf32>
    %927 = vector.extract_strided_slice %760 {offsets = [8, 0], sizes = [8, 8], strides = [1, 1]} : vector<16x8xf32> to vector<8x8xf32>
    %c1_338 = arith.constant 1 : index
    %c0_339 = arith.constant 0 : index
    %c0_340 = arith.constant 0 : index
    %928 = vector.load %arg24[%c1_338, %c0_339, %c0_340] : memref<2x1x8xf32, #tpu.memory_space<vmem>>, vector<1x1x8xf32>
    %929 = vector.shape_cast %928 : vector<1x1x8xf32> to vector<1x8xf32>
    %930 = arith.truncf %925 : vector<8x8xf32> to vector<8x8xbf16>
    %931 = arith.truncf %926 : vector<8x8xf32> to vector<8x8xbf16>
    %cst_341 = arith.constant dense<0.000000e+00> : vector<8x8xf32>
    %932 = tpu.matmul %930, %931, %cst_341 {dimension_numbers = #tpu.dot_dimension_numbers<[1], [1], [0], [0], [0, 0, 1, 0], [], []>} : vector<8x8xbf16>, vector<8x8xbf16>, vector<8x8xf32> -> vector<8x8xf32>
    %933 = vector.broadcast %929 : vector<1x8xf32> to vector<8x8xf32>
    %934 = arith.addf %932, %933 : vector<8x8xf32>
    %cst_342 = arith.constant dense<0xFF800000> : vector<8xf32>
    %935 = vector.multi_reduction <maximumf>, %934, %cst_342 [1] : vector<8x8xf32> to vector<8xf32>
    %936 = vector.shape_cast %935 : vector<8xf32> to vector<8x1xf32>
    %937 = vector.broadcast %936 : vector<8x1xf32> to vector<8x8xf32>
    %938 = arith.subf %934, %937 : vector<8x8xf32>
    %939 = math.exp %938 : vector<8x8xf32>
    %cst_343 = arith.constant dense<0.000000e+00> : vector<8xf32>
    %940 = vector.multi_reduction <add>, %939, %cst_343 [1] : vector<8x8xf32> to vector<8xf32>
    %941 = vector.shape_cast %940 : vector<8xf32> to vector<8x1xf32>
    %942 = tpu.reciprocal %941 {approx = true} : vector<8x1xf32> -> vector<8x1xf32>
    %943 = vector.broadcast %942 : vector<8x1xf32> to vector<8x8xf32>
    %944 = arith.mulf %939, %943 : vector<8x8xf32>
    %945 = arith.truncf %944 : vector<8x8xf32> to vector<8x8xbf16>
    %946 = arith.truncf %927 : vector<8x8xf32> to vector<8x8xbf16>
    %cst_344 = arith.constant dense<0.000000e+00> : vector<8x8xf32>
    %947 = tpu.matmul %945, %946, %cst_344 {dimension_numbers = #tpu.dot_dimension_numbers<[1], [0], [0], [1], [0, 0, 1, 1], [], []>} : vector<8x8xbf16>, vector<8x8xbf16>, vector<8x8xf32> -> vector<8x8xf32>
    %948 = tpu.concatenate %878, %901, %924, %947 in 1 : vector<8x8xf32>, vector<8x8xf32>, vector<8x8xf32>, vector<8x8xf32> -> vector<8x32xf32>
    %949 = arith.truncf %948 : vector<8x32xf32> to vector<8x32xbf16>
    %cst_345 = arith.constant dense<0.000000e+00> : vector<8x32xf32>
    %950 = tpu.matmul %949, %732, %cst_345 {dimension_numbers = #tpu.dot_dimension_numbers<[1], [0], [0], [1], [0, 0, 1, 1], [], []>} : vector<8x32xbf16>, vector<32x32xbf16>, vector<8x32xf32> -> vector<8x32xf32>
    %951 = tpu.concatenate %855, %950 in 0 : vector<8x32xf32>, vector<8x32xf32> -> vector<16x32xf32>
    %952 = arith.addf %724, %951 : vector<16x32xf32>
    %c0_346 = arith.constant 0 : index
    %c0_347 = arith.constant 0 : index
    %c0_348 = arith.constant 0 : index
    %953 = vector.load %arg19[%c0_346, %c0_347, %c0_348] : memref<2x1x32xf32, #tpu.memory_space<vmem>>, vector<1x1x32xf32>
    %954 = vector.shape_cast %953 : vector<1x1x32xf32> to vector<1x32xf32>
    %c0_349 = arith.constant 0 : index
    %c0_350 = arith.constant 0 : index
    %c0_351 = arith.constant 0 : index
    %955 = vector.load %arg20[%c0_349, %c0_350, %c0_351] : memref<2x32x64xbf16, #tpu.memory_space<vmem>>, vector<1x32x64xbf16>
    %956 = vector.shape_cast %955 : vector<1x32x64xbf16> to vector<32x64xbf16>
    %c0_352 = arith.constant 0 : index
    %c0_353 = arith.constant 0 : index
    %c0_354 = arith.constant 0 : index
    %957 = vector.load %arg21[%c0_352, %c0_353, %c0_354] : memref<2x64x32xbf16, #tpu.memory_space<vmem>>, vector<1x64x32xbf16>
    %958 = vector.shape_cast %957 : vector<1x64x32xbf16> to vector<64x32xbf16>
    %959 = arith.mulf %952, %952 : vector<16x32xf32>
    %cst_355 = arith.constant dense<0.000000e+00> : vector<16xf32>
    %960 = vector.multi_reduction <add>, %959, %cst_355 [1] : vector<16x32xf32> to vector<16xf32>
    %961 = vector.shape_cast %960 : vector<16xf32> to vector<16x1xf32>
    %cst_356 = arith.constant 3.200000e+01 : f32
    %962 = vector.broadcast %cst_356 : f32 to vector<16x1xf32>
    %963 = arith.divf %961, %962 : vector<16x1xf32>
    %cst_357 = arith.constant 9.99999997E-7 : f32
    %964 = vector.broadcast %cst_357 : f32 to vector<16x1xf32>
    %965 = arith.addf %963, %964 : vector<16x1xf32>
    %966 = math.rsqrt %965 : vector<16x1xf32>
    %967 = vector.broadcast %966 : vector<16x1xf32> to vector<16x32xf32>
    %968 = arith.mulf %952, %967 : vector<16x32xf32>
    %969 = vector.broadcast %954 : vector<1x32xf32> to vector<16x32xf32>
    %970 = arith.mulf %968, %969 : vector<16x32xf32>
    %971 = arith.truncf %970 : vector<16x32xf32> to vector<16x32xbf16>
    %cst_358 = arith.constant dense<0.000000e+00> : vector<16x64xf32>
    %972 = tpu.matmul %971, %956, %cst_358 {dimension_numbers = #tpu.dot_dimension_numbers<[1], [0], [0], [1], [0, 0, 1, 1], [], []>} : vector<16x32xbf16>, vector<32x64xbf16>, vector<16x64xf32> -> vector<16x64xf32>
    %cst_359 = arith.constant 0.000000e+00 : f32
    %973 = vector.broadcast %cst_359 : f32 to vector<16x64xf32>
    %974 = arith.maximumf %972, %973 : vector<16x64xf32>
    %975 = arith.truncf %974 : vector<16x64xf32> to vector<16x64xbf16>
    %cst_360 = arith.constant dense<0.000000e+00> : vector<16x32xf32>
    %976 = tpu.matmul %975, %958, %cst_360 {dimension_numbers = #tpu.dot_dimension_numbers<[1], [0], [0], [1], [0, 0, 1, 1], [], []>} : vector<16x64xbf16>, vector<64x32xbf16>, vector<16x32xf32> -> vector<16x32xf32>
    %977 = arith.addf %952, %976 : vector<16x32xf32>
    %c1_361 = arith.constant 1 : index
    %c0_362 = arith.constant 0 : index
    %c0_363 = arith.constant 0 : index
    %978 = vector.load %arg12[%c1_361, %c0_362, %c0_363] : memref<2x1x32xf32, #tpu.memory_space<vmem>>, vector<1x1x32xf32>
    %979 = vector.shape_cast %978 : vector<1x1x32xf32> to vector<1x32xf32>
    %c1_364 = arith.constant 1 : index
    %c0_365 = arith.constant 0 : index
    %c0_366 = arith.constant 0 : index
    %980 = vector.load %arg13[%c1_364, %c0_365, %c0_366] : memref<2x32x96xbf16, #tpu.memory_space<vmem>>, vector<1x32x96xbf16>
    %981 = vector.shape_cast %980 : vector<1x32x96xbf16> to vector<32x96xbf16>
    %c1_367 = arith.constant 1 : index
    %c0_368 = arith.constant 0 : index
    %c0_369 = arith.constant 0 : index
    %982 = vector.load %arg14[%c1_367, %c0_368, %c0_369] : memref<2x32x32xbf16, #tpu.memory_space<vmem>>, vector<1x32x32xbf16>
    %983 = vector.shape_cast %982 : vector<1x32x32xbf16> to vector<32x32xbf16>
    %984 = arith.mulf %977, %977 : vector<16x32xf32>
    %cst_370 = arith.constant dense<0.000000e+00> : vector<16xf32>
    %985 = vector.multi_reduction <add>, %984, %cst_370 [1] : vector<16x32xf32> to vector<16xf32>
    %986 = vector.shape_cast %985 : vector<16xf32> to vector<16x1xf32>
    %cst_371 = arith.constant 3.200000e+01 : f32
    %987 = vector.broadcast %cst_371 : f32 to vector<16x1xf32>
    %988 = arith.divf %986, %987 : vector<16x1xf32>
    %cst_372 = arith.constant 9.99999997E-7 : f32
    %989 = vector.broadcast %cst_372 : f32 to vector<16x1xf32>
    %990 = arith.addf %988, %989 : vector<16x1xf32>
    %991 = math.rsqrt %990 : vector<16x1xf32>
    %992 = vector.broadcast %991 : vector<16x1xf32> to vector<16x32xf32>
    %993 = arith.mulf %977, %992 : vector<16x32xf32>
    %994 = vector.broadcast %979 : vector<1x32xf32> to vector<16x32xf32>
    %995 = arith.mulf %993, %994 : vector<16x32xf32>
    %996 = arith.truncf %995 : vector<16x32xf32> to vector<16x32xbf16>
    %cst_373 = arith.constant dense<0.000000e+00> : vector<16x96xf32>
    %997 = tpu.matmul %996, %981, %cst_373 {dimension_numbers = #tpu.dot_dimension_numbers<[1], [0], [0], [1], [0, 0, 1, 1], [], []>} : vector<16x32xbf16>, vector<32x96xbf16>, vector<16x96xf32> -> vector<16x96xf32>
    %998 = vector.extract_strided_slice %997 {offsets = [0, 0], sizes = [16, 8], strides = [1, 1]} : vector<16x96xf32> to vector<16x8xf32>
    %999 = vector.extract_strided_slice %997 {offsets = [0, 8], sizes = [16, 8], strides = [1, 1]} : vector<16x96xf32> to vector<16x8xf32>
    %1000 = vector.extract_strided_slice %997 {offsets = [0, 16], sizes = [16, 8], strides = [1, 1]} : vector<16x96xf32> to vector<16x8xf32>
    %1001 = vector.extract_strided_slice %997 {offsets = [0, 24], sizes = [16, 8], strides = [1, 1]} : vector<16x96xf32> to vector<16x8xf32>
    %1002 = vector.extract_strided_slice %997 {offsets = [0, 32], sizes = [16, 8], strides = [1, 1]} : vector<16x96xf32> to vector<16x8xf32>
    %1003 = vector.extract_strided_slice %997 {offsets = [0, 40], sizes = [16, 8], strides = [1, 1]} : vector<16x96xf32> to vector<16x8xf32>
    %1004 = vector.extract_strided_slice %997 {offsets = [0, 48], sizes = [16, 8], strides = [1, 1]} : vector<16x96xf32> to vector<16x8xf32>
    %1005 = vector.extract_strided_slice %997 {offsets = [0, 56], sizes = [16, 8], strides = [1, 1]} : vector<16x96xf32> to vector<16x8xf32>
    %1006 = vector.extract_strided_slice %997 {offsets = [0, 64], sizes = [16, 8], strides = [1, 1]} : vector<16x96xf32> to vector<16x8xf32>
    %1007 = vector.extract_strided_slice %997 {offsets = [0, 72], sizes = [16, 8], strides = [1, 1]} : vector<16x96xf32> to vector<16x8xf32>
    %1008 = vector.extract_strided_slice %997 {offsets = [0, 80], sizes = [16, 8], strides = [1, 1]} : vector<16x96xf32> to vector<16x8xf32>
    %1009 = vector.extract_strided_slice %997 {offsets = [0, 88], sizes = [16, 8], strides = [1, 1]} : vector<16x96xf32> to vector<16x8xf32>
    %1010 = vector.extract_strided_slice %998 {offsets = [0, 0], sizes = [8, 8], strides = [1, 1]} : vector<16x8xf32> to vector<8x8xf32>
    %1011 = vector.extract_strided_slice %1002 {offsets = [0, 0], sizes = [8, 8], strides = [1, 1]} : vector<16x8xf32> to vector<8x8xf32>
    %1012 = vector.extract_strided_slice %1006 {offsets = [0, 0], sizes = [8, 8], strides = [1, 1]} : vector<16x8xf32> to vector<8x8xf32>
    %c0_374 = arith.constant 0 : index
    %c0_375 = arith.constant 0 : index
    %c0_376 = arith.constant 0 : index
    %1013 = vector.load %arg23[%c0_374, %c0_375, %c0_376] : memref<4x8x8xf32, #tpu.memory_space<vmem>>, vector<1x8x8xf32>
    %1014 = vector.shape_cast %1013 : vector<1x8x8xf32> to vector<8x8xf32>
    %1015 = arith.truncf %1010 : vector<8x8xf32> to vector<8x8xbf16>
    %1016 = arith.truncf %1011 : vector<8x8xf32> to vector<8x8xbf16>
    %cst_377 = arith.constant dense<0.000000e+00> : vector<8x8xf32>
    %1017 = tpu.matmul %1015, %1016, %cst_377 {dimension_numbers = #tpu.dot_dimension_numbers<[1], [1], [0], [0], [0, 0, 1, 0], [], []>} : vector<8x8xbf16>, vector<8x8xbf16>, vector<8x8xf32> -> vector<8x8xf32>
    %1018 = arith.addf %1017, %1014 : vector<8x8xf32>
    %cst_378 = arith.constant dense<0xFF800000> : vector<8xf32>
    %1019 = vector.multi_reduction <maximumf>, %1018, %cst_378 [1] : vector<8x8xf32> to vector<8xf32>
    %1020 = vector.shape_cast %1019 : vector<8xf32> to vector<8x1xf32>
    %1021 = vector.broadcast %1020 : vector<8x1xf32> to vector<8x8xf32>
    %1022 = arith.subf %1018, %1021 : vector<8x8xf32>
    %1023 = math.exp %1022 : vector<8x8xf32>
    %cst_379 = arith.constant dense<0.000000e+00> : vector<8xf32>
    %1024 = vector.multi_reduction <add>, %1023, %cst_379 [1] : vector<8x8xf32> to vector<8xf32>
    %1025 = vector.shape_cast %1024 : vector<8xf32> to vector<8x1xf32>
    %1026 = tpu.reciprocal %1025 {approx = true} : vector<8x1xf32> -> vector<8x1xf32>
    %1027 = vector.broadcast %1026 : vector<8x1xf32> to vector<8x8xf32>
    %1028 = arith.mulf %1023, %1027 : vector<8x8xf32>
    %1029 = arith.truncf %1028 : vector<8x8xf32> to vector<8x8xbf16>
    %1030 = arith.truncf %1012 : vector<8x8xf32> to vector<8x8xbf16>
    %cst_380 = arith.constant dense<0.000000e+00> : vector<8x8xf32>
    %1031 = tpu.matmul %1029, %1030, %cst_380 {dimension_numbers = #tpu.dot_dimension_numbers<[1], [0], [0], [1], [0, 0, 1, 1], [], []>} : vector<8x8xbf16>, vector<8x8xbf16>, vector<8x8xf32> -> vector<8x8xf32>
    %1032 = vector.extract_strided_slice %999 {offsets = [0, 0], sizes = [8, 8], strides = [1, 1]} : vector<16x8xf32> to vector<8x8xf32>
    %1033 = vector.extract_strided_slice %1003 {offsets = [0, 0], sizes = [8, 8], strides = [1, 1]} : vector<16x8xf32> to vector<8x8xf32>
    %1034 = vector.extract_strided_slice %1007 {offsets = [0, 0], sizes = [8, 8], strides = [1, 1]} : vector<16x8xf32> to vector<8x8xf32>
    %c1_381 = arith.constant 1 : index
    %c0_382 = arith.constant 0 : index
    %c0_383 = arith.constant 0 : index
    %1035 = vector.load %arg23[%c1_381, %c0_382, %c0_383] : memref<4x8x8xf32, #tpu.memory_space<vmem>>, vector<1x8x8xf32>
    %1036 = vector.shape_cast %1035 : vector<1x8x8xf32> to vector<8x8xf32>
    %1037 = arith.truncf %1032 : vector<8x8xf32> to vector<8x8xbf16>
    %1038 = arith.truncf %1033 : vector<8x8xf32> to vector<8x8xbf16>
    %cst_384 = arith.constant dense<0.000000e+00> : vector<8x8xf32>
    %1039 = tpu.matmul %1037, %1038, %cst_384 {dimension_numbers = #tpu.dot_dimension_numbers<[1], [1], [0], [0], [0, 0, 1, 0], [], []>} : vector<8x8xbf16>, vector<8x8xbf16>, vector<8x8xf32> -> vector<8x8xf32>
    %1040 = arith.addf %1039, %1036 : vector<8x8xf32>
    %cst_385 = arith.constant dense<0xFF800000> : vector<8xf32>
    %1041 = vector.multi_reduction <maximumf>, %1040, %cst_385 [1] : vector<8x8xf32> to vector<8xf32>
    %1042 = vector.shape_cast %1041 : vector<8xf32> to vector<8x1xf32>
    %1043 = vector.broadcast %1042 : vector<8x1xf32> to vector<8x8xf32>
    %1044 = arith.subf %1040, %1043 : vector<8x8xf32>
    %1045 = math.exp %1044 : vector<8x8xf32>
    %cst_386 = arith.constant dense<0.000000e+00> : vector<8xf32>
    %1046 = vector.multi_reduction <add>, %1045, %cst_386 [1] : vector<8x8xf32> to vector<8xf32>
    %1047 = vector.shape_cast %1046 : vector<8xf32> to vector<8x1xf32>
    %1048 = tpu.reciprocal %1047 {approx = true} : vector<8x1xf32> -> vector<8x1xf32>
    %1049 = vector.broadcast %1048 : vector<8x1xf32> to vector<8x8xf32>
    %1050 = arith.mulf %1045, %1049 : vector<8x8xf32>
    %1051 = arith.truncf %1050 : vector<8x8xf32> to vector<8x8xbf16>
    %1052 = arith.truncf %1034 : vector<8x8xf32> to vector<8x8xbf16>
    %cst_387 = arith.constant dense<0.000000e+00> : vector<8x8xf32>
    %1053 = tpu.matmul %1051, %1052, %cst_387 {dimension_numbers = #tpu.dot_dimension_numbers<[1], [0], [0], [1], [0, 0, 1, 1], [], []>} : vector<8x8xbf16>, vector<8x8xbf16>, vector<8x8xf32> -> vector<8x8xf32>
    %1054 = vector.extract_strided_slice %1000 {offsets = [0, 0], sizes = [8, 8], strides = [1, 1]} : vector<16x8xf32> to vector<8x8xf32>
    %1055 = vector.extract_strided_slice %1004 {offsets = [0, 0], sizes = [8, 8], strides = [1, 1]} : vector<16x8xf32> to vector<8x8xf32>
    %1056 = vector.extract_strided_slice %1008 {offsets = [0, 0], sizes = [8, 8], strides = [1, 1]} : vector<16x8xf32> to vector<8x8xf32>
    %c2_388 = arith.constant 2 : index
    %c0_389 = arith.constant 0 : index
    %c0_390 = arith.constant 0 : index
    %1057 = vector.load %arg23[%c2_388, %c0_389, %c0_390] : memref<4x8x8xf32, #tpu.memory_space<vmem>>, vector<1x8x8xf32>
    %1058 = vector.shape_cast %1057 : vector<1x8x8xf32> to vector<8x8xf32>
    %1059 = arith.truncf %1054 : vector<8x8xf32> to vector<8x8xbf16>
    %1060 = arith.truncf %1055 : vector<8x8xf32> to vector<8x8xbf16>
    %cst_391 = arith.constant dense<0.000000e+00> : vector<8x8xf32>
    %1061 = tpu.matmul %1059, %1060, %cst_391 {dimension_numbers = #tpu.dot_dimension_numbers<[1], [1], [0], [0], [0, 0, 1, 0], [], []>} : vector<8x8xbf16>, vector<8x8xbf16>, vector<8x8xf32> -> vector<8x8xf32>
    %1062 = arith.addf %1061, %1058 : vector<8x8xf32>
    %cst_392 = arith.constant dense<0xFF800000> : vector<8xf32>
    %1063 = vector.multi_reduction <maximumf>, %1062, %cst_392 [1] : vector<8x8xf32> to vector<8xf32>
    %1064 = vector.shape_cast %1063 : vector<8xf32> to vector<8x1xf32>
    %1065 = vector.broadcast %1064 : vector<8x1xf32> to vector<8x8xf32>
    %1066 = arith.subf %1062, %1065 : vector<8x8xf32>
    %1067 = math.exp %1066 : vector<8x8xf32>
    %cst_393 = arith.constant dense<0.000000e+00> : vector<8xf32>
    %1068 = vector.multi_reduction <add>, %1067, %cst_393 [1] : vector<8x8xf32> to vector<8xf32>
    %1069 = vector.shape_cast %1068 : vector<8xf32> to vector<8x1xf32>
    %1070 = tpu.reciprocal %1069 {approx = true} : vector<8x1xf32> -> vector<8x1xf32>
    %1071 = vector.broadcast %1070 : vector<8x1xf32> to vector<8x8xf32>
    %1072 = arith.mulf %1067, %1071 : vector<8x8xf32>
    %1073 = arith.truncf %1072 : vector<8x8xf32> to vector<8x8xbf16>
    %1074 = arith.truncf %1056 : vector<8x8xf32> to vector<8x8xbf16>
    %cst_394 = arith.constant dense<0.000000e+00> : vector<8x8xf32>
    %1075 = tpu.matmul %1073, %1074, %cst_394 {dimension_numbers = #tpu.dot_dimension_numbers<[1], [0], [0], [1], [0, 0, 1, 1], [], []>} : vector<8x8xbf16>, vector<8x8xbf16>, vector<8x8xf32> -> vector<8x8xf32>
    %1076 = vector.extract_strided_slice %1001 {offsets = [0, 0], sizes = [8, 8], strides = [1, 1]} : vector<16x8xf32> to vector<8x8xf32>
    %1077 = vector.extract_strided_slice %1005 {offsets = [0, 0], sizes = [8, 8], strides = [1, 1]} : vector<16x8xf32> to vector<8x8xf32>
    %1078 = vector.extract_strided_slice %1009 {offsets = [0, 0], sizes = [8, 8], strides = [1, 1]} : vector<16x8xf32> to vector<8x8xf32>
    %c3_395 = arith.constant 3 : index
    %c0_396 = arith.constant 0 : index
    %c0_397 = arith.constant 0 : index
    %1079 = vector.load %arg23[%c3_395, %c0_396, %c0_397] : memref<4x8x8xf32, #tpu.memory_space<vmem>>, vector<1x8x8xf32>
    %1080 = vector.shape_cast %1079 : vector<1x8x8xf32> to vector<8x8xf32>
    %1081 = arith.truncf %1076 : vector<8x8xf32> to vector<8x8xbf16>
    %1082 = arith.truncf %1077 : vector<8x8xf32> to vector<8x8xbf16>
    %cst_398 = arith.constant dense<0.000000e+00> : vector<8x8xf32>
    %1083 = tpu.matmul %1081, %1082, %cst_398 {dimension_numbers = #tpu.dot_dimension_numbers<[1], [1], [0], [0], [0, 0, 1, 0], [], []>} : vector<8x8xbf16>, vector<8x8xbf16>, vector<8x8xf32> -> vector<8x8xf32>
    %1084 = arith.addf %1083, %1080 : vector<8x8xf32>
    %cst_399 = arith.constant dense<0xFF800000> : vector<8xf32>
    %1085 = vector.multi_reduction <maximumf>, %1084, %cst_399 [1] : vector<8x8xf32> to vector<8xf32>
    %1086 = vector.shape_cast %1085 : vector<8xf32> to vector<8x1xf32>
    %1087 = vector.broadcast %1086 : vector<8x1xf32> to vector<8x8xf32>
    %1088 = arith.subf %1084, %1087 : vector<8x8xf32>
    %1089 = math.exp %1088 : vector<8x8xf32>
    %cst_400 = arith.constant dense<0.000000e+00> : vector<8xf32>
    %1090 = vector.multi_reduction <add>, %1089, %cst_400 [1] : vector<8x8xf32> to vector<8xf32>
    %1091 = vector.shape_cast %1090 : vector<8xf32> to vector<8x1xf32>
    %1092 = tpu.reciprocal %1091 {approx = true} : vector<8x1xf32> -> vector<8x1xf32>
    %1093 = vector.broadcast %1092 : vector<8x1xf32> to vector<8x8xf32>
    %1094 = arith.mulf %1089, %1093 : vector<8x8xf32>
    %1095 = arith.truncf %1094 : vector<8x8xf32> to vector<8x8xbf16>
    %1096 = arith.truncf %1078 : vector<8x8xf32> to vector<8x8xbf16>
    %cst_401 = arith.constant dense<0.000000e+00> : vector<8x8xf32>
    %1097 = tpu.matmul %1095, %1096, %cst_401 {dimension_numbers = #tpu.dot_dimension_numbers<[1], [0], [0], [1], [0, 0, 1, 1], [], []>} : vector<8x8xbf16>, vector<8x8xbf16>, vector<8x8xf32> -> vector<8x8xf32>
    %1098 = tpu.concatenate %1031, %1053, %1075, %1097 in 1 : vector<8x8xf32>, vector<8x8xf32>, vector<8x8xf32>, vector<8x8xf32> -> vector<8x32xf32>
    %1099 = arith.truncf %1098 : vector<8x32xf32> to vector<8x32xbf16>
    %cst_402 = arith.constant dense<0.000000e+00> : vector<8x32xf32>
    %1100 = tpu.matmul %1099, %983, %cst_402 {dimension_numbers = #tpu.dot_dimension_numbers<[1], [0], [0], [1], [0, 0, 1, 1], [], []>} : vector<8x32xbf16>, vector<32x32xbf16>, vector<8x32xf32> -> vector<8x32xf32>
    %1101 = vector.extract_strided_slice %998 {offsets = [8, 0], sizes = [8, 8], strides = [1, 1]} : vector<16x8xf32> to vector<8x8xf32>
    %1102 = vector.extract_strided_slice %1002 {offsets = [8, 0], sizes = [8, 8], strides = [1, 1]} : vector<16x8xf32> to vector<8x8xf32>
    %1103 = vector.extract_strided_slice %1006 {offsets = [8, 0], sizes = [8, 8], strides = [1, 1]} : vector<16x8xf32> to vector<8x8xf32>
    %c0_403 = arith.constant 0 : index
    %c0_404 = arith.constant 0 : index
    %c0_405 = arith.constant 0 : index
    %1104 = vector.load %arg23[%c0_403, %c0_404, %c0_405] : memref<4x8x8xf32, #tpu.memory_space<vmem>>, vector<1x8x8xf32>
    %1105 = vector.shape_cast %1104 : vector<1x8x8xf32> to vector<8x8xf32>
    %1106 = arith.truncf %1101 : vector<8x8xf32> to vector<8x8xbf16>
    %1107 = arith.truncf %1102 : vector<8x8xf32> to vector<8x8xbf16>
    %cst_406 = arith.constant dense<0.000000e+00> : vector<8x8xf32>
    %1108 = tpu.matmul %1106, %1107, %cst_406 {dimension_numbers = #tpu.dot_dimension_numbers<[1], [1], [0], [0], [0, 0, 1, 0], [], []>} : vector<8x8xbf16>, vector<8x8xbf16>, vector<8x8xf32> -> vector<8x8xf32>
    %1109 = arith.addf %1108, %1105 : vector<8x8xf32>
    %cst_407 = arith.constant dense<0xFF800000> : vector<8xf32>
    %1110 = vector.multi_reduction <maximumf>, %1109, %cst_407 [1] : vector<8x8xf32> to vector<8xf32>
    %1111 = vector.shape_cast %1110 : vector<8xf32> to vector<8x1xf32>
    %1112 = vector.broadcast %1111 : vector<8x1xf32> to vector<8x8xf32>
    %1113 = arith.subf %1109, %1112 : vector<8x8xf32>
    %1114 = math.exp %1113 : vector<8x8xf32>
    %cst_408 = arith.constant dense<0.000000e+00> : vector<8xf32>
    %1115 = vector.multi_reduction <add>, %1114, %cst_408 [1] : vector<8x8xf32> to vector<8xf32>
    %1116 = vector.shape_cast %1115 : vector<8xf32> to vector<8x1xf32>
    %1117 = tpu.reciprocal %1116 {approx = true} : vector<8x1xf32> -> vector<8x1xf32>
    %1118 = vector.broadcast %1117 : vector<8x1xf32> to vector<8x8xf32>
    %1119 = arith.mulf %1114, %1118 : vector<8x8xf32>
    %1120 = arith.truncf %1119 : vector<8x8xf32> to vector<8x8xbf16>
    %1121 = arith.truncf %1103 : vector<8x8xf32> to vector<8x8xbf16>
    %cst_409 = arith.constant dense<0.000000e+00> : vector<8x8xf32>
    %1122 = tpu.matmul %1120, %1121, %cst_409 {dimension_numbers = #tpu.dot_dimension_numbers<[1], [0], [0], [1], [0, 0, 1, 1], [], []>} : vector<8x8xbf16>, vector<8x8xbf16>, vector<8x8xf32> -> vector<8x8xf32>
    %1123 = vector.extract_strided_slice %999 {offsets = [8, 0], sizes = [8, 8], strides = [1, 1]} : vector<16x8xf32> to vector<8x8xf32>
    %1124 = vector.extract_strided_slice %1003 {offsets = [8, 0], sizes = [8, 8], strides = [1, 1]} : vector<16x8xf32> to vector<8x8xf32>
    %1125 = vector.extract_strided_slice %1007 {offsets = [8, 0], sizes = [8, 8], strides = [1, 1]} : vector<16x8xf32> to vector<8x8xf32>
    %c1_410 = arith.constant 1 : index
    %c0_411 = arith.constant 0 : index
    %c0_412 = arith.constant 0 : index
    %1126 = vector.load %arg23[%c1_410, %c0_411, %c0_412] : memref<4x8x8xf32, #tpu.memory_space<vmem>>, vector<1x8x8xf32>
    %1127 = vector.shape_cast %1126 : vector<1x8x8xf32> to vector<8x8xf32>
    %1128 = arith.truncf %1123 : vector<8x8xf32> to vector<8x8xbf16>
    %1129 = arith.truncf %1124 : vector<8x8xf32> to vector<8x8xbf16>
    %cst_413 = arith.constant dense<0.000000e+00> : vector<8x8xf32>
    %1130 = tpu.matmul %1128, %1129, %cst_413 {dimension_numbers = #tpu.dot_dimension_numbers<[1], [1], [0], [0], [0, 0, 1, 0], [], []>} : vector<8x8xbf16>, vector<8x8xbf16>, vector<8x8xf32> -> vector<8x8xf32>
    %1131 = arith.addf %1130, %1127 : vector<8x8xf32>
    %cst_414 = arith.constant dense<0xFF800000> : vector<8xf32>
    %1132 = vector.multi_reduction <maximumf>, %1131, %cst_414 [1] : vector<8x8xf32> to vector<8xf32>
    %1133 = vector.shape_cast %1132 : vector<8xf32> to vector<8x1xf32>
    %1134 = vector.broadcast %1133 : vector<8x1xf32> to vector<8x8xf32>
    %1135 = arith.subf %1131, %1134 : vector<8x8xf32>
    %1136 = math.exp %1135 : vector<8x8xf32>
    %cst_415 = arith.constant dense<0.000000e+00> : vector<8xf32>
    %1137 = vector.multi_reduction <add>, %1136, %cst_415 [1] : vector<8x8xf32> to vector<8xf32>
    %1138 = vector.shape_cast %1137 : vector<8xf32> to vector<8x1xf32>
    %1139 = tpu.reciprocal %1138 {approx = true} : vector<8x1xf32> -> vector<8x1xf32>
    %1140 = vector.broadcast %1139 : vector<8x1xf32> to vector<8x8xf32>
    %1141 = arith.mulf %1136, %1140 : vector<8x8xf32>
    %1142 = arith.truncf %1141 : vector<8x8xf32> to vector<8x8xbf16>
    %1143 = arith.truncf %1125 : vector<8x8xf32> to vector<8x8xbf16>
    %cst_416 = arith.constant dense<0.000000e+00> : vector<8x8xf32>
    %1144 = tpu.matmul %1142, %1143, %cst_416 {dimension_numbers = #tpu.dot_dimension_numbers<[1], [0], [0], [1], [0, 0, 1, 1], [], []>} : vector<8x8xbf16>, vector<8x8xbf16>, vector<8x8xf32> -> vector<8x8xf32>
    %1145 = vector.extract_strided_slice %1000 {offsets = [8, 0], sizes = [8, 8], strides = [1, 1]} : vector<16x8xf32> to vector<8x8xf32>
    %1146 = vector.extract_strided_slice %1004 {offsets = [8, 0], sizes = [8, 8], strides = [1, 1]} : vector<16x8xf32> to vector<8x8xf32>
    %1147 = vector.extract_strided_slice %1008 {offsets = [8, 0], sizes = [8, 8], strides = [1, 1]} : vector<16x8xf32> to vector<8x8xf32>
    %c2_417 = arith.constant 2 : index
    %c0_418 = arith.constant 0 : index
    %c0_419 = arith.constant 0 : index
    %1148 = vector.load %arg23[%c2_417, %c0_418, %c0_419] : memref<4x8x8xf32, #tpu.memory_space<vmem>>, vector<1x8x8xf32>
    %1149 = vector.shape_cast %1148 : vector<1x8x8xf32> to vector<8x8xf32>
    %1150 = arith.truncf %1145 : vector<8x8xf32> to vector<8x8xbf16>
    %1151 = arith.truncf %1146 : vector<8x8xf32> to vector<8x8xbf16>
    %cst_420 = arith.constant dense<0.000000e+00> : vector<8x8xf32>
    %1152 = tpu.matmul %1150, %1151, %cst_420 {dimension_numbers = #tpu.dot_dimension_numbers<[1], [1], [0], [0], [0, 0, 1, 0], [], []>} : vector<8x8xbf16>, vector<8x8xbf16>, vector<8x8xf32> -> vector<8x8xf32>
    %1153 = arith.addf %1152, %1149 : vector<8x8xf32>
    %cst_421 = arith.constant dense<0xFF800000> : vector<8xf32>
    %1154 = vector.multi_reduction <maximumf>, %1153, %cst_421 [1] : vector<8x8xf32> to vector<8xf32>
    %1155 = vector.shape_cast %1154 : vector<8xf32> to vector<8x1xf32>
    %1156 = vector.broadcast %1155 : vector<8x1xf32> to vector<8x8xf32>
    %1157 = arith.subf %1153, %1156 : vector<8x8xf32>
    %1158 = math.exp %1157 : vector<8x8xf32>
    %cst_422 = arith.constant dense<0.000000e+00> : vector<8xf32>
    %1159 = vector.multi_reduction <add>, %1158, %cst_422 [1] : vector<8x8xf32> to vector<8xf32>
    %1160 = vector.shape_cast %1159 : vector<8xf32> to vector<8x1xf32>
    %1161 = tpu.reciprocal %1160 {approx = true} : vector<8x1xf32> -> vector<8x1xf32>
    %1162 = vector.broadcast %1161 : vector<8x1xf32> to vector<8x8xf32>
    %1163 = arith.mulf %1158, %1162 : vector<8x8xf32>
    %1164 = arith.truncf %1163 : vector<8x8xf32> to vector<8x8xbf16>
    %1165 = arith.truncf %1147 : vector<8x8xf32> to vector<8x8xbf16>
    %cst_423 = arith.constant dense<0.000000e+00> : vector<8x8xf32>
    %1166 = tpu.matmul %1164, %1165, %cst_423 {dimension_numbers = #tpu.dot_dimension_numbers<[1], [0], [0], [1], [0, 0, 1, 1], [], []>} : vector<8x8xbf16>, vector<8x8xbf16>, vector<8x8xf32> -> vector<8x8xf32>
    %1167 = vector.extract_strided_slice %1001 {offsets = [8, 0], sizes = [8, 8], strides = [1, 1]} : vector<16x8xf32> to vector<8x8xf32>
    %1168 = vector.extract_strided_slice %1005 {offsets = [8, 0], sizes = [8, 8], strides = [1, 1]} : vector<16x8xf32> to vector<8x8xf32>
    %1169 = vector.extract_strided_slice %1009 {offsets = [8, 0], sizes = [8, 8], strides = [1, 1]} : vector<16x8xf32> to vector<8x8xf32>
    %c3_424 = arith.constant 3 : index
    %c0_425 = arith.constant 0 : index
    %c0_426 = arith.constant 0 : index
    %1170 = vector.load %arg23[%c3_424, %c0_425, %c0_426] : memref<4x8x8xf32, #tpu.memory_space<vmem>>, vector<1x8x8xf32>
    %1171 = vector.shape_cast %1170 : vector<1x8x8xf32> to vector<8x8xf32>
    %1172 = arith.truncf %1167 : vector<8x8xf32> to vector<8x8xbf16>
    %1173 = arith.truncf %1168 : vector<8x8xf32> to vector<8x8xbf16>
    %cst_427 = arith.constant dense<0.000000e+00> : vector<8x8xf32>
    %1174 = tpu.matmul %1172, %1173, %cst_427 {dimension_numbers = #tpu.dot_dimension_numbers<[1], [1], [0], [0], [0, 0, 1, 0], [], []>} : vector<8x8xbf16>, vector<8x8xbf16>, vector<8x8xf32> -> vector<8x8xf32>
    %1175 = arith.addf %1174, %1171 : vector<8x8xf32>
    %cst_428 = arith.constant dense<0xFF800000> : vector<8xf32>
    %1176 = vector.multi_reduction <maximumf>, %1175, %cst_428 [1] : vector<8x8xf32> to vector<8xf32>
    %1177 = vector.shape_cast %1176 : vector<8xf32> to vector<8x1xf32>
    %1178 = vector.broadcast %1177 : vector<8x1xf32> to vector<8x8xf32>
    %1179 = arith.subf %1175, %1178 : vector<8x8xf32>
    %1180 = math.exp %1179 : vector<8x8xf32>
    %cst_429 = arith.constant dense<0.000000e+00> : vector<8xf32>
    %1181 = vector.multi_reduction <add>, %1180, %cst_429 [1] : vector<8x8xf32> to vector<8xf32>
    %1182 = vector.shape_cast %1181 : vector<8xf32> to vector<8x1xf32>
    %1183 = tpu.reciprocal %1182 {approx = true} : vector<8x1xf32> -> vector<8x1xf32>
    %1184 = vector.broadcast %1183 : vector<8x1xf32> to vector<8x8xf32>
    %1185 = arith.mulf %1180, %1184 : vector<8x8xf32>
    %1186 = arith.truncf %1185 : vector<8x8xf32> to vector<8x8xbf16>
    %1187 = arith.truncf %1169 : vector<8x8xf32> to vector<8x8xbf16>
    %cst_430 = arith.constant dense<0.000000e+00> : vector<8x8xf32>
    %1188 = tpu.matmul %1186, %1187, %cst_430 {dimension_numbers = #tpu.dot_dimension_numbers<[1], [0], [0], [1], [0, 0, 1, 1], [], []>} : vector<8x8xbf16>, vector<8x8xbf16>, vector<8x8xf32> -> vector<8x8xf32>
    %1189 = tpu.concatenate %1122, %1144, %1166, %1188 in 1 : vector<8x8xf32>, vector<8x8xf32>, vector<8x8xf32>, vector<8x8xf32> -> vector<8x32xf32>
    %1190 = arith.truncf %1189 : vector<8x32xf32> to vector<8x32xbf16>
    %cst_431 = arith.constant dense<0.000000e+00> : vector<8x32xf32>
    %1191 = tpu.matmul %1190, %983, %cst_431 {dimension_numbers = #tpu.dot_dimension_numbers<[1], [0], [0], [1], [0, 0, 1, 1], [], []>} : vector<8x32xbf16>, vector<32x32xbf16>, vector<8x32xf32> -> vector<8x32xf32>
    %1192 = tpu.concatenate %1100, %1191 in 0 : vector<8x32xf32>, vector<8x32xf32> -> vector<16x32xf32>
    %1193 = arith.addf %977, %1192 : vector<16x32xf32>
    %c1_432 = arith.constant 1 : index
    %c0_433 = arith.constant 0 : index
    %c0_434 = arith.constant 0 : index
    %1194 = vector.load %arg15[%c1_432, %c0_433, %c0_434] : memref<2x1x32xf32, #tpu.memory_space<vmem>>, vector<1x1x32xf32>
    %1195 = vector.shape_cast %1194 : vector<1x1x32xf32> to vector<1x32xf32>
    %c1_435 = arith.constant 1 : index
    %c0_436 = arith.constant 0 : index
    %c0_437 = arith.constant 0 : index
    %1196 = vector.load %arg16[%c1_435, %c0_436, %c0_437] : memref<2x32x32xbf16, #tpu.memory_space<vmem>>, vector<1x32x32xbf16>
    %1197 = vector.shape_cast %1196 : vector<1x32x32xbf16> to vector<32x32xbf16>
    %c1_438 = arith.constant 1 : index
    %c0_439 = arith.constant 0 : index
    %c0_440 = arith.constant 0 : index
    %1198 = vector.load %arg17[%c1_438, %c0_439, %c0_440] : memref<2x32x64xbf16, #tpu.memory_space<vmem>>, vector<1x32x64xbf16>
    %1199 = vector.shape_cast %1198 : vector<1x32x64xbf16> to vector<32x64xbf16>
    %c1_441 = arith.constant 1 : index
    %c0_442 = arith.constant 0 : index
    %c0_443 = arith.constant 0 : index
    %1200 = vector.load %arg18[%c1_441, %c0_442, %c0_443] : memref<2x32x32xbf16, #tpu.memory_space<vmem>>, vector<1x32x32xbf16>
    %1201 = vector.shape_cast %1200 : vector<1x32x32xbf16> to vector<32x32xbf16>
    %1202 = arith.mulf %1193, %1193 : vector<16x32xf32>
    %cst_444 = arith.constant dense<0.000000e+00> : vector<16xf32>
    %1203 = vector.multi_reduction <add>, %1202, %cst_444 [1] : vector<16x32xf32> to vector<16xf32>
    %1204 = vector.shape_cast %1203 : vector<16xf32> to vector<16x1xf32>
    %cst_445 = arith.constant 3.200000e+01 : f32
    %1205 = vector.broadcast %cst_445 : f32 to vector<16x1xf32>
    %1206 = arith.divf %1204, %1205 : vector<16x1xf32>
    %cst_446 = arith.constant 9.99999997E-7 : f32
    %1207 = vector.broadcast %cst_446 : f32 to vector<16x1xf32>
    %1208 = arith.addf %1206, %1207 : vector<16x1xf32>
    %1209 = math.rsqrt %1208 : vector<16x1xf32>
    %1210 = vector.broadcast %1209 : vector<16x1xf32> to vector<16x32xf32>
    %1211 = arith.mulf %1193, %1210 : vector<16x32xf32>
    %1212 = vector.broadcast %1195 : vector<1x32xf32> to vector<16x32xf32>
    %1213 = arith.mulf %1211, %1212 : vector<16x32xf32>
    %1214 = arith.truncf %1213 : vector<16x32xf32> to vector<16x32xbf16>
    %cst_447 = arith.constant dense<0.000000e+00> : vector<16x32xf32>
    %1215 = tpu.matmul %1214, %1197, %cst_447 {dimension_numbers = #tpu.dot_dimension_numbers<[1], [0], [0], [1], [0, 0, 1, 1], [], []>} : vector<16x32xbf16>, vector<32x32xbf16>, vector<16x32xf32> -> vector<16x32xf32>
    %1216 = arith.truncf %498 : vector<16x32xf32> to vector<16x32xbf16>
    %cst_448 = arith.constant dense<0.000000e+00> : vector<16x64xf32>
    %1217 = tpu.matmul %1216, %1199, %cst_448 {dimension_numbers = #tpu.dot_dimension_numbers<[1], [0], [0], [1], [0, 0, 1, 1], [], []>} : vector<16x32xbf16>, vector<32x64xbf16>, vector<16x64xf32> -> vector<16x64xf32>
    %1218 = vector.extract_strided_slice %1215 {offsets = [0, 0], sizes = [16, 8], strides = [1, 1]} : vector<16x32xf32> to vector<16x8xf32>
    %1219 = vector.extract_strided_slice %1215 {offsets = [0, 8], sizes = [16, 8], strides = [1, 1]} : vector<16x32xf32> to vector<16x8xf32>
    %1220 = vector.extract_strided_slice %1215 {offsets = [0, 16], sizes = [16, 8], strides = [1, 1]} : vector<16x32xf32> to vector<16x8xf32>
    %1221 = vector.extract_strided_slice %1215 {offsets = [0, 24], sizes = [16, 8], strides = [1, 1]} : vector<16x32xf32> to vector<16x8xf32>
    %1222 = vector.extract_strided_slice %1217 {offsets = [0, 0], sizes = [16, 8], strides = [1, 1]} : vector<16x64xf32> to vector<16x8xf32>
    %1223 = vector.extract_strided_slice %1217 {offsets = [0, 8], sizes = [16, 8], strides = [1, 1]} : vector<16x64xf32> to vector<16x8xf32>
    %1224 = vector.extract_strided_slice %1217 {offsets = [0, 16], sizes = [16, 8], strides = [1, 1]} : vector<16x64xf32> to vector<16x8xf32>
    %1225 = vector.extract_strided_slice %1217 {offsets = [0, 24], sizes = [16, 8], strides = [1, 1]} : vector<16x64xf32> to vector<16x8xf32>
    %1226 = vector.extract_strided_slice %1217 {offsets = [0, 32], sizes = [16, 8], strides = [1, 1]} : vector<16x64xf32> to vector<16x8xf32>
    %1227 = vector.extract_strided_slice %1217 {offsets = [0, 40], sizes = [16, 8], strides = [1, 1]} : vector<16x64xf32> to vector<16x8xf32>
    %1228 = vector.extract_strided_slice %1217 {offsets = [0, 48], sizes = [16, 8], strides = [1, 1]} : vector<16x64xf32> to vector<16x8xf32>
    %1229 = vector.extract_strided_slice %1217 {offsets = [0, 56], sizes = [16, 8], strides = [1, 1]} : vector<16x64xf32> to vector<16x8xf32>
    %1230 = vector.extract_strided_slice %1218 {offsets = [0, 0], sizes = [8, 8], strides = [1, 1]} : vector<16x8xf32> to vector<8x8xf32>
    %1231 = vector.extract_strided_slice %1222 {offsets = [0, 0], sizes = [8, 8], strides = [1, 1]} : vector<16x8xf32> to vector<8x8xf32>
    %1232 = vector.extract_strided_slice %1226 {offsets = [0, 0], sizes = [8, 8], strides = [1, 1]} : vector<16x8xf32> to vector<8x8xf32>
    %c0_449 = arith.constant 0 : index
    %c0_450 = arith.constant 0 : index
    %c0_451 = arith.constant 0 : index
    %1233 = vector.load %arg24[%c0_449, %c0_450, %c0_451] : memref<2x1x8xf32, #tpu.memory_space<vmem>>, vector<1x1x8xf32>
    %1234 = vector.shape_cast %1233 : vector<1x1x8xf32> to vector<1x8xf32>
    %1235 = arith.truncf %1230 : vector<8x8xf32> to vector<8x8xbf16>
    %1236 = arith.truncf %1231 : vector<8x8xf32> to vector<8x8xbf16>
    %cst_452 = arith.constant dense<0.000000e+00> : vector<8x8xf32>
    %1237 = tpu.matmul %1235, %1236, %cst_452 {dimension_numbers = #tpu.dot_dimension_numbers<[1], [1], [0], [0], [0, 0, 1, 0], [], []>} : vector<8x8xbf16>, vector<8x8xbf16>, vector<8x8xf32> -> vector<8x8xf32>
    %1238 = vector.broadcast %1234 : vector<1x8xf32> to vector<8x8xf32>
    %1239 = arith.addf %1237, %1238 : vector<8x8xf32>
    %cst_453 = arith.constant dense<0xFF800000> : vector<8xf32>
    %1240 = vector.multi_reduction <maximumf>, %1239, %cst_453 [1] : vector<8x8xf32> to vector<8xf32>
    %1241 = vector.shape_cast %1240 : vector<8xf32> to vector<8x1xf32>
    %1242 = vector.broadcast %1241 : vector<8x1xf32> to vector<8x8xf32>
    %1243 = arith.subf %1239, %1242 : vector<8x8xf32>
    %1244 = math.exp %1243 : vector<8x8xf32>
    %cst_454 = arith.constant dense<0.000000e+00> : vector<8xf32>
    %1245 = vector.multi_reduction <add>, %1244, %cst_454 [1] : vector<8x8xf32> to vector<8xf32>
    %1246 = vector.shape_cast %1245 : vector<8xf32> to vector<8x1xf32>
    %1247 = tpu.reciprocal %1246 {approx = true} : vector<8x1xf32> -> vector<8x1xf32>
    %1248 = vector.broadcast %1247 : vector<8x1xf32> to vector<8x8xf32>
    %1249 = arith.mulf %1244, %1248 : vector<8x8xf32>
    %1250 = arith.truncf %1249 : vector<8x8xf32> to vector<8x8xbf16>
    %1251 = arith.truncf %1232 : vector<8x8xf32> to vector<8x8xbf16>
    %cst_455 = arith.constant dense<0.000000e+00> : vector<8x8xf32>
    %1252 = tpu.matmul %1250, %1251, %cst_455 {dimension_numbers = #tpu.dot_dimension_numbers<[1], [0], [0], [1], [0, 0, 1, 1], [], []>} : vector<8x8xbf16>, vector<8x8xbf16>, vector<8x8xf32> -> vector<8x8xf32>
    %1253 = vector.extract_strided_slice %1219 {offsets = [0, 0], sizes = [8, 8], strides = [1, 1]} : vector<16x8xf32> to vector<8x8xf32>
    %1254 = vector.extract_strided_slice %1223 {offsets = [0, 0], sizes = [8, 8], strides = [1, 1]} : vector<16x8xf32> to vector<8x8xf32>
    %1255 = vector.extract_strided_slice %1227 {offsets = [0, 0], sizes = [8, 8], strides = [1, 1]} : vector<16x8xf32> to vector<8x8xf32>
    %c0_456 = arith.constant 0 : index
    %c0_457 = arith.constant 0 : index
    %c0_458 = arith.constant 0 : index
    %1256 = vector.load %arg24[%c0_456, %c0_457, %c0_458] : memref<2x1x8xf32, #tpu.memory_space<vmem>>, vector<1x1x8xf32>
    %1257 = vector.shape_cast %1256 : vector<1x1x8xf32> to vector<1x8xf32>
    %1258 = arith.truncf %1253 : vector<8x8xf32> to vector<8x8xbf16>
    %1259 = arith.truncf %1254 : vector<8x8xf32> to vector<8x8xbf16>
    %cst_459 = arith.constant dense<0.000000e+00> : vector<8x8xf32>
    %1260 = tpu.matmul %1258, %1259, %cst_459 {dimension_numbers = #tpu.dot_dimension_numbers<[1], [1], [0], [0], [0, 0, 1, 0], [], []>} : vector<8x8xbf16>, vector<8x8xbf16>, vector<8x8xf32> -> vector<8x8xf32>
    %1261 = vector.broadcast %1257 : vector<1x8xf32> to vector<8x8xf32>
    %1262 = arith.addf %1260, %1261 : vector<8x8xf32>
    %cst_460 = arith.constant dense<0xFF800000> : vector<8xf32>
    %1263 = vector.multi_reduction <maximumf>, %1262, %cst_460 [1] : vector<8x8xf32> to vector<8xf32>
    %1264 = vector.shape_cast %1263 : vector<8xf32> to vector<8x1xf32>
    %1265 = vector.broadcast %1264 : vector<8x1xf32> to vector<8x8xf32>
    %1266 = arith.subf %1262, %1265 : vector<8x8xf32>
    %1267 = math.exp %1266 : vector<8x8xf32>
    %cst_461 = arith.constant dense<0.000000e+00> : vector<8xf32>
    %1268 = vector.multi_reduction <add>, %1267, %cst_461 [1] : vector<8x8xf32> to vector<8xf32>
    %1269 = vector.shape_cast %1268 : vector<8xf32> to vector<8x1xf32>
    %1270 = tpu.reciprocal %1269 {approx = true} : vector<8x1xf32> -> vector<8x1xf32>
    %1271 = vector.broadcast %1270 : vector<8x1xf32> to vector<8x8xf32>
    %1272 = arith.mulf %1267, %1271 : vector<8x8xf32>
    %1273 = arith.truncf %1272 : vector<8x8xf32> to vector<8x8xbf16>
    %1274 = arith.truncf %1255 : vector<8x8xf32> to vector<8x8xbf16>
    %cst_462 = arith.constant dense<0.000000e+00> : vector<8x8xf32>
    %1275 = tpu.matmul %1273, %1274, %cst_462 {dimension_numbers = #tpu.dot_dimension_numbers<[1], [0], [0], [1], [0, 0, 1, 1], [], []>} : vector<8x8xbf16>, vector<8x8xbf16>, vector<8x8xf32> -> vector<8x8xf32>
    %1276 = vector.extract_strided_slice %1220 {offsets = [0, 0], sizes = [8, 8], strides = [1, 1]} : vector<16x8xf32> to vector<8x8xf32>
    %1277 = vector.extract_strided_slice %1224 {offsets = [0, 0], sizes = [8, 8], strides = [1, 1]} : vector<16x8xf32> to vector<8x8xf32>
    %1278 = vector.extract_strided_slice %1228 {offsets = [0, 0], sizes = [8, 8], strides = [1, 1]} : vector<16x8xf32> to vector<8x8xf32>
    %c0_463 = arith.constant 0 : index
    %c0_464 = arith.constant 0 : index
    %c0_465 = arith.constant 0 : index
    %1279 = vector.load %arg24[%c0_463, %c0_464, %c0_465] : memref<2x1x8xf32, #tpu.memory_space<vmem>>, vector<1x1x8xf32>
    %1280 = vector.shape_cast %1279 : vector<1x1x8xf32> to vector<1x8xf32>
    %1281 = arith.truncf %1276 : vector<8x8xf32> to vector<8x8xbf16>
    %1282 = arith.truncf %1277 : vector<8x8xf32> to vector<8x8xbf16>
    %cst_466 = arith.constant dense<0.000000e+00> : vector<8x8xf32>
    %1283 = tpu.matmul %1281, %1282, %cst_466 {dimension_numbers = #tpu.dot_dimension_numbers<[1], [1], [0], [0], [0, 0, 1, 0], [], []>} : vector<8x8xbf16>, vector<8x8xbf16>, vector<8x8xf32> -> vector<8x8xf32>
    %1284 = vector.broadcast %1280 : vector<1x8xf32> to vector<8x8xf32>
    %1285 = arith.addf %1283, %1284 : vector<8x8xf32>
    %cst_467 = arith.constant dense<0xFF800000> : vector<8xf32>
    %1286 = vector.multi_reduction <maximumf>, %1285, %cst_467 [1] : vector<8x8xf32> to vector<8xf32>
    %1287 = vector.shape_cast %1286 : vector<8xf32> to vector<8x1xf32>
    %1288 = vector.broadcast %1287 : vector<8x1xf32> to vector<8x8xf32>
    %1289 = arith.subf %1285, %1288 : vector<8x8xf32>
    %1290 = math.exp %1289 : vector<8x8xf32>
    %cst_468 = arith.constant dense<0.000000e+00> : vector<8xf32>
    %1291 = vector.multi_reduction <add>, %1290, %cst_468 [1] : vector<8x8xf32> to vector<8xf32>
    %1292 = vector.shape_cast %1291 : vector<8xf32> to vector<8x1xf32>
    %1293 = tpu.reciprocal %1292 {approx = true} : vector<8x1xf32> -> vector<8x1xf32>
    %1294 = vector.broadcast %1293 : vector<8x1xf32> to vector<8x8xf32>
    %1295 = arith.mulf %1290, %1294 : vector<8x8xf32>
    %1296 = arith.truncf %1295 : vector<8x8xf32> to vector<8x8xbf16>
    %1297 = arith.truncf %1278 : vector<8x8xf32> to vector<8x8xbf16>
    %cst_469 = arith.constant dense<0.000000e+00> : vector<8x8xf32>
    %1298 = tpu.matmul %1296, %1297, %cst_469 {dimension_numbers = #tpu.dot_dimension_numbers<[1], [0], [0], [1], [0, 0, 1, 1], [], []>} : vector<8x8xbf16>, vector<8x8xbf16>, vector<8x8xf32> -> vector<8x8xf32>
    %1299 = vector.extract_strided_slice %1221 {offsets = [0, 0], sizes = [8, 8], strides = [1, 1]} : vector<16x8xf32> to vector<8x8xf32>
    %1300 = vector.extract_strided_slice %1225 {offsets = [0, 0], sizes = [8, 8], strides = [1, 1]} : vector<16x8xf32> to vector<8x8xf32>
    %1301 = vector.extract_strided_slice %1229 {offsets = [0, 0], sizes = [8, 8], strides = [1, 1]} : vector<16x8xf32> to vector<8x8xf32>
    %c0_470 = arith.constant 0 : index
    %c0_471 = arith.constant 0 : index
    %c0_472 = arith.constant 0 : index
    %1302 = vector.load %arg24[%c0_470, %c0_471, %c0_472] : memref<2x1x8xf32, #tpu.memory_space<vmem>>, vector<1x1x8xf32>
    %1303 = vector.shape_cast %1302 : vector<1x1x8xf32> to vector<1x8xf32>
    %1304 = arith.truncf %1299 : vector<8x8xf32> to vector<8x8xbf16>
    %1305 = arith.truncf %1300 : vector<8x8xf32> to vector<8x8xbf16>
    %cst_473 = arith.constant dense<0.000000e+00> : vector<8x8xf32>
    %1306 = tpu.matmul %1304, %1305, %cst_473 {dimension_numbers = #tpu.dot_dimension_numbers<[1], [1], [0], [0], [0, 0, 1, 0], [], []>} : vector<8x8xbf16>, vector<8x8xbf16>, vector<8x8xf32> -> vector<8x8xf32>
    %1307 = vector.broadcast %1303 : vector<1x8xf32> to vector<8x8xf32>
    %1308 = arith.addf %1306, %1307 : vector<8x8xf32>
    %cst_474 = arith.constant dense<0xFF800000> : vector<8xf32>
    %1309 = vector.multi_reduction <maximumf>, %1308, %cst_474 [1] : vector<8x8xf32> to vector<8xf32>
    %1310 = vector.shape_cast %1309 : vector<8xf32> to vector<8x1xf32>
    %1311 = vector.broadcast %1310 : vector<8x1xf32> to vector<8x8xf32>
    %1312 = arith.subf %1308, %1311 : vector<8x8xf32>
    %1313 = math.exp %1312 : vector<8x8xf32>
    %cst_475 = arith.constant dense<0.000000e+00> : vector<8xf32>
    %1314 = vector.multi_reduction <add>, %1313, %cst_475 [1] : vector<8x8xf32> to vector<8xf32>
    %1315 = vector.shape_cast %1314 : vector<8xf32> to vector<8x1xf32>
    %1316 = tpu.reciprocal %1315 {approx = true} : vector<8x1xf32> -> vector<8x1xf32>
    %1317 = vector.broadcast %1316 : vector<8x1xf32> to vector<8x8xf32>
    %1318 = arith.mulf %1313, %1317 : vector<8x8xf32>
    %1319 = arith.truncf %1318 : vector<8x8xf32> to vector<8x8xbf16>
    %1320 = arith.truncf %1301 : vector<8x8xf32> to vector<8x8xbf16>
    %cst_476 = arith.constant dense<0.000000e+00> : vector<8x8xf32>
    %1321 = tpu.matmul %1319, %1320, %cst_476 {dimension_numbers = #tpu.dot_dimension_numbers<[1], [0], [0], [1], [0, 0, 1, 1], [], []>} : vector<8x8xbf16>, vector<8x8xbf16>, vector<8x8xf32> -> vector<8x8xf32>
    %1322 = tpu.concatenate %1252, %1275, %1298, %1321 in 1 : vector<8x8xf32>, vector<8x8xf32>, vector<8x8xf32>, vector<8x8xf32> -> vector<8x32xf32>
    %1323 = arith.truncf %1322 : vector<8x32xf32> to vector<8x32xbf16>
    %cst_477 = arith.constant dense<0.000000e+00> : vector<8x32xf32>
    %1324 = tpu.matmul %1323, %1201, %cst_477 {dimension_numbers = #tpu.dot_dimension_numbers<[1], [0], [0], [1], [0, 0, 1, 1], [], []>} : vector<8x32xbf16>, vector<32x32xbf16>, vector<8x32xf32> -> vector<8x32xf32>
    %1325 = vector.extract_strided_slice %1218 {offsets = [8, 0], sizes = [8, 8], strides = [1, 1]} : vector<16x8xf32> to vector<8x8xf32>
    %1326 = vector.extract_strided_slice %1222 {offsets = [8, 0], sizes = [8, 8], strides = [1, 1]} : vector<16x8xf32> to vector<8x8xf32>
    %1327 = vector.extract_strided_slice %1226 {offsets = [8, 0], sizes = [8, 8], strides = [1, 1]} : vector<16x8xf32> to vector<8x8xf32>
    %c1_478 = arith.constant 1 : index
    %c0_479 = arith.constant 0 : index
    %c0_480 = arith.constant 0 : index
    %1328 = vector.load %arg24[%c1_478, %c0_479, %c0_480] : memref<2x1x8xf32, #tpu.memory_space<vmem>>, vector<1x1x8xf32>
    %1329 = vector.shape_cast %1328 : vector<1x1x8xf32> to vector<1x8xf32>
    %1330 = arith.truncf %1325 : vector<8x8xf32> to vector<8x8xbf16>
    %1331 = arith.truncf %1326 : vector<8x8xf32> to vector<8x8xbf16>
    %cst_481 = arith.constant dense<0.000000e+00> : vector<8x8xf32>
    %1332 = tpu.matmul %1330, %1331, %cst_481 {dimension_numbers = #tpu.dot_dimension_numbers<[1], [1], [0], [0], [0, 0, 1, 0], [], []>} : vector<8x8xbf16>, vector<8x8xbf16>, vector<8x8xf32> -> vector<8x8xf32>
    %1333 = vector.broadcast %1329 : vector<1x8xf32> to vector<8x8xf32>
    %1334 = arith.addf %1332, %1333 : vector<8x8xf32>
    %cst_482 = arith.constant dense<0xFF800000> : vector<8xf32>
    %1335 = vector.multi_reduction <maximumf>, %1334, %cst_482 [1] : vector<8x8xf32> to vector<8xf32>
    %1336 = vector.shape_cast %1335 : vector<8xf32> to vector<8x1xf32>
    %1337 = vector.broadcast %1336 : vector<8x1xf32> to vector<8x8xf32>
    %1338 = arith.subf %1334, %1337 : vector<8x8xf32>
    %1339 = math.exp %1338 : vector<8x8xf32>
    %cst_483 = arith.constant dense<0.000000e+00> : vector<8xf32>
    %1340 = vector.multi_reduction <add>, %1339, %cst_483 [1] : vector<8x8xf32> to vector<8xf32>
    %1341 = vector.shape_cast %1340 : vector<8xf32> to vector<8x1xf32>
    %1342 = tpu.reciprocal %1341 {approx = true} : vector<8x1xf32> -> vector<8x1xf32>
    %1343 = vector.broadcast %1342 : vector<8x1xf32> to vector<8x8xf32>
    %1344 = arith.mulf %1339, %1343 : vector<8x8xf32>
    %1345 = arith.truncf %1344 : vector<8x8xf32> to vector<8x8xbf16>
    %1346 = arith.truncf %1327 : vector<8x8xf32> to vector<8x8xbf16>
    %cst_484 = arith.constant dense<0.000000e+00> : vector<8x8xf32>
    %1347 = tpu.matmul %1345, %1346, %cst_484 {dimension_numbers = #tpu.dot_dimension_numbers<[1], [0], [0], [1], [0, 0, 1, 1], [], []>} : vector<8x8xbf16>, vector<8x8xbf16>, vector<8x8xf32> -> vector<8x8xf32>
    %1348 = vector.extract_strided_slice %1219 {offsets = [8, 0], sizes = [8, 8], strides = [1, 1]} : vector<16x8xf32> to vector<8x8xf32>
    %1349 = vector.extract_strided_slice %1223 {offsets = [8, 0], sizes = [8, 8], strides = [1, 1]} : vector<16x8xf32> to vector<8x8xf32>
    %1350 = vector.extract_strided_slice %1227 {offsets = [8, 0], sizes = [8, 8], strides = [1, 1]} : vector<16x8xf32> to vector<8x8xf32>
    %c1_485 = arith.constant 1 : index
    %c0_486 = arith.constant 0 : index
    %c0_487 = arith.constant 0 : index
    %1351 = vector.load %arg24[%c1_485, %c0_486, %c0_487] : memref<2x1x8xf32, #tpu.memory_space<vmem>>, vector<1x1x8xf32>
    %1352 = vector.shape_cast %1351 : vector<1x1x8xf32> to vector<1x8xf32>
    %1353 = arith.truncf %1348 : vector<8x8xf32> to vector<8x8xbf16>
    %1354 = arith.truncf %1349 : vector<8x8xf32> to vector<8x8xbf16>
    %cst_488 = arith.constant dense<0.000000e+00> : vector<8x8xf32>
    %1355 = tpu.matmul %1353, %1354, %cst_488 {dimension_numbers = #tpu.dot_dimension_numbers<[1], [1], [0], [0], [0, 0, 1, 0], [], []>} : vector<8x8xbf16>, vector<8x8xbf16>, vector<8x8xf32> -> vector<8x8xf32>
    %1356 = vector.broadcast %1352 : vector<1x8xf32> to vector<8x8xf32>
    %1357 = arith.addf %1355, %1356 : vector<8x8xf32>
    %cst_489 = arith.constant dense<0xFF800000> : vector<8xf32>
    %1358 = vector.multi_reduction <maximumf>, %1357, %cst_489 [1] : vector<8x8xf32> to vector<8xf32>
    %1359 = vector.shape_cast %1358 : vector<8xf32> to vector<8x1xf32>
    %1360 = vector.broadcast %1359 : vector<8x1xf32> to vector<8x8xf32>
    %1361 = arith.subf %1357, %1360 : vector<8x8xf32>
    %1362 = math.exp %1361 : vector<8x8xf32>
    %cst_490 = arith.constant dense<0.000000e+00> : vector<8xf32>
    %1363 = vector.multi_reduction <add>, %1362, %cst_490 [1] : vector<8x8xf32> to vector<8xf32>
    %1364 = vector.shape_cast %1363 : vector<8xf32> to vector<8x1xf32>
    %1365 = tpu.reciprocal %1364 {approx = true} : vector<8x1xf32> -> vector<8x1xf32>
    %1366 = vector.broadcast %1365 : vector<8x1xf32> to vector<8x8xf32>
    %1367 = arith.mulf %1362, %1366 : vector<8x8xf32>
    %1368 = arith.truncf %1367 : vector<8x8xf32> to vector<8x8xbf16>
    %1369 = arith.truncf %1350 : vector<8x8xf32> to vector<8x8xbf16>
    %cst_491 = arith.constant dense<0.000000e+00> : vector<8x8xf32>
    %1370 = tpu.matmul %1368, %1369, %cst_491 {dimension_numbers = #tpu.dot_dimension_numbers<[1], [0], [0], [1], [0, 0, 1, 1], [], []>} : vector<8x8xbf16>, vector<8x8xbf16>, vector<8x8xf32> -> vector<8x8xf32>
    %1371 = vector.extract_strided_slice %1220 {offsets = [8, 0], sizes = [8, 8], strides = [1, 1]} : vector<16x8xf32> to vector<8x8xf32>
    %1372 = vector.extract_strided_slice %1224 {offsets = [8, 0], sizes = [8, 8], strides = [1, 1]} : vector<16x8xf32> to vector<8x8xf32>
    %1373 = vector.extract_strided_slice %1228 {offsets = [8, 0], sizes = [8, 8], strides = [1, 1]} : vector<16x8xf32> to vector<8x8xf32>
    %c1_492 = arith.constant 1 : index
    %c0_493 = arith.constant 0 : index
    %c0_494 = arith.constant 0 : index
    %1374 = vector.load %arg24[%c1_492, %c0_493, %c0_494] : memref<2x1x8xf32, #tpu.memory_space<vmem>>, vector<1x1x8xf32>
    %1375 = vector.shape_cast %1374 : vector<1x1x8xf32> to vector<1x8xf32>
    %1376 = arith.truncf %1371 : vector<8x8xf32> to vector<8x8xbf16>
    %1377 = arith.truncf %1372 : vector<8x8xf32> to vector<8x8xbf16>
    %cst_495 = arith.constant dense<0.000000e+00> : vector<8x8xf32>
    %1378 = tpu.matmul %1376, %1377, %cst_495 {dimension_numbers = #tpu.dot_dimension_numbers<[1], [1], [0], [0], [0, 0, 1, 0], [], []>} : vector<8x8xbf16>, vector<8x8xbf16>, vector<8x8xf32> -> vector<8x8xf32>
    %1379 = vector.broadcast %1375 : vector<1x8xf32> to vector<8x8xf32>
    %1380 = arith.addf %1378, %1379 : vector<8x8xf32>
    %cst_496 = arith.constant dense<0xFF800000> : vector<8xf32>
    %1381 = vector.multi_reduction <maximumf>, %1380, %cst_496 [1] : vector<8x8xf32> to vector<8xf32>
    %1382 = vector.shape_cast %1381 : vector<8xf32> to vector<8x1xf32>
    %1383 = vector.broadcast %1382 : vector<8x1xf32> to vector<8x8xf32>
    %1384 = arith.subf %1380, %1383 : vector<8x8xf32>
    %1385 = math.exp %1384 : vector<8x8xf32>
    %cst_497 = arith.constant dense<0.000000e+00> : vector<8xf32>
    %1386 = vector.multi_reduction <add>, %1385, %cst_497 [1] : vector<8x8xf32> to vector<8xf32>
    %1387 = vector.shape_cast %1386 : vector<8xf32> to vector<8x1xf32>
    %1388 = tpu.reciprocal %1387 {approx = true} : vector<8x1xf32> -> vector<8x1xf32>
    %1389 = vector.broadcast %1388 : vector<8x1xf32> to vector<8x8xf32>
    %1390 = arith.mulf %1385, %1389 : vector<8x8xf32>
    %1391 = arith.truncf %1390 : vector<8x8xf32> to vector<8x8xbf16>
    %1392 = arith.truncf %1373 : vector<8x8xf32> to vector<8x8xbf16>
    %cst_498 = arith.constant dense<0.000000e+00> : vector<8x8xf32>
    %1393 = tpu.matmul %1391, %1392, %cst_498 {dimension_numbers = #tpu.dot_dimension_numbers<[1], [0], [0], [1], [0, 0, 1, 1], [], []>} : vector<8x8xbf16>, vector<8x8xbf16>, vector<8x8xf32> -> vector<8x8xf32>
    %1394 = vector.extract_strided_slice %1221 {offsets = [8, 0], sizes = [8, 8], strides = [1, 1]} : vector<16x8xf32> to vector<8x8xf32>
    %1395 = vector.extract_strided_slice %1225 {offsets = [8, 0], sizes = [8, 8], strides = [1, 1]} : vector<16x8xf32> to vector<8x8xf32>
    %1396 = vector.extract_strided_slice %1229 {offsets = [8, 0], sizes = [8, 8], strides = [1, 1]} : vector<16x8xf32> to vector<8x8xf32>
    %c1_499 = arith.constant 1 : index
    %c0_500 = arith.constant 0 : index
    %c0_501 = arith.constant 0 : index
    %1397 = vector.load %arg24[%c1_499, %c0_500, %c0_501] : memref<2x1x8xf32, #tpu.memory_space<vmem>>, vector<1x1x8xf32>
    %1398 = vector.shape_cast %1397 : vector<1x1x8xf32> to vector<1x8xf32>
    %1399 = arith.truncf %1394 : vector<8x8xf32> to vector<8x8xbf16>
    %1400 = arith.truncf %1395 : vector<8x8xf32> to vector<8x8xbf16>
    %cst_502 = arith.constant dense<0.000000e+00> : vector<8x8xf32>
    %1401 = tpu.matmul %1399, %1400, %cst_502 {dimension_numbers = #tpu.dot_dimension_numbers<[1], [1], [0], [0], [0, 0, 1, 0], [], []>} : vector<8x8xbf16>, vector<8x8xbf16>, vector<8x8xf32> -> vector<8x8xf32>
    %1402 = vector.broadcast %1398 : vector<1x8xf32> to vector<8x8xf32>
    %1403 = arith.addf %1401, %1402 : vector<8x8xf32>
    %cst_503 = arith.constant dense<0xFF800000> : vector<8xf32>
    %1404 = vector.multi_reduction <maximumf>, %1403, %cst_503 [1] : vector<8x8xf32> to vector<8xf32>
    %1405 = vector.shape_cast %1404 : vector<8xf32> to vector<8x1xf32>
    %1406 = vector.broadcast %1405 : vector<8x1xf32> to vector<8x8xf32>
    %1407 = arith.subf %1403, %1406 : vector<8x8xf32>
    %1408 = math.exp %1407 : vector<8x8xf32>
    %cst_504 = arith.constant dense<0.000000e+00> : vector<8xf32>
    %1409 = vector.multi_reduction <add>, %1408, %cst_504 [1] : vector<8x8xf32> to vector<8xf32>
    %1410 = vector.shape_cast %1409 : vector<8xf32> to vector<8x1xf32>
    %1411 = tpu.reciprocal %1410 {approx = true} : vector<8x1xf32> -> vector<8x1xf32>
    %1412 = vector.broadcast %1411 : vector<8x1xf32> to vector<8x8xf32>
    %1413 = arith.mulf %1408, %1412 : vector<8x8xf32>
    %1414 = arith.truncf %1413 : vector<8x8xf32> to vector<8x8xbf16>
    %1415 = arith.truncf %1396 : vector<8x8xf32> to vector<8x8xbf16>
    %cst_505 = arith.constant dense<0.000000e+00> : vector<8x8xf32>
    %1416 = tpu.matmul %1414, %1415, %cst_505 {dimension_numbers = #tpu.dot_dimension_numbers<[1], [0], [0], [1], [0, 0, 1, 1], [], []>} : vector<8x8xbf16>, vector<8x8xbf16>, vector<8x8xf32> -> vector<8x8xf32>
    %1417 = tpu.concatenate %1347, %1370, %1393, %1416 in 1 : vector<8x8xf32>, vector<8x8xf32>, vector<8x8xf32>, vector<8x8xf32> -> vector<8x32xf32>
    %1418 = arith.truncf %1417 : vector<8x32xf32> to vector<8x32xbf16>
    %cst_506 = arith.constant dense<0.000000e+00> : vector<8x32xf32>
    %1419 = tpu.matmul %1418, %1201, %cst_506 {dimension_numbers = #tpu.dot_dimension_numbers<[1], [0], [0], [1], [0, 0, 1, 1], [], []>} : vector<8x32xbf16>, vector<32x32xbf16>, vector<8x32xf32> -> vector<8x32xf32>
    %1420 = tpu.concatenate %1324, %1419 in 0 : vector<8x32xf32>, vector<8x32xf32> -> vector<16x32xf32>
    %1421 = arith.addf %1193, %1420 : vector<16x32xf32>
    %c1_507 = arith.constant 1 : index
    %c0_508 = arith.constant 0 : index
    %c0_509 = arith.constant 0 : index
    %1422 = vector.load %arg19[%c1_507, %c0_508, %c0_509] : memref<2x1x32xf32, #tpu.memory_space<vmem>>, vector<1x1x32xf32>
    %1423 = vector.shape_cast %1422 : vector<1x1x32xf32> to vector<1x32xf32>
    %c1_510 = arith.constant 1 : index
    %c0_511 = arith.constant 0 : index
    %c0_512 = arith.constant 0 : index
    %1424 = vector.load %arg20[%c1_510, %c0_511, %c0_512] : memref<2x32x64xbf16, #tpu.memory_space<vmem>>, vector<1x32x64xbf16>
    %1425 = vector.shape_cast %1424 : vector<1x32x64xbf16> to vector<32x64xbf16>
    %c1_513 = arith.constant 1 : index
    %c0_514 = arith.constant 0 : index
    %c0_515 = arith.constant 0 : index
    %1426 = vector.load %arg21[%c1_513, %c0_514, %c0_515] : memref<2x64x32xbf16, #tpu.memory_space<vmem>>, vector<1x64x32xbf16>
    %1427 = vector.shape_cast %1426 : vector<1x64x32xbf16> to vector<64x32xbf16>
    %1428 = arith.mulf %1421, %1421 : vector<16x32xf32>
    %cst_516 = arith.constant dense<0.000000e+00> : vector<16xf32>
    %1429 = vector.multi_reduction <add>, %1428, %cst_516 [1] : vector<16x32xf32> to vector<16xf32>
    %1430 = vector.shape_cast %1429 : vector<16xf32> to vector<16x1xf32>
    %cst_517 = arith.constant 3.200000e+01 : f32
    %1431 = vector.broadcast %cst_517 : f32 to vector<16x1xf32>
    %1432 = arith.divf %1430, %1431 : vector<16x1xf32>
    %cst_518 = arith.constant 9.99999997E-7 : f32
    %1433 = vector.broadcast %cst_518 : f32 to vector<16x1xf32>
    %1434 = arith.addf %1432, %1433 : vector<16x1xf32>
    %1435 = math.rsqrt %1434 : vector<16x1xf32>
    %1436 = vector.broadcast %1435 : vector<16x1xf32> to vector<16x32xf32>
    %1437 = arith.mulf %1421, %1436 : vector<16x32xf32>
    %1438 = vector.broadcast %1423 : vector<1x32xf32> to vector<16x32xf32>
    %1439 = arith.mulf %1437, %1438 : vector<16x32xf32>
    %1440 = arith.truncf %1439 : vector<16x32xf32> to vector<16x32xbf16>
    %cst_519 = arith.constant dense<0.000000e+00> : vector<16x64xf32>
    %1441 = tpu.matmul %1440, %1425, %cst_519 {dimension_numbers = #tpu.dot_dimension_numbers<[1], [0], [0], [1], [0, 0, 1, 1], [], []>} : vector<16x32xbf16>, vector<32x64xbf16>, vector<16x64xf32> -> vector<16x64xf32>
    %cst_520 = arith.constant 0.000000e+00 : f32
    %1442 = vector.broadcast %cst_520 : f32 to vector<16x64xf32>
    %1443 = arith.maximumf %1441, %1442 : vector<16x64xf32>
    %1444 = arith.truncf %1443 : vector<16x64xf32> to vector<16x64xbf16>
    %cst_521 = arith.constant dense<0.000000e+00> : vector<16x32xf32>
    %1445 = tpu.matmul %1444, %1427, %cst_521 {dimension_numbers = #tpu.dot_dimension_numbers<[1], [0], [0], [1], [0, 0, 1, 1], [], []>} : vector<16x64xbf16>, vector<64x32xbf16>, vector<16x32xf32> -> vector<16x32xf32>
    %1446 = arith.addf %1421, %1445 : vector<16x32xf32>
    %c0_522 = arith.constant 0 : index
    %c0_523 = arith.constant 0 : index
    %1447 = vector.load %arg22[%c0_522, %c0_523] : memref<1x32xf32, #tpu.memory_space<vmem>>, vector<1x32xf32>
    %1448 = arith.mulf %1446, %1446 : vector<16x32xf32>
    %cst_524 = arith.constant dense<0.000000e+00> : vector<16xf32>
    %1449 = vector.multi_reduction <add>, %1448, %cst_524 [1] : vector<16x32xf32> to vector<16xf32>
    %1450 = vector.shape_cast %1449 : vector<16xf32> to vector<16x1xf32>
    %cst_525 = arith.constant 3.200000e+01 : f32
    %1451 = vector.broadcast %cst_525 : f32 to vector<16x1xf32>
    %1452 = arith.divf %1450, %1451 : vector<16x1xf32>
    %cst_526 = arith.constant 9.99999997E-7 : f32
    %1453 = vector.broadcast %cst_526 : f32 to vector<16x1xf32>
    %1454 = arith.addf %1452, %1453 : vector<16x1xf32>
    %1455 = math.rsqrt %1454 : vector<16x1xf32>
    %1456 = vector.broadcast %1455 : vector<16x1xf32> to vector<16x32xf32>
    %1457 = arith.mulf %1446, %1456 : vector<16x32xf32>
    %1458 = vector.broadcast %1447 : vector<1x32xf32> to vector<16x32xf32>
    %1459 = arith.mulf %1457, %1458 : vector<16x32xf32>
    %cst_527 = arith.constant 0.176776692 : f32
    %1460 = vector.broadcast %cst_527 : f32 to vector<16x32xf32>
    %1461 = arith.mulf %1459, %1460 : vector<16x32xf32>
    %c0_528 = arith.constant 0 : index
    %c0_529 = arith.constant 0 : index
    %1462 = vector.load %arg25[%c0_528, %c0_529] : memref<32x128xbf16, #tpu.memory_space<vmem>>, vector<32x128xbf16>
    %1463 = arith.truncf %1461 : vector<16x32xf32> to vector<16x32xbf16>
    %cst_530 = arith.constant dense<0.000000e+00> : vector<16x128xf32>
    %1464 = tpu.matmul %1463, %1462, %cst_530 {dimension_numbers = #tpu.dot_dimension_numbers<[1], [0], [0], [1], [0, 0, 1, 1], [], []>} : vector<16x32xbf16>, vector<32x128xbf16>, vector<16x128xf32> -> vector<16x128xf32>
    %c119_i32 = arith.constant 119 : i32
    %1465 = vector.broadcast %c119_i32 : i32 to vector<16x128xi32>
    %1466 = arith.cmpi slt, %500, %1465 : vector<16x128xi32>
    %cst_531 = arith.constant -1.000000e+30 : f32
    %1467 = vector.broadcast %cst_531 : f32 to vector<16x128xf32>
    %1468 = arith.select %1466, %1464, %1467 : vector<16x128xi1>, vector<16x128xf32>
    %c0_532 = arith.constant 0 : index
    %c0_533 = arith.constant 0 : index
    %1469 = vector.load %arg28[%c0_532, %c0_533] : memref<16x128xf32, #tpu.memory_space<vmem>>, vector<16x128xf32>
    tpu.vector_store %arg28[%c0_532, %c0_533], %1468 {strides = array<i32>} : memref<16x128xf32, #tpu.memory_space<vmem>>, vector<16x128xf32>,
    %cst_534 = arith.constant dense<0xFF800000> : vector<16xf32>
    %1470 = vector.multi_reduction <maximumf>, %1468, %cst_534 [1] : vector<16x128xf32> to vector<16xf32>
    %1471 = vector.shape_cast %1470 : vector<16xf32> to vector<16x1xf32>
    %1472 = vector.broadcast %1471 : vector<16x1xf32> to vector<16x128xf32>
    %1473 = arith.subf %1468, %1472 : vector<16x128xf32>
    %1474 = math.exp %1473 : vector<16x128xf32>
    %cst_535 = arith.constant dense<0.000000e+00> : vector<16xf32>
    %1475 = vector.multi_reduction <add>, %1474, %cst_535 [1] : vector<16x128xf32> to vector<16xf32>
    %1476 = vector.shape_cast %1475 : vector<16xf32> to vector<16x1xf32>
    %1477 = math.log %1476 : vector<16x1xf32>
    %1478 = arith.addf %1471, %1477 : vector<16x1xf32>
    %c0_536 = arith.constant 0 : index
    %c0_537 = arith.constant 0 : index
    %1479 = vector.load %arg26[%c0_536, %c0_537] : memref<16x1xi32, #tpu.memory_space<vmem>>, vector<16x1xi32>
    %c-100_i32 = arith.constant -100 : i32
    %1480 = vector.broadcast %c-100_i32 : i32 to vector<16x1xi32>
    %1481 = arith.cmpi ne, %1479, %1480 : vector<16x1xi32>
    %c0_i32 = arith.constant 0 : i32
    %1482 = vector.broadcast %c0_i32 : i32 to vector<16x1xi32>
    %1483 = arith.select %1481, %1479, %1482 : vector<16x1xi1>, vector<16x1xi32>
    %1484 = vector.broadcast %1483 : vector<16x1xi32> to vector<16x128xi32>
    %1485 = arith.cmpi eq, %500, %1484 : vector<16x128xi32>
    %cst_538 = arith.constant 0.000000e+00 : f32
    %1486 = vector.broadcast %cst_538 : f32 to vector<16x128xf32>
    %1487 = arith.select %1485, %1468, %1486 : vector<16x128xi1>, vector<16x128xf32>
    %cst_539 = arith.constant dense<0.000000e+00> : vector<16xf32>
    %1488 = vector.multi_reduction <add>, %1487, %cst_539 [1] : vector<16x128xf32> to vector<16xf32>
    %1489 = vector.shape_cast %1488 : vector<16xf32> to vector<16x1xf32>
    %1490 = arith.subf %1478, %1489 : vector<16x1xf32>
    %1491 = arith.extui %1481 : vector<16x1xi1> to vector<16x1xi32>
    %1492 = arith.sitofp %1491 : vector<16x1xi32> to vector<16x1xf32>
    %1493 = arith.mulf %1490, %1492 : vector<16x1xf32>
    %cst_540 = arith.constant dense<0.000000e+00> : vector<1xf32>
    %1494 = vector.multi_reduction <add>, %1493, %cst_540 [0] : vector<16x1xf32> to vector<1xf32>
    %1495 = vector.shape_cast %1494 : vector<1xf32> to vector<1x1xf32>
    %1496 = arith.extui %1481 : vector<16x1xi1> to vector<16x1xi32>
    %1497 = arith.sitofp %1496 : vector<16x1xi32> to vector<16x1xf32>
    %cst_541 = arith.constant dense<0.000000e+00> : vector<1xf32>
    %1498 = vector.multi_reduction <add>, %1497, %cst_541 [0] : vector<16x1xf32> to vector<1xf32>
    %1499 = vector.shape_cast %1498 : vector<1xf32> to vector<1x1xf32>
    %cst_542 = arith.constant 1.000000e+00 : f32
    %1500 = vector.broadcast %cst_542 : f32 to vector<1x1xf32>
    %1501 = arith.maximumf %1499, %1500 : vector<1x1xf32>
    %1502 = tpu.reciprocal %1501 {approx = true} : vector<1x1xf32> -> vector<1x1xf32>
    %1503 = arith.mulf %1495, %1502 : vector<1x1xf32>
    %c0_543 = arith.constant 0 : index
    %c0_544 = arith.constant 0 : index
    %1504 = vector.load %arg29[%c0_543, %c0_544] : memref<1x1xf32, #tpu.memory_space<vmem>>, vector<1x1xf32>
    tpu.vector_store %arg29[%c0_543, %c0_544], %1503 {strides = array<i32>} : memref<1x1xf32, #tpu.memory_space<vmem>>, vector<1x1xf32>,
    return
  }
}

</mosaic_0001>

<bundles_post_ra>
// kernel: sign2thai_t5_forward.1
= control target key start
LH: loop header
LB: loop body
LE: loop exit
PB: predicated region body
PF: predicated region fallthrough
CT: control target
= control target key end

     0   :  { %s10244_s6 = smov 1   ;;  %s10245_s10 = smov 2   ;;  %s11990_s0 = inlined_call_operand.smem [shape: u32[30], index: -1, kind: input, shape index: {}] }
   0x1   :  { %s10302_s5 = sld [smem:[%s11990_s0]]   ;;  %s10246_s14 = smov 3  }
   0x2   :  { %s10307_s9 = sld [smem:[%s11990_s0 + %s10244_s6]]   ;;  %s10247_s18 = smov 4  }
   0x3   :  { %s10312_s13 = sld [smem:[%s11990_s0 + %s10245_s10]]   ;;  %s10248_s22 = smov 5  }
   0x4   :  { %s10317_s17 = sld [smem:[%s11990_s0 + %s10246_s14]]   ;;  %s10249_s26 = smov 6  }
   0x5   :  { %s10322_s21 = sld [smem:[%s11990_s0 + %s10247_s18]]   ;;  %s10250_s30 = smov 7  }
   0x6   :  { %s10327_s25 = sld [smem:[%s11990_s0 + %s10248_s22]]   ;;  %s10251_s4 = smov 8  }
   0x7   :  { %s10332_s29 = sld [smem:[%s11990_s0 + %s10249_s26]]   ;;  %s10252_s10 = smov 9  }
   0x8   :  { %s10337_s3 = sld [smem:[%s11990_s0 + %s10250_s30]]   ;;  %s10253_s15 = smov 10  }
   0x9   :  { %s10342_s8 = sld [smem:[%s11990_s0 + %s10251_s4]]   ;;  %s10254_s20 = smov 11  }
   0xa   :  { %s10347_s14 = sld [smem:[%s11990_s0 + %s10252_s10]]   ;;  %s10255_s26 = smov 12  }
   0xb   :  { %s10352_s19 = sld [smem:[%s11990_s0 + %s10253_s15]]   ;;  %s10256_s1 = smov 13  }
   0xc   :  { %s10357_s24 = sld [smem:[%s11990_s0 + %s10254_s20]]   ;;  %s10257_s7 = smov 14  }
   0xd   :  { %s10362_s30 = sld [smem:[%s11990_s0 + %s10255_s26]]   ;;  %s10258_s15 = smov 15  }
   0xe   :  { %s10367_s6 = sld [smem:[%s11990_s0 + %s10256_s1]]   ;;  %s10259_s22 = smov 16  }
   0xf   :  { %12001 = sst [smem:[#allocation8_spill]] %s10342_s8  ;;  %s10260_s28 = smov 17  }
  0x10   :  { %s10372_s12 = sld [smem:[%s11990_s0 + %s10257_s7]]   ;;  %s10261_s7 = smov 18  }
  0x11   :  { %s10377_s20 = sld [smem:[%s11990_s0 + %s10258_s15]]   ;;  %s10262_s15 = smov 19  }
  0x12   :  { %s10382_s27 = sld [smem:[%s11990_s0 + %s10259_s22]]   ;;  %s10263_s22 = smov 20  }
  0x13   :  { %s10387_s4 = sld [smem:[%s11990_s0 + %s10260_s28]]   ;;  %s10264_s28 = smov 21  }
  0x14   :  { %s10392_s8 = sld [smem:[%s11990_s0 + %s10261_s7]]   ;;  %s10265_s7 = smov 22  }
  0x16   :  { %12002 = sst [smem:[#allocation9_spill]] %s10372_s12 }
  0x17   :  { %12003 = sst [smem:[#allocation10_spill]] %s10377_s20 }
  0x18   :  { %12004 = sst [smem:[#allocation11_spill]] %s10382_s27 }
  0x19   :  { %12005 = sst [smem:[#allocation12_spill]] %s10387_s4 }
  0x1a   :  { %12006 = sst [smem:[#allocation13_spill]] %s10392_s8 }
  0x1b   :  { %s10397_s20 = sld [smem:[%s11990_s0 + %s10262_s15]]   ;;  %s10266_s15 = smov 23  }
  0x1c   :  { %s10402_s27 = sld [smem:[%s11990_s0 + %s10263_s22]]   ;;  %s10267_s22 = smov 24  }
  0x1d   :  { %s10407_s4 = sld [smem:[%s11990_s0 + %s10264_s28]]   ;;  %s10268_s28 = smov 25  }
  0x1e   :  { %s10412_s8 = sld [smem:[%s11990_s0 + %s10265_s7]]   ;;  %s10269_s7 = smov 26  }
  0x21   :  { %12007 = sst [smem:[#allocation14_spill]] %s10397_s20 }
  0x22   :  { %12008 = sst [smem:[#allocation15_spill]] %s10402_s27 }
  0x23   :  { %12009 = sst [smem:[#allocation16_spill]] %s10407_s4 }
  0x24   :  { %12010 = sst [smem:[#allocation17_spill]] %s10412_s8 }
  0x25   :  { %s10417_s20 = sld [smem:[%s11990_s0 + %s10266_s15]]   ;;  %s10270_s15 = smov 27  }
  0x26   :  { %s10422_s27 = sld [smem:[%s11990_s0 + %s10267_s22]]   ;;  %s10271_s22 = smov 28  }
  0x27   :  { %s10427_s4 = sld [smem:[%s11990_s0 + %s10268_s28]]   ;;  %s10272_s28 = smov 29  }
  0x28   :  { %s10432_s8 = sld [smem:[%s11990_s0 + %s10269_s7]]  }
  0x29   :  { %s10437_s12 = sld [smem:[%s11990_s0 + %s10270_s15]]  }
  0x2c   :  { %12011 = sst [smem:[#allocation18_spill]] %s10422_s27 }
  0x2d   :  { %12012 = sst [smem:[#allocation19_spill]] %s10427_s4 }
  0x2e   :  { %s10442_s27 = sld [smem:[%s11990_s0 + %s10271_s22]]  }
  0x2f   :  { %s10447_s4 = sld [smem:[%s11990_s0 + %s10272_s28]]  }
  0x30   :  { %65 = vsyncpa [#allocation3], 0  ;;  %v9850_v0 = vld [vmem:[%s10307_s9 + $0x78] sm:$0xff]   ;;  %v9854_v4 = vld [vmem:[%s10307_s9 + $0x70] sm:$0xff]  }
  0x31   :  { %v9851_v1 = vld [vmem:[%s10307_s9 + $0xf8] sm:$0xff]   ;;  %8614 = vmatprep.subr.bf16.mxu0 %v9850_v0  ;;  %v9855_v5 = vld [vmem:[%s10307_s9 + $0xf0] sm:$0xff]   ;;  %v9858_v8 = vld [vmem:[%s10307_s9 + $0x68] sm:$0xff]  }
  0x32   :  { %v9852_v2 = vld [vmem:[%s10307_s9 + $0x38] sm:$0xff]   ;;  %8636 = vmatprep.subr.bf16.mxu1 %v9851_v1  ;;  %v9856_v6 = vld [vmem:[%s10307_s9 + $0x30] sm:$0xff]   ;;  %v9859_v9 = vld [vmem:[%s10307_s9 + $0xe8] sm:$0xff]  }
  0x33   :  { %v9853_v3 = vld [vmem:[%s10307_s9 + $0xb8] sm:$0xff]   ;;  %8615 = vmatpush3.bf16.msra.mxu0 %v9852_v2  ;;  %v9857_v7 = vld [vmem:[%s10307_s9 + $0xb0] sm:$0xff]   ;;  %v9860_v10 = vld [vmem:[%s10307_s9 + $0x28] sm:$0xff]  }
  0x34   :  { %8637 = vmatpush3.bf16.msra.mxu1 %v9853_v3  ;;  %8616 = vmatprep.subr.bf16.mxu0 %v9854_v4  ;;  %v9861_v11 = vld [vmem:[%s10307_s9 + $0xa8] sm:$0xff]   ;;  %v9862_v12 = vld [vmem:[%s10307_s9 + $0x60] sm:$0xff]   ;;  %v9866_v16 = vld [vmem:[%s10307_s9 + $0x58] sm:$0xff]  }
  0x35   :  { %8638 = vmatprep.subr.bf16.mxu1 %v9855_v5  ;;  %v9863_v13 = vld [vmem:[%s10307_s9 + $0xe0] sm:$0xff]   ;;  %v9867_v17 = vld [vmem:[%s10307_s9 + $0xd8] sm:$0xff]   ;;  %v9870_v20 = vld [vmem:[%s10307_s9 + $0x50] sm:$0xff]  }
  0x36   :  { %v9864_v14 = vld [vmem:[%s10307_s9 + $0x20] sm:$0xff]   ;;  %v9868_v18 = vld [vmem:[%s10307_s9 + $0x18] sm:$0xff]   ;;  %v9871_v21 = vld [vmem:[%s10307_s9 + $0xd0] sm:$0xff]  }
  0x37   :  { %8617 = vmatpush3.bf16.msra.mxu0 %v9856_v6  ;;  %v9865_v15 = vld [vmem:[%s10307_s9 + $0xa0] sm:$0xff]   ;;  %v9869_v19 = vld [vmem:[%s10307_s9 + $0x98] sm:$0xff]   ;;  %v9872_v22 = vld [vmem:[%s10307_s9 + $0x10] sm:$0xff]  }
  0x38   :  { %8639 = vmatpush3.bf16.msra.mxu1 %v9857_v7  ;;  %8618 = vmatprep.subr.bf16.mxu0 %v9858_v8  ;;  %v9873_v23 = vld [vmem:[%s10307_s9 + $0x90] sm:$0xff]   ;;  %v9874_v24 = vld [vmem:[%s10307_s9 + $0x48] sm:$0xff]   ;;  %v9878_v28 = vld [vmem:[%s10307_s9 + $0x40] sm:$0xff]  }
  0x39   :  { %8640 = vmatprep.subr.bf16.mxu1 %v9859_v9  ;;  %v9875_v25 = vld [vmem:[%s10307_s9 + $0xc8] sm:$0xff]   ;;  %v9879_v29 = vld [vmem:[%s10307_s9 + $0xc0] sm:$0xff]   ;;  %v125_v34 = vld [vmem:[%s10302_s5 + $0x18] sm:$0xff] }
  0x3a   :  { %v9876_v26 = vld [vmem:[%s10307_s9 + $0x8] sm:$0xff]   ;;  %v9880_v30 = vld [vmem:[%s10307_s9] sm:$0xff]   ;;  %v129_v36 = vld [vmem:[%s10302_s5 + $0x38] sm:$0xff] }
  0x3b   :  { %8619 = vmatpush3.bf16.msra.mxu0 %v9860_v10  ;;  %v9877_v27 = vld [vmem:[%s10307_s9 + $0x88] sm:$0xff]   ;;  %v9881_v31 = vld [vmem:[%s10307_s9 + $0x80] sm:$0xff]   ;;  %v197_v39 = vpack.c.bf16 %v129_v36, %v125_v34  ;;  %v124_v41 = vld [vmem:[%s10302_s5 + $0x10] sm:$0xff] }
  0x3c   :  { %8641 = vmatpush3.bf16.msra.mxu1 %v9861_v11  ;;  %8620 = vmatprep.subr.bf16.mxu0 %v9862_v12  ;;  %v123_v32 = vld [vmem:[%s10302_s5 + $0x8] sm:$0xff]  ;;  %v122_v37 = vld [vmem:[%s10302_s5] sm:$0xff]  ;;  %v128_v42 = vld [vmem:[%s10302_s5 + $0x30] sm:$0xff] }
  0x3d   :  { %8642 = vmatprep.subr.bf16.mxu1 %v9863_v13  ;;  %v127_v33 = vld [vmem:[%s10302_s5 + $0x28] sm:$0xff]  ;;  %v126_v38 = vld [vmem:[%s10302_s5 + $0x20] sm:$0xff]  ;;  %v196_v43 = vpack.c.bf16 %v128_v42, %v124_v41  ;;  %463 = vmatprep.mubr.bf16.mxu1 %v197_v39 }
  0x3e   :  { %v195_v35 = vpack.c.bf16 %v127_v33, %v123_v32  ;;  %v194_v40 = vpack.c.bf16 %v126_v38, %v122_v37 }
  0x3f   :  { %8621 = vmatpush3.bf16.msra.mxu0 %v9864_v14 }
  0x40   :  { %8643 = vmatpush3.bf16.msra.mxu1 %v9865_v15  ;;  %8622 = vmatprep.subr.bf16.mxu0 %v9866_v16 }
  0x41   :  { %8644 = vmatprep.subr.bf16.mxu1 %v9867_v17  ;;  %422 = vmatprep.mubr.bf16.mxu0 %v195_v35 }
  0x43   :  { %8623 = vmatpush3.bf16.msra.mxu0 %v9868_v18 }
  0x44   :  { %8645 = vmatpush3.bf16.msra.mxu1 %v9869_v19  ;;  %8624 = vmatprep.subr.bf16.mxu0 %v9870_v20 }
  0x45   :  { %8646 = vmatprep.subr.bf16.mxu1 %v9871_v21 }
  0x47   :  { %8625 = vmatpush3.bf16.msra.mxu0 %v9872_v22 }
  0x48   :  { %8647 = vmatpush3.bf16.msra.mxu1 %v9873_v23  ;;  %8626 = vmatprep.subr.bf16.mxu0 %v9874_v24 }
  0x49   :  { %8648 = vmatprep.subr.bf16.mxu1 %v9875_v25 }
  0x4b   :  { %8627 = vmatpush3.bf16.msra.mxu0 %v9876_v26 }
  0x4c   :  { %8649 = vmatpush3.bf16.msra.mxu1 %v9877_v27  ;;  %8628 = vmatprep.subr.bf16.mxu0 %v9878_v28 }
  0x4d   :  { %8650 = vmatprep.subr.bf16.mxu1 %v9879_v29 }
  0x4f   :  { %8629 = vmatpush3.bf16.msra.mxu0 %v9880_v30 }
  0x50   :  { %8651 = vmatpush3.bf16.msra.mxu1 %v9881_v31 }
  0x52   :  { %423 = vmatmul.mubr.bf16.vlgmr.msra.gmra.mxu0 %v194_v40 }
  0x53   :  { %464 = vmatmul.mubr.bf16.vlgmr.msra.gmra.mxu1 %v196_v43 }
  0x54   :  { %66 = vsyncpa [#allocation5], 0  ;;  %vm483_vm0 = vcmask 261120   ;;  %v9882_v62 = vld [vmem:[%s10317_s17 + $0x8] sm:$0xff]   ;;  %v10273_v63 = vmov 0.0   ;;  %vm10274_vm1 = vmmov 0  }
  0x55   :  { %8954 = vmatprep.subr.bf16.mxu0 %v10273_v63  ;;  %8958 = vmatprep.mubr.msk.bf16.mxu0 %vm10274_vm1, %v10273_v63  ;;  %v9883_v0 = vld [vmem:[%s10317_s17] sm:$0xff]   ;;  %s10275_s0 = smov 120   ;;  %s10276_s5 = smov 96   ;;  %vm569_vm2 = vcmask 64512   ;;  %v10560_v38 = vld [vmem:[%s10347_s14 + $0x8] sm:$0xff]  ;;  %vm633_vm3 = vcmask 1043456  }
  0x56   :  { %8955 = vmatpush3.bf16.msra.mxu0 %v9882_v62  ;;  %8962 = vmatprep.subr.bf16.mxu1 %v10273_v63  ;;  %v8339_v10 = vld [vmem:[%s10312_s13] ss:$0 sm:$0xff]  ;;  %s10277_s9 = smov 88   ;;  %s10278_s7 = smov 80   ;;  %vm1026_vm4 = vcmask 130048   ;;  %vm1028_vm5 = vcmask 195584  }
  0x57   :  { %8956 = vmatprep.subr.bf16.mxu0 %v10273_v63  ;;  %8964 = vmatprep.mubr.msk.bf16.mxu1 %vm10274_vm1, %v10273_v63  ;;  %s10279_s10 = smov 112   ;;  %s10280_s11 = smov 72   ;;  %v10555_v31 = vld [vmem:[%s10347_s14] sm:$0xff]  ;;  %vm1716_vm6 = vcmask 523264  }
  0x58   :  { %s10281_s15 = smov 104   ;;  %s10282_s16 = smov 64  }
  0x59   :  { %s10283_s18 = smov 48   ;;  %s10284_s22 = smov 56  }
  0x5a   :  { %8957 = vmatpush3.bf16.msra.mxu0 %v9883_v0  ;;  %s10285_s23 = smov 40   ;;  %s10286_s26 = smov 16  }
  0x5b   :  { %8968 = vmatprep.subr.bf16.mxu0 %v10273_v63  ;;  %s10287_s28 = smov 8   ;;  %s12021_s1 = sld [smem:[#allocation16_spill]] }
  0x5c   :  { %s12022_s2 = sld [smem:[#allocation14_spill]] }
 0x112   :  { %v8630_v44 = vpop.f32.mrf.mxu0 }
 0x113   :  { %v8652_v45 = vpop.f32.mrf.mxu1 }
 0x114   :  { %v8631_v46 = vpop.f32.mrf.mxu0 }
 0x115   :  { %v8632_v47 = vadd.f32 %v8631_v46, %v8630_v44  ;;  %v8653_v48 = vpop.f32.mrf.mxu1 }
 0x116   :  { %v8654_v49 = vadd.f32 %v8653_v48, %v8652_v45  ;;  %v8633_v50 = vpop.f32.mrf.mxu0  ;;  %v10565_v45 = vld [vmem:[%s10347_s14 + $0x10] sm:$0xff] }
 0x117   :  { %v8655_v51 = vpop.f32.mrf.mxu1 }
 0x118   :  { %v10489_v52 = vadd.f32 %v8654_v49, %v8632_v47  ;;  %v8634_v53 = vpop.f32.mrf.mxu0 }
 0x119   :  { %v8635_v54 = vadd.f32 %v8634_v53, %v8633_v50  ;;  %v8656_v55 = vpop.f32.mrf.mxu1  ;;  %v10570_v53 = vld [vmem:[%s10347_s14 + $0x18] sm:$0xff] }
 0x11a   :  { %v8657_v56 = vadd.f32 %v8656_v55, %v8655_v51  ;;  %v481_v57 = vmul.f32 %v10489_v52, %v10489_v52 }
 0x11c   :  { %v10493_v58 = vadd.f32 %v8657_v56, %v8635_v54  ;;  %v484_v59 = vsel %vm483_vm0, %v481_v57, 0.0 }
 0x11d   :  { %485 = vadd.xlane.f32.xlu0 %v484_v59 }
 0x11e   :  { %v482_v60 = vmul.f32 %v10493_v58, %v10493_v58 }
 0x120   :  { %v487_v61 = vsel %vm483_vm0, %v482_v60, 0.0 }
 0x121   :  { %488 = vadd.xlane.f32.xlu0 %v487_v61 }
 0x1a6   :  { %v486_v1 = vpop.xlane.xlu0 %485 }
 0x1a7   :  { %v491_v2 = vmul.f32 0.03125, %v486_v1 }
 0x1a9   :  { %v493_v3 = vadd.f32 1e-06, %v491_v2 }
 0x1aa   :  { %v489_v4 = vpop.xlane.xlu0 %488 }
 0x1ab   :  { %9944 = vrsqrt.f32 %v493_v3  ;;  %v492_v5 = vmul.f32 0.03125, %v489_v4 }
 0x1ad   :  { %v494_v6 = vadd.f32 1e-06, %v492_v5 }
 0x1af   :  { %9946 = vrsqrt.f32 %v494_v6 }
 0x1b8   :  { %v9945_v7 = vpop.eup %9944 }
 0x1b9   :  { %v497_v8 = vmul.f32 %v9945_v7, %v10489_v52 }
 0x1bb   :  { %v505_v12 = vmul.f32 %v8339_v10, %v497_v8 }
 0x1bc   :  { %v9947_v9 = vpop.eup %9946 }
 0x1bd   :  { %v498_v11 = vmul.f32 %v9947_v9, %v10493_v58 }
 0x1bf   :  { %v506_v13 = vmul.f32 %v8339_v10, %v498_v11 }
 0x1c1   :  { %v507_v14 = vpack.c.bf16 %v506_v13, %v505_v12 }
 0x1c3   :  { %8959 = vmatmul.mubr.msk.bf16.vlgmr.msra.gmra.mxu0 %vm483_vm0, %v507_v14 }
 0x1c4   :  { %8970 = vmatprep.mubr.msk.bf16.mxu0 %vm10274_vm1, %v10273_v63 }
 0x283   :  { %v557_v15 = vpop.f32.mrf.mxu0 }
 0x284   :  { %v10515_v16 = vpack.c.bf16 %v557_v15, %v557_v15 }
 0x285   :  { %v8960_v17 = vpop.f32.mrf.mxu0 }
 0x286   :  { %679 = vrot.lane.b32.xlu0 %v10515_v16, %s10275_s0  ;;  %567 = vrot.lane.b32.xlu1 %v10515_v16, %s10276_s5 }
 0x287   :  { %v10521_v18 = vpop.f32.mrf.mxu0 }
 0x289   :  { %v8961_v19 = vpop.f32.mrf.mxu0 }
 0x28a   :  { %681 = vrot.lane.b32.xlu1 %v10515_v16, %s10277_s9 }
 0x28e   :  { %793 = vrot.lane.b32.xlu1 %v10515_v16, %s10278_s7 }
 0x292   :  { %791 = vrot.lane.b32.xlu1 %v10515_v16, %s10279_s10 }
 0x296   :  { %905 = vrot.lane.b32.xlu1 %v10515_v16, %s10280_s11 }
 0x29a   :  { %903 = vrot.lane.b32.xlu1 %v10515_v16, %s10281_s15 }
 0x2f8   :  { %v568_v20 = vpop.permute.xlu1 %567  ;;  %v680_v25 = vpop.permute.xlu0 %679 }
 0x2f9   :  { %v574_v21 = vsel %vm569_vm2, %v568_v20, 0 }
 0x2fa   :  { %8963 = vmatpush3.bf16.xpose.msra.mxu1 %v574_v21 }
 0x2fb   :  { %8974 = vmatprep.subr.bf16.mxu1 %v10273_v63 }
 0x2fc   :  { %v682_v22 = vpop.permute.xlu1 %681 }
 0x2fd   :  { %v687_v23 = vsel %vm569_vm2, %v682_v22, 0  ;;  %v10590_v22 = vpack.c.bf16 %v10521_v18, %v10521_v18 }
 0x300   :  { %v794_v24 = vpop.permute.xlu1 %793 }
 0x301   :  { %8965 = vmatmul.mubr.msk.bf16.vlgmr.msra.gmra.mxu1 %vm569_vm2, %v10515_v16  ;;  %v799_v27 = vsel %vm569_vm2, %v794_v24, 0 }
 0x302   :  { %8975 = vmatpush3.bf16.xpose.msra.mxu1 %v687_v23  ;;  %8976 = vmatprep.mubr.msk.bf16.mxu1 %vm10274_vm1, %v10273_v63 }
 0x303   :  { %8986 = vmatprep.subr.bf16.mxu1 %v10273_v63 }
 0x304   :  { %v792_v26 = vpop.permute.xlu1 %791 }
 0x308   :  { %v906_v28 = vpop.permute.xlu1 %905 }
 0x309   :  { %8977 = vmatmul.mubr.msk.bf16.vlgmr.msra.gmra.mxu1 %vm569_vm2, %v680_v25  ;;  %v911_v29 = vsel %vm569_vm2, %v906_v28, 0 }
 0x30a   :  { %8987 = vmatpush3.bf16.xpose.msra.mxu1 %v799_v27  ;;  %8988 = vmatprep.mubr.msk.bf16.mxu1 %vm10274_vm1, %v10273_v63 }
 0x30b   :  { %8998 = vmatprep.subr.bf16.mxu1 %v10273_v63 }
 0x30c   :  { %v904_v30 = vpop.permute.xlu1 %903 }
 0x311   :  { %8989 = vmatmul.mubr.msk.bf16.vlgmr.msra.gmra.mxu1 %vm569_vm2, %v792_v26 }
 0x312   :  { %8999 = vmatpush3.bf16.xpose.msra.mxu1 %v911_v29  ;;  %9000 = vmatprep.mubr.msk.bf16.mxu1 %vm10274_vm1, %v10273_v63 }
 0x313   :  { %9010 = vmatprep.subr.bf16.mxu1 %v10273_v63 }
 0x319   :  { %9001 = vmatmul.mubr.msk.bf16.vlgmr.msra.gmra.mxu1 %vm569_vm2, %v904_v30 }
 0x31a   :  { %9014 = vmatprep.mubr.msk.bf16.mxu1 %vm10274_vm1, %v10273_v63 }
 0x3c1   :  { %v610_v32 = vpop.f32.mrf.mxu1 }
 0x3c2   :  { %v611_v33 = vadd.f32 %v610_v32, %v10555_v31 }
 0x3c3   :  { %v8966_v34 = vpop.f32.mrf.mxu1 }
 0x3c4   :  { %v616_v35 = vsel %vm569_vm2, %v611_v33, -inf }
 0x3c5   :  { %617 = vmax.xlane.f32.xlu1 %v616_v35  ;;  %v613_v36 = vpop.f32.mrf.mxu1 }
 0x3c7   :  { %v8967_v37 = vpop.f32.mrf.mxu1 }
 0x3c9   :  { %v723_v39 = vpop.f32.mrf.mxu1 }
 0x3ca   :  { %v724_v40 = vadd.f32 %v10560_v38, %v723_v39 }
 0x3cb   :  { %v8978_v41 = vpop.f32.mrf.mxu1 }
 0x3cc   :  { %v729_v42 = vsel %vm569_vm2, %v724_v40, -inf }
 0x3cd   :  { %730 = vmax.xlane.f32.xlu0 %v729_v42  ;;  %v726_v43 = vpop.f32.mrf.mxu1 }
 0x3cf   :  { %v8979_v44 = vpop.f32.mrf.mxu1 }
 0x3d1   :  { %v835_v46 = vpop.f32.mrf.mxu1 }
 0x3d2   :  { %v836_v47 = vadd.f32 %v10565_v45, %v835_v46 }
 0x3d3   :  { %v8990_v48 = vpop.f32.mrf.mxu1 }
 0x3d4   :  { %v841_v49 = vsel %vm569_vm2, %v836_v47, -inf }
 0x3d5   :  { %842 = vmax.xlane.f32.xlu1 %v841_v49  ;;  %v838_v50 = vpop.f32.mrf.mxu1 }
 0x3d7   :  { %v8991_v51 = vpop.f32.mrf.mxu1 }
 0x3d9   :  { %v947_v54 = vpop.f32.mrf.mxu1 }
 0x3da   :  { %v948_v55 = vadd.f32 %v10570_v53, %v947_v54 }
 0x3db   :  { %v9002_v56 = vpop.f32.mrf.mxu1 }
 0x3dc   :  { %v953_v57 = vsel %vm569_vm2, %v948_v55, -inf }
 0x3dd   :  { %954 = vmax.xlane.f32.xlu0 %v953_v57  ;;  %v950_v59 = vpop.f32.mrf.mxu1 }
 0x3df   :  { %v9003_v60 = vpop.f32.mrf.mxu1 }
 0x3e6   :  { %628 = vrot.lane.b32.xlu1 %v10515_v16, %s10282_s16 }
 0x44e   :  { %v618_v61 = vpop.xlane.xlu1 %617 }
 0x44f   :  { %v619_v62 = vsub.f32 %v611_v33, %v618_v61 }
 0x451   :  { %v620_v0 = vmul.f32 1.442695, %v619_v62 }
 0x453   :  { %9948 = vpow2.f32 %v620_v0 }
 0x456   :  { %v731_v1 = vpop.xlane.xlu0 %730 }
 0x457   :  { %v732_v2 = vsub.f32 %v724_v40, %v731_v1 }
 0x459   :  { %v733_v3 = vmul.f32 1.442695, %v732_v2 }
 0x45b   :  { %9950 = vpow2.f32 %v733_v3 }
 0x45e   :  { %v843_v4 = vpop.xlane.xlu1 %842 }
 0x45f   :  { %v844_v11 = vsub.f32 %v836_v47, %v843_v4 }
 0x460   :  { %v9949_v5 = vpop.eup %9948 }
 0x461   :  { %v622_v6 = vsel %vm569_vm2, %v9949_v5, 0.0  ;;  %v845_v12 = vmul.f32 1.442695, %v844_v11 }
 0x462   :  { %623 = vadd.xlane.f32.xlu1 %v622_v6  ;;  %v629_v7 = vpop.permute.xlu1 %628 }
 0x463   :  { %v635_v8 = vsel %vm633_vm3, %v629_v7, 0  ;;  %9952 = vpow2.f32 %v845_v12 }
 0x464   :  { %8969 = vmatpush3.bf16.msra.mxu0 %v635_v8 }
 0x465   :  { %8980 = vmatprep.subr.bf16.mxu0 %v10273_v63 }
 0x466   :  { %v955_v13 = vpop.xlane.xlu0 %954 }
 0x467   :  { %v956_v14 = vsub.f32 %v948_v55, %v955_v13  ;;  %v10650_v13 = vld [vmem:[%s10347_s14 + $0x20] sm:$0xff] }
 0x468   :  { %v9951_v9 = vpop.eup %9950 }
 0x469   :  { %v735_v10 = vsel %vm569_vm2, %v9951_v9, 0.0  ;;  %v957_v15 = vmul.f32 1.442695, %v956_v14 }
 0x46a   :  { %736 = vadd.xlane.f32.xlu0 %v735_v10 }
 0x46b   :  { %9954 = vpow2.f32 %v957_v15 }
 0x470   :  { %v9953_v17 = vpop.eup %9952 }
 0x471   :  { %v847_v19 = vsel %vm569_vm2, %v9953_v17, 0.0 }
 0x473   :  { %853 = vrot.lane.b32.xlu1 %v10515_v16, %s10283_s18 }
 0x478   :  { %v9955_v20 = vpop.eup %9954 }
 0x479   :  { %v959_v21 = vsel %vm569_vm2, %v9955_v20, 0.0 }
 0x480   :  { %741 = vrot.lane.b32.xlu0 %v10515_v16, %s10284_s22 }
 0x497   :  { %848 = vadd.xlane.f32.xlu1 %v847_v19 }
 0x49f   :  { %960 = vadd.xlane.f32.xlu0 %v959_v21 }
 0x4a8   :  { %965 = vrot.lane.b32.xlu1 %v10515_v16, %s10285_s23 }
 0x4ac   :  { %1202 = vrot.lane.b32.xlu1 %v10590_v22, %s10277_s9 }
 0x4b0   :  { %1314 = vrot.lane.b32.xlu1 %v10590_v22, %s10278_s7 }
 0x4b4   :  { %1426 = vrot.lane.b32.xlu1 %v10590_v22, %s10280_s11 }
 0x4b5   :  { %1090 = vrot.lane.b32.xlu0 %v10590_v22, %s10276_s5 }
 0x4b9   :  { %1200 = vrot.lane.b32.xlu0 %v10590_v22, %s10275_s0 }
 0x4bd   :  { %1312 = vrot.lane.b32.xlu0 %v10590_v22, %s10279_s10 }
 0x4c1   :  { %1424 = vrot.lane.b32.xlu0 %v10590_v22, %s10281_s15 }
 0x4eb   :  { %v624_v16 = vpop.xlane.xlu1 %623 }
 0x4ec   :  { %9956 = vrcp.f32 %v624_v16  ;;  %v10655_v16 = vld [vmem:[%s10347_s14 + $0x28] sm:$0xff] }
 0x4ef   :  { %v854_v30 = vpop.permute.xlu1 %853 }
 0x4f0   :  { %v859_v33 = vsel %vm633_vm3, %v854_v30, 0 }
 0x4f3   :  { %v737_v18 = vpop.xlane.xlu0 %736 }
 0x4f4   :  { %9958 = vrcp.f32 %v737_v18 }
 0x4f7   :  { %v742_v25 = vpop.permute.xlu0 %741 }
 0x4f8   :  { %v747_v27 = vsel %vm633_vm3, %v742_v25, 0 }
 0x4f9   :  { %v9957_v23 = vpop.eup %9956 }
 0x4fa   :  { %v626_v24 = vmul.f32 %v9957_v23, %v9949_v5 }
 0x4fc   :  { %v627_v26 = vpack.c.bf16 %v626_v24, %v626_v24 }
 0x4fe   :  { %8971 = vmatmul.mubr.msk.bf16.vlgmr.msra.gmra.mxu0 %vm569_vm2, %v627_v26 }
 0x4ff   :  { %8981 = vmatpush3.bf16.msra.mxu0 %v747_v27  ;;  %8982 = vmatprep.mubr.msk.bf16.mxu0 %vm10274_vm1, %v10273_v63 }
 0x500   :  { %8992 = vmatprep.subr.bf16.mxu0 %v10273_v63 }
 0x501   :  { %v9959_v28 = vpop.eup %9958 }
 0x502   :  { %v739_v29 = vmul.f32 %v9959_v28, %v9951_v9  ;;  %v10660_v28 = vld [vmem:[%s10347_s14 + $0x30] sm:$0xff] }
 0x504   :  { %v740_v32 = vpack.c.bf16 %v739_v29, %v739_v29 }
 0x506   :  { %8983 = vmatmul.mubr.msk.bf16.vlgmr.msra.gmra.mxu0 %vm569_vm2, %v740_v32 }
 0x507   :  { %8993 = vmatpush3.bf16.msra.mxu0 %v859_v33  ;;  %8994 = vmatprep.mubr.msk.bf16.mxu0 %vm10274_vm1, %v10273_v63 }
 0x508   :  { %9004 = vmatprep.subr.bf16.mxu0 %v10273_v63 }
 0x520   :  { %v849_v34 = vpop.xlane.xlu1 %848 }
 0x521   :  { %9960 = vrcp.f32 %v849_v34 }
 0x524   :  { %v966_v39 = vpop.permute.xlu1 %965 }
 0x525   :  { %v971_v41 = vsel %vm633_vm3, %v966_v39, 0 }
 0x528   :  { %v961_v35 = vpop.xlane.xlu0 %960  ;;  %v1203_v48 = vpop.permute.xlu1 %1202 }
 0x529   :  { %9962 = vrcp.f32 %v961_v35  ;;  %v1208_v49 = vsel %vm569_vm2, %v1203_v48, 0 }
 0x52c   :  { %v1091_v44 = vpop.permute.xlu0 %1090  ;;  %v1315_v50 = vpop.permute.xlu1 %1314 }
 0x52d   :  { %v1096_v47 = vsel %vm569_vm2, %v1091_v44, 0  ;;  %v1320_v54 = vsel %vm569_vm2, %v1315_v50, 0 }
 0x52e   :  { %v9961_v36 = vpop.eup %9960 }
 0x52f   :  { %v851_v37 = vmul.f32 %v9961_v36, %v9953_v17  ;;  %v10665_v36 = vld [vmem:[%s10347_s14 + $0x38] sm:$0xff]  ;;  %s10288_s14 = smov 24  }
 0x530   :  { %v1201_v51 = vpop.permute.xlu0 %1200  ;;  %v1427_v55 = vpop.permute.xlu1 %1426 }
 0x531   :  { %v852_v40 = vpack.c.bf16 %v851_v37, %v851_v37  ;;  %v1432_v57 = vsel %vm569_vm2, %v1427_v55, 0 }
 0x533   :  { %8995 = vmatmul.mubr.msk.bf16.vlgmr.msra.gmra.mxu0 %vm569_vm2, %v852_v40 }
 0x534   :  { %9005 = vmatpush3.bf16.msra.mxu0 %v971_v41  ;;  %9006 = vmatprep.mubr.msk.bf16.mxu0 %vm10274_vm1, %v10273_v63  ;;  %v1313_v56 = vpop.permute.xlu0 %1312 }
 0x535   :  { %9018 = vmatprep.subr.bf16.mxu0 %v10273_v63 }
 0x536   :  { %v9963_v42 = vpop.eup %9962 }
 0x537   :  { %v963_v43 = vmul.f32 %v9963_v42, %v9955_v20 }
 0x538   :  { %v1425_v59 = vpop.permute.xlu0 %1424 }
 0x539   :  { %v964_v46 = vpack.c.bf16 %v963_v43, %v963_v43 }
 0x53b   :  { %9007 = vmatmul.mubr.msk.bf16.vlgmr.msra.gmra.mxu0 %vm569_vm2, %v964_v46 }
 0x53c   :  { %9019 = vmatpush3.bf16.xpose.msra.mxu0 %v1096_v47  ;;  %9020 = vmatprep.mubr.msk.bf16.mxu0 %vm10274_vm1, %v10273_v63 }
 0x53d   :  { %9030 = vmatprep.subr.bf16.mxu0 %v10273_v63 }
 0x543   :  { %9021 = vmatmul.mubr.msk.bf16.vlgmr.msra.gmra.mxu0 %vm569_vm2, %v10590_v22 }
 0x544   :  { %9031 = vmatpush3.bf16.xpose.msra.mxu0 %v1208_v49  ;;  %9032 = vmatprep.mubr.msk.bf16.mxu0 %vm10274_vm1, %v10273_v63 }
 0x545   :  { %9042 = vmatprep.subr.bf16.mxu0 %v10273_v63 }
 0x54b   :  { %9033 = vmatmul.mubr.msk.bf16.vlgmr.msra.gmra.mxu0 %vm569_vm2, %v1201_v51 }
 0x54c   :  { %9043 = vmatpush3.bf16.xpose.msra.mxu0 %v1320_v54  ;;  %9044 = vmatprep.mubr.msk.bf16.mxu0 %vm10274_vm1, %v10273_v63 }
 0x54d   :  { %9054 = vmatprep.subr.bf16.mxu0 %v10273_v63 }
 0x553   :  { %9045 = vmatmul.mubr.msk.bf16.vlgmr.msra.gmra.mxu0 %vm569_vm2, %v1313_v56 }
 0x554   :  { %9055 = vmatpush3.bf16.xpose.msra.mxu0 %v1432_v57  ;;  %9056 = vmatprep.mubr.msk.bf16.mxu0 %vm10274_vm1, %v10273_v63 }
 0x555   :  { %9066 = vmatprep.subr.bf16.mxu0 %v10273_v63 }
 0x55b   :  { %9057 = vmatmul.mubr.msk.bf16.vlgmr.msra.gmra.mxu0 %vm569_vm2, %v1425_v59 }
 0x55c   :  { %9070 = vmatprep.mubr.msk.bf16.mxu0 %vm10274_vm1, %v10273_v63 }
 0x5be   :  { %v10645_v60 = vpop.f32.mrf.mxu0 }
 0x5c0   :  { %v8972_v61 = vpop.f32.mrf.mxu0 }
 0x5c2   :  { %v674_v62 = vpop.f32.mrf.mxu0 }
 0x5c4   :  { %v8973_v0 = vpop.f32.mrf.mxu0 }
 0x5c6   :  { %v783_v1 = vpop.f32.mrf.mxu0 }
 0x5c8   :  { %v8984_v2 = vpop.f32.mrf.mxu0 }
 0x5c9   :  { %v9885_v2 = vld [vmem:[%s10322_s21] sm:$0xff]  }
 0x5ca   :  { %v786_v3 = vpop.f32.mrf.mxu0 }
 0x5cc   :  { %v8985_v4 = vpop.f32.mrf.mxu0 }
 0x5f3   :  { %v895_v5 = vpop.f32.mrf.mxu0 }
 0x5f5   :  { %v8996_v6 = vpop.f32.mrf.mxu0 }
 0x5f7   :  { %v898_v7 = vpop.f32.mrf.mxu0 }
 0x5f9   :  { %v8997_v8 = vpop.f32.mrf.mxu0 }
 0x5fb   :  { %v10647_v9 = vpop.f32.mrf.mxu0 }
 0x5fd   :  { %v9008_v10 = vpop.f32.mrf.mxu0 }
 0x5ff   :  { %v1010_v11 = vpop.f32.mrf.mxu0 }
 0x601   :  { %v9009_v12 = vpop.f32.mrf.mxu0 }
 0x603   :  { %v1132_v14 = vpop.f32.mrf.mxu0 }
 0x604   :  { %v1133_v15 = vadd.f32 %v10650_v13, %v1132_v14 }
 0x605   :  { %v9022_v17 = vpop.f32.mrf.mxu0 }
 0x606   :  { %v1138_v19 = vsel %vm569_vm2, %v1133_v15, -inf }
 0x607   :  { %1139 = vmax.xlane.f32.xlu1 %v1138_v19  ;;  %v1135_v20 = vpop.f32.mrf.mxu0 }
 0x609   :  { %v9023_v21 = vpop.f32.mrf.mxu0 }
 0x60b   :  { %v1244_v18 = vpop.f32.mrf.mxu0 }
 0x60c   :  { %v1245_v23 = vadd.f32 %v10655_v16, %v1244_v18 }
 0x60d   :  { %v9034_v24 = vpop.f32.mrf.mxu0 }
 0x60e   :  { %v1250_v25 = vsel %vm569_vm2, %v1245_v23, -inf }
 0x60f   :  { %1251 = vmax.xlane.f32.xlu0 %v1250_v25  ;;  %v1247_v26 = vpop.f32.mrf.mxu0 }
 0x611   :  { %v9035_v27 = vpop.f32.mrf.mxu0 }
 0x613   :  { %v1356_v29 = vpop.f32.mrf.mxu0 }
 0x614   :  { %v1357_v30 = vadd.f32 %v10660_v28, %v1356_v29 }
 0x615   :  { %v9046_v32 = vpop.f32.mrf.mxu0 }
 0x616   :  { %v1362_v33 = vsel %vm569_vm2, %v1357_v30, -inf }
 0x617   :  { %1363 = vmax.xlane.f32.xlu0 %v1362_v33  ;;  %v1359_v34 = vpop.f32.mrf.mxu0 }
 0x619   :  { %v9047_v35 = vpop.f32.mrf.mxu0 }
 0x61b   :  { %v1468_v37 = vpop.f32.mrf.mxu0 }
 0x61c   :  { %v1469_v39 = vadd.f32 %v10665_v36, %v1468_v37 }
 0x61d   :  { %v9058_v40 = vpop.f32.mrf.mxu0 }
 0x61e   :  { %v1474_v41 = vsel %vm569_vm2, %v1469_v39, -inf }
 0x61f   :  { %1475 = vmax.xlane.f32.xlu1 %v1474_v41  ;;  %v1471_v42 = vpop.f32.mrf.mxu0 }
 0x621   :  { %v9059_v43 = vpop.f32.mrf.mxu0 }
 0x62d   :  { %1018 = vrot.lane.b32.xlu0 %v895_v5, %s10286_s26 }
 0x630   :  { %1014 = vrot.lane.b32.xlu1 %v783_v1, %s10287_s28  ;;  %v9884_v1 = vld [vmem:[%s10322_s21 + $0x8] sm:$0xff]  }
 0x631   :  { %9011 = vmatpush3.bf16.msra.mxu1 %v9884_v1  ;;  %9067 = vmatpush3.bf16.msra.mxu0 %v9884_v1 }
 0x632   :  { %9012 = vmatprep.subr.bf16.mxu1 %v10273_v63  ;;  %9068 = vmatprep.subr.bf16.mxu0 %v10273_v63 }
 0x635   :  { %9013 = vmatpush3.bf16.msra.mxu1 %v9885_v2  ;;  %9069 = vmatpush3.bf16.msra.mxu0 %v9885_v2 }
 0x636   :  { %9024 = vmatprep.subr.bf16.mxu1 %v10273_v63  ;;  %9082 = vmatprep.subr.bf16.mxu0 %v10273_v63 }
 0x690   :  { %v1140_v44 = vpop.xlane.xlu1 %1139 }
 0x691   :  { %v1141_v46 = vsub.f32 %v1133_v15, %v1140_v44 }
 0x693   :  { %v1142_v47 = vmul.f32 1.442695, %v1141_v46 }
 0x695   :  { %9964 = vpow2.f32 %v1142_v47 }
 0x698   :  { %v1252_v48 = vpop.xlane.xlu0 %1251 }
 0x699   :  { %v1253_v49 = vsub.f32 %v1245_v23, %v1252_v48 }
 0x69b   :  { %v1254_v50 = vmul.f32 1.442695, %v1253_v49 }
 0x69d   :  { %9966 = vpow2.f32 %v1254_v50 }
 0x6a0   :  { %v1364_v51 = vpop.xlane.xlu0 %1363 }
 0x6a1   :  { %v1365_v54 = vsub.f32 %v1357_v30, %v1364_v51 }
 0x6a2   :  { %v9965_v55 = vpop.eup %9964 }
 0x6a3   :  { %v1366_v56 = vmul.f32 1.442695, %v1365_v54  ;;  %v1144_v57 = vsel %vm569_vm2, %v9965_v55, 0.0 }
 0x6a4   :  { %1145 = vadd.xlane.f32.xlu0 %v1144_v57  ;;  %v1019_v8 = vpop.permute.xlu0 %1018 }
 0x6a5   :  { %9968 = vpow2.f32 %v1366_v56 }
 0x6a8   :  { %v1476_v3 = vpop.xlane.xlu1 %1475 }
 0x6a9   :  { %v1477_v4 = vsub.f32 %v1469_v39, %v1476_v3 }
 0x6aa   :  { %v9967_v59 = vpop.eup %9966 }
 0x6ab   :  { %v1256_v61 = vsel %vm569_vm2, %v9967_v59, 0.0  ;;  %v1478_v5 = vmul.f32 1.442695, %v1477_v4 }
 0x6ac   :  { %1257 = vadd.xlane.f32.xlu1 %v1256_v61  ;;  %v1015_v10 = vpop.permute.xlu1 %1014 }
 0x6ad   :  { %9970 = vpow2.f32 %v1478_v5  ;;  %v1025_v12 = vsel %vm569_vm2, %v10645_v60, %v1015_v10 }
 0x6ae   :  { %v1027_v14 = vsel %vm1026_vm4, %v1025_v12, %v1019_v8 }
 0x6b2   :  { %v10673_v62 = vpop.eup %9968 }
 0x6b3   :  { %v1368_v0 = vsel %vm569_vm2, %v10673_v62, 0.0 }
 0x6b4   :  { %1369 = vadd.xlane.f32.xlu0 %v1368_v0 }
 0x6ba   :  { %v9971_v6 = vpop.eup %9970 }
 0x6bb   :  { %v1480_v7 = vsel %vm569_vm2, %v9971_v6, 0.0 }
 0x6bd   :  { %1022 = vrot.lane.b32.xlu1 %v10647_v9, %s10288_s14 }
 0x6ca   :  { %1150 = vrot.lane.b32.xlu0 %v10590_v22, %s10282_s16 }
 0x6ce   :  { %1262 = vrot.lane.b32.xlu0 %v10590_v22, %s10284_s22 }
 0x6d2   :  { %1374 = vrot.lane.b32.xlu0 %v10590_v22, %s10283_s18 }
 0x6d6   :  { %1486 = vrot.lane.b32.xlu0 %v10590_v22, %s10285_s23 }
 0x6e1   :  { %1481 = vadd.xlane.f32.xlu1 %v1480_v7 }
 0x72d   :  { %v1146_v9 = vpop.xlane.xlu0 %1145 }
 0x72e   :  { %9972 = vrcp.f32 %v1146_v9 }
 0x735   :  { %v1258_v11 = vpop.xlane.xlu1 %1257 }
 0x736   :  { %9974 = vrcp.f32 %v1258_v11 }
 0x739   :  { %v1023_v15 = vpop.permute.xlu1 %1022 }
 0x73a   :  { %v1029_v22 = vsel %vm1028_vm5, %v1027_v14, %v1023_v15 }
 0x73b   :  { %v1030_v17 = vpack.c.bf16 %v1029_v22, %v1029_v22  ;;  %v9973_v19 = vpop.eup %9972 }
 0x73c   :  { %v1148_v21 = vmul.f32 %v9973_v19, %v9965_v55 }
 0x73d   :  { %v1370_v20 = vpop.xlane.xlu0 %1369  ;;  %9015 = vmatmul.mubr.msk.bf16.vlgmr.msra.gmra.mxu1 %vm483_vm0, %v1030_v17 }
 0x73e   :  { %9026 = vmatprep.mubr.msk.bf16.mxu1 %vm10274_vm1, %v10273_v63  ;;  %9976 = vrcp.f32 %v1370_v20  ;;  %v1149_v23 = vpack.c.bf16 %v1148_v21, %v1148_v21 }
 0x741   :  { %v1151_v18 = vpop.permute.xlu0 %1150 }
 0x742   :  { %v1156_v60 = vsel %vm633_vm3, %v1151_v18, 0 }
 0x743   :  { %9025 = vmatpush3.bf16.msra.mxu1 %v1156_v60  ;;  %v9975_v24 = vpop.eup %9974 }
 0x744   :  { %9036 = vmatprep.subr.bf16.mxu1 %v10273_v63  ;;  %v1260_v27 = vmul.f32 %v9975_v24, %v9967_v59  ;;  %v9887_v24 = vld [vmem:[%s10332_s29] sm:$0xff]  }
 0x745   :  { %v1263_v25 = vpop.permute.xlu0 %1262 }
 0x746   :  { %v1268_v26 = vsel %vm633_vm3, %v1263_v25, 0  ;;  %9027 = vmatmul.mubr.msk.bf16.vlgmr.msra.gmra.mxu1 %vm569_vm2, %v1149_v23  ;;  %v1261_v30 = vpack.c.bf16 %v1260_v27, %v1260_v27  ;;  %v9886_v23 = vld [vmem:[%s10332_s29 + $0x8] sm:$0xff]   ;;  %v9888_v25 = vld [vmem:[%s10337_s3 + $0x18] sm:$0xff]  }
 0x747   :  { %9037 = vmatpush3.bf16.msra.mxu1 %v1268_v26  ;;  %9038 = vmatprep.mubr.msk.bf16.mxu1 %vm10274_vm1, %v10273_v63  ;;  %v9889_v26 = vld [vmem:[%s10337_s3 + $0x10] sm:$0xff]  }
 0x748   :  { %9048 = vmatprep.subr.bf16.mxu1 %v10273_v63 }
 0x749   :  { %v1375_v29 = vpop.permute.xlu0 %1374 }
 0x74a   :  { %v1380_v33 = vsel %vm633_vm3, %v1375_v29, 0 }
 0x74b   :  { %v9977_v32 = vpop.eup %9976 }
 0x74c   :  { %v1372_v34 = vmul.f32 %v9977_v32, %v10673_v62 }
 0x74d   :  { %v1487_v35 = vpop.permute.xlu0 %1486 }
 0x74e   :  { %9039 = vmatmul.mubr.msk.bf16.vlgmr.msra.gmra.mxu1 %vm569_vm2, %v1261_v30  ;;  %v1373_v37 = vpack.c.bf16 %v1372_v34, %v1372_v34  ;;  %v1492_v39 = vsel %vm633_vm3, %v1487_v35, 0 }
 0x74f   :  { %9049 = vmatpush3.bf16.msra.mxu1 %v1380_v33  ;;  %9050 = vmatprep.mubr.msk.bf16.mxu1 %vm10274_vm1, %v10273_v63 }
 0x750   :  { %9060 = vmatprep.subr.bf16.mxu1 %v10273_v63 }
 0x756   :  { %9051 = vmatmul.mubr.msk.bf16.vlgmr.msra.gmra.mxu1 %vm569_vm2, %v1373_v37 }
 0x757   :  { %9061 = vmatpush3.bf16.msra.mxu1 %v1492_v39  ;;  %9062 = vmatprep.mubr.msk.bf16.mxu1 %vm10274_vm1, %v10273_v63  ;;  %v8370_v39 = vld [vmem:[%s10327_s25] ss:$0 sm:$0xff] }
 0x758   :  { %9074 = vmatprep.subr.bf16.mxu1 %v10273_v63 }
 0x76a   :  { %v1482_v40 = vpop.xlane.xlu1 %1481 }
 0x76b   :  { %9978 = vrcp.f32 %v1482_v40 }
 0x778   :  { %v9979_v41 = vpop.eup %9978 }
 0x779   :  { %v1484_v42 = vmul.f32 %v9979_v41, %v9971_v6 }
 0x77b   :  { %v1485_v43 = vpack.c.bf16 %v1484_v42, %v1484_v42 }
 0x77d   :  { %9063 = vmatmul.mubr.msk.bf16.vlgmr.msra.gmra.mxu1 %vm569_vm2, %v1485_v43 }
 0x77e   :  { %9078 = vmatprep.mubr.msk.bf16.mxu1 %vm10274_vm1, %v10273_v63  ;;  %9075 = vmatpush3.bf16.msra.mxu1 %v9886_v23 }
 0x77f   :  { %9076 = vmatprep.subr.bf16.mxu1 %v10273_v63 }
 0x782   :  { %9077 = vmatpush3.bf16.msra.mxu1 %v9887_v24 }
 0x783   :  { %9094 = vmatprep.subr.bf16.mxu1 %v10273_v63 }
 0x7fd   :  { %v1080_v44 = vpop.f32.mrf.mxu1 }
 0x7fe   :  { %v10726_v6 = vadd.f32 %v1080_v44, %v10489_v52  ;;  %v9890_v44 = vld [vmem:[%s10337_s3 + $0x8] sm:$0xff]  }
 0x7ff   :  { %v9016_v46 = vpop.f32.mrf.mxu1 }
 0x800   :  { %v1608_v7 = vmul.f32 %v10726_v6, %v10726_v6  ;;  %v9891_v46 = vld [vmem:[%s10337_s3] sm:$0xff]  }
 0x801   :  { %v1083_v47 = vpop.f32.mrf.mxu1 }
 0x802   :  { %v1610_v8 = vsel %vm483_vm0, %v1608_v7, 0.0 }
 0x803   :  { %v9017_v48 = vpop.f32.mrf.mxu1 }
 0x806   :  { %v1192_v49 = vpop.f32.mrf.mxu1 }
 0x808   :  { %v9028_v50 = vpop.f32.mrf.mxu1 }
 0x80a   :  { %v1195_v51 = vpop.f32.mrf.mxu1 }
 0x80c   :  { %v9029_v54 = vpop.f32.mrf.mxu1 }
 0x80e   :  { %v1304_v55 = vpop.f32.mrf.mxu1 }
 0x80f   :  { %1535 = vrot.lane.b32.xlu0 %v1304_v55, %s10287_s28 }
 0x810   :  { %v9040_v56 = vpop.f32.mrf.mxu1 }
 0x812   :  { %v1307_v57 = vpop.f32.mrf.mxu1 }
 0x814   :  { %v9041_v59 = vpop.f32.mrf.mxu1 }
 0x816   :  { %v1416_v61 = vpop.f32.mrf.mxu1 }
 0x817   :  { %1539 = vrot.lane.b32.xlu0 %v1416_v61, %s10286_s26 }
 0x818   :  { %v9052_v62 = vpop.f32.mrf.mxu1 }
 0x81a   :  { %v1419_v0 = vpop.f32.mrf.mxu1 }
 0x81c   :  { %v9053_v1 = vpop.f32.mrf.mxu1 }
 0x83d   :  { %v1528_v2 = vpop.f32.mrf.mxu1 }
 0x83e   :  { %1543 = vrot.lane.b32.xlu0 %v1528_v2, %s10288_s14 }
 0x83f   :  { %v9064_v3 = vpop.f32.mrf.mxu1 }
 0x841   :  { %v1531_v4 = vpop.f32.mrf.mxu1 }
 0x843   :  { %v9065_v5 = vpop.f32.mrf.mxu1 }
 0x844   :  { %v9892_v5 = vld [vmem:[%s10317_s17 + $0x18] sm:$0xff]  }
 0x85d   :  { %1611 = vadd.xlane.f32.xlu0 %v1610_v8 }
 0x881   :  { %v1536_v9 = vpop.permute.xlu0 %1535 }
 0x882   :  { %v1546_v11 = vsel %vm569_vm2, %v1192_v49, %v1536_v9 }
 0x889   :  { %v1540_v10 = vpop.permute.xlu0 %1539 }
 0x88a   :  { %v1547_v12 = vsel %vm1026_vm4, %v1546_v11, %v1540_v10 }
 0x8b0   :  { %v1544_v14 = vpop.permute.xlu0 %1543 }
 0x8b1   :  { %v1548_v15 = vsel %vm1028_vm5, %v1547_v12, %v1544_v14 }
 0x8b2   :  { %v1549_v22 = vpack.c.bf16 %v1548_v15, %v1548_v15 }
 0x8b4   :  { %9071 = vmatmul.mubr.msk.bf16.vlgmr.msra.gmra.mxu0 %vm483_vm0, %v1549_v22 }
 0x8b5   :  { %9090 = vmatprep.mubr.msk.bf16.mxu0 %vm10274_vm1, %v10273_v63  ;;  %9083 = vmatpush3.bf16.msra.mxu0 %v9888_v25 }
 0x8b6   :  { %9084 = vmatprep.subr.bf16.mxu0 %v10273_v63 }
 0x8b9   :  { %9085 = vmatpush3.bf16.msra.mxu0 %v9889_v26 }
 0x8ba   :  { %9086 = vmatprep.subr.bf16.mxu0 %v10273_v63 }
 0x8bd   :  { %9087 = vmatpush3.bf16.msra.mxu0 %v9890_v44 }
 0x8be   :  { %9088 = vmatprep.subr.bf16.mxu0 %v10273_v63 }
 0x8c1   :  { %9089 = vmatpush3.bf16.msra.mxu0 %v9891_v46 }
 0x8c2   :  { %9108 = vmatprep.subr.bf16.mxu0 %v10273_v63 }
 0x974   :  { %v1587_v52 = vpop.f32.mrf.mxu0 }
 0x975   :  { %v1594_v17 = vadd.f32 %v1587_v52, %v10493_v58  ;;  %v1612_v58 = vpop.xlane.xlu0 %1611  ;;  %v8388_v52 = vld [vmem:[%s10312_s13 + $0x1] ss:$0 sm:$0xff]  ;;  %s12013_s13 = sld [smem:[#allocation9_spill]] }
 0x976   :  { %v9072_v19 = vpop.f32.mrf.mxu0  ;;  %v1616_v27 = vmul.f32 0.03125, %v1612_v58 }
 0x977   :  { %v1609_v20 = vmul.f32 %v1594_v17, %v1594_v17 }
 0x978   :  { %v1590_v21 = vpop.f32.mrf.mxu0  ;;  %v1618_v29 = vadd.f32 1e-06, %v1616_v27 }
 0x979   :  { %v1613_v18 = vsel %vm483_vm0, %v1609_v20, 0.0 }
 0x97a   :  { %1614 = vadd.xlane.f32.xlu1 %v1613_v18  ;;  %v9073_v60 = vpop.f32.mrf.mxu0  ;;  %9980 = vrsqrt.f32 %v1618_v29 }
 0x987   :  { %v9981_v34 = vpop.eup %9980 }
 0x988   :  { %v1622_v35 = vmul.f32 %v9981_v34, %v10726_v6 }
 0x98a   :  { %v1630_v41 = vmul.f32 %v8370_v39, %v1622_v35 }
 0xa03   :  { %v1615_v30 = vpop.xlane.xlu1 %1614 }
 0xa04   :  { %v1617_v32 = vmul.f32 0.03125, %v1615_v30 }
 0xa06   :  { %v1619_v33 = vadd.f32 1e-06, %v1617_v32 }
 0xa08   :  { %9982 = vrsqrt.f32 %v1619_v33 }
 0xa15   :  { %v9983_v37 = vpop.eup %9982 }
 0xa16   :  { %v1623_v40 = vmul.f32 %v9983_v37, %v1594_v17 }
 0xa18   :  { %v1631_v42 = vmul.f32 %v8370_v39, %v1623_v40 }
 0xa1a   :  { %v1632_v43 = vpack.c.bf16 %v1631_v42, %v1630_v41 }
 0xa1c   :  { %9079 = vmatmul.mubr.msk.bf16.vlgmr.msra.gmra.mxu1 %vm483_vm0, %v1632_v43 }
 0xa1d   :  { %9098 = vmatprep.mubr.msk.bf16.mxu1 %vm10274_vm1, %v10273_v63  ;;  %9095 = vmatpush3.bf16.msra.mxu1 %v9892_v5 }
 0xa1e   :  { %9096 = vmatprep.subr.bf16.mxu1 %v10273_v63 }
 0xadc   :  { %v1682_v47 = vpop.f32.mrf.mxu1 }
 0xadd   :  { %v1689_v50 = vmax.f32 %v1682_v47, 0.0 }
 0xade   :  { %v9080_v48 = vpop.f32.mrf.mxu1 }
 0xae0   :  { %v1685_v49 = vpop.f32.mrf.mxu1 }
 0xae1   :  { %v1690_v51 = vmax.f32 %v1685_v49, 0.0 }
 0xae2   :  { %v9081_v54 = vpop.f32.mrf.mxu1 }
 0xae3   :  { %v1691_v55 = vpack.c.bf16 %v1690_v51, %v1689_v50 }
 0xae5   :  { %9091 = vmatmul.mubr.msk.bf16.vlgmr.msra.gmra.mxu0 %vm1716_vm6, %v1691_v55 }
 0xae6   :  { %9110 = vmatprep.mubr.msk.bf16.mxu0 %vm10274_vm1, %v10273_v63 }
 0xba5   :  { %v1754_v56 = vpop.f32.mrf.mxu0 }
 0xba6   :  { %v10760_v57 = vadd.f32 %v1754_v56, %v10726_v6  ;;  %v9893_v6 = vld [vmem:[%s10317_s17 + $0x10] sm:$0xff]   ;;  %s12014_s17 = sld [smem:[#allocation8_spill]] }
 0xba7   :  { %v9092_v59 = vpop.f32.mrf.mxu0  ;;  %9097 = vmatpush3.bf16.msra.mxu1 %v9893_v6 }
 0xba8   :  { %v1775_v61 = vmul.f32 %v10760_v57, %v10760_v57  ;;  %9102 = vmatprep.subr.bf16.mxu1 %v10273_v63 }
 0xba9   :  { %v1757_v62 = vpop.f32.mrf.mxu0 }
 0xbaa   :  { %v10764_v0 = vadd.f32 %v1757_v62, %v1594_v17  ;;  %v1777_v1 = vsel %vm483_vm0, %v1775_v61, 0.0 }
 0xbab   :  { %1778 = vadd.xlane.f32.xlu1 %v1777_v1  ;;  %v9093_v2 = vpop.f32.mrf.mxu0 }
 0xbac   :  { %v1776_v3 = vmul.f32 %v10764_v0, %v10764_v0 }
 0xbae   :  { %v1780_v4 = vsel %vm483_vm0, %v1776_v3, 0.0 }
 0xbaf   :  { %1781 = vadd.xlane.f32.xlu1 %v1780_v4 }
 0xc34   :  { %v1779_v7 = vpop.xlane.xlu1 %1778 }
 0xc35   :  { %v1783_v8 = vmul.f32 0.03125, %v1779_v7 }
 0xc37   :  { %v1785_v9 = vadd.f32 1e-06, %v1783_v8 }
 0xc38   :  { %v1782_v10 = vpop.xlane.xlu1 %1781 }
 0xc39   :  { %9984 = vrsqrt.f32 %v1785_v9  ;;  %v1784_v11 = vmul.f32 0.03125, %v1782_v10 }
 0xc3b   :  { %v1786_v12 = vadd.f32 1e-06, %v1784_v11 }
 0xc3d   :  { %9986 = vrsqrt.f32 %v1786_v12 }
 0xc46   :  { %v9985_v14 = vpop.eup %9984 }
 0xc47   :  { %v1789_v15 = vmul.f32 %v9985_v14, %v10760_v57 }
 0xc49   :  { %v1797_v19 = vmul.f32 %v8388_v52, %v1789_v15 }
 0xc4a   :  { %v9987_v22 = vpop.eup %9986 }
 0xc4b   :  { %v1790_v17 = vmul.f32 %v9987_v22, %v10764_v0 }
 0xc4d   :  { %v1798_v20 = vmul.f32 %v8388_v52, %v1790_v17 }
 0xc4f   :  { %v1799_v21 = vpack.c.bf16 %v1798_v20, %v1797_v19 }
 0xc51   :  { %9099 = vmatmul.mubr.msk.bf16.vlgmr.msra.gmra.mxu1 %vm483_vm0, %v1799_v21 }
 0xc52   :  { %9104 = vmatprep.mubr.msk.bf16.mxu1 %vm10274_vm1, %v10273_v63 }
 0xd11   :  { %v1849_v18 = vpop.f32.mrf.mxu1 }
 0xd12   :  { %v10780_v60 = vpack.c.bf16 %v1849_v18, %v1849_v18 }
 0xd13   :  { %v9100_v23 = vpop.f32.mrf.mxu1 }
 0xd14   :  { %1968 = vrot.lane.b32.xlu0 %v10780_v60, %s10277_s9  ;;  %1858 = vrot.lane.b32.xlu1 %v10780_v60, %s10276_s5 }
 0xd15   :  { %v10786_v24 = vpop.f32.mrf.mxu1 }
 0xd17   :  { %v9101_v25 = vpop.f32.mrf.mxu1 }
 0xd18   :  { %1966 = vrot.lane.b32.xlu1 %v10780_v60, %s10275_s0 }
 0xd1c   :  { %2078 = vrot.lane.b32.xlu1 %v10780_v60, %s10278_s7 }
 0xd20   :  { %2076 = vrot.lane.b32.xlu1 %v10780_v60, %s10279_s10 }
 0xd24   :  { %2188 = vrot.lane.b32.xlu1 %v10780_v60, %s10280_s11 }
 0xd28   :  { %2186 = vrot.lane.b32.xlu1 %v10780_v60, %s10281_s15 }
 0xd86   :  { %v1859_v26 = vpop.permute.xlu1 %1858  ;;  %v1969_v29 = vpop.permute.xlu0 %1968 }
 0xd87   :  { %v1864_v58 = vsel %vm569_vm2, %v1859_v26, 0  ;;  %v1974_v30 = vsel %vm569_vm2, %v1969_v29, 0 }
 0xd88   :  { %9103 = vmatpush3.bf16.xpose.msra.mxu1 %v1864_v58 }
 0xd89   :  { %9114 = vmatprep.subr.bf16.mxu1 %v10273_v63 }
 0xd8a   :  { %v1967_v27 = vpop.permute.xlu1 %1966 }
 0xd8e   :  { %v2079_v32 = vpop.permute.xlu1 %2078 }
 0xd8f   :  { %9105 = vmatmul.mubr.msk.bf16.vlgmr.msra.gmra.mxu1 %vm569_vm2, %v10780_v60  ;;  %v2084_v34 = vsel %vm569_vm2, %v2079_v32, 0 }
 0xd90   :  { %9115 = vmatpush3.bf16.xpose.msra.mxu1 %v1974_v30  ;;  %9116 = vmatprep.mubr.msk.bf16.mxu1 %vm10274_vm1, %v10273_v63 }
 0xd91   :  { %9126 = vmatprep.subr.bf16.mxu1 %v10273_v63 }
 0xd92   :  { %v2077_v33 = vpop.permute.xlu1 %2076 }
 0xd96   :  { %v2189_v35 = vpop.permute.xlu1 %2188 }
 0xd97   :  { %9117 = vmatmul.mubr.msk.bf16.vlgmr.msra.gmra.mxu1 %vm569_vm2, %v1967_v27  ;;  %v2194_v37 = vsel %vm569_vm2, %v2189_v35, 0  ;;  %v10843_v27 = vpack.c.bf16 %v10786_v24, %v10786_v24 }
 0xd98   :  { %9127 = vmatpush3.bf16.xpose.msra.mxu1 %v2084_v34  ;;  %9128 = vmatprep.mubr.msk.bf16.mxu1 %vm10274_vm1, %v10273_v63 }
 0xd99   :  { %9138 = vmatprep.subr.bf16.mxu1 %v10273_v63 }
 0xd9a   :  { %v2187_v39 = vpop.permute.xlu1 %2186 }
 0xd9f   :  { %9129 = vmatmul.mubr.msk.bf16.vlgmr.msra.gmra.mxu1 %vm569_vm2, %v2077_v33 }
 0xda0   :  { %9139 = vmatpush3.bf16.xpose.msra.mxu1 %v2194_v37  ;;  %9140 = vmatprep.mubr.msk.bf16.mxu1 %vm10274_vm1, %v10273_v63 }
 0xda1   :  { %9150 = vmatprep.subr.bf16.mxu1 %v10273_v63 }
 0xda7   :  { %9141 = vmatmul.mubr.msk.bf16.vlgmr.msra.gmra.mxu1 %vm569_vm2, %v2187_v39 }
 0xda8   :  { %9154 = vmatprep.mubr.msk.bf16.mxu1 %vm10274_vm1, %v10273_v63 }
 0xe4f   :  { %v1900_v40 = vpop.f32.mrf.mxu1 }
 0xe50   :  { %v1901_v41 = vadd.f32 %v1900_v40, %v10555_v31 }
 0xe51   :  { %v9106_v42 = vpop.f32.mrf.mxu1 }
 0xe52   :  { %v1906_v43 = vsel %vm569_vm2, %v1901_v41, -inf }
 0xe53   :  { %1907 = vmax.xlane.f32.xlu0 %v1906_v43  ;;  %v1903_v44 = vpop.f32.mrf.mxu1 }
 0xe55   :  { %v9107_v46 = vpop.f32.mrf.mxu1 }
 0xe57   :  { %v2010_v47 = vpop.f32.mrf.mxu1 }
 0xe58   :  { %v2011_v48 = vadd.f32 %v10560_v38, %v2010_v47 }
 0xe59   :  { %v9118_v49 = vpop.f32.mrf.mxu1 }
 0xe5a   :  { %v2016_v50 = vsel %vm569_vm2, %v2011_v48, -inf }
 0xe5b   :  { %2017 = vmax.xlane.f32.xlu1 %v2016_v50  ;;  %v2013_v51 = vpop.f32.mrf.mxu1 }
 0xe5d   :  { %v9119_v54 = vpop.f32.mrf.mxu1 }
 0xe5f   :  { %v2120_v55 = vpop.f32.mrf.mxu1 }
 0xe60   :  { %v2121_v56 = vadd.f32 %v10565_v45, %v2120_v55 }
 0xe61   :  { %v9130_v59 = vpop.f32.mrf.mxu1 }
 0xe62   :  { %v2126_v31 = vsel %vm569_vm2, %v2121_v56, -inf }
 0xe63   :  { %2127 = vmax.xlane.f32.xlu0 %v2126_v31  ;;  %v2123_v61 = vpop.f32.mrf.mxu1 }
 0xe65   :  { %v9131_v62 = vpop.f32.mrf.mxu1 }
 0xe67   :  { %v2230_v1 = vpop.f32.mrf.mxu1 }
 0xe68   :  { %v2231_v2 = vadd.f32 %v10570_v53, %v2230_v1 }
 0xe69   :  { %v9142_v3 = vpop.f32.mrf.mxu1 }
 0xe6a   :  { %v2236_v38 = vsel %vm569_vm2, %v2231_v2, -inf }
 0xe6b   :  { %2237 = vmax.xlane.f32.xlu0 %v2236_v38  ;;  %v2233_v4 = vpop.f32.mrf.mxu1 }
 0xe6c   :  { %1918 = vrot.lane.b32.xlu1 %v10780_v60, %s10282_s16 }
 0xe6d   :  { %v9143_v5 = vpop.f32.mrf.mxu1 }
 0xedc   :  { %v1908_v6 = vpop.xlane.xlu0 %1907 }
 0xedd   :  { %v1909_v45 = vsub.f32 %v1901_v41, %v1908_v6 }
 0xedf   :  { %v1910_v7 = vmul.f32 1.442695, %v1909_v45 }
 0xee1   :  { %9988 = vpow2.f32 %v1910_v7 }
 0xee4   :  { %v2018_v8 = vpop.xlane.xlu1 %2017 }
 0xee5   :  { %v2019_v9 = vsub.f32 %v2011_v48, %v2018_v8 }
 0xee7   :  { %v2020_v10 = vmul.f32 1.442695, %v2019_v9 }
 0xee8   :  { %v1919_v11 = vpop.permute.xlu1 %1918 }
 0xee9   :  { %9990 = vpow2.f32 %v2020_v10  ;;  %v1924_v53 = vsel %vm633_vm3, %v1919_v11, 0 }
 0xeea   :  { %9109 = vmatpush3.bf16.msra.mxu0 %v1924_v53 }
 0xeeb   :  { %9120 = vmatprep.subr.bf16.mxu0 %v10273_v63 }
 0xeec   :  { %v2128_v52 = vpop.xlane.xlu0 %2127 }
 0xeed   :  { %v2129_v17 = vsub.f32 %v2121_v56, %v2128_v52 }
 0xeee   :  { %v9989_v12 = vpop.eup %9988 }
 0xeef   :  { %v1912_v14 = vsel %vm569_vm2, %v9989_v12, 0.0  ;;  %v2130_v19 = vmul.f32 1.442695, %v2129_v17 }
 0xef0   :  { %1913 = vadd.xlane.f32.xlu1 %v1912_v14 }
 0xef1   :  { %9992 = vpow2.f32 %v2130_v19 }
 0xef4   :  { %v2238_v20 = vpop.xlane.xlu0 %2237 }
 0xef5   :  { %v2239_v21 = vsub.f32 %v2231_v2, %v2238_v20 }
 0xef6   :  { %v9991_v15 = vpop.eup %9990 }
 0xef7   :  { %v2022_v22 = vsel %vm569_vm2, %v9991_v15, 0.0  ;;  %v2240_v18 = vmul.f32 1.442695, %v2239_v21 }
 0xef8   :  { %2023 = vadd.xlane.f32.xlu0 %v2022_v22 }
 0xef9   :  { %9994 = vpow2.f32 %v2240_v18 }
 0xefe   :  { %v9993_v23 = vpop.eup %9992 }
 0xeff   :  { %v2132_v25 = vsel %vm569_vm2, %v9993_v23, 0.0 }
 0xf01   :  { %2138 = vrot.lane.b32.xlu1 %v10780_v60, %s10283_s18 }
 0xf06   :  { %v9995_v26 = vpop.eup %9994 }
 0xf07   :  { %v2242_v58 = vsel %vm569_vm2, %v9995_v26, 0.0 }
 0xf0e   :  { %2028 = vrot.lane.b32.xlu0 %v10780_v60, %s10284_s22 }
 0xf25   :  { %2133 = vadd.xlane.f32.xlu1 %v2132_v25 }
 0xf2d   :  { %2243 = vadd.xlane.f32.xlu0 %v2242_v58 }
 0xf36   :  { %2248 = vrot.lane.b32.xlu1 %v10780_v60, %s10285_s23 }
 0xf3a   :  { %2479 = vrot.lane.b32.xlu1 %v10843_v27, %s10277_s9 }
 0xf3e   :  { %2589 = vrot.lane.b32.xlu1 %v10843_v27, %s10278_s7 }
 0xf42   :  { %2699 = vrot.lane.b32.xlu1 %v10843_v27, %s10280_s11 }
 0xf43   :  { %2369 = vrot.lane.b32.xlu0 %v10843_v27, %s10276_s5 }
 0xf47   :  { %2477 = vrot.lane.b32.xlu0 %v10843_v27, %s10275_s0 }
 0xf4b   :  { %2587 = vrot.lane.b32.xlu0 %v10843_v27, %s10279_s10 }
 0xf4f   :  { %2697 = vrot.lane.b32.xlu0 %v10843_v27, %s10281_s15 }
 0xf79   :  { %v1914_v60 = vpop.xlane.xlu1 %1913 }
 0xf7a   :  { %9996 = vrcp.f32 %v1914_v60 }
 0xf7d   :  { %v2139_v39 = vpop.permute.xlu1 %2138 }
 0xf7e   :  { %v2144_v41 = vsel %vm633_vm3, %v2139_v39, 0 }
 0xf81   :  { %v2024_v24 = vpop.xlane.xlu0 %2023 }
 0xf82   :  { %9998 = vrcp.f32 %v2024_v24 }
 0xf85   :  { %v2029_v32 = vpop.permute.xlu0 %2028 }
 0xf86   :  { %v2034_v34 = vsel %vm633_vm3, %v2029_v32, 0 }
 0xf87   :  { %v9997_v29 = vpop.eup %9996 }
 0xf88   :  { %v1916_v30 = vmul.f32 %v9997_v29, %v9989_v12 }
 0xf8a   :  { %v1917_v33 = vpack.c.bf16 %v1916_v30, %v1916_v30 }
 0xf8c   :  { %9111 = vmatmul.mubr.msk.bf16.vlgmr.msra.gmra.mxu0 %vm569_vm2, %v1917_v33 }
 0xf8d   :  { %9121 = vmatpush3.bf16.msra.mxu0 %v2034_v34  ;;  %9122 = vmatprep.mubr.msk.bf16.mxu0 %vm10274_vm1, %v10273_v63 }
 0xf8e   :  { %9132 = vmatprep.subr.bf16.mxu0 %v10273_v63 }
 0xf8f   :  { %v9999_v35 = vpop.eup %9998 }
 0xf90   :  { %v2026_v37 = vmul.f32 %v9999_v35, %v9991_v15 }
 0xf92   :  { %v2027_v40 = vpack.c.bf16 %v2026_v37, %v2026_v37 }
 0xf94   :  { %9123 = vmatmul.mubr.msk.bf16.vlgmr.msra.gmra.mxu0 %vm569_vm2, %v2027_v40 }
 0xf95   :  { %9133 = vmatpush3.bf16.msra.mxu0 %v2144_v41  ;;  %9134 = vmatprep.mubr.msk.bf16.mxu0 %vm10274_vm1, %v10273_v63 }
 0xf96   :  { %9144 = vmatprep.subr.bf16.mxu0 %v10273_v63 }
 0xfae   :  { %v2134_v42 = vpop.xlane.xlu1 %2133 }
 0xfaf   :  { %10000 = vrcp.f32 %v2134_v42 }
 0xfb2   :  { %v2249_v47 = vpop.permute.xlu1 %2248 }
 0xfb3   :  { %v2254_v49 = vsel %vm633_vm3, %v2249_v47, 0 }
 0xfb6   :  { %v2244_v43 = vpop.xlane.xlu0 %2243  ;;  %v2480_v59 = vpop.permute.xlu1 %2479 }
 0xfb7   :  { %10002 = vrcp.f32 %v2244_v43  ;;  %v2485_v31 = vsel %vm569_vm2, %v2480_v59, 0 }
 0xfba   :  { %v2370_v54 = vpop.permute.xlu0 %2369  ;;  %v2590_v61 = vpop.permute.xlu1 %2589 }
 0xfbb   :  { %v2375_v56 = vsel %vm569_vm2, %v2370_v54, 0  ;;  %v2595_v1 = vsel %vm569_vm2, %v2590_v61, 0 }
 0xfbc   :  { %v10001_v44 = vpop.eup %10000 }
 0xfbd   :  { %v2136_v46 = vmul.f32 %v10001_v44, %v9993_v23 }
 0xfbe   :  { %v2478_v62 = vpop.permute.xlu0 %2477  ;;  %v2700_v2 = vpop.permute.xlu1 %2699 }
 0xfbf   :  { %v2137_v48 = vpack.c.bf16 %v2136_v46, %v2136_v46  ;;  %v2705_v38 = vsel %vm569_vm2, %v2700_v2, 0  ;;  %v9895_v2 = vld [vmem:[%s10322_s21 + $0x10] sm:$0xff]  }
 0xfc1   :  { %9135 = vmatmul.mubr.msk.bf16.vlgmr.msra.gmra.mxu0 %vm569_vm2, %v2137_v48 }
 0xfc2   :  { %9145 = vmatpush3.bf16.msra.mxu0 %v2254_v49  ;;  %9146 = vmatprep.mubr.msk.bf16.mxu0 %vm10274_vm1, %v10273_v63  ;;  %v2588_v3 = vpop.permute.xlu0 %2587 }
 0xfc3   :  { %9158 = vmatprep.subr.bf16.mxu0 %v10273_v63 }
 0xfc4   :  { %v10003_v50 = vpop.eup %10002 }
 0xfc5   :  { %v2246_v51 = vmul.f32 %v10003_v50, %v9995_v26 }
 0xfc6   :  { %v2698_v4 = vpop.permute.xlu0 %2697 }
 0xfc7   :  { %v2247_v55 = vpack.c.bf16 %v2246_v51, %v2246_v51 }
 0xfc9   :  { %9147 = vmatmul.mubr.msk.bf16.vlgmr.msra.gmra.mxu0 %vm569_vm2, %v2247_v55 }
 0xfca   :  { %9159 = vmatpush3.bf16.xpose.msra.mxu0 %v2375_v56  ;;  %9160 = vmatprep.mubr.msk.bf16.mxu0 %vm10274_vm1, %v10273_v63 }
 0xfcb   :  { %9170 = vmatprep.subr.bf16.mxu0 %v10273_v63 }
 0xfd1   :  { %9161 = vmatmul.mubr.msk.bf16.vlgmr.msra.gmra.mxu0 %vm569_vm2, %v10843_v27 }
 0xfd2   :  { %9171 = vmatpush3.bf16.xpose.msra.mxu0 %v2485_v31  ;;  %9172 = vmatprep.mubr.msk.bf16.mxu0 %vm10274_vm1, %v10273_v63 }
 0xfd3   :  { %9182 = vmatprep.subr.bf16.mxu0 %v10273_v63 }
 0xfd9   :  { %9173 = vmatmul.mubr.msk.bf16.vlgmr.msra.gmra.mxu0 %vm569_vm2, %v2478_v62 }
 0xfda   :  { %9183 = vmatpush3.bf16.xpose.msra.mxu0 %v2595_v1  ;;  %9184 = vmatprep.mubr.msk.bf16.mxu0 %vm10274_vm1, %v10273_v63  ;;  %v9894_v1 = vld [vmem:[%s10322_s21 + $0x18] sm:$0xff]   ;;  %s12015_s21 = sld [smem:[#allocation12_spill]] }
 0xfdb   :  { %9194 = vmatprep.subr.bf16.mxu0 %v10273_v63  ;;  %9151 = vmatpush3.bf16.msra.mxu1 %v9894_v1 }
 0xfdc   :  { %9152 = vmatprep.subr.bf16.mxu1 %v10273_v63 }
 0xfdf   :  { %9153 = vmatpush3.bf16.msra.mxu1 %v9895_v2 }
 0xfe0   :  { %9164 = vmatprep.subr.bf16.mxu1 %v10273_v63 }
 0xfe1   :  { %9185 = vmatmul.mubr.msk.bf16.vlgmr.msra.gmra.mxu0 %vm569_vm2, %v2588_v3 }
 0xfe2   :  { %9195 = vmatpush3.bf16.xpose.msra.mxu0 %v2705_v38  ;;  %9196 = vmatprep.mubr.msk.bf16.mxu0 %vm10274_vm1, %v10273_v63 }
 0xfe3   :  { %9206 = vmatprep.subr.bf16.mxu0 %v10273_v63 }
 0xfe9   :  { %9197 = vmatmul.mubr.msk.bf16.vlgmr.msra.gmra.mxu0 %vm569_vm2, %v2698_v4 }
 0xfea   :  { %9210 = vmatprep.mubr.msk.bf16.mxu0 %vm10274_vm1, %v10273_v63  ;;  %9207 = vmatpush3.bf16.msra.mxu0 %v9894_v1 }
 0xfeb   :  { %9208 = vmatprep.subr.bf16.mxu0 %v10273_v63 }
 0xfee   :  { %9209 = vmatpush3.bf16.msra.mxu0 %v9895_v2 }
 0xfef   :  { %9222 = vmatprep.subr.bf16.mxu0 %v10273_v63 }
0x104c   :  { %v10898_v5 = vpop.f32.mrf.mxu0 }
0x104e   :  { %v9112_v6 = vpop.f32.mrf.mxu0 }
0x1050   :  { %v1963_v45 = vpop.f32.mrf.mxu0 }
0x1052   :  { %v9113_v7 = vpop.f32.mrf.mxu0 }
0x1054   :  { %v2070_v8 = vpop.f32.mrf.mxu0 }
0x1056   :  { %v9124_v9 = vpop.f32.mrf.mxu0 }
0x1058   :  { %v2073_v10 = vpop.f32.mrf.mxu0 }
0x105a   :  { %v9125_v11 = vpop.f32.mrf.mxu0 }
0x1081   :  { %v2180_v53 = vpop.f32.mrf.mxu0 }
0x1083   :  { %v9136_v12 = vpop.f32.mrf.mxu0 }
0x1085   :  { %v2183_v14 = vpop.f32.mrf.mxu0 }
0x1087   :  { %v9137_v15 = vpop.f32.mrf.mxu0 }
0x1089   :  { %v10900_v22 = vpop.f32.mrf.mxu0 }
0x108b   :  { %v9148_v52 = vpop.f32.mrf.mxu0 }
0x108d   :  { %v2293_v17 = vpop.f32.mrf.mxu0 }
0x108f   :  { %v9149_v19 = vpop.f32.mrf.mxu0 }
0x1091   :  { %v2411_v20 = vpop.f32.mrf.mxu0 }
0x1092   :  { %v2412_v21 = vadd.f32 %v10650_v13, %v2411_v20 }
0x1093   :  { %v9162_v18 = vpop.f32.mrf.mxu0 }
0x1094   :  { %v2417_v23 = vsel %vm569_vm2, %v2412_v21, -inf }
0x1095   :  { %2418 = vmax.xlane.f32.xlu1 %v2417_v23  ;;  %v2414_v25 = vpop.f32.mrf.mxu0 }
0x1097   :  { %v9163_v26 = vpop.f32.mrf.mxu0 }
0x1099   :  { %v2521_v58 = vpop.f32.mrf.mxu0 }
0x109a   :  { %v2522_v60 = vadd.f32 %v10655_v16, %v2521_v58 }
0x109b   :  { %v9174_v24 = vpop.f32.mrf.mxu0 }
0x109c   :  { %v2527_v29 = vsel %vm569_vm2, %v2522_v60, -inf }
0x109d   :  { %2528 = vmax.xlane.f32.xlu0 %v2527_v29  ;;  %v2524_v30 = vpop.f32.mrf.mxu0 }
0x109f   :  { %v9175_v32 = vpop.f32.mrf.mxu0 }
0x10a1   :  { %v2631_v33 = vpop.f32.mrf.mxu0 }
0x10a2   :  { %v2632_v34 = vadd.f32 %v10660_v28, %v2631_v33 }
0x10a3   :  { %v9186_v35 = vpop.f32.mrf.mxu0 }
0x10a4   :  { %v2637_v13 = vsel %vm569_vm2, %v2632_v34, -inf }
0x10a5   :  { %2638 = vmax.xlane.f32.xlu0 %v2637_v13  ;;  %v2634_v37 = vpop.f32.mrf.mxu0 }
0x10a7   :  { %v9187_v39 = vpop.f32.mrf.mxu0 }
0x10a9   :  { %v2741_v40 = vpop.f32.mrf.mxu0 }
0x10aa   :  { %v2742_v41 = vadd.f32 %v10665_v36, %v2741_v40 }
0x10ab   :  { %v9198_v42 = vpop.f32.mrf.mxu0 }
0x10ac   :  { %v2747_v16 = vsel %vm569_vm2, %v2742_v41, -inf }
0x10ad   :  { %2748 = vmax.xlane.f32.xlu1 %v2747_v16  ;;  %v2744_v43 = vpop.f32.mrf.mxu0 }
0x10af   :  { %v9199_v44 = vpop.f32.mrf.mxu0 }
0x10bb   :  { %2301 = vrot.lane.b32.xlu0 %v2180_v53, %s10286_s26 }
0x10be   :  { %2297 = vrot.lane.b32.xlu1 %v2070_v8, %s10287_s28 }
0x111e   :  { %v2419_v28 = vpop.xlane.xlu1 %2418 }
0x111f   :  { %v2420_v46 = vsub.f32 %v2412_v21, %v2419_v28 }
0x1121   :  { %v2421_v47 = vmul.f32 1.442695, %v2420_v46 }
0x1123   :  { %10004 = vpow2.f32 %v2421_v47 }
0x1126   :  { %v2529_v48 = vpop.xlane.xlu0 %2528 }
0x1127   :  { %v2530_v49 = vsub.f32 %v2522_v60, %v2529_v48 }
0x1129   :  { %v2531_v50 = vmul.f32 1.442695, %v2530_v49 }
0x112b   :  { %10006 = vpow2.f32 %v2531_v50 }
0x112e   :  { %v2639_v36 = vpop.xlane.xlu0 %2638 }
0x112f   :  { %v2640_v51 = vsub.f32 %v2632_v34, %v2639_v36 }
0x1130   :  { %v10005_v54 = vpop.eup %10004 }
0x1131   :  { %v2641_v55 = vmul.f32 1.442695, %v2640_v51  ;;  %v2423_v56 = vsel %vm569_vm2, %v10005_v54, 0.0 }
0x1132   :  { %2424 = vadd.xlane.f32.xlu0 %v2423_v56  ;;  %v2302_v7 = vpop.permute.xlu0 %2301 }
0x1133   :  { %10008 = vpow2.f32 %v2641_v55 }
0x1136   :  { %v2749_v3 = vpop.xlane.xlu1 %2748 }
0x1137   :  { %v2750_v38 = vsub.f32 %v2742_v41, %v2749_v3 }
0x1138   :  { %v10007_v59 = vpop.eup %10006 }
0x1139   :  { %v2533_v31 = vsel %vm569_vm2, %v10007_v59, 0.0  ;;  %v2751_v4 = vmul.f32 1.442695, %v2750_v38 }
0x113a   :  { %2534 = vadd.xlane.f32.xlu1 %v2533_v31  ;;  %v2298_v9 = vpop.permute.xlu1 %2297 }
0x113b   :  { %10010 = vpow2.f32 %v2751_v4  ;;  %v2308_v11 = vsel %vm569_vm2, %v10898_v5, %v2298_v9 }
0x113c   :  { %v2309_v53 = vsel %vm1026_vm4, %v2308_v11, %v2302_v7 }
0x1140   :  { %v10914_v61 = vpop.eup %10008 }
0x1141   :  { %v2643_v62 = vsel %vm569_vm2, %v10914_v61, 0.0 }
0x1142   :  { %2644 = vadd.xlane.f32.xlu0 %v2643_v62 }
0x1148   :  { %v10011_v6 = vpop.eup %10010 }
0x1149   :  { %v2753_v45 = vsel %vm569_vm2, %v10011_v6, 0.0 }
0x114b   :  { %2305 = vrot.lane.b32.xlu1 %v10900_v22, %s10288_s14 }
0x1158   :  { %2429 = vrot.lane.b32.xlu0 %v10843_v27, %s10282_s16 }
0x115c   :  { %2539 = vrot.lane.b32.xlu0 %v10843_v27, %s10284_s22 }
0x1160   :  { %2649 = vrot.lane.b32.xlu0 %v10843_v27, %s10283_s18 }
0x1164   :  { %2759 = vrot.lane.b32.xlu0 %v10843_v27, %s10285_s23 }
0x116f   :  { %2754 = vadd.xlane.f32.xlu1 %v2753_v45 }
0x11bb   :  { %v2425_v8 = vpop.xlane.xlu0 %2424 }
0x11bc   :  { %10012 = vrcp.f32 %v2425_v8 }
0x11c3   :  { %v2535_v10 = vpop.xlane.xlu1 %2534 }
0x11c4   :  { %10014 = vrcp.f32 %v2535_v10 }
0x11c7   :  { %v2306_v12 = vpop.permute.xlu1 %2305 }
0x11c8   :  { %v2310_v14 = vsel %vm1028_vm5, %v2309_v53, %v2306_v12 }
0x11c9   :  { %v2311_v15 = vpack.c.bf16 %v2310_v14, %v2310_v14  ;;  %v10013_v27 = vpop.eup %10012  ;;  %v3067_v14 = vld [vmem:[%s10352_s19] sm:$0xff] }
0x11ca   :  { %v2427_v52 = vmul.f32 %v10013_v27, %v10005_v54  ;;  %v9897_v27 = vld [vmem:[%s10332_s29 + $0x10] sm:$0xff]  }
0x11cb   :  { %v2645_v22 = vpop.xlane.xlu0 %2644  ;;  %9155 = vmatmul.mubr.msk.bf16.vlgmr.msra.gmra.mxu1 %vm483_vm0, %v2311_v15  ;;  %v9896_v15 = vld [vmem:[%s10332_s29 + $0x18] sm:$0xff]   ;;  %s12017_s29 = sld [smem:[#allocation10_spill]] }
0x11cc   :  { %9166 = vmatprep.mubr.msk.bf16.mxu1 %vm10274_vm1, %v10273_v63  ;;  %10016 = vrcp.f32 %v2645_v22  ;;  %v2428_v5 = vpack.c.bf16 %v2427_v52, %v2427_v52  ;;  %v9906_v22 = vld [vmem:[%s10337_s3 + $0x38] sm:$0xff]   ;;  %v9907_v52 = vld [vmem:[%s10337_s3 + $0x30] sm:$0xff]  }
0x11cf   :  { %v2430_v17 = vpop.permute.xlu0 %2429 }
0x11d0   :  { %v2435_v19 = vsel %vm633_vm3, %v2430_v17, 0 }
0x11d1   :  { %9165 = vmatpush3.bf16.msra.mxu1 %v2435_v19  ;;  %v10015_v20 = vpop.eup %10014 }
0x11d2   :  { %9176 = vmatprep.subr.bf16.mxu1 %v10273_v63  ;;  %v2537_v23 = vmul.f32 %v10015_v20, %v10007_v59 }
0x11d3   :  { %v2540_v21 = vpop.permute.xlu0 %2539 }
0x11d4   :  { %v2545_v18 = vsel %vm633_vm3, %v2540_v21, 0  ;;  %9167 = vmatmul.mubr.msk.bf16.vlgmr.msra.gmra.mxu1 %vm569_vm2, %v2428_v5  ;;  %v2538_v26 = vpack.c.bf16 %v2537_v23, %v2537_v23 }
0x11d5   :  { %9177 = vmatpush3.bf16.msra.mxu1 %v2545_v18  ;;  %9178 = vmatprep.mubr.msk.bf16.mxu1 %vm10274_vm1, %v10273_v63 }
0x11d6   :  { %9188 = vmatprep.subr.bf16.mxu1 %v10273_v63 }
0x11d7   :  { %v2650_v25 = vpop.permute.xlu0 %2649 }
0x11d8   :  { %v2655_v60 = vsel %vm633_vm3, %v2650_v25, 0 }
0x11d9   :  { %v10017_v58 = vpop.eup %10016 }
0x11da   :  { %v2647_v24 = vmul.f32 %v10017_v58, %v10914_v61  ;;  %v8425_v58 = vld [vmem:[%s10327_s25 + $0x1] ss:$0 sm:$0xff]  ;;  %s12016_s25 = sld [smem:[#allocation11_spill]] }
0x11db   :  { %v2760_v29 = vpop.permute.xlu0 %2759 }
0x11dc   :  { %9179 = vmatmul.mubr.msk.bf16.vlgmr.msra.gmra.mxu1 %vm569_vm2, %v2538_v26  ;;  %v2648_v30 = vpack.c.bf16 %v2647_v24, %v2647_v24  ;;  %v2765_v32 = vsel %vm633_vm3, %v2760_v29, 0 }
0x11dd   :  { %9189 = vmatpush3.bf16.msra.mxu1 %v2655_v60  ;;  %9190 = vmatprep.mubr.msk.bf16.mxu1 %vm10274_vm1, %v10273_v63 }
0x11de   :  { %9200 = vmatprep.subr.bf16.mxu1 %v10273_v63 }
0x11e4   :  { %9191 = vmatmul.mubr.msk.bf16.vlgmr.msra.gmra.mxu1 %vm569_vm2, %v2648_v30  ;;  %v9898_v30 = vld [vmem:[%s10357_s24 + $0x38] sm:$0xff]  }
0x11e5   :  { %9201 = vmatpush3.bf16.msra.mxu1 %v2765_v32  ;;  %9202 = vmatprep.mubr.msk.bf16.mxu1 %vm10274_vm1, %v10273_v63 }
0x11e6   :  { %9214 = vmatprep.subr.bf16.mxu1 %v10273_v63 }
0x11f8   :  { %v2755_v33 = vpop.xlane.xlu1 %2754 }
0x11f9   :  { %10018 = vrcp.f32 %v2755_v33  ;;  %v9899_v33 = vld [vmem:[%s10357_s24 + $0x30] sm:$0xff]  }
0x1206   :  { %v10019_v34 = vpop.eup %10018 }
0x1207   :  { %v2757_v35 = vmul.f32 %v10019_v34, %v10011_v6  ;;  %v9900_v34 = vld [vmem:[%s10357_s24 + $0x28] sm:$0xff]  }
0x1209   :  { %v2758_v13 = vpack.c.bf16 %v2757_v35, %v2757_v35  ;;  %v9901_v35 = vld [vmem:[%s10357_s24 + $0x20] sm:$0xff]  }
0x120b   :  { %9203 = vmatmul.mubr.msk.bf16.vlgmr.msra.gmra.mxu1 %vm569_vm2, %v2758_v13  ;;  %v9902_v13 = vld [vmem:[%s10357_s24 + $0x18] sm:$0xff]  }
0x120c   :  { %9218 = vmatprep.mubr.msk.bf16.mxu1 %vm10274_vm1, %v10273_v63  ;;  %9215 = vmatpush3.bf16.msra.mxu1 %v9896_v15 }
0x120d   :  { %9216 = vmatprep.subr.bf16.mxu1 %v10273_v63 }
0x1210   :  { %9217 = vmatpush3.bf16.msra.mxu1 %v9897_v27 }
0x1211   :  { %9234 = vmatprep.subr.bf16.mxu1 %v10273_v63 }
0x128b   :  { %v2361_v37 = vpop.f32.mrf.mxu1 }
0x128c   :  { %v10967_v31 = vadd.f32 %v2361_v37, %v10760_v57  ;;  %v10289_v57 = vmov 0   ;;  %v9903_v37 = vld [vmem:[%s10357_s24 + $0x10] sm:$0xff]  }
0x128d   :  { %v9156_v39 = vpop.f32.mrf.mxu1  ;;  %9848 = vset.pattern.permute.xlu1 %v10289_v57  ;;  %9849 = vset.pattern.permute.xlu0 %v10289_v57 }
0x128e   :  { %v2884_v61 = vmul.f32 %v10967_v31, %v10967_v31 }
0x128f   :  { %v2364_v40 = vpop.f32.mrf.mxu1 }
0x1290   :  { %v2886_v62 = vsel %vm483_vm0, %v2884_v61, 0.0  ;;  %v3065_v40 = vlaneseq }
0x1291   :  { %v9157_v41 = vpop.f32.mrf.mxu1 }
0x1292   :  { %v9904_v41 = vld [vmem:[%s10357_s24 + $0x8] sm:$0xff]  }
0x1294   :  { %v2471_v42 = vpop.f32.mrf.mxu1 }
0x1296   :  { %v9168_v16 = vpop.f32.mrf.mxu1 }
0x1298   :  { %v2474_v43 = vpop.f32.mrf.mxu1 }
0x1299   :  { %v9905_v43 = vld [vmem:[%s10357_s24] sm:$0xff]   ;;  %s12020_s24 = sld [smem:[#allocation15_spill]] }
0x129a   :  { %v9169_v44 = vpop.f32.mrf.mxu1 }
0x129b   :  { %v10290_v44 = vmov 1.0|1.0  }
0x129c   :  { %v2581_v28 = vpop.f32.mrf.mxu1 }
0x129d   :  { %2808 = vrot.lane.b32.xlu0 %v2581_v28, %s10287_s28  ;;  %v9908_v28 = vld [vmem:[%s10337_s3 + $0x28] sm:$0xff]  }
0x129e   :  { %v9180_v46 = vpop.f32.mrf.mxu1 }
0x129f   :  { %v9909_v46 = vld [vmem:[%s10337_s3 + $0x20] sm:$0xff]   ;;  %s12018_s3 = sld [smem:[#allocation18_spill]] }
0x12a0   :  { %v2584_v47 = vpop.f32.mrf.mxu1 }
0x12a2   :  { %v9181_v48 = vpop.f32.mrf.mxu1 }
0x12a4   :  { %v2691_v49 = vpop.f32.mrf.mxu1 }
0x12a5   :  { %2812 = vrot.lane.b32.xlu0 %v2691_v49, %s10286_s26 }
0x12a6   :  { %v9192_v50 = vpop.f32.mrf.mxu1 }
0x12a8   :  { %v2694_v36 = vpop.f32.mrf.mxu1 }
0x12aa   :  { %v9193_v51 = vpop.f32.mrf.mxu1 }
0x12cb   :  { %v2801_v54 = vpop.f32.mrf.mxu1 }
0x12cc   :  { %2816 = vrot.lane.b32.xlu0 %v2801_v54, %s10288_s14 }
0x12cd   :  { %v9204_v55 = vpop.f32.mrf.mxu1 }
0x12cf   :  { %v2804_v56 = vpop.f32.mrf.mxu1 }
0x12d1   :  { %v9205_v59 = vpop.f32.mrf.mxu1 }
0x12eb   :  { %2887 = vadd.xlane.f32.xlu0 %v2886_v62 }
0x130f   :  { %v2809_v1 = vpop.permute.xlu0 %2808 }
0x1310   :  { %v2819_v3 = vsel %vm569_vm2, %v2471_v42, %v2809_v1  ;;  %v11013_v42 = vand.u32 127, %v3065_v40 }
0x1312   :  { %vm8167_vm11 = vcmp.lt.s32.totalorder %v11013_v42, 119 }
0x1317   :  { %v2813_v2 = vpop.permute.xlu0 %2812 }
0x1318   :  { %v2820_v38 = vsel %vm1026_vm4, %v2819_v3, %v2813_v2 }
0x133e   :  { %v2817_v4 = vpop.permute.xlu0 %2816 }
0x133f   :  { %v2821_v6 = vsel %vm1028_vm5, %v2820_v38, %v2817_v4  ;;  %v9910_v38 = vld [vmem:[%s10367_s6 + $0x8] sm:$0xff]   ;;  %v9911_v4 = vld [vmem:[%s10367_s6] sm:$0xff]  }
0x1340   :  { %v2822_v45 = vpack.c.bf16 %v2821_v6, %v2821_v6 }
0x1342   :  { %9211 = vmatmul.mubr.msk.bf16.vlgmr.msra.gmra.mxu0 %vm483_vm0, %v2822_v45 }
0x1343   :  { %9230 = vmatprep.mubr.msk.bf16.mxu0 %vm10274_vm1, %v10273_v63  ;;  %9223 = vmatpush3.bf16.msra.mxu0 %v9906_v22 }
0x1344   :  { %9224 = vmatprep.subr.bf16.mxu0 %v10273_v63 }
0x1347   :  { %9225 = vmatpush3.bf16.msra.mxu0 %v9907_v52 }
0x1348   :  { %9226 = vmatprep.subr.bf16.mxu0 %v10273_v63 }
0x134b   :  { %9227 = vmatpush3.bf16.msra.mxu0 %v9908_v28 }
0x134c   :  { %9228 = vmatprep.subr.bf16.mxu0 %v10273_v63 }
0x134f   :  { %9229 = vmatpush3.bf16.msra.mxu0 %v9909_v46 }
0x1350   :  { %9254 = vmatprep.subr.bf16.mxu0 %v10273_v63 }
0x1374   :  { %v2888_v17 = vpop.xlane.xlu0 %2887 }
0x1375   :  { %v2892_v19 = vmul.f32 0.03125, %v2888_v17 }
0x1377   :  { %v2894_v5 = vadd.f32 1e-06, %v2892_v19 }
0x1379   :  { %10020 = vrsqrt.f32 %v2894_v5 }
0x1386   :  { %v10021_v23 = vpop.eup %10020 }
0x1387   :  { %v2898_v25 = vmul.f32 %v10021_v23, %v10967_v31 }
0x1389   :  { %v2906_v24 = vmul.f32 %v8425_v58, %v2898_v25 }
0x1402   :  { %v2860_v7 = vpop.f32.mrf.mxu0 }
0x1403   :  { %v10979_v8 = vadd.f32 %v2860_v7, %v10764_v0  ;;  %v3068_v0 = vld [vmem:[%s10352_s19 + $0x8] sm:$0xff]  ;;  %s12019_s19 = sld [smem:[#allocation13_spill]] }
0x1404   :  { %v9212_v9 = vpop.f32.mrf.mxu0 }
0x1405   :  { %v2885_v10 = vmul.f32 %v10979_v8, %v10979_v8 }
0x1406   :  { %v2863_v11 = vpop.f32.mrf.mxu0 }
0x1407   :  { %v2889_v53 = vsel %vm483_vm0, %v2885_v10, 0.0 }
0x1408   :  { %2890 = vadd.xlane.f32.xlu1 %v2889_v53  ;;  %v9213_v12 = vpop.f32.mrf.mxu0 }
0x1419   :  { %3070 = vperm.xlu1 %9848, %v3067_v14   ;;  %v8447_v14 = vld [vmem:[%s10362_s30] ss:$0 sm:$0xff] }
0x141d   :  { %3073 = vperm.xlu1 %9848, %v3068_v0  }
0x1491   :  { %v2891_v20 = vpop.xlane.xlu1 %2890 }
0x1492   :  { %v2893_v21 = vmul.f32 0.03125, %v2891_v20 }
0x1494   :  { %v2895_v18 = vadd.f32 1e-06, %v2893_v21 }
0x1495   :  { %v3071_v39 = vpop.permute.xlu1 %3070 }
0x1496   :  { %10022 = vrsqrt.f32 %v2895_v18  ;;  %vm3075_vm7 = vcmp.eq.s32.totalorder %v11013_v42, %v3071_v39 }
0x1499   :  { %v3074_v16 = vpop.permute.xlu1 %3073 }
0x149a   :  { %vm3076_vm8 = vcmp.eq.s32.totalorder %v11013_v42, %v3074_v16  ;;  %v11097_v16 = vld [vmem:[%s10417_s20 + $0x8] sm:$0xff] }
0x149b   :  { %vm8445_vm9 = vmpackc.low %vm3076_vm8, %vm3075_vm7 }
0x14a3   :  { %v10023_v26 = vpop.eup %10022 }
0x14a4   :  { %v2899_v60 = vmul.f32 %v10023_v26, %v10979_v8 }
0x14a6   :  { %v2907_v29 = vmul.f32 %v8425_v58, %v2899_v60 }
0x14a8   :  { %v2908_v32 = vpack.c.bf16 %v2907_v29, %v2906_v24 }
0x14aa   :  { %9219 = vmatmul.mubr.msk.bf16.vlgmr.msra.gmra.mxu1 %vm483_vm0, %v2908_v32 }
0x14ab   :  { %9235 = vmatpush3.bf16.msra.mxu1 %v9898_v30  ;;  %9250 = vmatprep.mubr.msk.bf16.mxu1 %vm10274_vm1, %v10273_v63 }
0x14ac   :  { %9236 = vmatprep.subr.bf16.mxu1 %v10273_v63 }
0x14af   :  { %9237 = vmatpush3.bf16.msra.mxu1 %v9899_v33 }
0x14b0   :  { %9238 = vmatprep.subr.bf16.mxu1 %v10273_v63 }
0x14b3   :  { %9239 = vmatpush3.bf16.msra.mxu1 %v9900_v34 }
0x14b4   :  { %9240 = vmatprep.subr.bf16.mxu1 %v10273_v63 }
0x14b7   :  { %9241 = vmatpush3.bf16.msra.mxu1 %v9901_v35 }
0x14b8   :  { %9242 = vmatprep.subr.bf16.mxu1 %v10273_v63 }
0x14bb   :  { %9243 = vmatpush3.bf16.msra.mxu1 %v9902_v13 }
0x14bc   :  { %9244 = vmatprep.subr.bf16.mxu1 %v10273_v63 }
0x14bf   :  { %9245 = vmatpush3.bf16.msra.mxu1 %v9903_v37  ;;  %v11093_v37 = vld [vmem:[%s10417_s20] sm:$0xff] }
0x14c0   :  { %9246 = vmatprep.subr.bf16.mxu1 %v10273_v63 }
0x14c3   :  { %9247 = vmatpush3.bf16.msra.mxu1 %v9904_v41 }
0x14c4   :  { %9248 = vmatprep.subr.bf16.mxu1 %v10273_v63 }
0x14c7   :  { %9249 = vmatpush3.bf16.msra.mxu1 %v9905_v43 }
0x14c8   :  { %9274 = vmatprep.subr.bf16.mxu1 %v10273_v63 }
0x14ca   :  { %9251 = vmatmul.mubr.msk.bf16.vlgmr.msra.gmra.mxu1 %vm8445_vm9, %v10290_v44 }
0x14cb   :  { %9276 = vmatprep.mubr.msk.bf16.mxu1 %vm10274_vm1, %v10273_v63 }
0x156a   :  { %v2958_v47 = vpop.f32.mrf.mxu1 }
0x156b   :  { %v2965_v50 = vmax.f32 %v2958_v47, 0.0 }
0x156c   :  { %v9220_v48 = vpop.f32.mrf.mxu1 }
0x156e   :  { %v2961_v49 = vpop.f32.mrf.mxu1 }
0x156f   :  { %v2966_v36 = vmax.f32 %v2961_v49, 0.0 }
0x1570   :  { %v9221_v51 = vpop.f32.mrf.mxu1 }
0x1571   :  { %v2967_v54 = vpack.c.bf16 %v2966_v36, %v2965_v50  ;;  %v11103_v51 = vld [vmem:[%s10417_s20 + $0x10] sm:$0xff] }
0x1573   :  { %9231 = vmatmul.mubr.msk.bf16.vlgmr.msra.gmra.mxu0 %vm1716_vm6, %v2967_v54 }
0x1574   :  { %9258 = vmatprep.mubr.msk.bf16.mxu0 %vm10274_vm1, %v10273_v63  ;;  %9255 = vmatpush3.bf16.msra.mxu0 %v9910_v38 }
0x1575   :  { %9256 = vmatprep.subr.bf16.mxu0 %v10273_v63 }
0x1578   :  { %9257 = vmatpush3.bf16.msra.mxu0 %v9911_v4 }
0x1579   :  { %9262 = vmatprep.subr.bf16.mxu0 %v10273_v63 }
0x158a   :  { %v11029_v55 = vpop.f32.mrf.mxu1 }
0x158b   :  { %v3196_v56 = vmul.f32 %v11029_v55, %v11029_v55 }
0x158c   :  { %v9252_v59 = vpop.f32.mrf.mxu1 }
0x158d   :  { %v3198_v61 = vsel %vm483_vm0, %v3196_v56, 0.0 }
0x158e   :  { %3199 = vadd.xlane.f32.xlu0 %v3198_v61  ;;  %v11034_v62 = vpop.f32.mrf.mxu1 }
0x158f   :  { %v3197_v1 = vmul.f32 %v11034_v62, %v11034_v62 }
0x1590   :  { %v9253_v2 = vpop.f32.mrf.mxu1 }
0x1591   :  { %v3201_v3 = vsel %vm483_vm0, %v3197_v1, 0.0 }
0x1592   :  { %3202 = vadd.xlane.f32.xlu1 %v3201_v3  ;;  %v11108_v3 = vld [vmem:[%s10417_s20 + $0x18] sm:$0xff] }
0x1617   :  { %v3200_v6 = vpop.xlane.xlu0 %3199 }
0x1618   :  { %v3204_v45 = vmul.f32 0.03125, %v3200_v6 }
0x161a   :  { %v3206_v57 = vadd.f32 1e-06, %v3204_v45 }
0x161b   :  { %v3203_v7 = vpop.xlane.xlu1 %3202 }
0x161c   :  { %10024 = vrsqrt.f32 %v3206_v57  ;;  %v3205_v9 = vmul.f32 0.03125, %v3203_v7 }
0x161e   :  { %v3207_v10 = vadd.f32 1e-06, %v3205_v9 }
0x1620   :  { %10026 = vrsqrt.f32 %v3207_v10 }
0x1629   :  { %v10025_v11 = vpop.eup %10024 }
0x162a   :  { %v3210_v53 = vmul.f32 %v10025_v11, %v11029_v55 }
0x162c   :  { %v3218_v27 = vmul.f32 %v8447_v14, %v3210_v53 }
0x162d   :  { %v10027_v12 = vpop.eup %10026 }
0x162e   :  { %v3211_v15 = vmul.f32 %v10027_v12, %v11034_v62 }
0x1630   :  { %v3219_v0 = vmul.f32 %v8447_v14, %v3211_v15 }
0x1632   :  { %v3220_v22 = vpack.c.bf16 %v3219_v0, %v3218_v27 }
0x1633   :  { %v11046_v52 = vpop.f32.mrf.mxu0 }
0x1634   :  { %9259 = vmatmul.mubr.msk.bf16.vlgmr.msra.gmra.mxu0 %vm483_vm0, %v3220_v22 }
0x1635   :  { %v9232_v17 = vpop.f32.mrf.mxu0  ;;  %9264 = vmatprep.mubr.msk.bf16.mxu0 %vm10274_vm1, %v10273_v63 }
0x1637   :  { %v11051_v19 = vpop.f32.mrf.mxu0 }
0x1639   :  { %v9233_v5 = vpop.f32.mrf.mxu0 }
0x16f4   :  { %v3270_v20 = vpop.f32.mrf.mxu0 }
0x16f5   :  { %v11053_v21 = vpack.c.bf16 %v3270_v20, %v3270_v20 }
0x16f6   :  { %v9260_v18 = vpop.f32.mrf.mxu0 }
0x16f7   :  { %3502 = vrot.lane.b32.xlu1 %v11053_v21, %s10279_s10  ;;  %3280 = vrot.lane.b32.xlu0 %v11053_v21, %s10276_s5 }
0x16f8   :  { %v11059_v23 = vpop.f32.mrf.mxu0 }
0x16fa   :  { %v9261_v25 = vpop.f32.mrf.mxu0 }
0x16fb   :  { %3392 = vrot.lane.b32.xlu0 %v11053_v21, %s10277_s9 }
0x16ff   :  { %3390 = vrot.lane.b32.xlu0 %v11053_v21, %s10275_s0 }
0x1703   :  { %3504 = vrot.lane.b32.xlu0 %v11053_v21, %s10278_s7 }
0x1707   :  { %3616 = vrot.lane.b32.xlu0 %v11053_v21, %s10280_s11 }
0x170b   :  { %3614 = vrot.lane.b32.xlu0 %v11053_v21, %s10281_s15 }
0x1769   :  { %v3281_v26 = vpop.permute.xlu0 %3280  ;;  %v3503_v34 = vpop.permute.xlu1 %3502 }
0x176a   :  { %v3286_v58 = vsel %vm569_vm2, %v3281_v26, 0 }
0x176b   :  { %9263 = vmatpush3.bf16.xpose.msra.mxu0 %v3286_v58 }
0x176c   :  { %9268 = vmatprep.subr.bf16.mxu0 %v10273_v63 }
0x176d   :  { %v3393_v60 = vpop.permute.xlu0 %3392 }
0x176e   :  { %v3398_v24 = vsel %vm569_vm2, %v3393_v60, 0 }
0x176f   :  { %9275 = vmatpush3.bf16.xpose.msra.mxu1 %v3398_v24 }
0x1770   :  { %9286 = vmatprep.subr.bf16.mxu1 %v10273_v63 }
0x1771   :  { %v3391_v29 = vpop.permute.xlu0 %3390 }
0x1772   :  { %9265 = vmatmul.mubr.msk.bf16.vlgmr.msra.gmra.mxu0 %vm569_vm2, %v11053_v21 }
0x1773   :  { %9270 = vmatprep.mubr.msk.bf16.mxu0 %vm10274_vm1, %v10273_v63 }
0x1775   :  { %v3505_v30 = vpop.permute.xlu0 %3504 }
0x1776   :  { %v3510_v32 = vsel %vm569_vm2, %v3505_v30, 0  ;;  %9277 = vmatmul.mubr.msk.bf16.vlgmr.msra.gmra.mxu1 %vm569_vm2, %v3391_v29 }
0x1777   :  { %9287 = vmatpush3.bf16.xpose.msra.mxu1 %v3510_v32  ;;  %9288 = vmatprep.mubr.msk.bf16.mxu1 %vm10274_vm1, %v10273_v63 }
0x1778   :  { %9298 = vmatprep.subr.bf16.mxu1 %v10273_v63 }
0x1779   :  { %v3617_v33 = vpop.permute.xlu0 %3616 }
0x177a   :  { %v3622_v35 = vsel %vm569_vm2, %v3617_v33, 0  ;;  %v11126_v33 = vpack.c.bf16 %v11059_v23, %v11059_v23 }
0x177d   :  { %v3615_v13 = vpop.permute.xlu0 %3614 }
0x177e   :  { %9289 = vmatmul.mubr.msk.bf16.vlgmr.msra.gmra.mxu1 %vm569_vm2, %v3503_v34 }
0x177f   :  { %9299 = vmatpush3.bf16.xpose.msra.mxu1 %v3622_v35  ;;  %9300 = vmatprep.mubr.msk.bf16.mxu1 %vm10274_vm1, %v10273_v63 }
0x1780   :  { %9310 = vmatprep.subr.bf16.mxu1 %v10273_v63 }
0x1786   :  { %9301 = vmatmul.mubr.msk.bf16.vlgmr.msra.gmra.mxu1 %vm569_vm2, %v3615_v13 }
0x1787   :  { %9314 = vmatprep.mubr.msk.bf16.mxu1 %vm10274_vm1, %v10273_v63 }
0x1832   :  { %v3322_v39 = vpop.f32.mrf.mxu0 }
0x1833   :  { %v3323_v40 = vadd.f32 %v3322_v39, %v11093_v37 }
0x1834   :  { %v9266_v41 = vpop.f32.mrf.mxu0 }
0x1835   :  { %v3328_v43 = vsel %vm569_vm2, %v3323_v40, -inf }
0x1836   :  { %v3434_v44 = vpop.f32.mrf.mxu1  ;;  %3329 = vmax.xlane.f32.xlu0 %v3328_v43  ;;  %v3325_v28 = vpop.f32.mrf.mxu0 }
0x1837   :  { %v3435_v46 = vadd.f32 %v11097_v16, %v3434_v44 }
0x1838   :  { %v9267_v47 = vpop.f32.mrf.mxu0  ;;  %v9278_v48 = vpop.f32.mrf.mxu1 }
0x1839   :  { %v3440_v49 = vsel %vm569_vm2, %v3435_v46, -inf }
0x183a   :  { %3441 = vmax.xlane.f32.xlu1 %v3440_v49  ;;  %v3437_v50 = vpop.f32.mrf.mxu1 }
0x183c   :  { %v9279_v36 = vpop.f32.mrf.mxu1 }
0x183e   :  { %v3546_v54 = vpop.f32.mrf.mxu1 }
0x183f   :  { %v3547_v56 = vadd.f32 %v11103_v51, %v3546_v54 }
0x1840   :  { %v9290_v59 = vpop.f32.mrf.mxu1 }
0x1841   :  { %v3552_v61 = vsel %vm569_vm2, %v3547_v56, -inf }
0x1842   :  { %v3549_v1 = vpop.f32.mrf.mxu1  ;;  %3553 = vmax.xlane.f32.xlu0 %v3552_v61 }
0x1844   :  { %v9291_v2 = vpop.f32.mrf.mxu1 }
0x1846   :  { %v3658_v38 = vpop.f32.mrf.mxu1 }
0x1847   :  { %v3659_v4 = vadd.f32 %v11108_v3, %v3658_v38 }
0x1848   :  { %v9302_v6 = vpop.f32.mrf.mxu1 }
0x1849   :  { %v3664_v45 = vsel %vm569_vm2, %v3659_v4, -inf }
0x184a   :  { %v3661_v57 = vpop.f32.mrf.mxu1  ;;  %3665 = vmax.xlane.f32.xlu0 %v3664_v45 }
0x184b   :  { %3340 = vrot.lane.b32.xlu1 %v11053_v21, %s10282_s16 }
0x184c   :  { %v9303_v7 = vpop.f32.mrf.mxu1 }
0x18bf   :  { %v3330_v9 = vpop.xlane.xlu0 %3329 }
0x18c0   :  { %v3331_v10 = vsub.f32 %v3323_v40, %v3330_v9 }
0x18c2   :  { %v3332_v11 = vmul.f32 1.442695, %v3331_v10 }
0x18c3   :  { %v3442_v53 = vpop.xlane.xlu1 %3441 }
0x18c4   :  { %10028 = vpow2.f32 %v3332_v11  ;;  %v3443_v12 = vsub.f32 %v3435_v46, %v3442_v53 }
0x18c6   :  { %v3444_v14 = vmul.f32 1.442695, %v3443_v12 }
0x18c7   :  { %v3341_v15 = vpop.permute.xlu1 %3340 }
0x18c8   :  { %10030 = vpow2.f32 %v3444_v14  ;;  %v3346_v27 = vsel %vm633_vm3, %v3341_v15, 0 }
0x18c9   :  { %9269 = vmatpush3.bf16.msra.mxu0 %v3346_v27 }
0x18ca   :  { %9280 = vmatprep.subr.bf16.mxu0 %v10273_v63 }
0x18cb   :  { %v3554_v0 = vpop.xlane.xlu0 %3553 }
0x18cc   :  { %v3555_v22 = vsub.f32 %v3547_v56, %v3554_v0 }
0x18ce   :  { %v3556_v17 = vmul.f32 1.442695, %v3555_v22 }
0x18d0   :  { %10032 = vpow2.f32 %v3556_v17 }
0x18d1   :  { %v10029_v5 = vpop.eup %10028 }
0x18d2   :  { %v3334_v20 = vsel %vm569_vm2, %v10029_v5, 0.0 }
0x18d3   :  { %3335 = vadd.xlane.f32.xlu0 %v3334_v20  ;;  %v3666_v18 = vpop.xlane.xlu0 %3665 }
0x18d4   :  { %v3667_v25 = vsub.f32 %v3659_v4, %v3666_v18 }
0x18d5   :  { %v10031_v26 = vpop.eup %10030 }
0x18d6   :  { %v3668_v58 = vmul.f32 1.442695, %v3667_v25  ;;  %v3446_v60 = vsel %vm569_vm2, %v10031_v26, 0.0 }
0x18d7   :  { %3447 = vadd.xlane.f32.xlu0 %v3446_v60 }
0x18d8   :  { %10034 = vpow2.f32 %v3668_v58 }
0x18dd   :  { %v10033_v24 = vpop.eup %10032 }
0x18de   :  { %v3558_v29 = vsel %vm569_vm2, %v10033_v24, 0.0 }
0x18df   :  { %3559 = vadd.xlane.f32.xlu1 %v3558_v29 }
0x18e5   :  { %v10035_v30 = vpop.eup %10034 }
0x18e6   :  { %v3670_v32 = vsel %vm569_vm2, %v10035_v30, 0.0 }
0x18e7   :  { %3671 = vadd.xlane.f32.xlu0 %v3670_v32 }
0x18f0   :  { %3564 = vrot.lane.b32.xlu1 %v11053_v21, %s10283_s18 }
0x18f4   :  { %3676 = vrot.lane.b32.xlu1 %v11053_v21, %s10285_s23 }
0x18f8   :  { %3797 = vrot.lane.b32.xlu1 %v11126_v33, %s10276_s5 }
0x18fc   :  { %3905 = vrot.lane.b32.xlu1 %v11126_v33, %s10275_s0 }
0x18fd   :  { %3452 = vrot.lane.b32.xlu0 %v11053_v21, %s10284_s22 }
0x1900   :  { %4015 = vrot.lane.b32.xlu1 %v11126_v33, %s10279_s10 }
0x1901   :  { %3907 = vrot.lane.b32.xlu0 %v11126_v33, %s10277_s9 }
0x1904   :  { %4125 = vrot.lane.b32.xlu1 %v11126_v33, %s10281_s15 }
0x1905   :  { %4017 = vrot.lane.b32.xlu0 %v11126_v33, %s10278_s7 }
0x1909   :  { %4127 = vrot.lane.b32.xlu0 %v11126_v33, %s10280_s11 }
0x195c   :  { %v3336_v23 = vpop.xlane.xlu0 %3335 }
0x195d   :  { %10036 = vrcp.f32 %v3336_v23 }
0x1960   :  { %v3448_v34 = vpop.xlane.xlu0 %3447 }
0x1961   :  { %10038 = vrcp.f32 %v3448_v34 }
0x1968   :  { %v3560_v21 = vpop.xlane.xlu1 %3559 }
0x1969   :  { %10040 = vrcp.f32 %v3560_v21 }
0x196a   :  { %v10037_v35 = vpop.eup %10036 }
0x196b   :  { %v3338_v13 = vmul.f32 %v10037_v35, %v10029_v5 }
0x196c   :  { %v3565_v46 = vpop.permute.xlu1 %3564 }
0x196d   :  { %v3339_v39 = vpack.c.bf16 %v3338_v13, %v3338_v13  ;;  %v3570_v49 = vsel %vm633_vm3, %v3565_v46, 0 }
0x196e   :  { %v10039_v40 = vpop.eup %10038 }
0x196f   :  { %9271 = vmatmul.mubr.msk.bf16.vlgmr.msra.gmra.mxu0 %vm569_vm2, %v3339_v39  ;;  %v3450_v43 = vmul.f32 %v10039_v40, %v10031_v26 }
0x1970   :  { %v3672_v41 = vpop.xlane.xlu0 %3671  ;;  %9282 = vmatprep.mubr.msk.bf16.mxu0 %vm10274_vm1, %v10273_v63  ;;  %v3677_v36 = vpop.permute.xlu1 %3676 }
0x1971   :  { %10042 = vrcp.f32 %v3672_v41  ;;  %v3451_v47 = vpack.c.bf16 %v3450_v43, %v3450_v43  ;;  %v3682_v59 = vsel %vm633_vm3, %v3677_v36, 0 }
0x1974   :  { %v3453_v44 = vpop.permute.xlu0 %3452  ;;  %v3798_v1 = vpop.permute.xlu1 %3797 }
0x1975   :  { %v3458_v28 = vsel %vm633_vm3, %v3453_v44, 0  ;;  %v3803_v38 = vsel %vm569_vm2, %v3798_v1, 0 }
0x1976   :  { %9281 = vmatpush3.bf16.msra.mxu0 %v3458_v28  ;;  %v10041_v48 = vpop.eup %10040 }
0x1977   :  { %9292 = vmatprep.subr.bf16.mxu0 %v10273_v63  ;;  %v3562_v50 = vmul.f32 %v10041_v48, %v10033_v24 }
0x1978   :  { %v3908_v4 = vpop.permute.xlu0 %3907  ;;  %v3906_v57 = vpop.permute.xlu1 %3905 }
0x1979   :  { %9283 = vmatmul.mubr.msk.bf16.vlgmr.msra.gmra.mxu0 %vm569_vm2, %v3451_v47  ;;  %v3563_v54 = vpack.c.bf16 %v3562_v50, %v3562_v50  ;;  %v3913_v6 = vsel %vm569_vm2, %v3908_v4, 0 }
0x197a   :  { %9293 = vmatpush3.bf16.msra.mxu0 %v3570_v49  ;;  %9294 = vmatprep.mubr.msk.bf16.mxu0 %vm10274_vm1, %v10273_v63 }
0x197b   :  { %9304 = vmatprep.subr.bf16.mxu0 %v10273_v63 }
0x197c   :  { %v4018_v45 = vpop.permute.xlu0 %4017  ;;  %v4016_v10 = vpop.permute.xlu1 %4015 }
0x197d   :  { %v4023_v7 = vsel %vm569_vm2, %v4018_v45, 0 }
0x197e   :  { %v10043_v56 = vpop.eup %10042 }
0x197f   :  { %v3674_v61 = vmul.f32 %v10043_v56, %v10035_v30 }
0x1980   :  { %v4128_v9 = vpop.permute.xlu0 %4127  ;;  %v4126_v53 = vpop.permute.xlu1 %4125 }
0x1981   :  { %9295 = vmatmul.mubr.msk.bf16.vlgmr.msra.gmra.mxu0 %vm569_vm2, %v3563_v54  ;;  %v3675_v2 = vpack.c.bf16 %v3674_v61, %v3674_v61  ;;  %v4133_v11 = vsel %vm569_vm2, %v4128_v9, 0 }
0x1982   :  { %9305 = vmatpush3.bf16.msra.mxu0 %v3682_v59  ;;  %9306 = vmatprep.mubr.msk.bf16.mxu0 %vm10274_vm1, %v10273_v63 }
0x1983   :  { %9318 = vmatprep.subr.bf16.mxu0 %v10273_v63 }
0x1989   :  { %9307 = vmatmul.mubr.msk.bf16.vlgmr.msra.gmra.mxu0 %vm569_vm2, %v3675_v2 }
0x198a   :  { %9319 = vmatpush3.bf16.xpose.msra.mxu0 %v3803_v38  ;;  %9320 = vmatprep.mubr.msk.bf16.mxu0 %vm10274_vm1, %v10273_v63 }
0x198b   :  { %9330 = vmatprep.subr.bf16.mxu0 %v10273_v63 }
0x1991   :  { %9321 = vmatmul.mubr.msk.bf16.vlgmr.msra.gmra.mxu0 %vm569_vm2, %v11126_v33 }
0x1992   :  { %9331 = vmatpush3.bf16.xpose.msra.mxu0 %v3913_v6  ;;  %9332 = vmatprep.mubr.msk.bf16.mxu0 %vm10274_vm1, %v10273_v63 }
0x1993   :  { %9342 = vmatprep.subr.bf16.mxu0 %v10273_v63 }
0x1999   :  { %9333 = vmatmul.mubr.msk.bf16.vlgmr.msra.gmra.mxu0 %vm569_vm2, %v3906_v57 }
0x199a   :  { %9343 = vmatpush3.bf16.xpose.msra.mxu0 %v4023_v7  ;;  %9344 = vmatprep.mubr.msk.bf16.mxu0 %vm10274_vm1, %v10273_v63 }
0x199b   :  { %9354 = vmatprep.subr.bf16.mxu0 %v10273_v63 }
0x19a1   :  { %9345 = vmatmul.mubr.msk.bf16.vlgmr.msra.gmra.mxu0 %vm569_vm2, %v4016_v10 }
0x19a2   :  { %9355 = vmatpush3.bf16.xpose.msra.mxu0 %v4133_v11  ;;  %9356 = vmatprep.mubr.msk.bf16.mxu0 %vm10274_vm1, %v10273_v63 }
0x19a3   :  { %9366 = vmatprep.subr.bf16.mxu0 %v10273_v63 }
0x19a9   :  { %9357 = vmatmul.mubr.msk.bf16.vlgmr.msra.gmra.mxu0 %vm569_vm2, %v4126_v53 }
0x19aa   :  { %9370 = vmatprep.mubr.msk.bf16.mxu0 %vm10274_vm1, %v10273_v63 }
0x1a2f   :  { %v11183_v12 = vpop.f32.mrf.mxu0 }
0x1a31   :  { %v9272_v14 = vpop.f32.mrf.mxu0 }
0x1a32   :  { %v9912_v14 = vld [vmem:[%s12013_s13 + $0x8] sm:$0xff]  }
0x1a33   :  { %v3385_v15 = vpop.f32.mrf.mxu0  ;;  %9311 = vmatpush3.bf16.msra.mxu1 %v9912_v14  ;;  %9367 = vmatpush3.bf16.msra.mxu0 %v9912_v14 }
0x1a34   :  { %9312 = vmatprep.subr.bf16.mxu1 %v10273_v63  ;;  %9368 = vmatprep.subr.bf16.mxu0 %v10273_v63  ;;  %v9913_v15 = vld [vmem:[%s12013_s13] sm:$0xff]  }
0x1a35   :  { %v9273_v27 = vpop.f32.mrf.mxu0 }
0x1a37   :  { %9313 = vmatpush3.bf16.msra.mxu1 %v9913_v15  ;;  %9369 = vmatpush3.bf16.msra.mxu0 %v9913_v15 }
0x1a38   :  { %9324 = vmatprep.subr.bf16.mxu1 %v10273_v63  ;;  %9382 = vmatprep.subr.bf16.mxu0 %v10273_v63 }
0x1a39   :  { %v3494_v0 = vpop.f32.mrf.mxu0 }
0x1a3b   :  { %v9284_v22 = vpop.f32.mrf.mxu0 }
0x1a3d   :  { %v3497_v17 = vpop.f32.mrf.mxu0 }
0x1a3e   :  { %v11221_v17 = vadd.f32 %v11051_v19, %v10979_v8 }
0x1a3f   :  { %v9285_v5 = vpop.f32.mrf.mxu0 }
0x1a41   :  { %v3606_v20 = vpop.f32.mrf.mxu0 }
0x1a43   :  { %v9296_v18 = vpop.f32.mrf.mxu0 }
0x1a45   :  { %v3609_v25 = vpop.f32.mrf.mxu0 }
0x1a47   :  { %v9297_v26 = vpop.f32.mrf.mxu0 }
0x1a49   :  { %v11185_v58 = vpop.f32.mrf.mxu0 }
0x1a4b   :  { %v9308_v60 = vpop.f32.mrf.mxu0 }
0x1a4d   :  { %v3721_v24 = vpop.f32.mrf.mxu0 }
0x1a4f   :  { %v9309_v29 = vpop.f32.mrf.mxu0 }
0x1a51   :  { %v3839_v30 = vpop.f32.mrf.mxu0 }
0x1a52   :  { %v3840_v32 = vadd.f32 %v3839_v30, %v11093_v37 }
0x1a53   :  { %v9322_v23 = vpop.f32.mrf.mxu0 }
0x1a54   :  { %v3845_v34 = vsel %vm569_vm2, %v3840_v32, -inf }
0x1a55   :  { %3846 = vmax.xlane.f32.xlu0 %v3845_v34  ;;  %v3842_v21 = vpop.f32.mrf.mxu0 }
0x1a57   :  { %v9323_v35 = vpop.f32.mrf.mxu0 }
0x1a59   :  { %v3949_v13 = vpop.f32.mrf.mxu0 }
0x1a5a   :  { %v3950_v39 = vadd.f32 %v11097_v16, %v3949_v13 }
0x1a5b   :  { %v9334_v40 = vpop.f32.mrf.mxu0 }
0x1a5c   :  { %v3955_v41 = vsel %vm569_vm2, %v3950_v39, -inf }
0x1a5d   :  { %3956 = vmax.xlane.f32.xlu1 %v3955_v41  ;;  %v3952_v43 = vpop.f32.mrf.mxu0 }
0x1a5f   :  { %v9335_v44 = vpop.f32.mrf.mxu0 }
0x1a61   :  { %v4059_v28 = vpop.f32.mrf.mxu0 }
0x1a62   :  { %v4060_v46 = vadd.f32 %v11103_v51, %v4059_v28 }
0x1a63   :  { %v9346_v47 = vpop.f32.mrf.mxu0 }
0x1a64   :  { %v4065_v37 = vsel %vm569_vm2, %v4060_v46, -inf }
0x1a65   :  { %4066 = vmax.xlane.f32.xlu0 %v4065_v37  ;;  %v4062_v48 = vpop.f32.mrf.mxu0 }
0x1a67   :  { %v9347_v49 = vpop.f32.mrf.mxu0 }
0x1a69   :  { %v4169_v50 = vpop.f32.mrf.mxu0 }
0x1a6a   :  { %v4170_v36 = vadd.f32 %v11108_v3, %v4169_v50 }
0x1a6b   :  { %v9358_v54 = vpop.f32.mrf.mxu0 }
0x1a6c   :  { %v4175_v16 = vsel %vm569_vm2, %v4170_v36, -inf }
0x1a6d   :  { %4176 = vmax.xlane.f32.xlu0 %v4175_v16  ;;  %v4172_v56 = vpop.f32.mrf.mxu0 }
0x1a6e   :  { %3725 = vrot.lane.b32.xlu1 %v3494_v0, %s10287_s28 }
0x1a6f   :  { %v9359_v59 = vpop.f32.mrf.mxu0 }
0x1a83   :  { %3729 = vrot.lane.b32.xlu0 %v3606_v20, %s10286_s26  ;;  %v3040_v20 = vmul.f32 %v11221_v17, %v11221_v17 }
0x1a85   :  { %v3044_v25 = vsel %vm483_vm0, %v3040_v20, 0.0 }
0x1ade   :  { %v3847_v51 = vpop.xlane.xlu0 %3846 }
0x1adf   :  { %v3848_v61 = vsub.f32 %v3840_v32, %v3847_v51 }
0x1ae1   :  { %v3849_v1 = vmul.f32 1.442695, %v3848_v61 }
0x1ae3   :  { %10044 = vpow2.f32 %v3849_v1  ;;  %v8434_v1 = vld [vmem:[%s12014_s17] ss:$0 sm:$0xff] }
0x1ae6   :  { %v3957_v2 = vpop.xlane.xlu1 %3956 }
0x1ae7   :  { %v3958_v38 = vsub.f32 %v3950_v39, %v3957_v2 }
0x1ae9   :  { %v3959_v4 = vmul.f32 1.442695, %v3958_v38 }
0x1aea   :  { %v3726_v60 = vpop.permute.xlu1 %3725 }
0x1aeb   :  { %10046 = vpow2.f32 %v3959_v4 }
0x1aee   :  { %v4067_v3 = vpop.xlane.xlu0 %4066 }
0x1aef   :  { %v4068_v6 = vsub.f32 %v4060_v46, %v4067_v3 }
0x1af0   :  { %v10045_v45 = vpop.eup %10044 }
0x1af1   :  { %v4069_v57 = vmul.f32 1.442695, %v4068_v6  ;;  %v3851_v7 = vsel %vm569_vm2, %v10045_v45, 0.0 }
0x1af2   :  { %3852 = vadd.xlane.f32.xlu0 %v3851_v7 }
0x1af3   :  { %10048 = vpow2.f32 %v4069_v57 }
0x1af6   :  { %v4177_v27 = vpop.xlane.xlu0 %4176 }
0x1af7   :  { %v4178_v0 = vsub.f32 %v4170_v36, %v4177_v27 }
0x1af8   :  { %v10047_v9 = vpop.eup %10046 }
0x1af9   :  { %v3961_v10 = vsel %vm569_vm2, %v10047_v9, 0.0  ;;  %v4179_v22 = vmul.f32 1.442695, %v4178_v0 }
0x1afa   :  { %3962 = vadd.xlane.f32.xlu1 %v3961_v10  ;;  %v3730_v26 = vpop.permute.xlu0 %3729 }
0x1afb   :  { %10050 = vpow2.f32 %v4179_v22 }
0x1b00   :  { %v11199_v11 = vpop.eup %10048 }
0x1b01   :  { %v4071_v53 = vsel %vm569_vm2, %v11199_v11, 0.0 }
0x1b02   :  { %4072 = vadd.xlane.f32.xlu0 %v4071_v53 }
0x1b08   :  { %v10051_v5 = vpop.eup %10050 }
0x1b09   :  { %v4181_v18 = vsel %vm569_vm2, %v10051_v5, 0.0 }
0x1b0b   :  { %3733 = vrot.lane.b32.xlu1 %v11185_v58, %s10288_s14 }
0x1b18   :  { %3857 = vrot.lane.b32.xlu0 %v11126_v33, %s10282_s16 }
0x1b1c   :  { %3967 = vrot.lane.b32.xlu0 %v11126_v33, %s10284_s22 }
0x1b20   :  { %4077 = vrot.lane.b32.xlu0 %v11126_v33, %s10283_s18 }
0x1b24   :  { %4187 = vrot.lane.b32.xlu0 %v11126_v33, %s10285_s23  ;;  %v3736_v33 = vsel %vm569_vm2, %v11183_v12, %v3726_v60  ;;  %v3036_v60 = vadd.f32 %v11046_v52, %v10967_v31 }
0x1b25   :  { %v3737_v8 = vsel %vm1026_vm4, %v3736_v33, %v3730_v26 }
0x1b2f   :  { %4182 = vadd.xlane.f32.xlu1 %v4181_v18 }
0x1b33   :  { %3045 = vadd.xlane.f32.xlu1 %v3044_v25 }
0x1b7b   :  { %v3853_v58 = vpop.xlane.xlu0 %3852 }
0x1b7c   :  { %10052 = vrcp.f32 %v3853_v58 }
0x1b83   :  { %v3963_v24 = vpop.xlane.xlu1 %3962 }
0x1b84   :  { %10054 = vrcp.f32 %v3963_v24  ;;  %v3039_v24 = vmul.f32 %v3036_v60, %v3036_v60 }
0x1b86   :  { %v3041_v33 = vsel %vm483_vm0, %v3039_v24, 0.0  ;;  %v8481_v24 = vld [vmem:[%s12018_s3] ss:$0 sm:$0xff] }
0x1b87   :  { %v3734_v19 = vpop.permute.xlu1 %3733 }
0x1b88   :  { %v3738_v29 = vsel %vm1028_vm5, %v3737_v8, %v3734_v19 }
0x1b89   :  { %v3739_v30 = vpack.c.bf16 %v3738_v29, %v3738_v29  ;;  %v10053_v32 = vpop.eup %10052 }
0x1b8a   :  { %v3855_v34 = vmul.f32 %v10053_v32, %v10045_v45 }
0x1b8b   :  { %9315 = vmatmul.mubr.msk.bf16.vlgmr.msra.gmra.mxu1 %vm483_vm0, %v3739_v30  ;;  %v4073_v23 = vpop.xlane.xlu0 %4072 }
0x1b8c   :  { %9326 = vmatprep.mubr.msk.bf16.mxu1 %vm10274_vm1, %v10273_v63  ;;  %10056 = vrcp.f32 %v4073_v23  ;;  %v3856_v12 = vpack.c.bf16 %v3855_v34, %v3855_v34  ;;  %v9914_v34 = vld [vmem:[%s12015_s21 + $0x8] sm:$0xff]  }
0x1b8f   :  { %v3858_v21 = vpop.permute.xlu0 %3857 }
0x1b90   :  { %v3863_v35 = vsel %vm633_vm3, %v3858_v21, 0 }
0x1b91   :  { %9325 = vmatpush3.bf16.msra.mxu1 %v3863_v35  ;;  %v10055_v13 = vpop.eup %10054  ;;  %v9915_v35 = vld [vmem:[%s12015_s21] sm:$0xff]  }
0x1b92   :  { %9336 = vmatprep.subr.bf16.mxu1 %v10273_v63  ;;  %v3965_v41 = vmul.f32 %v10055_v13, %v10047_v9 }
0x1b93   :  { %v3968_v39 = vpop.permute.xlu0 %3967 }
0x1b94   :  { %v3973_v40 = vsel %vm633_vm3, %v3968_v39, 0  ;;  %9327 = vmatmul.mubr.msk.bf16.vlgmr.msra.gmra.mxu1 %vm569_vm2, %v3856_v12  ;;  %v3966_v44 = vpack.c.bf16 %v3965_v41, %v3965_v41 }
0x1b95   :  { %9337 = vmatpush3.bf16.msra.mxu1 %v3973_v40  ;;  %9338 = vmatprep.mubr.msk.bf16.mxu1 %vm10274_vm1, %v10273_v63 }
0x1b96   :  { %9348 = vmatprep.subr.bf16.mxu1 %v10273_v63 }
0x1b97   :  { %v4078_v43 = vpop.permute.xlu0 %4077 }
0x1b98   :  { %v4083_v46 = vsel %vm633_vm3, %v4078_v43, 0 }
0x1b99   :  { %v10057_v28 = vpop.eup %10056 }
0x1b9a   :  { %v4075_v47 = vmul.f32 %v10057_v28, %v11199_v11 }
0x1b9b   :  { %v4188_v37 = vpop.permute.xlu0 %4187 }
0x1b9c   :  { %9339 = vmatmul.mubr.msk.bf16.vlgmr.msra.gmra.mxu1 %vm569_vm2, %v3966_v44  ;;  %v4076_v48 = vpack.c.bf16 %v4075_v47, %v4075_v47  ;;  %v4193_v49 = vsel %vm633_vm3, %v4188_v37, 0 }
0x1b9d   :  { %9349 = vmatpush3.bf16.msra.mxu1 %v4083_v46  ;;  %9350 = vmatprep.mubr.msk.bf16.mxu1 %vm10274_vm1, %v10273_v63 }
0x1b9e   :  { %9360 = vmatprep.subr.bf16.mxu1 %v10273_v63 }
0x1ba4   :  { %9351 = vmatmul.mubr.msk.bf16.vlgmr.msra.gmra.mxu1 %vm569_vm2, %v4076_v48 }
0x1ba5   :  { %9361 = vmatpush3.bf16.msra.mxu1 %v4193_v49  ;;  %9362 = vmatprep.mubr.msk.bf16.mxu1 %vm10274_vm1, %v10273_v63  ;;  %v9916_v49 = vld [vmem:[%s12016_s25 + $0x8] sm:$0xff]  }
0x1ba6   :  { %9374 = vmatprep.subr.bf16.mxu1 %v10273_v63 }
0x1bb8   :  { %v4183_v50 = vpop.xlane.xlu1 %4182 }
0x1bb9   :  { %10058 = vrcp.f32 %v4183_v50  ;;  %v9917_v50 = vld [vmem:[%s12016_s25] sm:$0xff]  }
0x1bbc   :  { %v3046_v36 = vpop.xlane.xlu1 %3045 }
0x1bbd   :  { %v3048_v54 = vmul.f32 0.03125, %v3046_v36 }
0x1bbf   :  { %v3050_v16 = vadd.f32 1e-06, %v3048_v54 }
0x1bc1   :  { %10060 = vrsqrt.f32 %v3050_v16 }
0x1bc6   :  { %v10059_v56 = vpop.eup %10058 }
0x1bc7   :  { %v4185_v59 = vmul.f32 %v10059_v56, %v10051_v5 }
0x1bc9   :  { %v4186_v51 = vpack.c.bf16 %v4185_v59, %v4185_v59 }
0x1bcb   :  { %9363 = vmatmul.mubr.msk.bf16.vlgmr.msra.gmra.mxu1 %vm569_vm2, %v4186_v51 }
0x1bcc   :  { %9378 = vmatprep.mubr.msk.bf16.mxu1 %vm10274_vm1, %v10273_v63  ;;  %9375 = vmatpush3.bf16.msra.mxu1 %v9916_v49 }
0x1bcd   :  { %9376 = vmatprep.subr.bf16.mxu1 %v10273_v63 }
0x1bce   :  { %v10061_v61 = vpop.eup %10060 }
0x1bcf   :  { %v3054_v2 = vmul.f32 %v10061_v61, %v11221_v17 }
0x1bd0   :  { %9377 = vmatpush3.bf16.msra.mxu1 %v9917_v50 }
0x1bd1   :  { %v3062_v38 = vmul.f32 %v8434_v1, %v3054_v2  ;;  %9390 = vmatprep.subr.bf16.mxu1 %v10273_v63 }
0x1bd3   :  { %3064 = vst.msk [vmem:[#allocation2 + $0x8] sm:$0xff] %vm483_vm0, %v3062_v38 }
0x1c4b   :  { %v3789_v4 = vpop.f32.mrf.mxu1 }
0x1c4c   :  { %v11259_v3 = vadd.f32 %v3789_v4, %v11029_v55 }
0x1c4d   :  { %v9316_v6 = vpop.f32.mrf.mxu1 }
0x1c4e   :  { %v4309_v45 = vmul.f32 %v11259_v3, %v11259_v3 }
0x1c4f   :  { %v3792_v57 = vpop.f32.mrf.mxu1 }
0x1c50   :  { %v4311_v7 = vsel %vm483_vm0, %v4309_v45, 0.0  ;;  %v8474_v57 = vld [vmem:[%s12017_s29] ss:$0 sm:$0xff] }
0x1c51   :  { %4312 = vadd.xlane.f32.xlu1 %v4311_v7  ;;  %v9317_v9 = vpop.f32.mrf.mxu1 }
0x1c54   :  { %v3899_v10 = vpop.f32.mrf.mxu1 }
0x1c56   :  { %v9328_v11 = vpop.f32.mrf.mxu1 }
0x1c58   :  { %v3902_v53 = vpop.f32.mrf.mxu1 }
0x1c5a   :  { %v9329_v14 = vpop.f32.mrf.mxu1 }
0x1c5c   :  { %v4009_v15 = vpop.f32.mrf.mxu1 }
0x1c5d   :  { %4236 = vrot.lane.b32.xlu0 %v4009_v15, %s10287_s28 }
0x1c5e   :  { %v9340_v27 = vpop.f32.mrf.mxu1 }
0x1c60   :  { %v4012_v0 = vpop.f32.mrf.mxu1 }
0x1c62   :  { %v9341_v55 = vpop.f32.mrf.mxu1 }
0x1c64   :  { %v4119_v22 = vpop.f32.mrf.mxu1 }
0x1c65   :  { %4240 = vrot.lane.b32.xlu0 %v4119_v22, %s10286_s26 }
0x1c66   :  { %v9352_v17 = vpop.f32.mrf.mxu1 }
0x1c68   :  { %v4122_v5 = vpop.f32.mrf.mxu1 }
0x1c6a   :  { %v9353_v20 = vpop.f32.mrf.mxu1 }
0x1c8b   :  { %v4229_v18 = vpop.f32.mrf.mxu1 }
0x1c8c   :  { %4244 = vrot.lane.b32.xlu0 %v4229_v18, %s10288_s14 }
0x1c8d   :  { %v9364_v25 = vpop.f32.mrf.mxu1 }
0x1c8f   :  { %v4232_v26 = vpop.f32.mrf.mxu1 }
0x1c91   :  { %v9365_v58 = vpop.f32.mrf.mxu1 }
0x1cab   :  { %3042 = vadd.xlane.f32.xlu0 %v3041_v33 }
0x1ccf   :  { %v4237_v8 = vpop.permute.xlu0 %4236 }
0x1cd0   :  { %v4247_v29 = vsel %vm569_vm2, %v3899_v10, %v4237_v8 }
0x1cd7   :  { %v4241_v19 = vpop.permute.xlu0 %4240 }
0x1cd8   :  { %v4248_v30 = vsel %vm1026_vm4, %v4247_v29, %v4241_v19 }
0x1cda   :  { %v4313_v59 = vpop.xlane.xlu1 %4312 }
0x1cdb   :  { %v4317_v51 = vmul.f32 0.03125, %v4313_v59 }
0x1cdd   :  { %v4319_v61 = vadd.f32 1e-06, %v4317_v51 }
0x1cfe   :  { %v4245_v32 = vpop.permute.xlu0 %4244 }
0x1cff   :  { %v4249_v23 = vsel %vm1028_vm5, %v4248_v30, %v4245_v32 }
0x1d00   :  { %v4250_v21 = vpack.c.bf16 %v4249_v23, %v4249_v23 }
0x1d02   :  { %9371 = vmatmul.mubr.msk.bf16.vlgmr.msra.gmra.mxu0 %vm483_vm0, %v4250_v21 }
0x1d03   :  { %9383 = vmatpush3.bf16.msra.mxu0 %v9914_v34  ;;  %9386 = vmatprep.mubr.msk.bf16.mxu0 %vm10274_vm1, %v10273_v63 }
0x1d04   :  { %9384 = vmatprep.subr.bf16.mxu0 %v10273_v63 }
0x1d07   :  { %9385 = vmatpush3.bf16.msra.mxu0 %v9915_v35 }
0x1d08   :  { %9396 = vmatprep.subr.bf16.mxu0 %v10273_v63 }
0x1d34   :  { %v3043_v31 = vpop.xlane.xlu0 %3042 }
0x1d35   :  { %v3047_v52 = vmul.f32 0.03125, %v3043_v31 }
0x1d37   :  { %v3049_v12 = vadd.f32 1e-06, %v3047_v52 }
0x1d39   :  { %10062 = vrsqrt.f32 %v3049_v12 }
0x1d3a   :  { %10064 = vrsqrt.f32 %v4319_v61 }
0x1d46   :  { %v10063_v13 = vpop.eup %10062 }
0x1d47   :  { %v3053_v39 = vmul.f32 %v10063_v13, %v3036_v60  ;;  %v10065_v4 = vpop.eup %10064 }
0x1d48   :  { %v4323_v6 = vmul.f32 %v10065_v4, %v11259_v3 }
0x1d49   :  { %v3061_v40 = vmul.f32 %v8434_v1, %v3053_v39 }
0x1d4a   :  { %v4331_v9 = vmul.f32 %v8474_v57, %v4323_v6 }
0x1d4b   :  { %3063 = vst.msk [vmem:[#allocation2] sm:$0xff] %vm483_vm0, %v3061_v40  ;;  %v11281_v41 = vpack.c.bf16 %v3062_v38, %v3061_v40 }
0x1d4d   :  { %9387 = vmatmul.mubr.msk.bf16.vlgmr.msra.gmra.mxu0 %vm483_vm0, %v11281_v41 }
0x1d4e   :  { %9398 = vmatprep.mubr.msk.bf16.mxu0 %vm10274_vm1, %v10273_v63 }
0x1dc2   :  { %v4288_v43 = vpop.f32.mrf.mxu0 }
0x1dc3   :  { %v11288_v44 = vadd.f32 %v4288_v43, %v11034_v62 }
0x1dc4   :  { %v9372_v28 = vpop.f32.mrf.mxu0 }
0x1dc5   :  { %v4310_v46 = vmul.f32 %v11288_v44, %v11288_v44 }
0x1dc6   :  { %v4291_v47 = vpop.f32.mrf.mxu0 }
0x1dc7   :  { %v4314_v37 = vsel %vm483_vm0, %v4310_v46, 0.0 }
0x1dc8   :  { %4315 = vadd.xlane.f32.xlu1 %v4314_v37  ;;  %v9373_v48 = vpop.f32.mrf.mxu0 }
0x1e0d   :  { %v4440_v36 = vpop.f32.mrf.mxu0 }
0x1e0e   :  { %v11297_v62 = vpack.c.bf16 %v4440_v36, %v4440_v36 }
0x1e0f   :  { %v9388_v54 = vpop.f32.mrf.mxu0 }
0x1e10   :  { %4566 = vrot.lane.b32.xlu1 %v11297_v62, %s10275_s0  ;;  %v4460_v53 = vsel %vm569_vm2, %v11297_v62, 0 }
0x1e11   :  { %v11301_v16 = vpop.f32.mrf.mxu0 }
0x1e13   :  { %v9389_v56 = vpop.f32.mrf.mxu0 }
0x1e14   :  { %4676 = vrot.lane.b32.xlu1 %v11297_v62, %s10279_s10 }
0x1e51   :  { %v4316_v1 = vpop.xlane.xlu1 %4315 }
0x1e52   :  { %v4318_v2 = vmul.f32 0.03125, %v4316_v1 }
0x1e54   :  { %v4320_v38 = vadd.f32 1e-06, %v4318_v2 }
0x1e56   :  { %10066 = vrsqrt.f32 %v4320_v38 }
0x1e63   :  { %v10067_v45 = vpop.eup %10066 }
0x1e64   :  { %v4324_v7 = vmul.f32 %v10067_v45, %v11288_v44 }
0x1e66   :  { %v4332_v10 = vmul.f32 %v8474_v57, %v4324_v7 }
0x1e68   :  { %v4333_v11 = vpack.c.bf16 %v4332_v10, %v4331_v9 }
0x1e6a   :  { %9379 = vmatmul.mubr.msk.bf16.vlgmr.msra.gmra.mxu1 %vm483_vm0, %v4333_v11  ;;  %v11355_v11 = vpack.c.bf16 %v11301_v16, %v11301_v16 }
0x1e6b   :  { %9391 = vmatpush3.bf16.xpose.msra.mxu1 %v4460_v53  ;;  %9392 = vmatprep.mubr.msk.bf16.mxu1 %vm10274_vm1, %v10273_v63 }
0x1e6c   :  { %9402 = vmatprep.subr.bf16.mxu1 %v10273_v63 }
0x1e82   :  { %v4567_v15 = vpop.permute.xlu1 %4566 }
0x1e83   :  { %v4572_v55 = vsel %vm569_vm2, %v4567_v15, 0 }
0x1e86   :  { %v4677_v5 = vpop.permute.xlu1 %4676 }
0x1e87   :  { %v4682_v25 = vsel %vm569_vm2, %v4677_v5, 0 }
0x1f2a   :  { %v4383_v14 = vpop.f32.mrf.mxu1 }
0x1f2b   :  { %v4448_v27 = vpack.c.bf16 %v4383_v14, %v4383_v14 }
0x1f2c   :  { %v9380_v0 = vpop.f32.mrf.mxu1 }
0x1f2d   :  { %4564 = vrot.lane.b32.xlu0 %v4448_v27, %s10275_s0  ;;  %4674 = vrot.lane.b32.xlu1 %v4448_v27, %s10279_s10 }
0x1f2e   :  { %9393 = vmatmul.mubr.msk.bf16.vlgmr.msra.gmra.mxu1 %vm569_vm2, %v4448_v27  ;;  %v11318_v22 = vpop.f32.mrf.mxu1 }
0x1f2f   :  { %9403 = vmatpush3.bf16.xpose.msra.mxu1 %v4572_v55  ;;  %9404 = vmatprep.mubr.msk.bf16.mxu1 %vm10274_vm1, %v10273_v63  ;;  %v4967_v16 = vpack.c.bf16 %v11318_v22, %v11318_v22 }
0x1f30   :  { %v9381_v17 = vpop.f32.mrf.mxu1  ;;  %9414 = vmatprep.subr.bf16.mxu1 %v10273_v63 }
0x1f31   :  { %4786 = vrot.lane.b32.xlu1 %v11297_v62, %s10281_s15 }
0x1f35   :  { %4784 = vrot.lane.b32.xlu1 %v4448_v27, %s10281_s15 }
0x1f9f   :  { %v4565_v20 = vpop.permute.xlu0 %4564  ;;  %v4675_v18 = vpop.permute.xlu1 %4674 }
0x1fa0   :  { %9405 = vmatmul.mubr.msk.bf16.vlgmr.msra.gmra.mxu1 %vm569_vm2, %v4565_v20 }
0x1fa1   :  { %9415 = vmatpush3.bf16.xpose.msra.mxu1 %v4682_v25  ;;  %9416 = vmatprep.mubr.msk.bf16.mxu1 %vm10274_vm1, %v10273_v63 }
0x1fa2   :  { %9426 = vmatprep.subr.bf16.mxu1 %v10273_v63 }
0x1fa3   :  { %v4787_v26 = vpop.permute.xlu1 %4786 }
0x1fa4   :  { %v4792_v58 = vsel %vm569_vm2, %v4787_v26, 0 }
0x1fa7   :  { %v4785_v60 = vpop.permute.xlu1 %4784 }
0x1fa8   :  { %9417 = vmatmul.mubr.msk.bf16.vlgmr.msra.gmra.mxu1 %vm569_vm2, %v4675_v18 }
0x1fa9   :  { %9427 = vmatpush3.bf16.xpose.msra.mxu1 %v4792_v58  ;;  %9428 = vmatprep.mubr.msk.bf16.mxu1 %vm10274_vm1, %v10273_v63 }
0x1faa   :  { %9438 = vmatprep.subr.bf16.mxu1 %v10273_v63 }
0x1fb0   :  { %9429 = vmatmul.mubr.msk.bf16.vlgmr.msra.gmra.mxu1 %vm569_vm2, %v4785_v60 }
0x1fb1   :  { %9442 = vmatprep.mubr.msk.bf16.mxu1 %vm10274_vm1, %v10273_v63 }
0x1fee   :  { %v4496_v33 = vpop.f32.mrf.mxu1 }
0x1fef   :  { %v4497_v8 = vadd.f32 %v8481_v24, %v4496_v33 }
0x1ff0   :  { %v9394_v19 = vpop.f32.mrf.mxu1 }
0x1ff1   :  { %v4502_v29 = vsel %vm569_vm2, %v4497_v8, -inf }
0x1ff2   :  { %4503 = vmax.xlane.f32.xlu1 %v4502_v29  ;;  %v4499_v30 = vpop.f32.mrf.mxu1 }
0x1ff4   :  { %v9395_v32 = vpop.f32.mrf.mxu1 }
0x2060   :  { %v4608_v23 = vpop.f32.mrf.mxu1 }
0x2061   :  { %v4609_v34 = vadd.f32 %v8481_v24, %v4608_v23 }
0x2062   :  { %v9406_v21 = vpop.f32.mrf.mxu1 }
0x2063   :  { %v4614_v35 = vsel %vm569_vm2, %v4609_v34, -inf }
0x2064   :  { %4615 = vmax.xlane.f32.xlu0 %v4614_v35  ;;  %v4611_v31 = vpop.f32.mrf.mxu1 }
0x2066   :  { %v9407_v52 = vpop.f32.mrf.mxu1 }
0x2067   :  { %v4979_v52 = vsel %vm569_vm2, %v11355_v11, 0 }
0x2068   :  { %v4718_v12 = vpop.f32.mrf.mxu1 }
0x2069   :  { %v4719_v13 = vadd.f32 %v8481_v24, %v4718_v12 }
0x206a   :  { %v9418_v39 = vpop.f32.mrf.mxu1 }
0x206b   :  { %v4724_v40 = vsel %vm569_vm2, %v4719_v13, -inf }
0x206c   :  { %4725 = vmax.xlane.f32.xlu0 %v4724_v40  ;;  %v4721_v43 = vpop.f32.mrf.mxu1 }
0x206e   :  { %v9419_v28 = vpop.f32.mrf.mxu1 }
0x2070   :  { %v4828_v46 = vpop.f32.mrf.mxu1 }
0x2071   :  { %v4829_v47 = vadd.f32 %v8481_v24, %v4828_v46 }
0x2072   :  { %v9430_v37 = vpop.f32.mrf.mxu1 }
0x2073   :  { %v4834_v48 = vsel %vm569_vm2, %v4829_v47, -inf }
0x2074   :  { %4835 = vmax.xlane.f32.xlu1 %v4834_v48  ;;  %v4831_v49 = vpop.f32.mrf.mxu1 }
0x2076   :  { %v9431_v50 = vpop.f32.mrf.mxu1 }
0x207b   :  { %v4504_v36 = vpop.xlane.xlu1 %4503 }
0x207c   :  { %v4505_v54 = vsub.f32 %v4497_v8, %v4504_v36 }
0x207e   :  { %v4506_v56 = vmul.f32 1.442695, %v4505_v54 }
0x2080   :  { %10068 = vpow2.f32 %v4506_v56 }
0x208d   :  { %v10069_v59 = vpop.eup %10068 }
0x208e   :  { %v4508_v51 = vsel %vm569_vm2, %v10069_v59, 0.0 }
0x208f   :  { %4509 = vadd.xlane.f32.xlu0 %v4508_v51 }
0x20ed   :  { %v4616_v61 = vpop.xlane.xlu0 %4615 }
0x20ee   :  { %v4617_v1 = vsub.f32 %v4609_v34, %v4616_v61 }
0x20f0   :  { %v4618_v2 = vmul.f32 1.442695, %v4617_v1 }
0x20f2   :  { %10070 = vpow2.f32 %v4618_v2 }
0x20f5   :  { %v4726_v38 = vpop.xlane.xlu0 %4725 }
0x20f6   :  { %v4727_v4 = vsub.f32 %v4719_v13, %v4726_v38 }
0x20f8   :  { %v4728_v6 = vmul.f32 1.442695, %v4727_v4 }
0x20fa   :  { %10072 = vpow2.f32 %v4728_v6 }
0x20fd   :  { %v4836_v10 = vpop.xlane.xlu1 %4835 }
0x20fe   :  { %v4837_v53 = vsub.f32 %v4829_v47, %v4836_v10 }
0x20ff   :  { %v10071_v45 = vpop.eup %10070 }
0x2100   :  { %v4620_v57 = vsel %vm569_vm2, %v10071_v45, 0.0  ;;  %v4838_v14 = vmul.f32 1.442695, %v4837_v53 }
0x2101   :  { %4621 = vadd.xlane.f32.xlu1 %v4620_v57 }
0x2102   :  { %10074 = vpow2.f32 %v4838_v14 }
0x2107   :  { %v10073_v7 = vpop.eup %10072 }
0x2108   :  { %v4730_v9 = vsel %vm569_vm2, %v10073_v7, 0.0 }
0x2109   :  { %4731 = vadd.xlane.f32.xlu0 %v4730_v9 }
0x210f   :  { %v10075_v15 = vpop.eup %10074 }
0x2110   :  { %v4840_v27 = vsel %vm569_vm2, %v10075_v15, 0.0 }
0x2112   :  { %4626 = vrot.lane.b32.xlu1 %v11297_v62, %s10277_s9 }
0x2116   :  { %4736 = vrot.lane.b32.xlu1 %v11297_v62, %s10278_s7 }
0x2118   :  { %v4510_v0 = vpop.xlane.xlu0 %4509 }
0x2119   :  { %10076 = vrcp.f32 %v4510_v0 }
0x211f   :  { %4515 = vrot.lane.b32.xlu0 %v11297_v62, %s10276_s5 }
0x2123   :  { %5085 = vrot.lane.b32.xlu0 %v11355_v11, %s10275_s0 }
0x2126   :  { %v10077_v17 = vpop.eup %10076 }
0x2127   :  { %5195 = vrot.lane.b32.xlu0 %v11355_v11, %s10279_s10  ;;  %v4512_v20 = vmul.f32 %v10077_v17, %v10069_v59 }
0x2129   :  { %v4513_v22 = vpack.c.bf16 %v4512_v20, %v4512_v20 }
0x212b   :  { %5305 = vrot.lane.b32.xlu0 %v11355_v11, %s10281_s15 }
0x213a   :  { %4841 = vadd.xlane.f32.xlu1 %v4840_v27 }
0x214b   :  { %4846 = vrot.lane.b32.xlu1 %v11297_v62, %s10280_s11 }
0x214f   :  { %5083 = vrot.lane.b32.xlu1 %v4967_v16, %s10275_s0 }
0x2153   :  { %5193 = vrot.lane.b32.xlu1 %v4967_v16, %s10279_s10 }
0x2157   :  { %5303 = vrot.lane.b32.xlu1 %v4967_v16, %s10281_s15 }
0x218a   :  { %v4622_v55 = vpop.xlane.xlu1 %4621 }
0x218b   :  { %10078 = vrcp.f32 %v4622_v55 }
0x218e   :  { %v4627_v25 = vpop.permute.xlu1 %4626 }
0x218f   :  { %v4632_v58 = vsel %vm633_vm3, %v4627_v25, 0 }
0x2192   :  { %v4732_v5 = vpop.xlane.xlu0 %4731  ;;  %v4737_v24 = vpop.permute.xlu1 %4736 }
0x2193   :  { %10080 = vrcp.f32 %v4732_v5  ;;  %v4742_v19 = vsel %vm633_vm3, %v4737_v24, 0 }
0x2196   :  { %v4516_v18 = vpop.permute.xlu0 %4515 }
0x2197   :  { %v4521_v62 = vsel %vm633_vm3, %v4516_v18, 0 }
0x2198   :  { %9397 = vmatpush3.bf16.msra.mxu0 %v4521_v62  ;;  %v10079_v26 = vpop.eup %10078 }
0x2199   :  { %9408 = vmatprep.subr.bf16.mxu0 %v10273_v63  ;;  %v4624_v60 = vmul.f32 %v10079_v26, %v10071_v45 }
0x219a   :  { %v5086_v12 = vpop.permute.xlu0 %5085 }
0x219b   :  { %9399 = vmatmul.mubr.msk.bf16.vlgmr.msra.gmra.mxu0 %vm569_vm2, %v4513_v22  ;;  %v4625_v33 = vpack.c.bf16 %v4624_v60, %v4624_v60  ;;  %v5091_v13 = vsel %vm569_vm2, %v5086_v12, 0 }
0x219c   :  { %9409 = vmatpush3.bf16.msra.mxu0 %v4632_v58  ;;  %9410 = vmatprep.mubr.msk.bf16.mxu0 %vm10274_vm1, %v10273_v63 }
0x219d   :  { %9420 = vmatprep.subr.bf16.mxu0 %v10273_v63 }
0x219e   :  { %v5196_v39 = vpop.permute.xlu0 %5195 }
0x219f   :  { %v5201_v43 = vsel %vm569_vm2, %v5196_v39, 0 }
0x21a0   :  { %v10081_v8 = vpop.eup %10080 }
0x21a1   :  { %v4734_v29 = vmul.f32 %v10081_v8, %v10073_v7  ;;  %v8494_v7 = vld [vmem:[%s12018_s3 + $0x1] ss:$0 sm:$0xff] }
0x21a2   :  { %v5306_v28 = vpop.permute.xlu0 %5305 }
0x21a3   :  { %9411 = vmatmul.mubr.msk.bf16.vlgmr.msra.gmra.mxu0 %vm569_vm2, %v4625_v33  ;;  %v4735_v30 = vpack.c.bf16 %v4734_v29, %v4734_v29  ;;  %v5311_v47 = vsel %vm569_vm2, %v5306_v28, 0 }
0x21a4   :  { %9421 = vmatpush3.bf16.msra.mxu0 %v4742_v19  ;;  %9422 = vmatprep.mubr.msk.bf16.mxu0 %vm10274_vm1, %v10273_v63 }
0x21a5   :  { %9432 = vmatprep.subr.bf16.mxu0 %v10273_v63 }
0x21ab   :  { %9423 = vmatmul.mubr.msk.bf16.vlgmr.msra.gmra.mxu0 %vm569_vm2, %v4735_v30 }
0x21ac   :  { %9434 = vmatprep.mubr.msk.bf16.mxu0 %vm10274_vm1, %v10273_v63 }
0x21c3   :  { %v4842_v32 = vpop.xlane.xlu1 %4841 }
0x21c4   :  { %10082 = vrcp.f32 %v4842_v32 }
0x21c7   :  { %v4847_v23 = vpop.permute.xlu1 %4846 }
0x21c8   :  { %v4852_v34 = vsel %vm633_vm3, %v4847_v23, 0 }
0x21c9   :  { %9433 = vmatpush3.bf16.msra.mxu0 %v4852_v34 }
0x21ca   :  { %9446 = vmatprep.subr.bf16.mxu0 %v10273_v63 }
0x21cb   :  { %v5084_v40 = vpop.permute.xlu1 %5083 }
0x21cf   :  { %v5194_v46 = vpop.permute.xlu1 %5193 }
0x21d1   :  { %v10083_v21 = vpop.eup %10082 }
0x21d2   :  { %v4844_v35 = vmul.f32 %v10083_v21, %v10075_v15 }
0x21d3   :  { %v5304_v37 = vpop.permute.xlu1 %5303 }
0x21d4   :  { %v4845_v31 = vpack.c.bf16 %v4844_v35, %v4844_v35 }
0x21d6   :  { %9435 = vmatmul.mubr.msk.bf16.vlgmr.msra.gmra.mxu0 %vm569_vm2, %v4845_v31 }
0x21d7   :  { %9447 = vmatpush3.bf16.xpose.msra.mxu0 %v4979_v52  ;;  %9448 = vmatprep.mubr.msk.bf16.mxu0 %vm10274_vm1, %v10273_v63 }
0x21d8   :  { %9458 = vmatprep.subr.bf16.mxu0 %v10273_v63 }
0x21de   :  { %9449 = vmatmul.mubr.msk.bf16.vlgmr.msra.gmra.mxu0 %vm569_vm2, %v4967_v16 }
0x21df   :  { %9459 = vmatpush3.bf16.xpose.msra.mxu0 %v5091_v13  ;;  %9460 = vmatprep.mubr.msk.bf16.mxu0 %vm10274_vm1, %v10273_v63 }
0x21e0   :  { %9470 = vmatprep.subr.bf16.mxu0 %v10273_v63 }
0x21e6   :  { %9461 = vmatmul.mubr.msk.bf16.vlgmr.msra.gmra.mxu0 %vm569_vm2, %v5084_v40 }
0x21e7   :  { %9471 = vmatpush3.bf16.xpose.msra.mxu0 %v5201_v43  ;;  %9472 = vmatprep.mubr.msk.bf16.mxu0 %vm10274_vm1, %v10273_v63 }
0x21e8   :  { %9482 = vmatprep.subr.bf16.mxu0 %v10273_v63 }
0x21ee   :  { %9473 = vmatmul.mubr.msk.bf16.vlgmr.msra.gmra.mxu0 %vm569_vm2, %v5194_v46 }
0x21ef   :  { %9483 = vmatpush3.bf16.xpose.msra.mxu0 %v5311_v47  ;;  %9484 = vmatprep.mubr.msk.bf16.mxu0 %vm10274_vm1, %v10273_v63  ;;  %v9918_v47 = vld [vmem:[%s12019_s19 + $0x8] sm:$0xff]  }
0x21f0   :  { %9494 = vmatprep.subr.bf16.mxu0 %v10273_v63  ;;  %9439 = vmatpush3.bf16.msra.mxu1 %v9918_v47 }
0x21f1   :  { %9440 = vmatprep.subr.bf16.mxu1 %v10273_v63 }
0x21f6   :  { %9485 = vmatmul.mubr.msk.bf16.vlgmr.msra.gmra.mxu0 %vm569_vm2, %v5304_v37  ;;  %v9919_v37 = vld [vmem:[%s12019_s19] sm:$0xff]  }
0x21f7   :  { %9498 = vmatprep.mubr.msk.bf16.mxu0 %vm10274_vm1, %v10273_v63  ;;  %9495 = vmatpush3.bf16.msra.mxu0 %v9918_v47 }
0x21f8   :  { %9496 = vmatprep.subr.bf16.mxu0 %v10273_v63  ;;  %9441 = vmatpush3.bf16.msra.mxu1 %v9919_v37 }
0x21f9   :  { %9452 = vmatprep.subr.bf16.mxu1 %v10273_v63 }
0x21fb   :  { %9497 = vmatpush3.bf16.msra.mxu0 %v9919_v37 }
0x21fc   :  { %9510 = vmatprep.subr.bf16.mxu0 %v10273_v63 }
0x225b   :  { %v11412_v48 = vpop.f32.mrf.mxu0 }
0x225d   :  { %v9400_v49 = vpop.f32.mrf.mxu0 }
0x225f   :  { %v4560_v50 = vpop.f32.mrf.mxu0 }
0x2261   :  { %v9401_v36 = vpop.f32.mrf.mxu0 }
0x2263   :  { %v4668_v54 = vpop.f32.mrf.mxu0 }
0x2265   :  { %v9412_v56 = vpop.f32.mrf.mxu0 }
0x2267   :  { %v4671_v59 = vpop.f32.mrf.mxu0 }
0x2269   :  { %v9413_v51 = vpop.f32.mrf.mxu0 }
0x226b   :  { %v4778_v61 = vpop.f32.mrf.mxu0 }
0x226d   :  { %v9424_v1 = vpop.f32.mrf.mxu0 }
0x226f   :  { %v4781_v2 = vpop.f32.mrf.mxu0 }
0x2271   :  { %v9425_v38 = vpop.f32.mrf.mxu0 }
0x2296   :  { %v11414_v4 = vpop.f32.mrf.mxu0 }
0x2298   :  { %v9436_v6 = vpop.f32.mrf.mxu0 }
0x229a   :  { %v4891_v45 = vpop.f32.mrf.mxu0 }
0x229c   :  { %v9437_v57 = vpop.f32.mrf.mxu0 }
0x229e   :  { %v5015_v9 = vpop.f32.mrf.mxu0 }
0x229f   :  { %v5016_v10 = vadd.f32 %v8494_v7, %v5015_v9 }
0x22a0   :  { %v9450_v53 = vpop.f32.mrf.mxu0 }
0x22a1   :  { %v5021_v14 = vsel %vm569_vm2, %v5016_v10, -inf }
0x22a2   :  { %5022 = vmax.xlane.f32.xlu0 %v5021_v14  ;;  %v5018_v15 = vpop.f32.mrf.mxu0 }
0x22a4   :  { %v9451_v27 = vpop.f32.mrf.mxu0 }
0x22a6   :  { %v5127_v16 = vpop.f32.mrf.mxu0 }
0x22a7   :  { %v5128_v0 = vadd.f32 %v8494_v7, %v5127_v16 }
0x22a8   :  { %v9462_v55 = vpop.f32.mrf.mxu0 }
0x22a9   :  { %v5133_v17 = vsel %vm569_vm2, %v5128_v0, -inf }
0x22aa   :  { %5134 = vmax.xlane.f32.xlu1 %v5133_v17  ;;  %v5130_v5 = vpop.f32.mrf.mxu0 }
0x22ac   :  { %v9463_v20 = vpop.f32.mrf.mxu0 }
0x22ae   :  { %v5237_v18 = vpop.f32.mrf.mxu0 }
0x22af   :  { %v5238_v62 = vadd.f32 %v8494_v7, %v5237_v18 }
0x22b0   :  { %v9474_v25 = vpop.f32.mrf.mxu0 }
0x22b1   :  { %v5243_v22 = vsel %vm569_vm2, %v5238_v62, -inf }
0x22b2   :  { %5244 = vmax.xlane.f32.xlu0 %v5243_v22  ;;  %v5240_v26 = vpop.f32.mrf.mxu0 }
0x22b4   :  { %v9475_v58 = vpop.f32.mrf.mxu0 }
0x22b6   :  { %v5347_v60 = vpop.f32.mrf.mxu0 }
0x22b7   :  { %v5348_v24 = vadd.f32 %v8494_v7, %v5347_v60 }
0x22b8   :  { %v9486_v33 = vpop.f32.mrf.mxu0 }
0x22b9   :  { %v5353_v8 = vsel %vm569_vm2, %v5348_v24, -inf }
0x22ba   :  { %5354 = vmax.xlane.f32.xlu0 %v5353_v8  ;;  %v5350_v19 = vpop.f32.mrf.mxu0 }
0x22bb   :  { %4895 = vrot.lane.b32.xlu1 %v4668_v54, %s10287_s28 }
0x22bc   :  { %v9487_v29 = vpop.f32.mrf.mxu0 }
0x22d0   :  { %4899 = vrot.lane.b32.xlu0 %v4778_v61, %s10286_s26 }
0x232b   :  { %v5023_v30 = vpop.xlane.xlu0 %5022 }
0x232c   :  { %v5024_v32 = vsub.f32 %v5016_v10, %v5023_v30 }
0x232e   :  { %v5025_v23 = vmul.f32 1.442695, %v5024_v32 }
0x2330   :  { %10084 = vpow2.f32 %v5025_v23 }
0x2333   :  { %v5135_v34 = vpop.xlane.xlu1 %5134 }
0x2334   :  { %v5136_v21 = vsub.f32 %v5128_v0, %v5135_v34 }
0x2336   :  { %v5137_v35 = vmul.f32 1.442695, %v5136_v21 }
0x2337   :  { %v4896_v61 = vpop.permute.xlu1 %4895 }
0x2338   :  { %10086 = vpow2.f32 %v5137_v35  ;;  %v4906_v2 = vsel %vm569_vm2, %v11412_v48, %v4896_v61 }
0x233b   :  { %v5245_v31 = vpop.xlane.xlu0 %5244 }
0x233c   :  { %v5246_v52 = vsub.f32 %v5238_v62, %v5245_v31 }
0x233d   :  { %v10085_v12 = vpop.eup %10084 }
0x233e   :  { %v5247_v13 = vmul.f32 1.442695, %v5246_v52  ;;  %v5027_v39 = vsel %vm569_vm2, %v10085_v12, 0.0 }
0x233f   :  { %5028 = vadd.xlane.f32.xlu0 %v5027_v39 }
0x2340   :  { %10088 = vpow2.f32 %v5247_v13 }
0x2343   :  { %v5355_v49 = vpop.xlane.xlu0 %5354 }
0x2344   :  { %v5356_v50 = vsub.f32 %v5348_v24, %v5355_v49 }
0x2345   :  { %v10087_v40 = vpop.eup %10086 }
0x2346   :  { %v5139_v43 = vsel %vm569_vm2, %v10087_v40, 0.0  ;;  %v5357_v36 = vmul.f32 1.442695, %v5356_v50 }
0x2347   :  { %5140 = vadd.xlane.f32.xlu1 %v5139_v43  ;;  %v4900_v59 = vpop.permute.xlu0 %4899 }
0x2348   :  { %10090 = vpow2.f32 %v5357_v36  ;;  %v4907_v38 = vsel %vm1026_vm4, %v4906_v2, %v4900_v59 }
0x234d   :  { %v10089_v28 = vpop.eup %10088 }
0x234e   :  { %v5249_v46 = vsel %vm569_vm2, %v10089_v28, 0.0 }
0x234f   :  { %5250 = vadd.xlane.f32.xlu0 %v5249_v46 }
0x2355   :  { %v10091_v54 = vpop.eup %10090 }
0x2356   :  { %v5359_v56 = vsel %vm569_vm2, %v10091_v54, 0.0 }
0x2358   :  { %4903 = vrot.lane.b32.xlu1 %v11414_v4, %s10288_s14 }
0x2365   :  { %5034 = vrot.lane.b32.xlu0 %v11355_v11, %s10276_s5 }
0x2369   :  { %5145 = vrot.lane.b32.xlu0 %v11355_v11, %s10277_s9 }
0x236d   :  { %5255 = vrot.lane.b32.xlu0 %v11355_v11, %s10278_s7 }
0x2371   :  { %5365 = vrot.lane.b32.xlu0 %v11355_v11, %s10280_s11 }
0x237c   :  { %5360 = vadd.xlane.f32.xlu1 %v5359_v56 }
0x23c8   :  { %v5029_v51 = vpop.xlane.xlu0 %5028 }
0x23c9   :  { %10092 = vrcp.f32 %v5029_v51 }
0x23d0   :  { %v5141_v1 = vpop.xlane.xlu1 %5140 }
0x23d1   :  { %10094 = vrcp.f32 %v5141_v1 }
0x23d4   :  { %v4904_v4 = vpop.permute.xlu1 %4903 }
0x23d5   :  { %v4908_v6 = vsel %vm1028_vm5, %v4907_v38, %v4904_v4 }
0x23d6   :  { %v4909_v45 = vpack.c.bf16 %v4908_v6, %v4908_v6  ;;  %v10093_v11 = vpop.eup %10092 }
0x23d7   :  { %v5031_v7 = vmul.f32 %v10093_v11, %v10085_v12  ;;  %v9921_v11 = vld [vmem:[%s12020_s24] sm:$0xff]  }
0x23d8   :  { %9443 = vmatmul.mubr.msk.bf16.vlgmr.msra.gmra.mxu1 %vm483_vm0, %v4909_v45  ;;  %v5251_v57 = vpop.xlane.xlu0 %5250  ;;  %v9920_v45 = vld [vmem:[%s12020_s24 + $0x8] sm:$0xff]  }
0x23d9   :  { %9454 = vmatprep.mubr.msk.bf16.mxu1 %vm10274_vm1, %v10273_v63  ;;  %10096 = vrcp.f32 %v5251_v57  ;;  %v5032_v48 = vpack.c.bf16 %v5031_v7, %v5031_v7  ;;  %v9922_v57 = vld [vmem:[%s12021_s1 + $0x18] sm:$0xff]   ;;  %v9923_v7 = vld [vmem:[%s12021_s1 + $0x10] sm:$0xff]  }
0x23dc   :  { %v5035_v9 = vpop.permute.xlu0 %5034 }
0x23dd   :  { %v5040_v10 = vsel %vm633_vm3, %v5035_v9, 0 }
0x23de   :  { %9453 = vmatpush3.bf16.msra.mxu1 %v5040_v10  ;;  %v10095_v53 = vpop.eup %10094 }
0x23df   :  { %9464 = vmatprep.subr.bf16.mxu1 %v10273_v63  ;;  %v5143_v27 = vmul.f32 %v10095_v53, %v10087_v40 }
0x23e0   :  { %v5146_v14 = vpop.permute.xlu0 %5145 }
0x23e1   :  { %v5151_v15 = vsel %vm633_vm3, %v5146_v14, 0  ;;  %9455 = vmatmul.mubr.msk.bf16.vlgmr.msra.gmra.mxu1 %vm569_vm2, %v5032_v48  ;;  %v5144_v0 = vpack.c.bf16 %v5143_v27, %v5143_v27 }
0x23e2   :  { %9465 = vmatpush3.bf16.msra.mxu1 %v5151_v15  ;;  %9466 = vmatprep.mubr.msk.bf16.mxu1 %vm10274_vm1, %v10273_v63 }
0x23e3   :  { %9476 = vmatprep.subr.bf16.mxu1 %v10273_v63 }
0x23e4   :  { %v5256_v16 = vpop.permute.xlu0 %5255 }
0x23e5   :  { %v5261_v17 = vsel %vm633_vm3, %v5256_v16, 0 }
0x23e6   :  { %v10097_v55 = vpop.eup %10096 }
0x23e7   :  { %v5253_v5 = vmul.f32 %v10097_v55, %v10089_v28 }
0x23e8   :  { %v5366_v20 = vpop.permute.xlu0 %5365 }
0x23e9   :  { %9467 = vmatmul.mubr.msk.bf16.vlgmr.msra.gmra.mxu1 %vm569_vm2, %v5144_v0  ;;  %v5254_v18 = vpack.c.bf16 %v5253_v5, %v5253_v5  ;;  %v5371_v62 = vsel %vm633_vm3, %v5366_v20, 0  ;;  %v8504_v0 = vld [vmem:[%s12022_s2] ss:$0 sm:$0xff] }
0x23ea   :  { %9477 = vmatpush3.bf16.msra.mxu1 %v5261_v17  ;;  %9478 = vmatprep.mubr.msk.bf16.mxu1 %vm10274_vm1, %v10273_v63 }
0x23eb   :  { %9488 = vmatprep.subr.bf16.mxu1 %v10273_v63 }
0x23f1   :  { %9479 = vmatmul.mubr.msk.bf16.vlgmr.msra.gmra.mxu1 %vm569_vm2, %v5254_v18  ;;  %v9924_v18 = vld [vmem:[%s12021_s1 + $0x8] sm:$0xff]  }
0x23f2   :  { %9489 = vmatpush3.bf16.msra.mxu1 %v5371_v62  ;;  %9490 = vmatprep.mubr.msk.bf16.mxu1 %vm10274_vm1, %v10273_v63  ;;  %v9925_v62 = vld [vmem:[%s12021_s1] sm:$0xff]  }
0x23f3   :  { %9502 = vmatprep.subr.bf16.mxu1 %v10273_v63 }
0x2405   :  { %v5361_v25 = vpop.xlane.xlu1 %5360 }
0x2406   :  { %10098 = vrcp.f32 %v5361_v25 }
0x2413   :  { %v10099_v22 = vpop.eup %10098 }
0x2414   :  { %v5363_v26 = vmul.f32 %v10099_v22, %v10091_v54 }
0x2416   :  { %v5364_v58 = vpack.c.bf16 %v5363_v26, %v5363_v26 }
0x2418   :  { %9491 = vmatmul.mubr.msk.bf16.vlgmr.msra.gmra.mxu1 %vm569_vm2, %v5364_v58 }
0x2419   :  { %9506 = vmatprep.mubr.msk.bf16.mxu1 %vm10274_vm1, %v10273_v63  ;;  %9503 = vmatpush3.bf16.msra.mxu1 %v9920_v45 }
0x241a   :  { %9504 = vmatprep.subr.bf16.mxu1 %v10273_v63 }
0x241d   :  { %9505 = vmatpush3.bf16.msra.mxu1 %v9921_v11 }
0x241e   :  { %9522 = vmatprep.subr.bf16.mxu1 %v10273_v63 }
0x2498   :  { %v4959_v60 = vpop.f32.mrf.mxu1 }
0x2499   :  { %v11474_v46 = vadd.f32 %v4959_v60, %v11259_v3 }
0x249a   :  { %v9444_v24 = vpop.f32.mrf.mxu1 }
0x249b   :  { %v5487_v47 = vmul.f32 %v11474_v46, %v11474_v46 }
0x249c   :  { %v4962_v33 = vpop.f32.mrf.mxu1 }
0x249d   :  { %v5489_v37 = vsel %vm483_vm0, %v5487_v47, 0.0 }
0x249e   :  { %v9445_v8 = vpop.f32.mrf.mxu1 }
0x24a1   :  { %v5076_v19 = vpop.f32.mrf.mxu1 }
0x24a3   :  { %v9456_v29 = vpop.f32.mrf.mxu1 }
0x24a5   :  { %v5079_v30 = vpop.f32.mrf.mxu1 }
0x24a7   :  { %v9457_v32 = vpop.f32.mrf.mxu1 }
0x24a9   :  { %v5187_v23 = vpop.f32.mrf.mxu1 }
0x24aa   :  { %5414 = vrot.lane.b32.xlu0 %v5187_v23, %s10287_s28 }
0x24ab   :  { %v9468_v34 = vpop.f32.mrf.mxu1 }
0x24ad   :  { %v5190_v21 = vpop.f32.mrf.mxu1 }
0x24af   :  { %v9469_v35 = vpop.f32.mrf.mxu1 }
0x24b1   :  { %v5297_v31 = vpop.f32.mrf.mxu1 }
0x24b2   :  { %5418 = vrot.lane.b32.xlu0 %v5297_v31, %s10286_s26 }
0x24b3   :  { %v9480_v52 = vpop.f32.mrf.mxu1 }
0x24b4   :  { %v9926_v52 = vld [vmem:[%s10367_s6 + $0x18] sm:$0xff]  }
0x24b5   :  { %v5300_v12 = vpop.f32.mrf.mxu1 }
0x24b6   :  { %v9927_v12 = vld [vmem:[%s10367_s6 + $0x10] sm:$0xff]   ;;  %s12024_s6 = sld [smem:[#allocation17_spill]] }
0x24b7   :  { %v9481_v13 = vpop.f32.mrf.mxu1 }
0x24d8   :  { %v5407_v39 = vpop.f32.mrf.mxu1 }
0x24d9   :  { %5422 = vrot.lane.b32.xlu0 %v5407_v39, %s10288_s14 }
0x24da   :  { %v9492_v40 = vpop.f32.mrf.mxu1 }
0x24dc   :  { %v5410_v43 = vpop.f32.mrf.mxu1 }
0x24de   :  { %v9493_v28 = vpop.f32.mrf.mxu1 }
0x24f8   :  { %5490 = vadd.xlane.f32.xlu0 %v5489_v37 }
0x251c   :  { %v5415_v49 = vpop.permute.xlu0 %5414 }
0x251d   :  { %v5425_v36 = vsel %vm569_vm2, %v5076_v19, %v5415_v49 }
0x2524   :  { %v5419_v50 = vpop.permute.xlu0 %5418 }
0x2525   :  { %v5426_v54 = vsel %vm1026_vm4, %v5425_v36, %v5419_v50  ;;  %v8522_v50 = vld [vmem:[%s10362_s30 + $0x1] ss:$0 sm:$0xff]  ;;  %s12023_s30 = sld [smem:[#allocation19_spill]] }
0x254b   :  { %v5423_v56 = vpop.permute.xlu0 %5422 }
0x254c   :  { %v5427_v59 = vsel %vm1028_vm5, %v5426_v54, %v5423_v56 }
0x254d   :  { %v5428_v51 = vpack.c.bf16 %v5427_v59, %v5427_v59 }
0x254f   :  { %9499 = vmatmul.mubr.msk.bf16.vlgmr.msra.gmra.mxu0 %vm483_vm0, %v5428_v51 }
0x2550   :  { %9518 = vmatprep.mubr.msk.bf16.mxu0 %vm10274_vm1, %v10273_v63  ;;  %9511 = vmatpush3.bf16.msra.mxu0 %v9922_v57 }
0x2551   :  { %9512 = vmatprep.subr.bf16.mxu0 %v10273_v63 }
0x2554   :  { %9513 = vmatpush3.bf16.msra.mxu0 %v9923_v7 }
0x2555   :  { %9514 = vmatprep.subr.bf16.mxu0 %v10273_v63 }
0x2558   :  { %9515 = vmatpush3.bf16.msra.mxu0 %v9924_v18 }
0x2559   :  { %9516 = vmatprep.subr.bf16.mxu0 %v10273_v63 }
0x255c   :  { %9517 = vmatpush3.bf16.msra.mxu0 %v9925_v62 }
0x255d   :  { %9536 = vmatprep.subr.bf16.mxu0 %v10273_v63 }
0x260f   :  { %v5466_v3 = vpop.f32.mrf.mxu0 }
0x2610   :  { %v5473_v61 = vadd.f32 %v5466_v3, %v11288_v44  ;;  %v5491_v44 = vpop.xlane.xlu0 %5490 }
0x2611   :  { %v9500_v1 = vpop.f32.mrf.mxu0  ;;  %v5495_v9 = vmul.f32 0.03125, %v5491_v44 }
0x2612   :  { %v5488_v2 = vmul.f32 %v5473_v61, %v5473_v61 }
0x2613   :  { %v5469_v38 = vpop.f32.mrf.mxu0  ;;  %v5497_v10 = vadd.f32 1e-06, %v5495_v9 }
0x2614   :  { %v5492_v4 = vsel %vm483_vm0, %v5488_v2, 0.0 }
0x2615   :  { %5493 = vadd.xlane.f32.xlu1 %v5492_v4  ;;  %v9501_v6 = vpop.f32.mrf.mxu0  ;;  %10100 = vrsqrt.f32 %v5497_v10 }
0x2622   :  { %v10101_v15 = vpop.eup %10100 }
0x2623   :  { %v5501_v27 = vmul.f32 %v10101_v15, %v11474_v46 }
0x2625   :  { %v5509_v17 = vmul.f32 %v8504_v0, %v5501_v27 }
0x269e   :  { %v5494_v48 = vpop.xlane.xlu1 %5493 }
0x269f   :  { %v5496_v53 = vmul.f32 0.03125, %v5494_v48 }
0x26a1   :  { %v5498_v14 = vadd.f32 1e-06, %v5496_v53 }
0x26a3   :  { %10102 = vrsqrt.f32 %v5498_v14  ;;  %v11568_v14 = vld [vmem:[%s10417_s20] sm:$0xff] }
0x26b0   :  { %v10103_v16 = vpop.eup %10102 }
0x26b1   :  { %v5502_v55 = vmul.f32 %v10103_v16, %v5473_v61 }
0x26b3   :  { %v5510_v5 = vmul.f32 %v8504_v0, %v5502_v55 }
0x26b5   :  { %v5511_v20 = vpack.c.bf16 %v5510_v5, %v5509_v17  ;;  %v11573_v5 = vld [vmem:[%s10417_s20 + $0x8] sm:$0xff] }
0x26b7   :  { %9507 = vmatmul.mubr.msk.bf16.vlgmr.msra.gmra.mxu1 %vm483_vm0, %v5511_v20 }
0x26b8   :  { %9526 = vmatprep.mubr.msk.bf16.mxu1 %vm10274_vm1, %v10273_v63  ;;  %9523 = vmatpush3.bf16.msra.mxu1 %v9926_v52 }
0x26b9   :  { %9524 = vmatprep.subr.bf16.mxu1 %v10273_v63 }
0x26bc   :  { %9525 = vmatpush3.bf16.msra.mxu1 %v9927_v12 }
0x26bd   :  { %9530 = vmatprep.subr.bf16.mxu1 %v10273_v63 }
0x2777   :  { %v5561_v25 = vpop.f32.mrf.mxu1 }
0x2778   :  { %v5568_v58 = vmax.f32 %v5561_v25, 0.0 }
0x2779   :  { %v9508_v22 = vpop.f32.mrf.mxu1 }
0x277b   :  { %v5564_v26 = vpop.f32.mrf.mxu1 }
0x277c   :  { %v5569_v60 = vmax.f32 %v5564_v26, 0.0 }
0x277d   :  { %v9509_v24 = vpop.f32.mrf.mxu1 }
0x277e   :  { %v5570_v33 = vpack.c.bf16 %v5569_v60, %v5568_v58  ;;  %v11578_v58 = vld [vmem:[%s10417_s20 + $0x10] sm:$0xff] }
0x2780   :  { %9519 = vmatmul.mubr.msk.bf16.vlgmr.msra.gmra.mxu0 %vm1716_vm6, %v5570_v33 }
0x2781   :  { %9538 = vmatprep.mubr.msk.bf16.mxu0 %vm10274_vm1, %v10273_v63 }
0x2840   :  { %v5632_v8 = vpop.f32.mrf.mxu0 }
0x2841   :  { %v11508_v19 = vadd.f32 %v5632_v8, %v11474_v46 }
0x2842   :  { %v9520_v29 = vpop.f32.mrf.mxu0 }
0x2843   :  { %v5653_v30 = vmul.f32 %v11508_v19, %v11508_v19 }
0x2844   :  { %v5635_v32 = vpop.f32.mrf.mxu0 }
0x2845   :  { %v11512_v23 = vadd.f32 %v5635_v32, %v5473_v61  ;;  %v5655_v34 = vsel %vm483_vm0, %v5653_v30, 0.0  ;;  %v11583_v32 = vld [vmem:[%s10417_s20 + $0x18] sm:$0xff]  ;;  %s10291_s20 = smov [#allocation2]  }
0x2846   :  { %5656 = vadd.xlane.f32.xlu1 %v5655_v34  ;;  %v9521_v21 = vpop.f32.mrf.mxu0 }
0x2847   :  { %v5654_v35 = vmul.f32 %v11512_v23, %v11512_v23 }
0x2849   :  { %v5658_v31 = vsel %vm483_vm0, %v5654_v35, 0.0 }
0x284a   :  { %5659 = vadd.xlane.f32.xlu1 %v5658_v31 }
0x28cf   :  { %v5657_v13 = vpop.xlane.xlu1 %5656 }
0x28d0   :  { %v5661_v39 = vmul.f32 0.03125, %v5657_v13 }
0x28d2   :  { %v5663_v40 = vadd.f32 1e-06, %v5661_v39 }
0x28d3   :  { %v5660_v43 = vpop.xlane.xlu1 %5659 }
0x28d4   :  { %10104 = vrsqrt.f32 %v5663_v40  ;;  %v5662_v28 = vmul.f32 0.03125, %v5660_v43 }
0x28d6   :  { %v5664_v46 = vadd.f32 1e-06, %v5662_v28 }
0x28d8   :  { %10106 = vrsqrt.f32 %v5664_v46 }
0x28e1   :  { %v10105_v47 = vpop.eup %10104 }
0x28e2   :  { %v5667_v37 = vmul.f32 %v10105_v47, %v11508_v19 }
0x28e4   :  { %v5675_v54 = vmul.f32 %v8522_v50, %v5667_v37 }
0x28e5   :  { %v10107_v49 = vpop.eup %10106 }
0x28e6   :  { %v5668_v36 = vmul.f32 %v10107_v49, %v11512_v23 }
0x28e8   :  { %v5676_v56 = vmul.f32 %v8522_v50, %v5668_v36 }
0x28ea   :  { %v5677_v59 = vpack.c.bf16 %v5676_v56, %v5675_v54 }
0x28ec   :  { %9527 = vmatmul.mubr.msk.bf16.vlgmr.msra.gmra.mxu1 %vm483_vm0, %v5677_v59 }
0x28ed   :  { %9532 = vmatprep.mubr.msk.bf16.mxu1 %vm10274_vm1, %v10273_v63 }
0x29ac   :  { %v5727_v51 = vpop.f32.mrf.mxu1 }
0x29ad   :  { %v11528_v3 = vpack.c.bf16 %v5727_v51, %v5727_v51 }
0x29ae   :  { %v9528_v61 = vpop.f32.mrf.mxu1 }
0x29af   :  { %5846 = vrot.lane.b32.xlu0 %v11528_v3, %s10277_s9  ;;  %5736 = vrot.lane.b32.xlu1 %v11528_v3, %s10276_s5 }
0x29b0   :  { %v11534_v1 = vpop.f32.mrf.mxu1 }
0x29b2   :  { %v9529_v2 = vpop.f32.mrf.mxu1 }
0x29b3   :  { %5844 = vrot.lane.b32.xlu1 %v11528_v3, %s10275_s0 }
0x29b7   :  { %5956 = vrot.lane.b32.xlu1 %v11528_v3, %s10278_s7 }
0x29bb   :  { %5954 = vrot.lane.b32.xlu1 %v11528_v3, %s10279_s10 }
0x29bf   :  { %6066 = vrot.lane.b32.xlu1 %v11528_v3, %s10280_s11 }
0x29c3   :  { %6064 = vrot.lane.b32.xlu1 %v11528_v3, %s10281_s15 }
0x2a21   :  { %v5737_v38 = vpop.permute.xlu1 %5736  ;;  %v5847_v45 = vpop.permute.xlu0 %5846 }
0x2a22   :  { %v5742_v4 = vsel %vm569_vm2, %v5737_v38, 0  ;;  %v5852_v11 = vsel %vm569_vm2, %v5847_v45, 0  ;;  %v11596_v38 = vpack.c.bf16 %v11534_v1, %v11534_v1 }
0x2a23   :  { %9531 = vmatpush3.bf16.xpose.msra.mxu1 %v5742_v4 }
0x2a24   :  { %9542 = vmatprep.subr.bf16.mxu1 %v10273_v63 }
0x2a25   :  { %v5845_v6 = vpop.permute.xlu1 %5844 }
0x2a29   :  { %v5957_v57 = vpop.permute.xlu1 %5956 }
0x2a2a   :  { %9533 = vmatmul.mubr.msk.bf16.vlgmr.msra.gmra.mxu1 %vm569_vm2, %v11528_v3  ;;  %v5962_v44 = vsel %vm569_vm2, %v5957_v57, 0 }
0x2a2b   :  { %9543 = vmatpush3.bf16.xpose.msra.mxu1 %v5852_v11  ;;  %9544 = vmatprep.mubr.msk.bf16.mxu1 %vm10274_vm1, %v10273_v63 }
0x2a2c   :  { %9554 = vmatprep.subr.bf16.mxu1 %v10273_v63 }
0x2a2d   :  { %v5955_v7 = vpop.permute.xlu1 %5954 }
0x2a31   :  { %v6067_v9 = vpop.permute.xlu1 %6066 }
0x2a32   :  { %9545 = vmatmul.mubr.msk.bf16.vlgmr.msra.gmra.mxu1 %vm569_vm2, %v5845_v6  ;;  %v6072_v10 = vsel %vm569_vm2, %v6067_v9, 0 }
0x2a33   :  { %9555 = vmatpush3.bf16.xpose.msra.mxu1 %v5962_v44  ;;  %9556 = vmatprep.mubr.msk.bf16.mxu1 %vm10274_vm1, %v10273_v63 }
0x2a34   :  { %9566 = vmatprep.subr.bf16.mxu1 %v10273_v63 }
0x2a35   :  { %v6065_v48 = vpop.permute.xlu1 %6064 }
0x2a3a   :  { %9557 = vmatmul.mubr.msk.bf16.vlgmr.msra.gmra.mxu1 %vm569_vm2, %v5955_v7 }
0x2a3b   :  { %9567 = vmatpush3.bf16.xpose.msra.mxu1 %v6072_v10  ;;  %9568 = vmatprep.mubr.msk.bf16.mxu1 %vm10274_vm1, %v10273_v63 }
0x2a3c   :  { %9578 = vmatprep.subr.bf16.mxu1 %v10273_v63 }
0x2a42   :  { %9569 = vmatmul.mubr.msk.bf16.vlgmr.msra.gmra.mxu1 %vm569_vm2, %v6065_v48 }
0x2a43   :  { %9582 = vmatprep.mubr.msk.bf16.mxu1 %vm10274_vm1, %v10273_v63 }
0x2aea   :  { %v5778_v53 = vpop.f32.mrf.mxu1 }
0x2aeb   :  { %v5779_v15 = vadd.f32 %v11568_v14, %v5778_v53 }
0x2aec   :  { %v9534_v27 = vpop.f32.mrf.mxu1 }
0x2aed   :  { %v5784_v16 = vsel %vm569_vm2, %v5779_v15, -inf }
0x2aee   :  { %5785 = vmax.xlane.f32.xlu1 %v5784_v16  ;;  %v5781_v0 = vpop.f32.mrf.mxu1 }
0x2af0   :  { %v9535_v55 = vpop.f32.mrf.mxu1 }
0x2af2   :  { %v5888_v17 = vpop.f32.mrf.mxu1 }
0x2af3   :  { %v5889_v20 = vadd.f32 %v11573_v5, %v5888_v17 }
0x2af4   :  { %v9546_v18 = vpop.f32.mrf.mxu1 }
0x2af5   :  { %v5894_v62 = vsel %vm569_vm2, %v5889_v20, -inf }
0x2af6   :  { %5895 = vmax.xlane.f32.xlu0 %v5894_v62  ;;  %v5891_v25 = vpop.f32.mrf.mxu1 }
0x2af8   :  { %v9547_v22 = vpop.f32.mrf.mxu1 }
0x2afa   :  { %v5998_v26 = vpop.f32.mrf.mxu1 }
0x2afb   :  { %v5999_v60 = vadd.f32 %v11578_v58, %v5998_v26 }
0x2afc   :  { %v9558_v24 = vpop.f32.mrf.mxu1 }
0x2afd   :  { %v6004_v33 = vsel %vm569_vm2, %v5999_v60, -inf }
0x2afe   :  { %6005 = vmax.xlane.f32.xlu0 %v6004_v33  ;;  %v6001_v8 = vpop.f32.mrf.mxu1 }
0x2b00   :  { %v9559_v29 = vpop.f32.mrf.mxu1 }
0x2b02   :  { %v6108_v30 = vpop.f32.mrf.mxu1 }
0x2b03   :  { %v6109_v34 = vadd.f32 %v11583_v32, %v6108_v30 }
0x2b04   :  { %v9570_v21 = vpop.f32.mrf.mxu1 }
0x2b05   :  { %v6114_v35 = vsel %vm569_vm2, %v6109_v34, -inf }
0x2b06   :  { %6115 = vmax.xlane.f32.xlu0 %v6114_v35  ;;  %v6111_v31 = vpop.f32.mrf.mxu1 }
0x2b08   :  { %v9571_v52 = vpop.f32.mrf.mxu1 }
0x2b77   :  { %v5786_v12 = vpop.xlane.xlu1 %5785 }
0x2b78   :  { %v5787_v13 = vsub.f32 %v5779_v15, %v5786_v12 }
0x2b7a   :  { %v5788_v39 = vmul.f32 1.442695, %v5787_v13 }
0x2b7c   :  { %10108 = vpow2.f32 %v5788_v39 }
0x2b7f   :  { %v5896_v40 = vpop.xlane.xlu0 %5895 }
0x2b80   :  { %v5897_v43 = vsub.f32 %v5889_v20, %v5896_v40 }
0x2b82   :  { %v5898_v28 = vmul.f32 1.442695, %v5897_v43 }
0x2b84   :  { %10110 = vpow2.f32 %v5898_v28 }
0x2b87   :  { %v6006_v37 = vpop.xlane.xlu0 %6005 }
0x2b88   :  { %v6007_v61 = vsub.f32 %v5999_v60, %v6006_v37 }
0x2b89   :  { %v10109_v46 = vpop.eup %10108 }
0x2b8a   :  { %v5790_v47 = vsel %vm569_vm2, %v10109_v46, 0.0  ;;  %v6008_v2 = vmul.f32 1.442695, %v6007_v61 }
0x2b8b   :  { %5791 = vadd.xlane.f32.xlu1 %v5790_v47 }
0x2b8f   :  { %v6116_v49 = vpop.xlane.xlu0 %6115 }
0x2b90   :  { %v6117_v50 = vsub.f32 %v6109_v34, %v6116_v49 }
0x2b91   :  { %v10111_v36 = vpop.eup %10110 }
0x2b92   :  { %v6118_v54 = vmul.f32 1.442695, %v6117_v50  ;;  %v5900_v56 = vsel %vm569_vm2, %v10111_v36, 0.0 }
0x2b93   :  { %5901 = vadd.xlane.f32.xlu0 %v5900_v56 }
0x2b94   :  { %10112 = vpow2.f32 %v6118_v54 }
0x2b95   :  { %10114 = vpow2.f32 %v6008_v2 }
0x2b9c   :  { %5796 = vrot.lane.b32.xlu1 %v11528_v3, %s10282_s16 }
0x2ba1   :  { %v10113_v59 = vpop.eup %10112 }
0x2ba2   :  { %v6120_v51 = vsel %vm569_vm2, %v10113_v59, 0.0  ;;  %v10115_v4 = vpop.eup %10114 }
0x2ba3   :  { %6121 = vadd.xlane.f32.xlu0 %v6120_v51  ;;  %v6010_v6 = vsel %vm569_vm2, %v10115_v4, 0.0 }
0x2bb9   :  { %5906 = vrot.lane.b32.xlu0 %v11528_v3, %s10284_s22 }
0x2bbd   :  { %6357 = vrot.lane.b32.xlu0 %v11596_v38, %s10277_s9 }
0x2bc0   :  { %6011 = vadd.xlane.f32.xlu1 %v6010_v6 }
0x2bc1   :  { %6467 = vrot.lane.b32.xlu0 %v11596_v38, %s10278_s7 }
0x2bc5   :  { %6577 = vrot.lane.b32.xlu0 %v11596_v38, %s10280_s11 }
0x2bd1   :  { %6016 = vrot.lane.b32.xlu1 %v11528_v3, %s10283_s18 }
0x2bd5   :  { %6126 = vrot.lane.b32.xlu1 %v11528_v3, %s10285_s23 }
0x2bd9   :  { %6247 = vrot.lane.b32.xlu1 %v11596_v38, %s10276_s5 }
0x2bdd   :  { %6355 = vrot.lane.b32.xlu1 %v11596_v38, %s10275_s0 }
0x2be1   :  { %6465 = vrot.lane.b32.xlu1 %v11596_v38, %s10279_s10 }
0x2be5   :  { %6575 = vrot.lane.b32.xlu1 %v11596_v38, %s10281_s15 }
0x2c14   :  { %v5792_v1 = vpop.xlane.xlu1 %5791 }
0x2c15   :  { %10116 = vrcp.f32 %v5792_v1 }
0x2c18   :  { %v5797_v45 = vpop.permute.xlu1 %5796 }
0x2c19   :  { %v5802_v11 = vsel %vm633_vm3, %v5797_v45, 0 }
0x2c1a   :  { %9537 = vmatpush3.bf16.msra.mxu0 %v5802_v11 }
0x2c1b   :  { %9548 = vmatprep.subr.bf16.mxu0 %v10273_v63 }
0x2c1c   :  { %v5902_v3 = vpop.xlane.xlu0 %5901 }
0x2c1d   :  { %10118 = vrcp.f32 %v5902_v3 }
0x2c22   :  { %v10117_v57 = vpop.eup %10116 }
0x2c23   :  { %v5794_v7 = vmul.f32 %v10117_v57, %v10109_v46 }
0x2c25   :  { %v5795_v44 = vpack.c.bf16 %v5794_v7, %v5794_v7 }
0x2c27   :  { %9539 = vmatmul.mubr.msk.bf16.vlgmr.msra.gmra.mxu0 %vm569_vm2, %v5795_v44 }
0x2c28   :  { %9550 = vmatprep.mubr.msk.bf16.mxu0 %vm10274_vm1, %v10273_v63 }
0x2c2a   :  { %v10119_v9 = vpop.eup %10118 }
0x2c2b   :  { %v5904_v48 = vmul.f32 %v10119_v9, %v10111_v36 }
0x2c2c   :  { %v6122_v10 = vpop.xlane.xlu0 %6121 }
0x2c2d   :  { %v5905_v27 = vpack.c.bf16 %v5904_v48, %v5904_v48 }
0x2c30   :  { %v5907_v53 = vpop.permute.xlu0 %5906 }
0x2c31   :  { %v5912_v15 = vsel %vm633_vm3, %v5907_v53, 0 }
0x2c32   :  { %9549 = vmatpush3.bf16.msra.mxu0 %v5912_v15 }
0x2c33   :  { %9560 = vmatprep.subr.bf16.mxu0 %v10273_v63 }
0x2c34   :  { %v6358_v8 = vpop.permute.xlu0 %6357 }
0x2c35   :  { %9551 = vmatmul.mubr.msk.bf16.vlgmr.msra.gmra.mxu0 %vm569_vm2, %v5905_v27  ;;  %v6363_v29 = vsel %vm569_vm2, %v6358_v8, 0 }
0x2c36   :  { %9562 = vmatprep.mubr.msk.bf16.mxu0 %vm10274_vm1, %v10273_v63 }
0x2c38   :  { %v6468_v30 = vpop.permute.xlu0 %6467 }
0x2c39   :  { %v6473_v21 = vsel %vm569_vm2, %v6468_v30, 0 }
0x2c3c   :  { %v6578_v35 = vpop.permute.xlu0 %6577 }
0x2c3d   :  { %v6583_v52 = vsel %vm569_vm2, %v6578_v35, 0 }
0x2c49   :  { %v6012_v16 = vpop.xlane.xlu1 %6011 }
0x2c4a   :  { %10120 = vrcp.f32 %v6012_v16 }
0x2c4b   :  { %10122 = vrcp.f32 %v6122_v10 }
0x2c4d   :  { %v6017_v0 = vpop.permute.xlu1 %6016 }
0x2c4e   :  { %v6022_v55 = vsel %vm633_vm3, %v6017_v0, 0 }
0x2c4f   :  { %9561 = vmatpush3.bf16.msra.mxu0 %v6022_v55 }
0x2c50   :  { %9572 = vmatprep.subr.bf16.mxu0 %v10273_v63 }
0x2c51   :  { %v6127_v18 = vpop.permute.xlu1 %6126 }
0x2c52   :  { %v6132_v22 = vsel %vm633_vm3, %v6127_v18, 0 }
0x2c55   :  { %v6248_v60 = vpop.permute.xlu1 %6247 }
0x2c56   :  { %v6253_v33 = vsel %vm569_vm2, %v6248_v60, 0 }
0x2c57   :  { %v10121_v17 = vpop.eup %10120 }
0x2c58   :  { %v6014_v20 = vmul.f32 %v10121_v17, %v10115_v4  ;;  %v10123_v25 = vpop.eup %10122 }
0x2c59   :  { %v6124_v26 = vmul.f32 %v10123_v25, %v10113_v59  ;;  %v6356_v34 = vpop.permute.xlu1 %6355 }
0x2c5a   :  { %v6015_v62 = vpack.c.bf16 %v6014_v20, %v6014_v20 }
0x2c5b   :  { %v6125_v24 = vpack.c.bf16 %v6124_v26, %v6124_v26 }
0x2c5c   :  { %9563 = vmatmul.mubr.msk.bf16.vlgmr.msra.gmra.mxu0 %vm569_vm2, %v6015_v62 }
0x2c5d   :  { %9573 = vmatpush3.bf16.msra.mxu0 %v6132_v22  ;;  %9574 = vmatprep.mubr.msk.bf16.mxu0 %vm10274_vm1, %v10273_v63  ;;  %v6466_v31 = vpop.permute.xlu1 %6465 }
0x2c5e   :  { %9586 = vmatprep.subr.bf16.mxu0 %v10273_v63 }
0x2c61   :  { %v6576_v12 = vpop.permute.xlu1 %6575 }
0x2c64   :  { %9575 = vmatmul.mubr.msk.bf16.vlgmr.msra.gmra.mxu0 %vm569_vm2, %v6125_v24 }
0x2c65   :  { %9587 = vmatpush3.bf16.xpose.msra.mxu0 %v6253_v33  ;;  %9588 = vmatprep.mubr.msk.bf16.mxu0 %vm10274_vm1, %v10273_v63 }
0x2c66   :  { %9598 = vmatprep.subr.bf16.mxu0 %v10273_v63 }
0x2c6c   :  { %9589 = vmatmul.mubr.msk.bf16.vlgmr.msra.gmra.mxu0 %vm569_vm2, %v11596_v38 }
0x2c6d   :  { %9599 = vmatpush3.bf16.xpose.msra.mxu0 %v6363_v29  ;;  %9600 = vmatprep.mubr.msk.bf16.mxu0 %vm10274_vm1, %v10273_v63 }
0x2c6e   :  { %9610 = vmatprep.subr.bf16.mxu0 %v10273_v63 }
0x2c74   :  { %9601 = vmatmul.mubr.msk.bf16.vlgmr.msra.gmra.mxu0 %vm569_vm2, %v6356_v34 }
0x2c75   :  { %9611 = vmatpush3.bf16.xpose.msra.mxu0 %v6473_v21  ;;  %9612 = vmatprep.mubr.msk.bf16.mxu0 %vm10274_vm1, %v10273_v63 }
0x2c76   :  { %9622 = vmatprep.subr.bf16.mxu0 %v10273_v63 }
0x2c7c   :  { %9613 = vmatmul.mubr.msk.bf16.vlgmr.msra.gmra.mxu0 %vm569_vm2, %v6466_v31  ;;  %v9928_v31 = vld [vmem:[%s12013_s13 + $0x18] sm:$0xff]  }
0x2c7d   :  { %9623 = vmatpush3.bf16.xpose.msra.mxu0 %v6583_v52  ;;  %9624 = vmatprep.mubr.msk.bf16.mxu0 %vm10274_vm1, %v10273_v63  ;;  %v9929_v52 = vld [vmem:[%s12013_s13 + $0x10] sm:$0xff]  }
0x2c7e   :  { %9634 = vmatprep.subr.bf16.mxu0 %v10273_v63  ;;  %9579 = vmatpush3.bf16.msra.mxu1 %v9928_v31 }
0x2c7f   :  { %9580 = vmatprep.subr.bf16.mxu1 %v10273_v63 }
0x2c82   :  { %9581 = vmatpush3.bf16.msra.mxu1 %v9929_v52 }
0x2c83   :  { %9592 = vmatprep.subr.bf16.mxu1 %v10273_v63 }
0x2c84   :  { %9625 = vmatmul.mubr.msk.bf16.vlgmr.msra.gmra.mxu0 %vm569_vm2, %v6576_v12 }
0x2c85   :  { %9638 = vmatprep.mubr.msk.bf16.mxu0 %vm10274_vm1, %v10273_v63  ;;  %9635 = vmatpush3.bf16.msra.mxu0 %v9928_v31 }
0x2c86   :  { %9636 = vmatprep.subr.bf16.mxu0 %v10273_v63 }
0x2c89   :  { %9637 = vmatpush3.bf16.msra.mxu0 %v9929_v52 }
0x2c8a   :  { %9650 = vmatprep.subr.bf16.mxu0 %v10273_v63 }
0x2ce7   :  { %v11658_v13 = vpop.f32.mrf.mxu0 }
0x2ce9   :  { %v9540_v39 = vpop.f32.mrf.mxu0 }
0x2ceb   :  { %v5841_v40 = vpop.f32.mrf.mxu0 }
0x2ced   :  { %v9541_v43 = vpop.f32.mrf.mxu0 }
0x2cf5   :  { %v5948_v28 = vpop.f32.mrf.mxu0 }
0x2cf7   :  { %v9552_v46 = vpop.f32.mrf.mxu0 }
0x2cf9   :  { %v5951_v47 = vpop.f32.mrf.mxu0 }
0x2cfb   :  { %v9553_v37 = vpop.f32.mrf.mxu0 }
0x2d1c   :  { %v6058_v49 = vpop.f32.mrf.mxu0 }
0x2d1e   :  { %v9564_v50 = vpop.f32.mrf.mxu0 }
0x2d20   :  { %v6061_v36 = vpop.f32.mrf.mxu0 }
0x2d22   :  { %v9565_v54 = vpop.f32.mrf.mxu0 }
0x2d24   :  { %v6168_v56 = vpop.f32.mrf.mxu0 }
0x2d26   :  { %v9576_v59 = vpop.f32.mrf.mxu0 }
0x2d28   :  { %v6171_v51 = vpop.f32.mrf.mxu0 }
0x2d2a   :  { %v9577_v61 = vpop.f32.mrf.mxu0 }
0x2d2c   :  { %v6289_v2 = vpop.f32.mrf.mxu0 }
0x2d2d   :  { %v6290_v4 = vadd.f32 %v11568_v14, %v6289_v2 }
0x2d2e   :  { %v9590_v6 = vpop.f32.mrf.mxu0 }
0x2d2f   :  { %v6295_v1 = vsel %vm569_vm2, %v6290_v4, -inf }
0x2d30   :  { %6296 = vmax.xlane.f32.xlu0 %v6295_v1  ;;  %v6292_v45 = vpop.f32.mrf.mxu0 }
0x2d32   :  { %v9591_v11 = vpop.f32.mrf.mxu0 }
0x2d34   :  { %v6399_v3 = vpop.f32.mrf.mxu0 }
0x2d35   :  { %v6400_v57 = vadd.f32 %v11573_v5, %v6399_v3 }
0x2d36   :  { %v9602_v7 = vpop.f32.mrf.mxu0 }
0x2d37   :  { %v6405_v44 = vsel %vm569_vm2, %v6400_v57, -inf }
0x2d38   :  { %6406 = vmax.xlane.f32.xlu1 %v6405_v44  ;;  %v6402_v9 = vpop.f32.mrf.mxu0 }
0x2d3a   :  { %v9603_v10 = vpop.f32.mrf.mxu0 }
0x2d3c   :  { %v6509_v48 = vpop.f32.mrf.mxu0 }
0x2d3d   :  { %v6510_v53 = vadd.f32 %v11578_v58, %v6509_v48 }
0x2d3e   :  { %v9614_v15 = vpop.f32.mrf.mxu0 }
0x2d3f   :  { %v6515_v14 = vsel %vm569_vm2, %v6510_v53, -inf }
0x2d40   :  { %6516 = vmax.xlane.f32.xlu0 %v6515_v14  ;;  %v6512_v27 = vpop.f32.mrf.mxu0 }
0x2d42   :  { %v9615_v16 = vpop.f32.mrf.mxu0 }
0x2d44   :  { %v6619_v0 = vpop.f32.mrf.mxu0 }
0x2d45   :  { %v6620_v55 = vadd.f32 %v11583_v32, %v6619_v0 }
0x2d46   :  { %v9626_v17 = vpop.f32.mrf.mxu0 }
0x2d47   :  { %v6625_v5 = vsel %vm569_vm2, %v6620_v55, -inf }
0x2d48   :  { %6626 = vmax.xlane.f32.xlu0 %v6625_v5  ;;  %v6622_v20 = vpop.f32.mrf.mxu0 }
0x2d49   :  { %6175 = vrot.lane.b32.xlu1 %v5948_v28, %s10287_s28 }
0x2d4a   :  { %v9627_v18 = vpop.f32.mrf.mxu0 }
0x2d5e   :  { %6179 = vrot.lane.b32.xlu0 %v6058_v49, %s10286_s26 }
0x2db9   :  { %v6297_v58 = vpop.xlane.xlu0 %6296 }
0x2dba   :  { %v6298_v62 = vsub.f32 %v6290_v4, %v6297_v58 }
0x2dbc   :  { %v6299_v25 = vmul.f32 1.442695, %v6298_v62 }
0x2dbe   :  { %10124 = vpow2.f32 %v6299_v25 }
0x2dc1   :  { %v6407_v22 = vpop.xlane.xlu1 %6406 }
0x2dc2   :  { %v6408_v26 = vsub.f32 %v6400_v57, %v6407_v22 }
0x2dc4   :  { %v6409_v60 = vmul.f32 1.442695, %v6408_v26 }
0x2dc5   :  { %v6176_v37 = vpop.permute.xlu1 %6175 }
0x2dc6   :  { %10126 = vpow2.f32 %v6409_v60  ;;  %v6186_v50 = vsel %vm569_vm2, %v11658_v13, %v6176_v37 }
0x2dc9   :  { %v6517_v32 = vpop.xlane.xlu0 %6516 }
0x2dca   :  { %v6518_v24 = vsub.f32 %v6510_v53, %v6517_v32 }
0x2dcb   :  { %v10125_v33 = vpop.eup %10124 }
0x2dcc   :  { %v6519_v8 = vmul.f32 1.442695, %v6518_v24  ;;  %v6301_v29 = vsel %vm569_vm2, %v10125_v33, 0.0 }
0x2dcd   :  { %6302 = vadd.xlane.f32.xlu0 %v6301_v29 }
0x2dce   :  { %10128 = vpow2.f32 %v6519_v8 }
0x2dd1   :  { %v6627_v12 = vpop.xlane.xlu0 %6626 }
0x2dd2   :  { %v6628_v39 = vsub.f32 %v6620_v55, %v6627_v12 }
0x2dd3   :  { %v10127_v30 = vpop.eup %10126 }
0x2dd4   :  { %v6411_v34 = vsel %vm569_vm2, %v10127_v30, 0.0  ;;  %v6629_v40 = vmul.f32 1.442695, %v6628_v39 }
0x2dd5   :  { %6412 = vadd.xlane.f32.xlu1 %v6411_v34  ;;  %v6180_v46 = vpop.permute.xlu0 %6179 }
0x2dd6   :  { %10130 = vpow2.f32 %v6629_v40  ;;  %v6187_v36 = vsel %vm1026_vm4, %v6186_v50, %v6180_v46 }
0x2ddb   :  { %v10129_v21 = vpop.eup %10128 }
0x2ddc   :  { %v6521_v35 = vsel %vm569_vm2, %v10129_v21, 0.0 }
0x2ddd   :  { %6522 = vadd.xlane.f32.xlu0 %v6521_v35 }
0x2de3   :  { %v10131_v43 = vpop.eup %10130 }
0x2de4   :  { %v6631_v28 = vsel %vm569_vm2, %v10131_v43, 0.0 }
0x2de6   :  { %6183 = vrot.lane.b32.xlu1 %v6168_v56, %s10288_s14 }
0x2df3   :  { %6307 = vrot.lane.b32.xlu0 %v11596_v38, %s10282_s16 }
0x2df7   :  { %6417 = vrot.lane.b32.xlu0 %v11596_v38, %s10284_s22 }
0x2dfb   :  { %6527 = vrot.lane.b32.xlu0 %v11596_v38, %s10283_s18 }
0x2dff   :  { %6637 = vrot.lane.b32.xlu0 %v11596_v38, %s10285_s23 }
0x2e0a   :  { %6632 = vadd.xlane.f32.xlu1 %v6631_v28 }
0x2e56   :  { %v6303_v47 = vpop.xlane.xlu0 %6302 }
0x2e57   :  { %10132 = vrcp.f32 %v6303_v47  ;;  %v9930_v47 = vld [vmem:[%s12015_s21 + $0x18] sm:$0xff]  }
0x2e5e   :  { %v6413_v49 = vpop.xlane.xlu1 %6412 }
0x2e5f   :  { %10134 = vrcp.f32 %v6413_v49 }
0x2e62   :  { %v6184_v54 = vpop.permute.xlu1 %6183 }
0x2e63   :  { %v6188_v56 = vsel %vm1028_vm5, %v6187_v36, %v6184_v54 }
0x2e64   :  { %v6189_v59 = vpack.c.bf16 %v6188_v56, %v6188_v56  ;;  %v10133_v38 = vpop.eup %10132 }
0x2e65   :  { %v6305_v61 = vmul.f32 %v10133_v38, %v10125_v33 }
0x2e66   :  { %9583 = vmatmul.mubr.msk.bf16.vlgmr.msra.gmra.mxu1 %vm483_vm0, %v6189_v59  ;;  %v6523_v51 = vpop.xlane.xlu0 %6522 }
0x2e67   :  { %9594 = vmatprep.mubr.msk.bf16.mxu1 %vm10274_vm1, %v10273_v63  ;;  %10136 = vrcp.f32 %v6523_v51  ;;  %v6306_v13 = vpack.c.bf16 %v6305_v61, %v6305_v61 }
0x2e6a   :  { %v6308_v2 = vpop.permute.xlu0 %6307 }
0x2e6b   :  { %v6313_v4 = vsel %vm633_vm3, %v6308_v2, 0 }
0x2e6c   :  { %9593 = vmatpush3.bf16.msra.mxu1 %v6313_v4  ;;  %v10135_v6 = vpop.eup %10134 }
0x2e6d   :  { %9604 = vmatprep.subr.bf16.mxu1 %v10273_v63  ;;  %v6415_v11 = vmul.f32 %v10135_v6, %v10127_v30 }
0x2e6e   :  { %v6418_v1 = vpop.permute.xlu0 %6417 }
0x2e6f   :  { %v6423_v45 = vsel %vm633_vm3, %v6418_v1, 0  ;;  %9595 = vmatmul.mubr.msk.bf16.vlgmr.msra.gmra.mxu1 %vm569_vm2, %v6306_v13  ;;  %v6416_v57 = vpack.c.bf16 %v6415_v11, %v6415_v11  ;;  %v9933_v13 = vld [vmem:[%s12016_s25 + $0x10] sm:$0xff]  }
0x2e70   :  { %9605 = vmatpush3.bf16.msra.mxu1 %v6423_v45  ;;  %9606 = vmatprep.mubr.msk.bf16.mxu1 %vm10274_vm1, %v10273_v63 }
0x2e71   :  { %9616 = vmatprep.subr.bf16.mxu1 %v10273_v63 }
0x2e72   :  { %v6528_v3 = vpop.permute.xlu0 %6527 }
0x2e73   :  { %v6533_v44 = vsel %vm633_vm3, %v6528_v3, 0 }
0x2e74   :  { %v10137_v7 = vpop.eup %10136 }
0x2e75   :  { %v6525_v9 = vmul.f32 %v10137_v7, %v10129_v21 }
0x2e76   :  { %v6638_v10 = vpop.permute.xlu0 %6637 }
0x2e77   :  { %9607 = vmatmul.mubr.msk.bf16.vlgmr.msra.gmra.mxu1 %vm569_vm2, %v6416_v57  ;;  %v6526_v48 = vpack.c.bf16 %v6525_v9, %v6525_v9  ;;  %v6643_v53 = vsel %vm633_vm3, %v6638_v10, 0  ;;  %v8559_v10 = vld [vmem:[%s12017_s29 + $0x1] ss:$0 sm:$0xff] }
0x2e78   :  { %9617 = vmatpush3.bf16.msra.mxu1 %v6533_v44  ;;  %9618 = vmatprep.mubr.msk.bf16.mxu1 %vm10274_vm1, %v10273_v63 }
0x2e79   :  { %9628 = vmatprep.subr.bf16.mxu1 %v10273_v63 }
0x2e7f   :  { %9619 = vmatmul.mubr.msk.bf16.vlgmr.msra.gmra.mxu1 %vm569_vm2, %v6526_v48 }
0x2e80   :  { %9629 = vmatpush3.bf16.msra.mxu1 %v6643_v53  ;;  %9630 = vmatprep.mubr.msk.bf16.mxu1 %vm10274_vm1, %v10273_v63 }
0x2e81   :  { %9642 = vmatprep.subr.bf16.mxu1 %v10273_v63 }
0x2e93   :  { %v6633_v15 = vpop.xlane.xlu1 %6632 }
0x2e94   :  { %10138 = vrcp.f32 %v6633_v15 }
0x2ea1   :  { %v10139_v14 = vpop.eup %10138 }
0x2ea2   :  { %v6635_v27 = vmul.f32 %v10139_v14, %v10131_v43 }
0x2ea4   :  { %v6636_v16 = vpack.c.bf16 %v6635_v27, %v6635_v27 }
0x2ea6   :  { %9631 = vmatmul.mubr.msk.bf16.vlgmr.msra.gmra.mxu1 %vm569_vm2, %v6636_v16 }
0x2ea7   :  { %9646 = vmatprep.mubr.msk.bf16.mxu1 %vm10274_vm1, %v10273_v63 }
0x2f26   :  { %v6239_v0 = vpop.f32.mrf.mxu1 }
0x2f27   :  { %v11720_v35 = vadd.f32 %v6239_v0, %v11508_v19  ;;  %v9931_v19 = vld [vmem:[%s12015_s21 + $0x10] sm:$0xff]  }
0x2f28   :  { %v9584_v55 = vpop.f32.mrf.mxu1 }
0x2f29   :  { %v6763_v31 = vmul.f32 %v11720_v35, %v11720_v35 }
0x2f2a   :  { %v6242_v17 = vpop.f32.mrf.mxu1 }
0x2f2b   :  { %v6765_v52 = vsel %vm483_vm0, %v6763_v31, 0.0 }
0x2f2c   :  { %v9585_v5 = vpop.f32.mrf.mxu1 }
0x2f2f   :  { %v6349_v20 = vpop.f32.mrf.mxu1 }
0x2f31   :  { %v9596_v18 = vpop.f32.mrf.mxu1 }
0x2f33   :  { %v6352_v58 = vpop.f32.mrf.mxu1 }
0x2f35   :  { %v9597_v62 = vpop.f32.mrf.mxu1 }
0x2f37   :  { %v6459_v25 = vpop.f32.mrf.mxu1 }
0x2f38   :  { %6686 = vrot.lane.b32.xlu0 %v6459_v25, %s10287_s28 }
0x2f39   :  { %v9608_v22 = vpop.f32.mrf.mxu1 }
0x2f3b   :  { %v6462_v26 = vpop.f32.mrf.mxu1 }
0x2f3d   :  { %v9609_v60 = vpop.f32.mrf.mxu1 }
0x2f3f   :  { %v6569_v32 = vpop.f32.mrf.mxu1 }
0x2f40   :  { %6690 = vrot.lane.b32.xlu0 %v6569_v32, %s10286_s26 }
0x2f41   :  { %v9620_v24 = vpop.f32.mrf.mxu1 }
0x2f43   :  { %v6572_v33 = vpop.f32.mrf.mxu1 }
0x2f44   :  { %v10198_v33 = vld [vmem:[%s12018_s3] ss:$0 sm:$0xff] }
0x2f45   :  { %v9621_v8 = vpop.f32.mrf.mxu1 }
0x2f66   :  { %v6679_v29 = vpop.f32.mrf.mxu1 }
0x2f67   :  { %6694 = vrot.lane.b32.xlu0 %v6679_v29, %s10288_s14 }
0x2f68   :  { %v9632_v30 = vpop.f32.mrf.mxu1 }
0x2f6a   :  { %v6682_v34 = vpop.f32.mrf.mxu1 }
0x2f6c   :  { %v9633_v21 = vpop.f32.mrf.mxu1 }
0x2f86   :  { %6766 = vadd.xlane.f32.xlu0 %v6765_v52 }
0x2faa   :  { %v6687_v12 = vpop.permute.xlu0 %6686 }
0x2fab   :  { %v6697_v40 = vsel %vm569_vm2, %v6349_v20, %v6687_v12 }
0x2fb2   :  { %v6691_v39 = vpop.permute.xlu0 %6690 }
0x2fb3   :  { %v6698_v43 = vsel %vm1026_vm4, %v6697_v40, %v6691_v39 }
0x2fd9   :  { %v6695_v28 = vpop.permute.xlu0 %6694 }
0x2fda   :  { %v6699_v46 = vsel %vm1028_vm5, %v6698_v43, %v6695_v28 }
0x2fdb   :  { %v6700_v37 = vpack.c.bf16 %v6699_v46, %v6699_v46 }
0x2fdd   :  { %9639 = vmatmul.mubr.msk.bf16.vlgmr.msra.gmra.mxu0 %vm483_vm0, %v6700_v37 }
0x2fde   :  { %9651 = vmatpush3.bf16.msra.mxu0 %v9930_v47  ;;  %9654 = vmatprep.mubr.msk.bf16.mxu0 %vm10274_vm1, %v10273_v63 }
0x2fdf   :  { %9652 = vmatprep.subr.bf16.mxu0 %v10273_v63 }
0x2fe2   :  { %9653 = vmatpush3.bf16.msra.mxu0 %v9931_v19 }
0x2fe3   :  { %9664 = vmatprep.subr.bf16.mxu0 %v10273_v63 }
0x2fe5   :  { %9655 = vmatmul.mubr.msk.bf16.vlgmr.msra.gmra.mxu0 %vm483_vm0, %v11281_v41 }
0x2fe6   :  { %9666 = vmatprep.mubr.msk.bf16.mxu0 %vm10274_vm1, %v10273_v63 }
0x300f   :  { %v6767_v6 = vpop.xlane.xlu0 %6766 }
0x3010   :  { %v6771_v1 = vmul.f32 0.03125, %v6767_v6 }
0x3012   :  { %v6773_v45 = vadd.f32 1e-06, %v6771_v1 }
0x3014   :  { %10140 = vrsqrt.f32 %v6773_v45 }
0x3021   :  { %v10141_v7 = vpop.eup %10140 }
0x3022   :  { %v6777_v44 = vmul.f32 %v10141_v7, %v11720_v35 }
0x3024   :  { %v6785_v53 = vmul.f32 %v8559_v10, %v6777_v44 }
0x309d   :  { %v6738_v49 = vpop.f32.mrf.mxu0 }
0x309e   :  { %v11740_v50 = vadd.f32 %v6738_v49, %v11512_v23  ;;  %v9932_v23 = vld [vmem:[%s12016_s25 + $0x18] sm:$0xff]  }
0x309f   :  { %v9640_v36 = vpop.f32.mrf.mxu0  ;;  %9643 = vmatpush3.bf16.msra.mxu1 %v9932_v23 }
0x30a0   :  { %v6764_v54 = vmul.f32 %v11740_v50, %v11740_v50  ;;  %9644 = vmatprep.subr.bf16.mxu1 %v10273_v63 }
0x30a1   :  { %v6741_v56 = vpop.f32.mrf.mxu0 }
0x30a2   :  { %v6768_v59 = vsel %vm483_vm0, %v6764_v54, 0.0 }
0x30a3   :  { %6769 = vadd.xlane.f32.xlu1 %v6768_v59  ;;  %v9641_v38 = vpop.f32.mrf.mxu0  ;;  %9645 = vmatpush3.bf16.msra.mxu1 %v9933_v13 }
0x30a4   :  { %9658 = vmatprep.subr.bf16.mxu1 %v10273_v63 }
0x30a5   :  { %v6890_v51 = vpop.f32.mrf.mxu0 }
0x30a6   :  { %v11747_v4 = vpack.c.bf16 %v6890_v51, %v6890_v51 }
0x30a7   :  { %v9656_v41 = vpop.f32.mrf.mxu0 }
0x30a8   :  { %v6903_v27 = vsel %vm569_vm2, %v11747_v4, 0 }
0x30a9   :  { %v11745_v61 = vpop.f32.mrf.mxu0 }
0x30ab   :  { %v9657_v2 = vpop.f32.mrf.mxu0 }
0x30b4   :  { %7009 = vrot.lane.b32.xlu1 %v11747_v4, %s10275_s0 }
0x312c   :  { %v6770_v11 = vpop.xlane.xlu1 %6769 }
0x312d   :  { %v6772_v3 = vmul.f32 0.03125, %v6770_v11 }
0x312f   :  { %v6774_v57 = vadd.f32 1e-06, %v6772_v3 }
0x3130   :  { %v7010_v0 = vpop.permute.xlu1 %7009 }
0x3131   :  { %10142 = vrsqrt.f32 %v6774_v57  ;;  %v7015_v5 = vsel %vm569_vm2, %v7010_v0, 0 }
0x313e   :  { %v10143_v9 = vpop.eup %10142 }
0x313f   :  { %v6778_v48 = vmul.f32 %v10143_v9, %v11740_v50 }
0x3141   :  { %v6786_v15 = vmul.f32 %v8559_v10, %v6778_v48 }
0x3143   :  { %v6787_v14 = vpack.c.bf16 %v6786_v15, %v6785_v53 }
0x3145   :  { %9647 = vmatmul.mubr.msk.bf16.vlgmr.msra.gmra.mxu1 %vm483_vm0, %v6787_v14  ;;  %v11807_v14 = vpack.c.bf16 %v11745_v61, %v11745_v61 }
0x3146   :  { %9659 = vmatpush3.bf16.xpose.msra.mxu1 %v6903_v27  ;;  %9660 = vmatprep.mubr.msk.bf16.mxu1 %vm10274_vm1, %v10273_v63 }
0x3147   :  { %9670 = vmatprep.subr.bf16.mxu1 %v10273_v63 }
0x3205   :  { %v6837_v16 = vpop.f32.mrf.mxu1 }
0x3206   :  { %v6897_v55 = vpack.c.bf16 %v6837_v16, %v6837_v16 }
0x3207   :  { %v9648_v17 = vpop.f32.mrf.mxu1 }
0x3208   :  { %7117 = vrot.lane.b32.xlu0 %v6897_v55, %s10279_s10  ;;  %7007 = vrot.lane.b32.xlu1 %v6897_v55, %s10275_s0 }
0x3209   :  { %9661 = vmatmul.mubr.msk.bf16.vlgmr.msra.gmra.mxu1 %vm569_vm2, %v6897_v55  ;;  %v11768_v20 = vpop.f32.mrf.mxu1 }
0x320a   :  { %9671 = vmatpush3.bf16.xpose.msra.mxu1 %v7015_v5  ;;  %9672 = vmatprep.mubr.msk.bf16.mxu1 %vm10274_vm1, %v10273_v63  ;;  %v7408_v61 = vpack.c.bf16 %v11768_v20, %v11768_v20 }
0x320b   :  { %v9649_v18 = vpop.f32.mrf.mxu1  ;;  %9682 = vmatprep.subr.bf16.mxu1 %v10273_v63 }
0x320c   :  { %7119 = vrot.lane.b32.xlu1 %v11747_v4, %s10279_s10 }
0x3210   :  { %7229 = vrot.lane.b32.xlu1 %v11747_v4, %s10281_s15 }
0x3214   :  { %7227 = vrot.lane.b32.xlu1 %v6897_v55, %s10281_s15 }
0x327a   :  { %v7008_v58 = vpop.permute.xlu1 %7007  ;;  %v7118_v26 = vpop.permute.xlu0 %7117 }
0x327b   :  { %9673 = vmatmul.mubr.msk.bf16.vlgmr.msra.gmra.mxu1 %vm569_vm2, %v7008_v58 }
0x327c   :  { %9684 = vmatprep.mubr.msk.bf16.mxu1 %vm10274_vm1, %v10273_v63 }
0x327e   :  { %v7120_v62 = vpop.permute.xlu1 %7119 }
0x327f   :  { %v7125_v25 = vsel %vm569_vm2, %v7120_v62, 0 }
0x3280   :  { %9683 = vmatpush3.bf16.xpose.msra.mxu1 %v7125_v25 }
0x3281   :  { %9694 = vmatprep.subr.bf16.mxu1 %v10273_v63 }
0x3282   :  { %v7230_v22 = vpop.permute.xlu1 %7229 }
0x3283   :  { %v7235_v60 = vsel %vm569_vm2, %v7230_v22, 0 }
0x3286   :  { %v7228_v32 = vpop.permute.xlu1 %7227 }
0x3287   :  { %9685 = vmatmul.mubr.msk.bf16.vlgmr.msra.gmra.mxu1 %vm569_vm2, %v7118_v26 }
0x3288   :  { %9695 = vmatpush3.bf16.xpose.msra.mxu1 %v7235_v60  ;;  %9696 = vmatprep.mubr.msk.bf16.mxu1 %vm10274_vm1, %v10273_v63 }
0x3289   :  { %9706 = vmatprep.subr.bf16.mxu1 %v10273_v63 }
0x328f   :  { %9697 = vmatmul.mubr.msk.bf16.vlgmr.msra.gmra.mxu1 %vm569_vm2, %v7228_v32 }
0x3290   :  { %9710 = vmatprep.mubr.msk.bf16.mxu1 %vm10274_vm1, %v10273_v63 }
0x32c9   :  { %v6939_v24 = vpop.f32.mrf.mxu1 }
0x32ca   :  { %v6940_v8 = vadd.f32 %v10198_v33, %v6939_v24 }
0x32cb   :  { %v9662_v29 = vpop.f32.mrf.mxu1 }
0x32cc   :  { %v6945_v30 = vsel %vm569_vm2, %v6940_v8, -inf }
0x32cd   :  { %6946 = vmax.xlane.f32.xlu1 %v6945_v30  ;;  %v6942_v34 = vpop.f32.mrf.mxu1 }
0x32cf   :  { %v9663_v21 = vpop.f32.mrf.mxu1 }
0x333b   :  { %v7051_v31 = vpop.f32.mrf.mxu1 }
0x333c   :  { %v7052_v52 = vadd.f32 %v10198_v33, %v7051_v31 }
0x333d   :  { %v9674_v12 = vpop.f32.mrf.mxu1 }
0x333e   :  { %v7057_v39 = vsel %vm569_vm2, %v7052_v52, -inf }
0x333f   :  { %7058 = vmax.xlane.f32.xlu0 %v7057_v39  ;;  %v7054_v40 = vpop.f32.mrf.mxu1 }
0x3340   :  { %v7414_v40 = vsel %vm569_vm2, %v11807_v14, 0 }
0x3341   :  { %v9675_v43 = vpop.f32.mrf.mxu1 }
0x3347   :  { %v7161_v28 = vpop.f32.mrf.mxu1 }
0x3348   :  { %v7162_v46 = vadd.f32 %v10198_v33, %v7161_v28 }
0x3349   :  { %v9686_v47 = vpop.f32.mrf.mxu1 }
0x334a   :  { %v7167_v37 = vsel %vm569_vm2, %v7162_v46, -inf }
0x334b   :  { %7168 = vmax.xlane.f32.xlu1 %v7167_v37  ;;  %v7164_v19 = vpop.f32.mrf.mxu1 }
0x334d   :  { %v9687_v49 = vpop.f32.mrf.mxu1 }
0x334f   :  { %v7271_v36 = vpop.f32.mrf.mxu1 }
0x3350   :  { %v7272_v54 = vadd.f32 %v10198_v33, %v7271_v36 }
0x3351   :  { %v9698_v56 = vpop.f32.mrf.mxu1 }
0x3352   :  { %v7277_v59 = vsel %vm569_vm2, %v7272_v54, -inf }
0x3353   :  { %7278 = vmax.xlane.f32.xlu1 %v7277_v59  ;;  %v7274_v38 = vpop.f32.mrf.mxu1 }
0x3355   :  { %v9699_v51 = vpop.f32.mrf.mxu1 }
0x3356   :  { %v6947_v41 = vpop.xlane.xlu1 %6946 }
0x3357   :  { %v6948_v2 = vsub.f32 %v6940_v8, %v6947_v41 }
0x3359   :  { %v6949_v23 = vmul.f32 1.442695, %v6948_v2 }
0x335b   :  { %10144 = vpow2.f32 %v6949_v23 }
0x3368   :  { %v10145_v13 = vpop.eup %10144 }
0x3369   :  { %v6951_v6 = vsel %vm569_vm2, %v10145_v13, 0.0 }
0x336a   :  { %6952 = vadd.xlane.f32.xlu0 %v6951_v6 }
0x33c8   :  { %v7059_v1 = vpop.xlane.xlu0 %7058 }
0x33c9   :  { %v7060_v45 = vsub.f32 %v7052_v52, %v7059_v1 }
0x33cb   :  { %v7061_v11 = vmul.f32 1.442695, %v7060_v45 }
0x33cd   :  { %10146 = vpow2.f32 %v7061_v11 }
0x33d4   :  { %v7169_v3 = vpop.xlane.xlu1 %7168 }
0x33d5   :  { %v7170_v57 = vsub.f32 %v7162_v46, %v7169_v3 }
0x33d7   :  { %v7171_v7 = vmul.f32 1.442695, %v7170_v57 }
0x33d9   :  { %10148 = vpow2.f32 %v7171_v7 }
0x33da   :  { %v10147_v44 = vpop.eup %10146 }
0x33db   :  { %v7063_v9 = vsel %vm569_vm2, %v10147_v44, 0.0 }
0x33dc   :  { %7064 = vadd.xlane.f32.xlu1 %v7063_v9  ;;  %v7279_v53 = vpop.xlane.xlu1 %7278 }
0x33dd   :  { %v7280_v15 = vsub.f32 %v7272_v54, %v7279_v53 }
0x33df   :  { %v7281_v27 = vmul.f32 1.442695, %v7280_v15 }
0x33e1   :  { %10150 = vpow2.f32 %v7281_v27 }
0x33e6   :  { %v10149_v10 = vpop.eup %10148 }
0x33e7   :  { %v7173_v48 = vsel %vm569_vm2, %v10149_v10, 0.0 }
0x33e8   :  { %7174 = vadd.xlane.f32.xlu0 %v7173_v48 }
0x33ed   :  { %7069 = vrot.lane.b32.xlu1 %v11747_v4, %s10277_s9 }
0x33ee   :  { %v10151_v16 = vpop.eup %10150 }
0x33ef   :  { %v7283_v0 = vsel %vm569_vm2, %v10151_v16, 0.0 }
0x33f1   :  { %7179 = vrot.lane.b32.xlu1 %v11747_v4, %s10278_s7 }
0x33f3   :  { %v6953_v55 = vpop.xlane.xlu0 %6952 }
0x33f4   :  { %10152 = vrcp.f32 %v6953_v55 }
0x33fe   :  { %6958 = vrot.lane.b32.xlu0 %v11747_v4, %s10276_s5 }
0x3401   :  { %v10153_v5 = vpop.eup %10152 }
0x3402   :  { %7520 = vrot.lane.b32.xlu0 %v11807_v14, %s10275_s0  ;;  %v6955_v58 = vmul.f32 %v10153_v5, %v10145_v13 }
0x3404   :  { %v6956_v20 = vpack.c.bf16 %v6955_v58, %v6955_v58 }
0x3406   :  { %7630 = vrot.lane.b32.xlu0 %v11807_v14, %s10279_s10 }
0x340a   :  { %7740 = vrot.lane.b32.xlu0 %v11807_v14, %s10281_s15 }
0x3415   :  { %7284 = vadd.xlane.f32.xlu1 %v7283_v0 }
0x3426   :  { %7289 = vrot.lane.b32.xlu1 %v11747_v4, %s10280_s11 }
0x342a   :  { %7518 = vrot.lane.b32.xlu1 %v7408_v61, %s10275_s0 }
0x342e   :  { %7628 = vrot.lane.b32.xlu1 %v7408_v61, %s10279_s10 }
0x3432   :  { %7738 = vrot.lane.b32.xlu1 %v7408_v61, %s10281_s15 }
0x3465   :  { %v7065_v17 = vpop.xlane.xlu1 %7064 }
0x3466   :  { %10154 = vrcp.f32 %v7065_v17 }
0x3469   :  { %v7070_v25 = vpop.permute.xlu1 %7069 }
0x346a   :  { %v7075_v26 = vsel %vm633_vm3, %v7070_v25, 0 }
0x346d   :  { %v7180_v32 = vpop.permute.xlu1 %7179 }
0x346e   :  { %v7185_v8 = vsel %vm633_vm3, %v7180_v32, 0 }
0x3471   :  { %v7175_v18 = vpop.xlane.xlu0 %7174 }
0x3472   :  { %10156 = vrcp.f32 %v7175_v18 }
0x3473   :  { %v10155_v22 = vpop.eup %10154 }
0x3474   :  { %v7067_v60 = vmul.f32 %v10155_v22, %v10147_v44 }
0x3475   :  { %v6959_v62 = vpop.permute.xlu0 %6958 }
0x3476   :  { %v6964_v4 = vsel %vm633_vm3, %v6959_v62, 0  ;;  %v7068_v24 = vpack.c.bf16 %v7067_v60, %v7067_v60 }
0x3477   :  { %9665 = vmatpush3.bf16.msra.mxu0 %v6964_v4 }
0x3478   :  { %9676 = vmatprep.subr.bf16.mxu0 %v10273_v63 }
0x3479   :  { %v7521_v43 = vpop.permute.xlu0 %7520 }
0x347a   :  { %9667 = vmatmul.mubr.msk.bf16.vlgmr.msra.gmra.mxu0 %vm569_vm2, %v6956_v20  ;;  %v7526_v28 = vsel %vm569_vm2, %v7521_v43, 0 }
0x347b   :  { %9677 = vmatpush3.bf16.msra.mxu0 %v7075_v26  ;;  %9678 = vmatprep.mubr.msk.bf16.mxu0 %vm10274_vm1, %v10273_v63 }
0x347c   :  { %9688 = vmatprep.subr.bf16.mxu0 %v10273_v63 }
0x347d   :  { %v7631_v46 = vpop.permute.xlu0 %7630 }
0x347e   :  { %v7636_v37 = vsel %vm569_vm2, %v7631_v46, 0 }
0x347f   :  { %v10157_v33 = vpop.eup %10156 }
0x3480   :  { %v7177_v29 = vmul.f32 %v10157_v33, %v10149_v10  ;;  %v10199_v10 = vld [vmem:[%s12018_s3 + $0x1] ss:$0 sm:$0xff] }
0x3481   :  { %v7741_v19 = vpop.permute.xlu0 %7740 }
0x3482   :  { %9679 = vmatmul.mubr.msk.bf16.vlgmr.msra.gmra.mxu0 %vm569_vm2, %v7068_v24  ;;  %v7178_v30 = vpack.c.bf16 %v7177_v29, %v7177_v29  ;;  %v7746_v36 = vsel %vm569_vm2, %v7741_v19, 0 }
0x3483   :  { %9689 = vmatpush3.bf16.msra.mxu0 %v7185_v8  ;;  %9690 = vmatprep.mubr.msk.bf16.mxu0 %vm10274_vm1, %v10273_v63 }
0x3484   :  { %9700 = vmatprep.subr.bf16.mxu0 %v10273_v63 }
0x348a   :  { %9691 = vmatmul.mubr.msk.bf16.vlgmr.msra.gmra.mxu0 %vm569_vm2, %v7178_v30 }
0x348b   :  { %9702 = vmatprep.mubr.msk.bf16.mxu0 %vm10274_vm1, %v10273_v63 }
0x349e   :  { %v7285_v34 = vpop.xlane.xlu1 %7284 }
0x349f   :  { %10158 = vrcp.f32 %v7285_v34 }
0x34a2   :  { %v7290_v21 = vpop.permute.xlu1 %7289 }
0x34a3   :  { %v7295_v31 = vsel %vm633_vm3, %v7290_v21, 0 }
0x34a4   :  { %9701 = vmatpush3.bf16.msra.mxu0 %v7295_v31 }
0x34a5   :  { %9714 = vmatprep.subr.bf16.mxu0 %v10273_v63 }
0x34a6   :  { %v7519_v47 = vpop.permute.xlu1 %7518 }
0x34aa   :  { %v7629_v49 = vpop.permute.xlu1 %7628 }
0x34ac   :  { %v10159_v52 = vpop.eup %10158 }
0x34ad   :  { %v7287_v12 = vmul.f32 %v10159_v52, %v10151_v16 }
0x34ae   :  { %v7739_v54 = vpop.permute.xlu1 %7738 }
0x34af   :  { %v7288_v39 = vpack.c.bf16 %v7287_v12, %v7287_v12 }
0x34b1   :  { %9703 = vmatmul.mubr.msk.bf16.vlgmr.msra.gmra.mxu0 %vm569_vm2, %v7288_v39 }
0x34b2   :  { %9715 = vmatpush3.bf16.xpose.msra.mxu0 %v7414_v40  ;;  %9716 = vmatprep.mubr.msk.bf16.mxu0 %vm10274_vm1, %v10273_v63 }
0x34b3   :  { %9726 = vmatprep.subr.bf16.mxu0 %v10273_v63 }
0x34b9   :  { %9717 = vmatmul.mubr.msk.bf16.vlgmr.msra.gmra.mxu0 %vm569_vm2, %v7408_v61 }
0x34ba   :  { %9727 = vmatpush3.bf16.xpose.msra.mxu0 %v7526_v28  ;;  %9728 = vmatprep.mubr.msk.bf16.mxu0 %vm10274_vm1, %v10273_v63 }
0x34bb   :  { %9738 = vmatprep.subr.bf16.mxu0 %v10273_v63 }
0x34c1   :  { %9729 = vmatmul.mubr.msk.bf16.vlgmr.msra.gmra.mxu0 %vm569_vm2, %v7519_v47 }
0x34c2   :  { %9739 = vmatpush3.bf16.xpose.msra.mxu0 %v7636_v37  ;;  %9740 = vmatprep.mubr.msk.bf16.mxu0 %vm10274_vm1, %v10273_v63 }
0x34c3   :  { %9750 = vmatprep.subr.bf16.mxu0 %v10273_v63 }
0x34c9   :  { %9741 = vmatmul.mubr.msk.bf16.vlgmr.msra.gmra.mxu0 %vm569_vm2, %v7629_v49  ;;  %v9934_v49 = vld [vmem:[%s12019_s19 + $0x18] sm:$0xff]  }
0x34ca   :  { %9751 = vmatpush3.bf16.xpose.msra.mxu0 %v7746_v36  ;;  %9752 = vmatprep.mubr.msk.bf16.mxu0 %vm10274_vm1, %v10273_v63  ;;  %v9935_v36 = vld [vmem:[%s12019_s19 + $0x10] sm:$0xff]  }
0x34cb   :  { %9762 = vmatprep.subr.bf16.mxu0 %v10273_v63  ;;  %9707 = vmatpush3.bf16.msra.mxu1 %v9934_v49 }
0x34cc   :  { %9708 = vmatprep.subr.bf16.mxu1 %v10273_v63 }
0x34cf   :  { %9709 = vmatpush3.bf16.msra.mxu1 %v9935_v36 }
0x34d0   :  { %9720 = vmatprep.subr.bf16.mxu1 %v10273_v63 }
0x34d1   :  { %9753 = vmatmul.mubr.msk.bf16.vlgmr.msra.gmra.mxu0 %vm569_vm2, %v7739_v54 }
0x34d2   :  { %9766 = vmatprep.mubr.msk.bf16.mxu0 %vm10274_vm1, %v10273_v63  ;;  %9763 = vmatpush3.bf16.msra.mxu0 %v9934_v49 }
0x34d3   :  { %9764 = vmatprep.subr.bf16.mxu0 %v10273_v63 }
0x34d6   :  { %9765 = vmatpush3.bf16.msra.mxu0 %v9935_v36 }
0x34d7   :  { %9778 = vmatprep.subr.bf16.mxu0 %v10273_v63 }
0x353a   :  { %v11864_v56 = vpop.f32.mrf.mxu0 }
0x353c   :  { %v9668_v59 = vpop.f32.mrf.mxu0 }
0x353e   :  { %v7003_v38 = vpop.f32.mrf.mxu0 }
0x3540   :  { %v9669_v51 = vpop.f32.mrf.mxu0 }
0x3542   :  { %v7111_v41 = vpop.f32.mrf.mxu0 }
0x3544   :  { %v9680_v2 = vpop.f32.mrf.mxu0 }
0x3546   :  { %v7114_v23 = vpop.f32.mrf.mxu0 }
0x3548   :  { %v9681_v13 = vpop.f32.mrf.mxu0 }
0x354a   :  { %v7221_v6 = vpop.f32.mrf.mxu0 }
0x354c   :  { %v9692_v1 = vpop.f32.mrf.mxu0 }
0x354e   :  { %v7224_v45 = vpop.f32.mrf.mxu0 }
0x3550   :  { %v9693_v11 = vpop.f32.mrf.mxu0 }
0x3571   :  { %v11866_v3 = vpop.f32.mrf.mxu0 }
0x3573   :  { %v9704_v57 = vpop.f32.mrf.mxu0 }
0x3575   :  { %v7334_v7 = vpop.f32.mrf.mxu0 }
0x3577   :  { %v9705_v44 = vpop.f32.mrf.mxu0 }
0x3579   :  { %v7450_v9 = vpop.f32.mrf.mxu0 }
0x357a   :  { %v7451_v48 = vadd.f32 %v10199_v10, %v7450_v9 }
0x357b   :  { %v9718_v53 = vpop.f32.mrf.mxu0 }
0x357c   :  { %v7456_v15 = vsel %vm569_vm2, %v7451_v48, -inf }
0x357d   :  { %7457 = vmax.xlane.f32.xlu0 %v7456_v15  ;;  %v7453_v27 = vpop.f32.mrf.mxu0 }
0x357f   :  { %v9719_v16 = vpop.f32.mrf.mxu0 }
0x3581   :  { %v7562_v0 = vpop.f32.mrf.mxu0 }
0x3582   :  { %v7563_v61 = vadd.f32 %v10199_v10, %v7562_v0 }
0x3583   :  { %v9730_v55 = vpop.f32.mrf.mxu0 }
0x3584   :  { %v7568_v17 = vsel %vm569_vm2, %v7563_v61, -inf }
0x3585   :  { %7569 = vmax.xlane.f32.xlu1 %v7568_v17  ;;  %v7565_v5 = vpop.f32.mrf.mxu0 }
0x3587   :  { %v9731_v18 = vpop.f32.mrf.mxu0 }
0x3589   :  { %v7672_v58 = vpop.f32.mrf.mxu0 }
0x358a   :  { %v7673_v62 = vadd.f32 %v10199_v10, %v7672_v58 }
0x358b   :  { %v9742_v4 = vpop.f32.mrf.mxu0 }
0x358c   :  { %v7678_v25 = vsel %vm569_vm2, %v7673_v62, -inf }
0x358d   :  { %7679 = vmax.xlane.f32.xlu0 %v7678_v25  ;;  %v7675_v20 = vpop.f32.mrf.mxu0 }
0x358f   :  { %v9743_v22 = vpop.f32.mrf.mxu0 }
0x3591   :  { %v7782_v26 = vpop.f32.mrf.mxu0 }
0x3592   :  { %v7783_v60 = vadd.f32 %v10199_v10, %v7782_v26 }
0x3593   :  { %v9754_v32 = vpop.f32.mrf.mxu0 }
0x3594   :  { %v7788_v24 = vsel %vm569_vm2, %v7783_v60, -inf }
0x3595   :  { %7789 = vmax.xlane.f32.xlu0 %v7788_v24  ;;  %v7785_v33 = vpop.f32.mrf.mxu0 }
0x3596   :  { %7338 = vrot.lane.b32.xlu1 %v7111_v41, %s10287_s28 }
0x3597   :  { %v9755_v8 = vpop.f32.mrf.mxu0 }
0x35ab   :  { %7342 = vrot.lane.b32.xlu0 %v7221_v6, %s10286_s26 }
0x3606   :  { %v7458_v29 = vpop.xlane.xlu0 %7457 }
0x3607   :  { %v7459_v30 = vsub.f32 %v7451_v48, %v7458_v29 }
0x3609   :  { %v7460_v34 = vmul.f32 1.442695, %v7459_v30 }
0x360b   :  { %10160 = vpow2.f32 %v7460_v34 }
0x360e   :  { %v7570_v21 = vpop.xlane.xlu1 %7569 }
0x360f   :  { %v7571_v31 = vsub.f32 %v7563_v61, %v7570_v21 }
0x3611   :  { %v7572_v52 = vmul.f32 1.442695, %v7571_v31 }
0x3612   :  { %v7339_v13 = vpop.permute.xlu1 %7338 }
0x3613   :  { %10162 = vpow2.f32 %v7572_v52  ;;  %v7349_v1 = vsel %vm569_vm2, %v11864_v56, %v7339_v13 }
0x3616   :  { %v7680_v12 = vpop.xlane.xlu0 %7679 }
0x3617   :  { %v7681_v39 = vsub.f32 %v7673_v62, %v7680_v12 }
0x3618   :  { %v10161_v40 = vpop.eup %10160 }
0x3619   :  { %v7682_v43 = vmul.f32 1.442695, %v7681_v39  ;;  %v7462_v28 = vsel %vm569_vm2, %v10161_v40, 0.0 }
0x361a   :  { %7463 = vadd.xlane.f32.xlu0 %v7462_v28 }
0x361b   :  { %10164 = vpow2.f32 %v7682_v43 }
0x361e   :  { %v7790_v54 = vpop.xlane.xlu0 %7789 }
0x361f   :  { %v7791_v59 = vsub.f32 %v7783_v60, %v7790_v54 }
0x3620   :  { %v10163_v46 = vpop.eup %10162 }
0x3621   :  { %v7574_v47 = vsel %vm569_vm2, %v10163_v46, 0.0  ;;  %v7792_v38 = vmul.f32 1.442695, %v7791_v59 }
0x3622   :  { %7575 = vadd.xlane.f32.xlu1 %v7574_v47  ;;  %v7343_v2 = vpop.permute.xlu0 %7342 }
0x3623   :  { %10166 = vpow2.f32 %v7792_v38  ;;  %v7350_v45 = vsel %vm1026_vm4, %v7349_v1, %v7343_v2 }
0x3628   :  { %v10165_v37 = vpop.eup %10164 }
0x3629   :  { %v7684_v19 = vsel %vm569_vm2, %v10165_v37, 0.0 }
0x362a   :  { %7685 = vadd.xlane.f32.xlu0 %v7684_v19 }
0x3630   :  { %v10167_v51 = vpop.eup %10166 }
0x3631   :  { %v7794_v41 = vsel %vm569_vm2, %v10167_v51, 0.0 }
0x3633   :  { %7346 = vrot.lane.b32.xlu1 %v11866_v3, %s10288_s14 }
0x3640   :  { %7469 = vrot.lane.b32.xlu0 %v11807_v14, %s10276_s5 }
0x3644   :  { %7580 = vrot.lane.b32.xlu0 %v11807_v14, %s10277_s9 }
0x3648   :  { %7690 = vrot.lane.b32.xlu0 %v11807_v14, %s10278_s7 }
0x364c   :  { %7800 = vrot.lane.b32.xlu0 %v11807_v14, %s10280_s11 }
0x3657   :  { %7795 = vadd.xlane.f32.xlu1 %v7794_v41 }
0x36a3   :  { %v7464_v23 = vpop.xlane.xlu0 %7463 }
0x36a4   :  { %10168 = vrcp.f32 %v7464_v23 }
0x36ab   :  { %v7576_v6 = vpop.xlane.xlu1 %7575 }
0x36ac   :  { %10170 = vrcp.f32 %v7576_v6 }
0x36af   :  { %v7347_v11 = vpop.permute.xlu1 %7346 }
0x36b0   :  { %v7351_v3 = vsel %vm1028_vm5, %v7350_v45, %v7347_v11 }
0x36b1   :  { %v7352_v57 = vpack.c.bf16 %v7351_v3, %v7351_v3  ;;  %v10169_v14 = vpop.eup %10168  ;;  %v9936_v3 = vld [vmem:[%s12020_s24 + $0x18] sm:$0xff]  }
0x36b2   :  { %v7466_v44 = vmul.f32 %v10169_v14, %v10161_v40  ;;  %v9938_v14 = vld [vmem:[%s12021_s1 + $0x38] sm:$0xff]  }
0x36b3   :  { %9711 = vmatmul.mubr.msk.bf16.vlgmr.msra.gmra.mxu1 %vm483_vm0, %v7352_v57  ;;  %v7686_v7 = vpop.xlane.xlu0 %7685  ;;  %v9937_v57 = vld [vmem:[%s12020_s24 + $0x10] sm:$0xff]  }
0x36b4   :  { %9722 = vmatprep.mubr.msk.bf16.mxu1 %vm10274_vm1, %v10273_v63  ;;  %10172 = vrcp.f32 %v7686_v7  ;;  %v7467_v56 = vpack.c.bf16 %v7466_v44, %v7466_v44  ;;  %v9939_v7 = vld [vmem:[%s12021_s1 + $0x30] sm:$0xff]  }
0x36b7   :  { %v7470_v9 = vpop.permute.xlu0 %7469 }
0x36b8   :  { %v7475_v10 = vsel %vm633_vm3, %v7470_v9, 0 }
0x36b9   :  { %9721 = vmatpush3.bf16.msra.mxu1 %v7475_v10  ;;  %v10171_v48 = vpop.eup %10170 }
0x36ba   :  { %9732 = vmatprep.subr.bf16.mxu1 %v10273_v63  ;;  %v7578_v27 = vmul.f32 %v10171_v48, %v10163_v46 }
0x36bb   :  { %v7581_v53 = vpop.permute.xlu0 %7580 }
0x36bc   :  { %v7586_v15 = vsel %vm633_vm3, %v7581_v53, 0  ;;  %9723 = vmatmul.mubr.msk.bf16.vlgmr.msra.gmra.mxu1 %vm569_vm2, %v7467_v56  ;;  %v7579_v0 = vpack.c.bf16 %v7578_v27, %v7578_v27 }
0x36bd   :  { %9733 = vmatpush3.bf16.msra.mxu1 %v7586_v15  ;;  %9734 = vmatprep.mubr.msk.bf16.mxu1 %vm10274_vm1, %v10273_v63 }
0x36be   :  { %9744 = vmatprep.subr.bf16.mxu1 %v10273_v63 }
0x36bf   :  { %v7691_v16 = vpop.permute.xlu0 %7690 }
0x36c0   :  { %v7696_v55 = vsel %vm633_vm3, %v7691_v16, 0  ;;  %v8599_v16 = vld [vmem:[%s12022_s2 + $0x1] ss:$0 sm:$0xff] }
0x36c1   :  { %v10173_v61 = vpop.eup %10172 }
0x36c2   :  { %v7688_v17 = vmul.f32 %v10173_v61, %v10165_v37 }
0x36c3   :  { %v7801_v5 = vpop.permute.xlu0 %7800 }
0x36c4   :  { %9735 = vmatmul.mubr.msk.bf16.vlgmr.msra.gmra.mxu1 %vm569_vm2, %v7579_v0  ;;  %v7689_v18 = vpack.c.bf16 %v7688_v17, %v7688_v17  ;;  %v7806_v58 = vsel %vm633_vm3, %v7801_v5, 0  ;;  %v9940_v5 = vld [vmem:[%s12021_s1 + $0x28] sm:$0xff]  }
0x36c5   :  { %9745 = vmatpush3.bf16.msra.mxu1 %v7696_v55  ;;  %9746 = vmatprep.mubr.msk.bf16.mxu1 %vm10274_vm1, %v10273_v63 }
0x36c6   :  { %9756 = vmatprep.subr.bf16.mxu1 %v10273_v63 }
0x36cc   :  { %9747 = vmatmul.mubr.msk.bf16.vlgmr.msra.gmra.mxu1 %vm569_vm2, %v7689_v18  ;;  %v9941_v18 = vld [vmem:[%s12021_s1 + $0x20] sm:$0xff]  }
0x36cd   :  { %9757 = vmatpush3.bf16.msra.mxu1 %v7806_v58  ;;  %9758 = vmatprep.mubr.msk.bf16.mxu1 %vm10274_vm1, %v10273_v63 }
0x36ce   :  { %9770 = vmatprep.subr.bf16.mxu1 %v10273_v63 }
0x36e0   :  { %v7796_v62 = vpop.xlane.xlu1 %7795 }
0x36e1   :  { %10174 = vrcp.f32 %v7796_v62 }
0x36ee   :  { %v10175_v4 = vpop.eup %10174 }
0x36ef   :  { %v7798_v25 = vmul.f32 %v10175_v4, %v10167_v51 }
0x36f1   :  { %v7799_v20 = vpack.c.bf16 %v7798_v25, %v7798_v25 }
0x36f3   :  { %9759 = vmatmul.mubr.msk.bf16.vlgmr.msra.gmra.mxu1 %vm569_vm2, %v7799_v20 }
0x36f4   :  { %9774 = vmatprep.mubr.msk.bf16.mxu1 %vm10274_vm1, %v10273_v63  ;;  %9771 = vmatpush3.bf16.msra.mxu1 %v9936_v3 }
0x36f5   :  { %9772 = vmatprep.subr.bf16.mxu1 %v10273_v63 }
0x36f8   :  { %9773 = vmatpush3.bf16.msra.mxu1 %v9937_v57 }
0x36f9   :  { %9790 = vmatprep.subr.bf16.mxu1 %v10273_v63 }
0x3773   :  { %v7402_v22 = vpop.f32.mrf.mxu1 }
0x3774   :  { %v11926_v37 = vadd.f32 %v7402_v22, %v11720_v35 }
0x3775   :  { %v9712_v26 = vpop.f32.mrf.mxu1 }
0x3776   :  { %v7925_v19 = vmul.f32 %v11926_v37, %v11926_v37 }
0x3777   :  { %v7405_v60 = vpop.f32.mrf.mxu1 }
0x3778   :  { %v7927_v49 = vsel %vm483_vm0, %v7925_v19, 0.0 }
0x3779   :  { %v9713_v32 = vpop.f32.mrf.mxu1 }
0x377c   :  { %v7511_v24 = vpop.f32.mrf.mxu1 }
0x377e   :  { %v9724_v33 = vpop.f32.mrf.mxu1 }
0x3780   :  { %v7514_v8 = vpop.f32.mrf.mxu1 }
0x3782   :  { %v9725_v29 = vpop.f32.mrf.mxu1 }
0x3784   :  { %v7622_v30 = vpop.f32.mrf.mxu1 }
0x3785   :  { %7849 = vrot.lane.b32.xlu0 %v7622_v30, %s10287_s28 }
0x3786   :  { %v9736_v34 = vpop.f32.mrf.mxu1 }
0x3788   :  { %v7625_v21 = vpop.f32.mrf.mxu1 }
0x378a   :  { %v9737_v31 = vpop.f32.mrf.mxu1 }
0x378c   :  { %v7732_v52 = vpop.f32.mrf.mxu1 }
0x378d   :  { %7853 = vrot.lane.b32.xlu0 %v7732_v52, %s10286_s26  ;;  %v9942_v52 = vld [vmem:[%s12023_s30 + $0x8] sm:$0xff]  }
0x378e   :  { %v9748_v12 = vpop.f32.mrf.mxu1 }
0x378f   :  { %v9943_v12 = vld [vmem:[%s12023_s30] sm:$0xff]  }
0x3790   :  { %v7735_v39 = vpop.f32.mrf.mxu1 }
0x3791   :  { %v11963_v39 = vld [vmem:[%s10432_s8] sm:$0xff] }
0x3792   :  { %v9749_v40 = vpop.f32.mrf.mxu1  ;;  %vm8194_vm10 = vcmp.ne.s32.totalorder %v11963_v39, 4294967196 }
0x3793   :  { %v8196_v40 = vsel %vm8194_vm10, %v11963_v39, 0 }
0x37b3   :  { %v7842_v43 = vpop.f32.mrf.mxu1 }
0x37b4   :  { %7857 = vrot.lane.b32.xlu0 %v7842_v43, %s10288_s14 }
0x37b5   :  { %v9760_v28 = vpop.f32.mrf.mxu1 }
0x37b7   :  { %v7845_v46 = vpop.f32.mrf.mxu1 }
0x37b9   :  { %v9761_v47 = vpop.f32.mrf.mxu1 }
0x37d3   :  { %7928 = vadd.xlane.f32.xlu0 %v7927_v49 }
0x37e9   :  { %8199 = vperm.xlu0 %9849, %v8196_v40  }
0x37f7   :  { %v7850_v36 = vpop.permute.xlu0 %7849 }
0x37f8   :  { %v7860_v59 = vsel %vm569_vm2, %v7511_v24, %v7850_v36 }
0x37ff   :  { %v7854_v54 = vpop.permute.xlu0 %7853 }
0x3800   :  { %v7861_v38 = vsel %vm1026_vm4, %v7860_v59, %v7854_v54  ;;  %v8608_v54 = vld [vmem:[%s12024_s6] ss:$0 sm:$0xff] }
0x3826   :  { %v7858_v51 = vpop.permute.xlu0 %7857 }
0x3827   :  { %v7862_v41 = vsel %vm1028_vm5, %v7861_v38, %v7858_v51 }
0x3828   :  { %v7863_v2 = vpack.c.bf16 %v7862_v41, %v7862_v41 }
0x382a   :  { %9767 = vmatmul.mubr.msk.bf16.vlgmr.msra.gmra.mxu0 %vm483_vm0, %v7863_v2 }
0x382b   :  { %9786 = vmatprep.mubr.msk.bf16.mxu0 %vm10274_vm1, %v10273_v63  ;;  %9779 = vmatpush3.bf16.msra.mxu0 %v9938_v14 }
0x382c   :  { %9780 = vmatprep.subr.bf16.mxu0 %v10273_v63 }
0x382f   :  { %9781 = vmatpush3.bf16.msra.mxu0 %v9939_v7 }
0x3830   :  { %9782 = vmatprep.subr.bf16.mxu0 %v10273_v63 }
0x3833   :  { %9783 = vmatpush3.bf16.msra.mxu0 %v9940_v5 }
0x3834   :  { %9784 = vmatprep.subr.bf16.mxu0 %v10273_v63 }
0x3837   :  { %9785 = vmatpush3.bf16.msra.mxu0 %v9941_v18 }
0x38ea   :  { %v7901_v35 = vpop.f32.mrf.mxu0 }
0x38eb   :  { %v7908_v23 = vadd.f32 %v7901_v35, %v11740_v50  ;;  %v7929_v50 = vpop.xlane.xlu0 %7928 }
0x38ec   :  { %v9768_v13 = vpop.f32.mrf.mxu0  ;;  %v7933_v44 = vmul.f32 0.03125, %v7929_v50 }
0x38ed   :  { %v7926_v6 = vmul.f32 %v7908_v23, %v7908_v23 }
0x38ee   :  { %v7904_v1 = vpop.f32.mrf.mxu0  ;;  %v7935_v9 = vadd.f32 1e-06, %v7933_v44 }
0x38ef   :  { %v7930_v45 = vsel %vm483_vm0, %v7926_v6, 0.0 }
0x38f0   :  { %7931 = vadd.xlane.f32.xlu1 %v7930_v45  ;;  %v9769_v11 = vpop.f32.mrf.mxu0  ;;  %10176 = vrsqrt.f32 %v7935_v9 }
0x38fd   :  { %v10177_v53 = vpop.eup %10176 }
0x38fe   :  { %v7939_v15 = vmul.f32 %v10177_v53, %v11926_v37 }
0x3900   :  { %v7947_v61 = vmul.f32 %v8599_v16, %v7939_v15  ;;  %v8200_v15 = vpop.permute.xlu0 %8199 }
0x3901   :  { %vm8204_vm13 = vcmp.eq.s32.totalorder %v11013_v42, %v8200_v15 }
0x3979   :  { %v7932_v10 = vpop.xlane.xlu1 %7931 }
0x397a   :  { %v7934_v56 = vmul.f32 0.03125, %v7932_v10 }
0x397c   :  { %v7936_v48 = vadd.f32 1e-06, %v7934_v56 }
0x397e   :  { %10178 = vrsqrt.f32 %v7936_v48  ;;  %v8193_v48 = vld [vmem:[%s10432_s8 + $0x8] sm:$0xff] }
0x397f   :  { %vm8195_vm12 = vcmp.ne.s32.totalorder %v8193_v48, 4294967196 }
0x3980   :  { %v8197_v53 = vsel %vm8195_vm12, %v8193_v48, 0 }
0x398b   :  { %v10179_v27 = vpop.eup %10178 }
0x398c   :  { %v7940_v0 = vmul.f32 %v10179_v27, %v7908_v23 }
0x398e   :  { %v7948_v55 = vmul.f32 %v8599_v16, %v7940_v0 }
0x3990   :  { %v7949_v17 = vpack.c.bf16 %v7948_v55, %v7947_v61 }
0x3992   :  { %9775 = vmatmul.mubr.msk.bf16.vlgmr.msra.gmra.mxu1 %vm483_vm0, %v7949_v17 }
0x3993   :  { %9794 = vmatprep.mubr.msk.bf16.mxu1 %vm10274_vm1, %v10273_v63  ;;  %9791 = vmatpush3.bf16.msra.mxu1 %v9942_v52 }
0x3994   :  { %9792 = vmatprep.subr.bf16.mxu1 %v10273_v63 }
0x3997   :  { %9793 = vmatpush3.bf16.msra.mxu1 %v9943_v12 }
0x3a52   :  { %v7999_v58 = vpop.f32.mrf.mxu1 }
0x3a53   :  { %v8006_v25 = vmax.f32 %v7999_v58, 0.0 }
0x3a54   :  { %v9776_v62 = vpop.f32.mrf.mxu1 }
0x3a56   :  { %v8002_v4 = vpop.f32.mrf.mxu1 }
0x3a57   :  { %v8007_v20 = vmax.f32 %v8002_v4, 0.0 }
0x3a58   :  { %v9777_v22 = vpop.f32.mrf.mxu1 }
0x3a59   :  { %v8008_v26 = vpack.c.bf16 %v8007_v20, %v8006_v25 }
0x3a5b   :  { %9787 = vmatmul.mubr.msk.bf16.vlgmr.msra.gmra.mxu0 %vm1716_vm6, %v8008_v26 }
0x3b1b   :  { %v8070_v60 = vpop.f32.mrf.mxu0 }
0x3b1c   :  { %v8077_v32 = vadd.f32 %v8070_v60, %v11926_v37 }
0x3b1d   :  { %v9788_v24 = vpop.f32.mrf.mxu0 }
0x3b1e   :  { %v8080_v33 = vmul.f32 %v8077_v32, %v8077_v32 }
0x3b1f   :  { %v8073_v8 = vpop.f32.mrf.mxu0 }
0x3b20   :  { %v8078_v29 = vadd.f32 %v8073_v8, %v7908_v23  ;;  %v8082_v30 = vsel %vm483_vm0, %v8080_v33, 0.0 }
0x3b21   :  { %8083 = vadd.xlane.f32.xlu1 %v8082_v30  ;;  %v9789_v34 = vpop.f32.mrf.mxu0 }
0x3b22   :  { %v8081_v21 = vmul.f32 %v8078_v29, %v8078_v29 }
0x3b24   :  { %v8085_v31 = vsel %vm483_vm0, %v8081_v21, 0.0 }
0x3b25   :  { %8086 = vadd.xlane.f32.xlu1 %v8085_v31 }
0x3baa   :  { %v8084_v43 = vpop.xlane.xlu1 %8083 }
0x3bab   :  { %v8088_v28 = vmul.f32 0.03125, %v8084_v43 }
0x3bad   :  { %v8090_v46 = vadd.f32 1e-06, %v8088_v28 }
0x3bae   :  { %v8087_v47 = vpop.xlane.xlu1 %8086 }
0x3baf   :  { %10180 = vrsqrt.f32 %v8090_v46  ;;  %v8089_v37 = vmul.f32 0.03125, %v8087_v47 }
0x3bb1   :  { %v8091_v19 = vadd.f32 1e-06, %v8089_v37 }
0x3bb3   :  { %10182 = vrsqrt.f32 %v8091_v19 }
0x3bbc   :  { %v10181_v49 = vpop.eup %10180 }
0x3bbd   :  { %v8094_v36 = vmul.f32 %v10181_v49, %v8077_v32 }
0x3bbf   :  { %v8102_v38 = vmul.f32 %v8608_v54, %v8094_v36 }
0x3bc0   :  { %v10183_v59 = vpop.eup %10182 }
0x3bc1   :  { %v8095_v51 = vmul.f32 %v10183_v59, %v8078_v29  ;;  %v8104_v2 = vmul.f32 0.17677669, %v8102_v38 }
0x3bc3   :  { %v8103_v41 = vmul.f32 %v8608_v54, %v8095_v51 }
0x3bc5   :  { %v8105_v35 = vmul.f32 0.17677669, %v8103_v41 }
0x3bc7   :  { %v8110_v23 = vpack.c.bf16 %v8105_v35, %v8104_v2 }
0x3bc9   :  { %9795 = vmatmul.mubr.msk.bf16.vlgmr.msra.gmra.mxu1 %vm483_vm0, %v8110_v23 }
0x3c89   :  { %v8160_v13 = vpop.f32.mrf.mxu1 }
0x3c8a   :  { %v8168_v6 = vsel %vm8167_vm11, %v8160_v13, -1e+30 }
0x3c8b   :  { %8170 = vst [vmem:[%s10442_s27] sm:$0xff] %v8168_v6  ;;  %8172 = vmax.xlane.f32.xlu1 %v8168_v6  ;;  %v9796_v1 = vpop.f32.mrf.mxu1  ;;  %v8206_v27 = vsel %vm8204_vm13, %v8168_v6, 0.0 }
0x3c8d   :  { %v8163_v45 = vpop.f32.mrf.mxu1 }
0x3c8e   :  { %v8169_v11 = vsel %vm8167_vm11, %v8163_v45, -1e+30 }
0x3c8f   :  { %8171 = vst [vmem:[%s10442_s27 + $0x8] sm:$0xff] %v8169_v11  ;;  %8174 = vmax.xlane.f32.xlu1 %v8169_v11  ;;  %v9797_v3 = vpop.f32.mrf.mxu1  ;;  %s8249_s27 = sshll.u32 %s10291_s20, 4  ;;  %s8250_s27 = int_to_ptr.vmem [resolvable:$true] %s8249_s27 }
0x3c90   :  { %s10200_s8 = scalar_lea.vmem %s8250_s27, 256  ;;  %p10205_p1 = scmp.lt.s32.totalorder %s8250_s27, %s8250_s27 }
0x3c91   :  { %p10201_p0 = scmp.ne.s32.totalorder %s8250_s27, %s10200_s8  ;;  %p10206_p2 = scmp.lt.s32.totalorder %s10200_s8, %s10200_s8 }
0x3c93   :  { %p10207_p3 = por %p10206_p2, %p10205_p1 }
0x3c95   :  { %p10208_p4 = pnand %p10207_p3, %p10201_p0 }
0x3d14   :  { %v8173_v57 = vpop.xlane.xlu1 %8172 }
0x3d15   :  { %v8176_v14 = vsub.f32 %v8168_v6, %v8173_v57 }
0x3d17   :  { %v8178_v7 = vmul.f32 1.442695, %v8176_v14 }
0x3d18   :  { %v8175_v50 = vpop.xlane.xlu1 %8174 }
0x3d19   :  { %10184 = vpow2.f32 %v8178_v7  ;;  %v8177_v44 = vsub.f32 %v8169_v11, %v8175_v50 }
0x3d1b   :  { %v8180_v9 = vmul.f32 1.442695, %v8177_v44 }
0x3d1d   :  { %10186 = vpow2.f32 %v8180_v9 }
0x3d26   :  { %v10185_v10 = vpop.eup %10184 }
0x3d27   :  { %8182 = vadd.xlane.f32.xlu1 %v10185_v10 }
0x3d2a   :  { %v10187_v56 = vpop.eup %10186 }
0x3d2b   :  { %8184 = vadd.xlane.f32.xlu1 %v10187_v56 }
0x3d3c   :  { %8202 = vperm.xlu1 %9848, %v8197_v53  }
0x3d60   :  { %8208 = vadd.xlane.f32.xlu1 %v8206_v27 }
0x3db0   :  { %v8183_v16 = vpop.xlane.xlu1 %8182 }
0x3db4   :  { %v8185_v0 = vpop.xlane.xlu1 %8184 }
0x3db8   :  { %v8203_v61 = vpop.permute.xlu1 %8202 }
0x3db9   :  { %vm8205_vm14 = vcmp.eq.s32.totalorder %v11013_v42, %v8203_v61 }
0x3dba   :  { %v8207_v55 = vsel %vm8205_vm14, %v8169_v11, 0.0 }
0x3dbb   :  { %8210 = vadd.xlane.f32.xlu0 %v8207_v55 }
0x3dbc   :  { %10211 = shalt.err (!%p10208_p4)
}
0x3dbd   :  { %s10292_s0 = smov 128   ;;  %v8613_v17 = vsel %vm8195_vm12, 1.0, %v10273_v63  ;;  %v8612_v42 = vsel %vm8194_vm10, 1.0, %v10273_v63  ;;  %vm8220_vm15 = vcmask 7168   ;;  %10188 = vlog2.f32 %v8183_v16 }
0x3dbe   :  { %8255 = dma.vmem_to_hbm [thread:$0]  %s8250_s27, 256, %s10437_s12, [#allocation3], %s10292_s0, %s10292_s0, %s10287_s28   ;;  %v8230_v5 = vsel %vm8220_vm15, %v8612_v42, 0.0  ;;  %v8231_v18 = vsel %vm8220_vm15, %v8613_v17, 0.0  ;;  %10190 = vlog2.f32 %v8185_v0  ;;  %vm8242_vm0 = vcmask 0  }
0x3dbf   :  { %v8232_v58 = vadd.f32 %v8231_v18, %v8230_v5  ;;  %s10293_s12 = smov [#allocation4]  }
0x3dc0   :  { %s8264_s5 = sshll.u32 %s10293_s12, 4  ;;  %s8265_s5 = int_to_ptr.vmem [resolvable:$true] %s8264_s5 }
0x3dc1   :  { %v8233_v62 = vrot.slane %v8232_v58, 4  ;;  %s10220_s9 = scalar_lea.vmem %s8265_s5, 16  ;;  %s10224_s7 = scalar_lea.vmem %s8265_s5, 32 }
0x3dc2   :  { %p10221_p5 = scmp.ne.s32.totalorder %s8265_s5, %s10220_s9  ;;  %p10225_p6 = scmp.lt.s32.totalorder %s8265_s5, %s8265_s5 }
0x3dc3   :  { %v8234_v4 = vadd.f32 %v8233_v62, %v8232_v58  ;;  %p10226_p7 = scmp.lt.s32.totalorder %s10224_s7, %s10220_s9 }
0x3dc5   :  { %v8235_v25 = vrot.slane %v8234_v4, 2  ;;  %p10227_p8 = por %p10226_p7, %p10225_p6 }
0x3dc7   :  { %v8236_v22 = vadd.f32 %v8235_v25, %v8234_v4  ;;  %p10228_p9 = pnand %p10227_p8, %p10221_p5 }
0x3dc9   :  { %v8237_v32 = vrot.slane %v8236_v22, 1 }
0x3dca   :  { %v10189_v20 = vpop.eup %10188 }
0x3dcb   :  { %v8187_v26 = vmul.f32 0.6931472, %v10189_v20  ;;  %v10191_v60 = vpop.eup %10190  ;;  %v8238_v63 = vadd.f32 %v8237_v32, %v8236_v22 }
0x3dcc   :  { %v8189_v33 = vmul.f32 0.6931472, %v10191_v60 }
0x3dcd   :  { %v8190_v8 = vadd.f32 %v8187_v26, %v8173_v57  ;;  %v8239_v34 = vmax.f32 %v8238_v63, 1.0 }
0x3dce   :  { %v8191_v30 = vadd.f32 %v8189_v33, %v8175_v50 }
0x3dcf   :  { %10192 = vrcp.f32 %v8239_v34 }
0x3ddc   :  { %v10193_v49 = vpop.eup %10192 }
0x3de9   :  { %v8209_v24 = vpop.xlane.xlu1 %8208 }
0x3dea   :  { %v8212_v29 = vsub.f32 %v8190_v8, %v8209_v24 }
0x3dec   :  { %v8218_v31 = vmul.f32 %v8612_v42, %v8212_v29 }
0x3dee   :  { %v8221_v39 = vsel %vm8220_vm15, %v8218_v31, 0.0 }
0x3e44   :  { %v8211_v21 = vpop.xlane.xlu0 %8210 }
0x3e45   :  { %v8213_v52 = vsub.f32 %v8191_v30, %v8211_v21 }
0x3e47   :  { %v8219_v12 = vmul.f32 %v8613_v17, %v8213_v52 }
0x3e49   :  { %v8222_v40 = vsel %vm8220_vm15, %v8219_v12, 0.0 }
0x3e4a   :  { %v8223_v43 = vadd.f32 %v8222_v40, %v8221_v39 }
0x3e4c   :  { %v8224_v28 = vrot.slane %v8223_v43, 4 }
0x3e4e   :  { %v8225_v46 = vadd.f32 %v8224_v28, %v8223_v43 }
0x3e50   :  { %v8226_v47 = vrot.slane %v8225_v46, 2 }
0x3e52   :  { %v8227_v37 = vadd.f32 %v8226_v47, %v8225_v46 }
0x3e54   :  { %v8228_v19 = vrot.slane %v8227_v37, 1 }
0x3e56   :  { %v8229_v36 = vadd.f32 %v8228_v19, %v8227_v37 }
0x3e58   :  { %v8241_v54 = vmul.f32 %v10193_v49, %v8229_v36 }
0x3e5a   :  { %8243 = vst.msk [vmem:[#allocation4] sm:$0x1] %vm8242_vm0, %v8241_v54 }
0x3e5b   :  { %10231 = shalt.err (!%p10228_p9)
}
0x3e5c   :  { %8267 = dma.vmem_to_hbm [thread:$0]  %s8265_s5, 16, %s10447_s4, [#allocation5]  }
0x3e5d   :  { %10240 = dma.done.wait [#allocation3], 256  }
0x3e5e   :  { %10241 = vsyncadd [#allocation3], 4294967040 }
0x3e5f   :  { %10242 = dma.done.wait [#allocation5], 16  }
0x3e60   :  { %10243 = vsyncadd [#allocation5], 4294967280 }
0x3e61   :  { %8276 = vsyncpa [#allocation3], 1 }
0x3e62   :  { %8277 = vsyncpa [#allocation5], 1 }

</bundles_post_ra>
